<compile_context>
chip_gen: v6e
topology: v6e:2x2x1
jax: 0.10.0
libtpu: 0.0.40
codegen_flags: <defaults>
</compile_context>

<pallas_src>
import functools
import math

import jax
import jax.numpy as jnp
from jax.experimental import pallas as pl
from jax.experimental.pallas import tpu as pltpu

NEG_INF = -1e30  # additive-mask value (same softmax result as -inf, safer numerics)


# ------------------------------ fused Pallas kernel ------------------------------

def _decoder_kernel(ids_ref, mem_ref, tgtmask_ref, padmask_ref, pe_ref, emb_ref,
                    sa_w_ref, sa_b_ref, sa_wo_ref, sa_bo_ref,
                    ca_w_ref, ca_b_ref, ca_wo_ref, ca_bo_ref,
                    ln_g_ref, ln_b_ref,
                    w1_ref, b1_ref, w2_ref, b2_ref,
                    wout_ref, bout_ref,
                    out_ref,
                    *, n_heads, ffn_chunk):
    B, Sk, D = mem_ref.shape
    S = tgtmask_ref.shape[0]
    M = ids_ref.shape[0]                 # B * S
    VE = emb_ref.shape[0]                # padded embedding rows
    n_layers, _, dff = w1_ref.shape
    Dh = D // n_heads
    scale = 1.0 / math.sqrt(Dh)

    # ---- embedding gather (one-hot matmul, data-dependent gather stays in VMEM)
    ids = ids_ref[...]                                       # (M, 1) int32
    iota = jax.lax.broadcasted_iota(jnp.int32, (M, VE), 1)
    onehot = jnp.where(ids == iota, 1.0, 0.0)                # (M, VE) f32
    emb2 = jnp.dot(onehot, emb_ref[...], preferred_element_type=jnp.float32)

    # ---- positional encoding add ----
    pe = pe_ref[0:1, :S, :]                                  # (1, S, D)
    x2 = (emb2.reshape(B, S, D) + pe).reshape(M, D)          # (M, D) f32

    mem2b = mem_ref[...].reshape(B * Sk, D).astype(jnp.bfloat16)

    tgt_mask = tgtmask_ref[...]                              # (S, S) additive
    pad_add = padmask_ref[...]                               # (B, S) additive

    def add_layer_norm(a, b, g, beta):
        # LayerNorm(a + b), eps=1e-5 (PyTorch default); one-pass variance.
        h = a + b
        mu = jnp.mean(h, axis=-1, keepdims=True)
        ms = jnp.mean(h * h, axis=-1, keepdims=True)
        var = ms - mu * mu
        return (h - mu) * jax.lax.rsqrt(var + 1e-5) * g + beta

    def softmax(s):
        m = jnp.max(s, axis=-1, keepdims=True)
        p = jnp.exp(s - m)
        return p * pl.reciprocal(jnp.sum(p, axis=-1, keepdims=True), approx=True)

    def mha(xqb, kvb, skv, w_ref, b_ref, wo_ref, bo_ref, l, masked):
        # xqb: (M, D) bf16 query rows; kvb: (B*skv, D) bf16 key/value rows.
        # w_ref[l, i] is the (D, D) transposed projection weight of q/k/v.
        q2 = jnp.dot(xqb, w_ref[l, 0], preferred_element_type=jnp.float32) + b_ref[l, 0]
        k2 = jnp.dot(kvb, w_ref[l, 1], preferred_element_type=jnp.float32) + b_ref[l, 1]
        v2 = jnp.dot(kvb, w_ref[l, 2], preferred_element_type=jnp.float32) + b_ref[l, 2]
        q3 = q2.reshape(B, S, D)
        k3 = k2.reshape(B, skv, D)
        v3 = v2.reshape(B, skv, D)

        # TODO(synk): per-head score/context einsums kept with a single batch
        # dim (proven Mosaic lowering) instead of a 2-batch-dim 4D einsum.
        ctxs = []
        for h in range(n_heads):
            lo, hi = h * Dh, (h + 1) * Dh
            s = jnp.einsum('bqd,bkd->bqk', q3[:, :, lo:hi], k3[:, :, lo:hi],
                           preferred_element_type=jnp.float32) * scale
            if masked:
                s = s + tgt_mask[None] + pad_add[:, None, :]
            p = softmax(s)
            ctxs.append(jnp.einsum('bqk,bkd->bqd', p, v3[:, :, lo:hi],
                                   preferred_element_type=jnp.float32))
        ctx = jnp.concatenate(ctxs, axis=-1).reshape(M, D)   # (M, D)
        # concat-over-heads feeds ONE (M, D) @ (D, D) out-projection dot
        return (jnp.dot(ctx.astype(jnp.bfloat16), wo_ref[l],
                        preferred_element_type=jnp.float32) + bo_ref[l])

    for l in range(n_layers):
        lng = ln_g_ref[l]   # (3, D): [ln1_g, ln2_g, ln3_g]
        lnb = ln_b_ref[l]   # (3, D)

        # --- self-attention block -> add & norm1 ---
        x2b = x2.astype(jnp.bfloat16)
        sa = mha(x2b, x2b, S, sa_w_ref, sa_b_ref, sa_wo_ref, sa_bo_ref, l, True)
        x2 = add_layer_norm(x2, sa, lng[0:1, :], lnb[0:1, :])

        # --- cross-attention block -> add & norm2 ---
        x2b = x2.astype(jnp.bfloat16)
        ca = mha(x2b, mem2b, Sk, ca_w_ref, ca_b_ref, ca_wo_ref, ca_bo_ref, l, False)
        x2 = add_layer_norm(x2, ca, lng[1:2, :], lnb[1:2, :])

        # --- feed-forward block (linear -> relu -> linear), chunked over dff ---
        x2b = x2.astype(jnp.bfloat16)
        ff = b2_ref[l]                                       # (1, D) f32, broadcasts
        for c0 in range(0, dff, ffn_chunk):
            c1 = c0 + ffn_chunk
            h1 = jnp.maximum(
                jnp.dot(x2b, w1_ref[l, :, c0:c1],
                        preferred_element_type=jnp.float32) + b1_ref[l, :, c0:c1],
                0.0)                                         # (M, chunk) f32
            ff = ff + jnp.dot(h1.astype(jnp.bfloat16), w2_ref[l, c0:c1, :],
                              preferred_element_type=jnp.float32)
        x2 = add_layer_norm(x2, ff, lng[2:3, :], lnb[2:3, :])

    # final vocab projection; output padded to a lane-dense 128-wide last dim
    out_ref[...] = (jnp.dot(x2.astype(jnp.bfloat16), wout_ref[...],
                            preferred_element_type=jnp.float32) + bout_ref[...])


# ------------------------------ params / packing ------------------------------

def positional_encoding(maxlen, d):
    position = jnp.arange(maxlen, dtype=jnp.float32)[:, None]
    div_term = jnp.exp(jnp.arange(0, d, 2, dtype=jnp.float32) * (-math.log(10000.0) / d))
    pe = jnp.zeros((maxlen, d), jnp.float32)
    pe = pe.at[:, 0::2].set(jnp.sin(position * div_term))
    pe = pe.at[:, 1::2].set(jnp.cos(position * div_term))
    return pe[None]  # (1, maxlen, d)


def init_params(key, vocab, d, dff, n_layers=2):
    keys = iter(jax.random.split(key, 8 + n_layers * 16))

    def w(shape, scale=0.02):
        return scale * jax.random.normal(next(keys), shape, jnp.float32)

    params = {
        'embedding': w((vocab, d), 1.0),
        'out_w': w((vocab, d)), 'out_b': w((vocab,)),
        'layers': [],
    }
    for _ in range(n_layers):
        params['layers'].append(dict(
            sa_in_w=w((3 * d, d)), sa_in_b=w((3 * d,)),
            sa_out_w=w((d, d)),    sa_out_b=w((d,)),
            ca_in_w=w((3 * d, d)), ca_in_b=w((3 * d,)),
            ca_out_w=w((d, d)),    ca_out_b=w((d,)),
            ln1_g=jnp.ones((d,), jnp.float32), ln1_b=jnp.zeros((d,), jnp.float32),
            ln2_g=jnp.ones((d,), jnp.float32), ln2_b=jnp.zeros((d,), jnp.float32),
            ln3_g=jnp.ones((d,), jnp.float32), ln3_b=jnp.zeros((d,), jnp.float32),
            w1=w((dff, d)), b1=w((dff,)),
            w2=w((d, dff)), b2=w((d,)),
        ))
    return params


def pack_params(params, vocab, maxlen):
    """One-time packing of PyTorch-layout params into kernel-ready arrays."""
    D = params['embedding'].shape[1]
    layers = params['layers']

    def qkv_w(name):  # (L, 3, D, D) bf16, lane-aligned per projection
        return jnp.stack([
            jnp.stack([lp[name][i * D:(i + 1) * D, :].T for i in range(3)])
            for lp in layers]).astype(jnp.bfloat16)

    def qkv_b(name):  # (L, 3, 1, D) f32
        return jnp.stack([lp[name].reshape(3, 1, D) for lp in layers])

    packed = dict(
        pe=positional_encoding(maxlen, D),
        sa_w=qkv_w('sa_in_w'), sa_b=qkv_b('sa_in_b'),
        sa_wo=jnp.stack([lp['sa_out_w'].T for lp in layers]).astype(jnp.bfloat16),
        sa_bo=jnp.stack([lp['sa_out_b'][None, :] for lp in layers]),
        ca_w=qkv_w('ca_in_w'), ca_b=qkv_b('ca_in_b'),
        ca_wo=jnp.stack([lp['ca_out_w'].T for lp in layers]).astype(jnp.bfloat16),
        ca_bo=jnp.stack([lp['ca_out_b'][None, :] for lp in layers]),
        ln_g=jnp.stack([jnp.stack([lp['ln1_g'], lp['ln2_g'], lp['ln3_g']]) for lp in layers]),
        ln_b=jnp.stack([jnp.stack([lp['ln1_b'], lp['ln2_b'], lp['ln3_b']]) for lp in layers]),
        w1=jnp.stack([lp['w1'].T for lp in layers]).astype(jnp.bfloat16),     # (L, D, dff)
        b1=jnp.stack([lp['b1'][None, :] for lp in layers]),                   # (L, 1, dff)
        w2=jnp.stack([lp['w2'].T for lp in layers]).astype(jnp.bfloat16),     # (L, dff, D)
        b2=jnp.stack([lp['b2'][None, :] for lp in layers]),                   # (L, 1, D)
    )
    VE = ((vocab + 127) // 128) * 128              # lane-dense padded embedding rows
    Vp = ((vocab + 127) // 128) * 128              # lane-dense padded vocab
    packed['emb'] = jnp.zeros((VE, D), jnp.float32).at[:vocab].set(params['embedding'])
    packed['wout'] = (jnp.zeros((D, Vp), jnp.float32)
                      .at[:, :vocab].set(params['out_w'].T).astype(jnp.bfloat16))
    packed['bout'] = jnp.zeros((1, Vp), jnp.float32).at[:, :vocab].set(params['out_b'])
    return packed


# ------------------------------ forward wrapper ------------------------------

def decoder_forward(packed, x_ids, encoder_outputs,
                    tgt_attention_mask=None, tgt_key_padding_mask=None,
                    *, n_heads, vocab):
    B, S = x_ids.shape
    M = B * S
    Vp = packed['wout'].shape[1]

    ids2 = x_ids.reshape(M, 1).astype(jnp.int32)

    if tgt_attention_mask is None:
        tgt_mask = jnp.zeros((S, S), jnp.float32)
    else:
        tgt_mask = tgt_attention_mask.astype(jnp.float32)
    if tgt_key_padding_mask is None:
        pad_add = jnp.zeros((B, S), jnp.float32)
    else:
        # Note: fully-masked rows give uniform attention instead of PyTorch's NaN.
        pad_add = jnp.where(tgt_key_padding_mask, NEG_INF, 0.0).astype(jnp.float32)

    inputs = (ids2, encoder_outputs.astype(jnp.float32), tgt_mask, pad_add,
              packed['pe'], packed['emb'],
              packed['sa_w'], packed['sa_b'], packed['sa_wo'], packed['sa_bo'],
              packed['ca_w'], packed['ca_b'], packed['ca_wo'], packed['ca_bo'],
              packed['ln_g'], packed['ln_b'],
              packed['w1'], packed['b1'], packed['w2'], packed['b2'],
              packed['wout'], packed['bout'])

    def full_spec(a):
        zeros = (0,) * a.ndim
        return pl.BlockSpec(a.shape, lambda i, z=zeros: z)

    kernel = functools.partial(_decoder_kernel, n_heads=n_heads, ffn_chunk=512)
    out = pl.pallas_call(
        kernel,
        out_shape=jax.ShapeDtypeStruct((M, Vp), jnp.float32),
        grid=(1,),
        in_specs=[full_spec(a) for a in inputs],
        out_specs=pl.BlockSpec((M, Vp), lambda i: (0, 0)),
        compiler_params=pltpu.CompilerParams(
            dimension_semantics=("arbitrary",),
            vmem_limit_bytes=64 * 1024 * 1024),
    )(*inputs)

    return out[:, :vocab].reshape(B, S, vocab)


# ------------------------------ main ------------------------------

if __name__ == "__main__":
    # Config: vocab_size=50, d_model=32, n_heads_decoder=4, maxlen=16,
    # dim_feedforward=2048 (PyTorch TransformerDecoderLayer default).
    vocab, d_model, n_heads, maxlen, dff = 50, 32, 4, 16, 2048
    B, S = 2, 8

    key = jax.random.PRNGKey(0)
    k_param, k_ids, k_mem = jax.random.split(key, 3)

    params = init_params(k_param, vocab, d_model, dff)
    packed = pack_params(params, vocab, maxlen)   # one-time packing (outside jit)

    x_ids = jax.random.randint(k_ids, (B, S), 0, vocab, dtype=jnp.int32)
    encoder_outputs = jax.random.normal(k_mem, (B, S, d_model), jnp.float32)
    # causal mask, same semantics as nn.Transformer.generate_square_subsequent_mask
    tgt_attention_mask = jnp.where(jnp.triu(jnp.ones((S, S), bool), k=1), NEG_INF, 0.0)

    fwd = jax.jit(functools.partial(decoder_forward, n_heads=n_heads, vocab=vocab))
    preds = fwd(packed, x_ids, encoder_outputs,
                tgt_attention_mask=tgt_attention_mask,
                tgt_key_padding_mask=None)
    jax.block_until_ready(preds)

    assert preds.shape == (B, S, vocab) and preds.dtype == jnp.float32
    assert bool(jnp.all(jnp.isfinite(preds)))
    print("KERNEL_OK")
</pallas_src>

<mosaic_0001>
module attributes {stable_mosaic.version = 11 : i64} {
  func.func @_decoder_kernel(%arg0: i32, %arg1: memref<16x1xi32, #tpu.memory_space<vmem>>, %arg2: memref<2x8x32xf32, #tpu.memory_space<vmem>>, %arg3: memref<8x8xf32, #tpu.memory_space<vmem>>, %arg4: memref<2x8xf32, #tpu.memory_space<vmem>>, %arg5: memref<1x16x32xf32, #tpu.memory_space<vmem>>, %arg6: memref<128x32xf32, #tpu.memory_space<vmem>>, %arg7: memref<2x3x32x32xbf16, #tpu.memory_space<vmem>>, %arg8: memref<2x3x1x32xf32, #tpu.memory_space<vmem>>, %arg9: memref<2x32x32xbf16, #tpu.memory_space<vmem>>, %arg10: memref<2x1x32xf32, #tpu.memory_space<vmem>>, %arg11: memref<2x3x32x32xbf16, #tpu.memory_space<vmem>>, %arg12: memref<2x3x1x32xf32, #tpu.memory_space<vmem>>, %arg13: memref<2x32x32xbf16, #tpu.memory_space<vmem>>, %arg14: memref<2x1x32xf32, #tpu.memory_space<vmem>>, %arg15: memref<2x3x32xf32, #tpu.memory_space<vmem>>, %arg16: memref<2x3x32xf32, #tpu.memory_space<vmem>>, %arg17: memref<2x32x2048xbf16, #tpu.memory_space<vmem>>, %arg18: memref<2x1x2048xf32, #tpu.memory_space<vmem>>, %arg19: memref<2x2048x32xbf16, #tpu.memory_space<vmem>>, %arg20: memref<2x1x32xf32, #tpu.memory_space<vmem>>, %arg21: memref<32x128xbf16, #tpu.memory_space<vmem>>, %arg22: memref<1x128xf32, #tpu.memory_space<vmem>>, %arg23: memref<16x128xf32, #tpu.memory_space<vmem>>) attributes {dimension_semantics = [#tpu.dimension_semantics<arbitrary>], iteration_bounds = array<i64: 1>, scalar_prefetch = 0 : i64, scratch_operands = 0 : i64, tpu.core_type = #tpu.core_type<tc>, window_params = [{pipeline_mode = #tpu.pipeline_mode<synchronous>, transform_indices = @transform_0, window_bounds = array<i64: 16, 1>}, {pipeline_mode = #tpu.pipeline_mode<synchronous>, transform_indices = @transform_1, window_bounds = array<i64: 2, 8, 32>}, {pipeline_mode = #tpu.pipeline_mode<synchronous>, transform_indices = @transform_2, window_bounds = array<i64: 8, 8>}, {pipeline_mode = #tpu.pipeline_mode<synchronous>, transform_indices = @transform_3, window_bounds = array<i64: 2, 8>}, {pipeline_mode = #tpu.pipeline_mode<synchronous>, transform_indices = @transform_4, window_bounds = array<i64: 1, 16, 32>}, {pipeline_mode = #tpu.pipeline_mode<synchronous>, transform_indices = @transform_5, window_bounds = array<i64: 128, 32>}, {pipeline_mode = #tpu.pipeline_mode<synchronous>, transform_indices = @transform_6, window_bounds = array<i64: 2, 3, 32, 32>}, {pipeline_mode = #tpu.pipeline_mode<synchronous>, transform_indices = @transform_7, window_bounds = array<i64: 2, 3, 1, 32>}, {pipeline_mode = #tpu.pipeline_mode<synchronous>, transform_indices = @transform_8, window_bounds = array<i64: 2, 32, 32>}, {pipeline_mode = #tpu.pipeline_mode<synchronous>, transform_indices = @transform_9, window_bounds = array<i64: 2, 1, 32>}, {pipeline_mode = #tpu.pipeline_mode<synchronous>, transform_indices = @transform_10, window_bounds = array<i64: 2, 3, 32, 32>}, {pipeline_mode = #tpu.pipeline_mode<synchronous>, transform_indices = @transform_11, window_bounds = array<i64: 2, 3, 1, 32>}, {pipeline_mode = #tpu.pipeline_mode<synchronous>, transform_indices = @transform_12, window_bounds = array<i64: 2, 32, 32>}, {pipeline_mode = #tpu.pipeline_mode<synchronous>, transform_indices = @transform_13, window_bounds = array<i64: 2, 1, 32>}, {pipeline_mode = #tpu.pipeline_mode<synchronous>, transform_indices = @transform_14, window_bounds = array<i64: 2, 3, 32>}, {pipeline_mode = #tpu.pipeline_mode<synchronous>, transform_indices = @transform_15, window_bounds = array<i64: 2, 3, 32>}, {pipeline_mode = #tpu.pipeline_mode<synchronous>, transform_indices = @transform_16, window_bounds = array<i64: 2, 32, 2048>}, {pipeline_mode = #tpu.pipeline_mode<synchronous>, transform_indices = @transform_17, window_bounds = array<i64: 2, 1, 2048>}, {pipeline_mode = #tpu.pipeline_mode<synchronous>, transform_indices = @transform_18, window_bounds = array<i64: 2, 2048, 32>}, {pipeline_mode = #tpu.pipeline_mode<synchronous>, transform_indices = @transform_19, window_bounds = array<i64: 2, 1, 32>}, {pipeline_mode = #tpu.pipeline_mode<synchronous>, transform_indices = @transform_20, window_bounds = array<i64: 32, 128>}, {pipeline_mode = #tpu.pipeline_mode<synchronous>, transform_indices = @transform_21, window_bounds = array<i64: 1, 128>}, {pipeline_mode = #tpu.pipeline_mode<synchronous>, transform_indices = @transform_22, window_bounds = array<i64: 16, 128>}]} {
    %c0 = arith.constant 0 : index
    %c0_0 = arith.constant 0 : index
    %0 = vector.load %arg1[%c0, %c0_0] : memref<16x1xi32, #tpu.memory_space<vmem>>, vector<16x1xi32>
    %1 = tpu.iota {dimensions = array<i32: 1>} : vector<16x128xi32>
    %2 = vector.broadcast %0 : vector<16x1xi32> to vector<16x128xi32>
    %3 = arith.cmpi eq, %2, %1 : vector<16x128xi32>
    %cst = arith.constant 1.000000e+00 : f32
    %cst_1 = arith.constant 0.000000e+00 : f32
    %4 = vector.broadcast %cst : f32 to vector<16x128xf32>
    %5 = vector.broadcast %cst_1 : f32 to vector<16x128xf32>
    %6 = arith.select %3, %4, %5 : vector<16x128xi1>, vector<16x128xf32>
    %c0_2 = arith.constant 0 : index
    %c0_3 = arith.constant 0 : index
    %7 = vector.load %arg6[%c0_2, %c0_3] : memref<128x32xf32, #tpu.memory_space<vmem>>, vector<128x32xf32>
    %cst_4 = arith.constant dense<0.000000e+00> : vector<16x32xf32>
    %8 = tpu.matmul %6, %7, %cst_4 {dimension_numbers = #tpu.dot_dimension_numbers<[1], [0], [0], [1], [0, 0, 1, 1], [], []>} : vector<16x128xf32>, vector<128x32xf32>, vector<16x32xf32> -> vector<16x32xf32>
    %c0_5 = arith.constant 0 : index
    %c0_6 = arith.constant 0 : index
    %c0_7 = arith.constant 0 : index
    %9 = vector.load %arg5[%c0_5, %c0_6, %c0_7] : memref<1x16x32xf32, #tpu.memory_space<vmem>>, vector<1x8x32xf32>
    %10 = vector.shape_cast %8 : vector<16x32xf32> to vector<2x8x32xf32>
    %11 = vector.broadcast %9 : vector<1x8x32xf32> to vector<2x8x32xf32>
    %12 = arith.addf %10, %11 : vector<2x8x32xf32>
    %13 = vector.shape_cast %12 : vector<2x8x32xf32> to vector<16x32xf32>
    %c0_8 = arith.constant 0 : index
    %c0_9 = arith.constant 0 : index
    %c0_10 = arith.constant 0 : index
    %14 = vector.load %arg2[%c0_8, %c0_9, %c0_10] : memref<2x8x32xf32, #tpu.memory_space<vmem>>, vector<2x8x32xf32>
    %15 = vector.shape_cast %14 : vector<2x8x32xf32> to vector<16x32xf32>
    %16 = arith.truncf %15 : vector<16x32xf32> to vector<16x32xbf16>
    %c0_11 = arith.constant 0 : index
    %c0_12 = arith.constant 0 : index
    %17 = vector.load %arg3[%c0_11, %c0_12] : memref<8x8xf32, #tpu.memory_space<vmem>>, vector<8x8xf32>
    %c0_13 = arith.constant 0 : index
    %c0_14 = arith.constant 0 : index
    %18 = vector.load %arg4[%c0_13, %c0_14] : memref<2x8xf32, #tpu.memory_space<vmem>>, vector<2x8xf32>
    %c0_15 = arith.constant 0 : index
    %c0_16 = arith.constant 0 : index
    %c0_17 = arith.constant 0 : index
    %19 = vector.load %arg15[%c0_15, %c0_16, %c0_17] : memref<2x3x32xf32, #tpu.memory_space<vmem>>, vector<1x3x32xf32>
    %20 = vector.shape_cast %19 : vector<1x3x32xf32> to vector<3x32xf32>
    %c0_18 = arith.constant 0 : index
    %c0_19 = arith.constant 0 : index
    %c0_20 = arith.constant 0 : index
    %21 = vector.load %arg16[%c0_18, %c0_19, %c0_20] : memref<2x3x32xf32, #tpu.memory_space<vmem>>, vector<1x3x32xf32>
    %22 = vector.shape_cast %21 : vector<1x3x32xf32> to vector<3x32xf32>
    %23 = arith.truncf %13 : vector<16x32xf32> to vector<16x32xbf16>
    %c0_21 = arith.constant 0 : index
    %c0_22 = arith.constant 0 : index
    %c0_23 = arith.constant 0 : index
    %c0_24 = arith.constant 0 : index
    %24 = vector.load %arg7[%c0_21, %c0_22, %c0_23, %c0_24] : memref<2x3x32x32xbf16, #tpu.memory_space<vmem>>, vector<1x1x32x32xbf16>
    %25 = vector.shape_cast %24 : vector<1x1x32x32xbf16> to vector<32x32xbf16>
    %cst_25 = arith.constant dense<0.000000e+00> : vector<16x32xf32>
    %26 = tpu.matmul %23, %25, %cst_25 {dimension_numbers = #tpu.dot_dimension_numbers<[1], [0], [0], [1], [0, 0, 1, 1], [], []>} : vector<16x32xbf16>, vector<32x32xbf16>, vector<16x32xf32> -> vector<16x32xf32>
    %c0_26 = arith.constant 0 : index
    %c0_27 = arith.constant 0 : index
    %c0_28 = arith.constant 0 : index
    %c0_29 = arith.constant 0 : index
    %27 = vector.load %arg8[%c0_26, %c0_27, %c0_28, %c0_29] : memref<2x3x1x32xf32, #tpu.memory_space<vmem>>, vector<1x1x1x32xf32>
    %28 = vector.shape_cast %27 : vector<1x1x1x32xf32> to vector<1x32xf32>
    %29 = vector.broadcast %28 : vector<1x32xf32> to vector<16x32xf32>
    %30 = arith.addf %26, %29 : vector<16x32xf32>
    %c0_30 = arith.constant 0 : index
    %c1 = arith.constant 1 : index
    %c0_31 = arith.constant 0 : index
    %c0_32 = arith.constant 0 : index
    %31 = vector.load %arg7[%c0_30, %c1, %c0_31, %c0_32] : memref<2x3x32x32xbf16, #tpu.memory_space<vmem>>, vector<1x1x32x32xbf16>
    %32 = vector.shape_cast %31 : vector<1x1x32x32xbf16> to vector<32x32xbf16>
    %cst_33 = arith.constant dense<0.000000e+00> : vector<16x32xf32>
    %33 = tpu.matmul %23, %32, %cst_33 {dimension_numbers = #tpu.dot_dimension_numbers<[1], [0], [0], [1], [0, 0, 1, 1], [], []>} : vector<16x32xbf16>, vector<32x32xbf16>, vector<16x32xf32> -> vector<16x32xf32>
    %c0_34 = arith.constant 0 : index
    %c1_35 = arith.constant 1 : index
    %c0_36 = arith.constant 0 : index
    %c0_37 = arith.constant 0 : index
    %34 = vector.load %arg8[%c0_34, %c1_35, %c0_36, %c0_37] : memref<2x3x1x32xf32, #tpu.memory_space<vmem>>, vector<1x1x1x32xf32>
    %35 = vector.shape_cast %34 : vector<1x1x1x32xf32> to vector<1x32xf32>
    %36 = vector.broadcast %35 : vector<1x32xf32> to vector<16x32xf32>
    %37 = arith.addf %33, %36 : vector<16x32xf32>
    %c0_38 = arith.constant 0 : index
    %c2 = arith.constant 2 : index
    %c0_39 = arith.constant 0 : index
    %c0_40 = arith.constant 0 : index
    %38 = vector.load %arg7[%c0_38, %c2, %c0_39, %c0_40] : memref<2x3x32x32xbf16, #tpu.memory_space<vmem>>, vector<1x1x32x32xbf16>
    %39 = vector.shape_cast %38 : vector<1x1x32x32xbf16> to vector<32x32xbf16>
    %cst_41 = arith.constant dense<0.000000e+00> : vector<16x32xf32>
    %40 = tpu.matmul %23, %39, %cst_41 {dimension_numbers = #tpu.dot_dimension_numbers<[1], [0], [0], [1], [0, 0, 1, 1], [], []>} : vector<16x32xbf16>, vector<32x32xbf16>, vector<16x32xf32> -> vector<16x32xf32>
    %c0_42 = arith.constant 0 : index
    %c2_43 = arith.constant 2 : index
    %c0_44 = arith.constant 0 : index
    %c0_45 = arith.constant 0 : index
    %41 = vector.load %arg8[%c0_42, %c2_43, %c0_44, %c0_45] : memref<2x3x1x32xf32, #tpu.memory_space<vmem>>, vector<1x1x1x32xf32>
    %42 = vector.shape_cast %41 : vector<1x1x1x32xf32> to vector<1x32xf32>
    %43 = vector.broadcast %42 : vector<1x32xf32> to vector<16x32xf32>
    %44 = arith.addf %40, %43 : vector<16x32xf32>
    %45 = vector.shape_cast %30 : vector<16x32xf32> to vector<2x8x32xf32>
    %46 = vector.shape_cast %37 : vector<16x32xf32> to vector<2x8x32xf32>
    %47 = vector.shape_cast %44 : vector<16x32xf32> to vector<2x8x32xf32>
    %48 = vector.extract_strided_slice %45 {offsets = [0, 0, 0], sizes = [2, 8, 8], strides = [1, 1, 1]} : vector<2x8x32xf32> to vector<2x8x8xf32>
    %49 = vector.extract_strided_slice %46 {offsets = [0, 0, 0], sizes = [2, 8, 8], strides = [1, 1, 1]} : vector<2x8x32xf32> to vector<2x8x8xf32>
    "tpu.trace_start"() <{level = 10 : i32, message = "bqd,bkd->bqk"}> : () -> ()
    %cst_46 = arith.constant dense<0.000000e+00> : vector<2x8x8xf32>
    %50 = tpu.matmul %48, %49, %cst_46 {dimension_numbers = #tpu.dot_dimension_numbers<[2], [2], [1], [1], [0, 0, 0, 1, 1, 1], [0], [0]>} : vector<2x8x8xf32>, vector<2x8x8xf32>, vector<2x8x8xf32> -> vector<2x8x8xf32>
    "tpu.trace_stop"() : () -> ()
    %cst_47 = arith.constant 0.353553385 : f32
    %51 = vector.broadcast %cst_47 : f32 to vector<2x8x8xf32>
    %52 = arith.mulf %50, %51 : vector<2x8x8xf32>
    %53 = vector.shape_cast %17 : vector<8x8xf32> to vector<1x8x8xf32>
    %54 = vector.broadcast %53 : vector<1x8x8xf32> to vector<2x8x8xf32>
    %55 = arith.addf %52, %54 : vector<2x8x8xf32>
    %56 = vector.shape_cast %18 : vector<2x8xf32> to vector<2x1x8xf32>
    %57 = vector.broadcast %56 : vector<2x1x8xf32> to vector<2x8x8xf32>
    %58 = arith.addf %55, %57 : vector<2x8x8xf32>
    %cst_48 = arith.constant dense<0xFF800000> : vector<2x8xf32>
    %59 = vector.multi_reduction <maximumf>, %58, %cst_48 [2] : vector<2x8x8xf32> to vector<2x8xf32>
    %60 = vector.shape_cast %59 : vector<2x8xf32> to vector<2x8x1xf32>
    %61 = vector.broadcast %60 : vector<2x8x1xf32> to vector<2x8x8xf32>
    %62 = arith.subf %58, %61 : vector<2x8x8xf32>
    %63 = math.exp %62 : vector<2x8x8xf32>
    %cst_49 = arith.constant dense<0.000000e+00> : vector<2x8xf32>
    %64 = vector.multi_reduction <add>, %63, %cst_49 [2] : vector<2x8x8xf32> to vector<2x8xf32>
    %65 = vector.shape_cast %64 : vector<2x8xf32> to vector<2x8x1xf32>
    %66 = tpu.reciprocal %65 {approx = true} : vector<2x8x1xf32> -> vector<2x8x1xf32>
    %67 = vector.broadcast %66 : vector<2x8x1xf32> to vector<2x8x8xf32>
    %68 = arith.mulf %63, %67 : vector<2x8x8xf32>
    %69 = vector.extract_strided_slice %47 {offsets = [0, 0, 0], sizes = [2, 8, 8], strides = [1, 1, 1]} : vector<2x8x32xf32> to vector<2x8x8xf32>
    "tpu.trace_start"() <{level = 10 : i32, message = "bqk,bkd->bqd"}> : () -> ()
    %cst_50 = arith.constant dense<0.000000e+00> : vector<2x8x8xf32>
    %70 = tpu.matmul %68, %69, %cst_50 {dimension_numbers = #tpu.dot_dimension_numbers<[2], [1], [1], [2], [0, 0, 0, 1, 1, 2], [0], [0]>} : vector<2x8x8xf32>, vector<2x8x8xf32>, vector<2x8x8xf32> -> vector<2x8x8xf32>
    "tpu.trace_stop"() : () -> ()
    %71 = vector.extract_strided_slice %45 {offsets = [0, 0, 8], sizes = [2, 8, 8], strides = [1, 1, 1]} : vector<2x8x32xf32> to vector<2x8x8xf32>
    %72 = vector.extract_strided_slice %46 {offsets = [0, 0, 8], sizes = [2, 8, 8], strides = [1, 1, 1]} : vector<2x8x32xf32> to vector<2x8x8xf32>
    "tpu.trace_start"() <{level = 10 : i32, message = "bqd,bkd->bqk"}> : () -> ()
    %cst_51 = arith.constant dense<0.000000e+00> : vector<2x8x8xf32>
    %73 = tpu.matmul %71, %72, %cst_51 {dimension_numbers = #tpu.dot_dimension_numbers<[2], [2], [1], [1], [0, 0, 0, 1, 1, 1], [0], [0]>} : vector<2x8x8xf32>, vector<2x8x8xf32>, vector<2x8x8xf32> -> vector<2x8x8xf32>
    "tpu.trace_stop"() : () -> ()
    %cst_52 = arith.constant 0.353553385 : f32
    %74 = vector.broadcast %cst_52 : f32 to vector<2x8x8xf32>
    %75 = arith.mulf %73, %74 : vector<2x8x8xf32>
    %76 = vector.shape_cast %17 : vector<8x8xf32> to vector<1x8x8xf32>
    %77 = vector.broadcast %76 : vector<1x8x8xf32> to vector<2x8x8xf32>
    %78 = arith.addf %75, %77 : vector<2x8x8xf32>
    %79 = vector.shape_cast %18 : vector<2x8xf32> to vector<2x1x8xf32>
    %80 = vector.broadcast %79 : vector<2x1x8xf32> to vector<2x8x8xf32>
    %81 = arith.addf %78, %80 : vector<2x8x8xf32>
    %cst_53 = arith.constant dense<0xFF800000> : vector<2x8xf32>
    %82 = vector.multi_reduction <maximumf>, %81, %cst_53 [2] : vector<2x8x8xf32> to vector<2x8xf32>
    %83 = vector.shape_cast %82 : vector<2x8xf32> to vector<2x8x1xf32>
    %84 = vector.broadcast %83 : vector<2x8x1xf32> to vector<2x8x8xf32>
    %85 = arith.subf %81, %84 : vector<2x8x8xf32>
    %86 = math.exp %85 : vector<2x8x8xf32>
    %cst_54 = arith.constant dense<0.000000e+00> : vector<2x8xf32>
    %87 = vector.multi_reduction <add>, %86, %cst_54 [2] : vector<2x8x8xf32> to vector<2x8xf32>
    %88 = vector.shape_cast %87 : vector<2x8xf32> to vector<2x8x1xf32>
    %89 = tpu.reciprocal %88 {approx = true} : vector<2x8x1xf32> -> vector<2x8x1xf32>
    %90 = vector.broadcast %89 : vector<2x8x1xf32> to vector<2x8x8xf32>
    %91 = arith.mulf %86, %90 : vector<2x8x8xf32>
    %92 = vector.extract_strided_slice %47 {offsets = [0, 0, 8], sizes = [2, 8, 8], strides = [1, 1, 1]} : vector<2x8x32xf32> to vector<2x8x8xf32>
    "tpu.trace_start"() <{level = 10 : i32, message = "bqk,bkd->bqd"}> : () -> ()
    %cst_55 = arith.constant dense<0.000000e+00> : vector<2x8x8xf32>
    %93 = tpu.matmul %91, %92, %cst_55 {dimension_numbers = #tpu.dot_dimension_numbers<[2], [1], [1], [2], [0, 0, 0, 1, 1, 2], [0], [0]>} : vector<2x8x8xf32>, vector<2x8x8xf32>, vector<2x8x8xf32> -> vector<2x8x8xf32>
    "tpu.trace_stop"() : () -> ()
    %94 = vector.extract_strided_slice %45 {offsets = [0, 0, 16], sizes = [2, 8, 8], strides = [1, 1, 1]} : vector<2x8x32xf32> to vector<2x8x8xf32>
    %95 = vector.extract_strided_slice %46 {offsets = [0, 0, 16], sizes = [2, 8, 8], strides = [1, 1, 1]} : vector<2x8x32xf32> to vector<2x8x8xf32>
    "tpu.trace_start"() <{level = 10 : i32, message = "bqd,bkd->bqk"}> : () -> ()
    %cst_56 = arith.constant dense<0.000000e+00> : vector<2x8x8xf32>
    %96 = tpu.matmul %94, %95, %cst_56 {dimension_numbers = #tpu.dot_dimension_numbers<[2], [2], [1], [1], [0, 0, 0, 1, 1, 1], [0], [0]>} : vector<2x8x8xf32>, vector<2x8x8xf32>, vector<2x8x8xf32> -> vector<2x8x8xf32>
    "tpu.trace_stop"() : () -> ()
    %cst_57 = arith.constant 0.353553385 : f32
    %97 = vector.broadcast %cst_57 : f32 to vector<2x8x8xf32>
    %98 = arith.mulf %96, %97 : vector<2x8x8xf32>
    %99 = vector.shape_cast %17 : vector<8x8xf32> to vector<1x8x8xf32>
    %100 = vector.broadcast %99 : vector<1x8x8xf32> to vector<2x8x8xf32>
    %101 = arith.addf %98, %100 : vector<2x8x8xf32>
    %102 = vector.shape_cast %18 : vector<2x8xf32> to vector<2x1x8xf32>
    %103 = vector.broadcast %102 : vector<2x1x8xf32> to vector<2x8x8xf32>
    %104 = arith.addf %101, %103 : vector<2x8x8xf32>
    %cst_58 = arith.constant dense<0xFF800000> : vector<2x8xf32>
    %105 = vector.multi_reduction <maximumf>, %104, %cst_58 [2] : vector<2x8x8xf32> to vector<2x8xf32>
    %106 = vector.shape_cast %105 : vector<2x8xf32> to vector<2x8x1xf32>
    %107 = vector.broadcast %106 : vector<2x8x1xf32> to vector<2x8x8xf32>
    %108 = arith.subf %104, %107 : vector<2x8x8xf32>
    %109 = math.exp %108 : vector<2x8x8xf32>
    %cst_59 = arith.constant dense<0.000000e+00> : vector<2x8xf32>
    %110 = vector.multi_reduction <add>, %109, %cst_59 [2] : vector<2x8x8xf32> to vector<2x8xf32>
    %111 = vector.shape_cast %110 : vector<2x8xf32> to vector<2x8x1xf32>
    %112 = tpu.reciprocal %111 {approx = true} : vector<2x8x1xf32> -> vector<2x8x1xf32>
    %113 = vector.broadcast %112 : vector<2x8x1xf32> to vector<2x8x8xf32>
    %114 = arith.mulf %109, %113 : vector<2x8x8xf32>
    %115 = vector.extract_strided_slice %47 {offsets = [0, 0, 16], sizes = [2, 8, 8], strides = [1, 1, 1]} : vector<2x8x32xf32> to vector<2x8x8xf32>
    "tpu.trace_start"() <{level = 10 : i32, message = "bqk,bkd->bqd"}> : () -> ()
    %cst_60 = arith.constant dense<0.000000e+00> : vector<2x8x8xf32>
    %116 = tpu.matmul %114, %115, %cst_60 {dimension_numbers = #tpu.dot_dimension_numbers<[2], [1], [1], [2], [0, 0, 0, 1, 1, 2], [0], [0]>} : vector<2x8x8xf32>, vector<2x8x8xf32>, vector<2x8x8xf32> -> vector<2x8x8xf32>
    "tpu.trace_stop"() : () -> ()
    %117 = vector.extract_strided_slice %45 {offsets = [0, 0, 24], sizes = [2, 8, 8], strides = [1, 1, 1]} : vector<2x8x32xf32> to vector<2x8x8xf32>
    %118 = vector.extract_strided_slice %46 {offsets = [0, 0, 24], sizes = [2, 8, 8], strides = [1, 1, 1]} : vector<2x8x32xf32> to vector<2x8x8xf32>
    "tpu.trace_start"() <{level = 10 : i32, message = "bqd,bkd->bqk"}> : () -> ()
    %cst_61 = arith.constant dense<0.000000e+00> : vector<2x8x8xf32>
    %119 = tpu.matmul %117, %118, %cst_61 {dimension_numbers = #tpu.dot_dimension_numbers<[2], [2], [1], [1], [0, 0, 0, 1, 1, 1], [0], [0]>} : vector<2x8x8xf32>, vector<2x8x8xf32>, vector<2x8x8xf32> -> vector<2x8x8xf32>
    "tpu.trace_stop"() : () -> ()
    %cst_62 = arith.constant 0.353553385 : f32
    %120 = vector.broadcast %cst_62 : f32 to vector<2x8x8xf32>
    %121 = arith.mulf %119, %120 : vector<2x8x8xf32>
    %122 = vector.shape_cast %17 : vector<8x8xf32> to vector<1x8x8xf32>
    %123 = vector.broadcast %122 : vector<1x8x8xf32> to vector<2x8x8xf32>
    %124 = arith.addf %121, %123 : vector<2x8x8xf32>
    %125 = vector.shape_cast %18 : vector<2x8xf32> to vector<2x1x8xf32>
    %126 = vector.broadcast %125 : vector<2x1x8xf32> to vector<2x8x8xf32>
    %127 = arith.addf %124, %126 : vector<2x8x8xf32>
    %cst_63 = arith.constant dense<0xFF800000> : vector<2x8xf32>
    %128 = vector.multi_reduction <maximumf>, %127, %cst_63 [2] : vector<2x8x8xf32> to vector<2x8xf32>
    %129 = vector.shape_cast %128 : vector<2x8xf32> to vector<2x8x1xf32>
    %130 = vector.broadcast %129 : vector<2x8x1xf32> to vector<2x8x8xf32>
    %131 = arith.subf %127, %130 : vector<2x8x8xf32>
    %132 = math.exp %131 : vector<2x8x8xf32>
    %cst_64 = arith.constant dense<0.000000e+00> : vector<2x8xf32>
    %133 = vector.multi_reduction <add>, %132, %cst_64 [2] : vector<2x8x8xf32> to vector<2x8xf32>
    %134 = vector.shape_cast %133 : vector<2x8xf32> to vector<2x8x1xf32>
    %135 = tpu.reciprocal %134 {approx = true} : vector<2x8x1xf32> -> vector<2x8x1xf32>
    %136 = vector.broadcast %135 : vector<2x8x1xf32> to vector<2x8x8xf32>
    %137 = arith.mulf %132, %136 : vector<2x8x8xf32>
    %138 = vector.extract_strided_slice %47 {offsets = [0, 0, 24], sizes = [2, 8, 8], strides = [1, 1, 1]} : vector<2x8x32xf32> to vector<2x8x8xf32>
    "tpu.trace_start"() <{level = 10 : i32, message = "bqk,bkd->bqd"}> : () -> ()
    %cst_65 = arith.constant dense<0.000000e+00> : vector<2x8x8xf32>
    %139 = tpu.matmul %137, %138, %cst_65 {dimension_numbers = #tpu.dot_dimension_numbers<[2], [1], [1], [2], [0, 0, 0, 1, 1, 2], [0], [0]>} : vector<2x8x8xf32>, vector<2x8x8xf32>, vector<2x8x8xf32> -> vector<2x8x8xf32>
    "tpu.trace_stop"() : () -> ()
    %140 = tpu.concatenate %70, %93, %116, %139 in 2 : vector<2x8x8xf32>, vector<2x8x8xf32>, vector<2x8x8xf32>, vector<2x8x8xf32> -> vector<2x8x32xf32>
    %141 = vector.shape_cast %140 : vector<2x8x32xf32> to vector<16x32xf32>
    %142 = arith.truncf %141 : vector<16x32xf32> to vector<16x32xbf16>
    %c0_66 = arith.constant 0 : index
    %c0_67 = arith.constant 0 : index
    %c0_68 = arith.constant 0 : index
    %143 = vector.load %arg9[%c0_66, %c0_67, %c0_68] : memref<2x32x32xbf16, #tpu.memory_space<vmem>>, vector<1x32x32xbf16>
    %144 = vector.shape_cast %143 : vector<1x32x32xbf16> to vector<32x32xbf16>
    %cst_69 = arith.constant dense<0.000000e+00> : vector<16x32xf32>
    %145 = tpu.matmul %142, %144, %cst_69 {dimension_numbers = #tpu.dot_dimension_numbers<[1], [0], [0], [1], [0, 0, 1, 1], [], []>} : vector<16x32xbf16>, vector<32x32xbf16>, vector<16x32xf32> -> vector<16x32xf32>
    %c0_70 = arith.constant 0 : index
    %c0_71 = arith.constant 0 : index
    %c0_72 = arith.constant 0 : index
    %146 = vector.load %arg10[%c0_70, %c0_71, %c0_72] : memref<2x1x32xf32, #tpu.memory_space<vmem>>, vector<1x1x32xf32>
    %147 = vector.shape_cast %146 : vector<1x1x32xf32> to vector<1x32xf32>
    %148 = vector.broadcast %147 : vector<1x32xf32> to vector<16x32xf32>
    %149 = arith.addf %145, %148 : vector<16x32xf32>
    %150 = vector.extract_strided_slice %20 {offsets = [0, 0], sizes = [1, 32], strides = [1, 1]} : vector<3x32xf32> to vector<1x32xf32>
    %151 = vector.extract_strided_slice %22 {offsets = [0, 0], sizes = [1, 32], strides = [1, 1]} : vector<3x32xf32> to vector<1x32xf32>
    %152 = arith.addf %13, %149 : vector<16x32xf32>
    %cst_73 = arith.constant dense<0.000000e+00> : vector<16xf32>
    %153 = vector.multi_reduction <add>, %152, %cst_73 [1] : vector<16x32xf32> to vector<16xf32>
    %154 = vector.shape_cast %153 : vector<16xf32> to vector<16x1xf32>
    %cst_74 = arith.constant 3.200000e+01 : f32
    %155 = vector.broadcast %cst_74 : f32 to vector<16x1xf32>
    %156 = arith.divf %154, %155 : vector<16x1xf32>
    %157 = arith.mulf %152, %152 : vector<16x32xf32>
    %cst_75 = arith.constant dense<0.000000e+00> : vector<16xf32>
    %158 = vector.multi_reduction <add>, %157, %cst_75 [1] : vector<16x32xf32> to vector<16xf32>
    %159 = vector.shape_cast %158 : vector<16xf32> to vector<16x1xf32>
    %cst_76 = arith.constant 3.200000e+01 : f32
    %160 = vector.broadcast %cst_76 : f32 to vector<16x1xf32>
    %161 = arith.divf %159, %160 : vector<16x1xf32>
    %162 = arith.mulf %156, %156 : vector<16x1xf32>
    %163 = arith.subf %161, %162 : vector<16x1xf32>
    %164 = vector.broadcast %156 : vector<16x1xf32> to vector<16x32xf32>
    %165 = arith.subf %152, %164 : vector<16x32xf32>
    %cst_77 = arith.constant 9.99999974E-6 : f32
    %166 = vector.broadcast %cst_77 : f32 to vector<16x1xf32>
    %167 = arith.addf %163, %166 : vector<16x1xf32>
    %168 = math.rsqrt %167 : vector<16x1xf32>
    %169 = vector.broadcast %168 : vector<16x1xf32> to vector<16x32xf32>
    %170 = arith.mulf %165, %169 : vector<16x32xf32>
    %171 = vector.broadcast %150 : vector<1x32xf32> to vector<16x32xf32>
    %172 = arith.mulf %170, %171 : vector<16x32xf32>
    %173 = vector.broadcast %151 : vector<1x32xf32> to vector<16x32xf32>
    %174 = arith.addf %172, %173 : vector<16x32xf32>
    %175 = arith.truncf %174 : vector<16x32xf32> to vector<16x32xbf16>
    %c0_78 = arith.constant 0 : index
    %c0_79 = arith.constant 0 : index
    %c0_80 = arith.constant 0 : index
    %c0_81 = arith.constant 0 : index
    %176 = vector.load %arg11[%c0_78, %c0_79, %c0_80, %c0_81] : memref<2x3x32x32xbf16, #tpu.memory_space<vmem>>, vector<1x1x32x32xbf16>
    %177 = vector.shape_cast %176 : vector<1x1x32x32xbf16> to vector<32x32xbf16>
    %cst_82 = arith.constant dense<0.000000e+00> : vector<16x32xf32>
    %178 = tpu.matmul %175, %177, %cst_82 {dimension_numbers = #tpu.dot_dimension_numbers<[1], [0], [0], [1], [0, 0, 1, 1], [], []>} : vector<16x32xbf16>, vector<32x32xbf16>, vector<16x32xf32> -> vector<16x32xf32>
    %c0_83 = arith.constant 0 : index
    %c0_84 = arith.constant 0 : index
    %c0_85 = arith.constant 0 : index
    %c0_86 = arith.constant 0 : index
    %179 = vector.load %arg12[%c0_83, %c0_84, %c0_85, %c0_86] : memref<2x3x1x32xf32, #tpu.memory_space<vmem>>, vector<1x1x1x32xf32>
    %180 = vector.shape_cast %179 : vector<1x1x1x32xf32> to vector<1x32xf32>
    %181 = vector.broadcast %180 : vector<1x32xf32> to vector<16x32xf32>
    %182 = arith.addf %178, %181 : vector<16x32xf32>
    %c0_87 = arith.constant 0 : index
    %c1_88 = arith.constant 1 : index
    %c0_89 = arith.constant 0 : index
    %c0_90 = arith.constant 0 : index
    %183 = vector.load %arg11[%c0_87, %c1_88, %c0_89, %c0_90] : memref<2x3x32x32xbf16, #tpu.memory_space<vmem>>, vector<1x1x32x32xbf16>
    %184 = vector.shape_cast %183 : vector<1x1x32x32xbf16> to vector<32x32xbf16>
    %cst_91 = arith.constant dense<0.000000e+00> : vector<16x32xf32>
    %185 = tpu.matmul %16, %184, %cst_91 {dimension_numbers = #tpu.dot_dimension_numbers<[1], [0], [0], [1], [0, 0, 1, 1], [], []>} : vector<16x32xbf16>, vector<32x32xbf16>, vector<16x32xf32> -> vector<16x32xf32>
    %c0_92 = arith.constant 0 : index
    %c1_93 = arith.constant 1 : index
    %c0_94 = arith.constant 0 : index
    %c0_95 = arith.constant 0 : index
    %186 = vector.load %arg12[%c0_92, %c1_93, %c0_94, %c0_95] : memref<2x3x1x32xf32, #tpu.memory_space<vmem>>, vector<1x1x1x32xf32>
    %187 = vector.shape_cast %186 : vector<1x1x1x32xf32> to vector<1x32xf32>
    %188 = vector.broadcast %187 : vector<1x32xf32> to vector<16x32xf32>
    %189 = arith.addf %185, %188 : vector<16x32xf32>
    %c0_96 = arith.constant 0 : index
    %c2_97 = arith.constant 2 : index
    %c0_98 = arith.constant 0 : index
    %c0_99 = arith.constant 0 : index
    %190 = vector.load %arg11[%c0_96, %c2_97, %c0_98, %c0_99] : memref<2x3x32x32xbf16, #tpu.memory_space<vmem>>, vector<1x1x32x32xbf16>
    %191 = vector.shape_cast %190 : vector<1x1x32x32xbf16> to vector<32x32xbf16>
    %cst_100 = arith.constant dense<0.000000e+00> : vector<16x32xf32>
    %192 = tpu.matmul %16, %191, %cst_100 {dimension_numbers = #tpu.dot_dimension_numbers<[1], [0], [0], [1], [0, 0, 1, 1], [], []>} : vector<16x32xbf16>, vector<32x32xbf16>, vector<16x32xf32> -> vector<16x32xf32>
    %c0_101 = arith.constant 0 : index
    %c2_102 = arith.constant 2 : index
    %c0_103 = arith.constant 0 : index
    %c0_104 = arith.constant 0 : index
    %193 = vector.load %arg12[%c0_101, %c2_102, %c0_103, %c0_104] : memref<2x3x1x32xf32, #tpu.memory_space<vmem>>, vector<1x1x1x32xf32>
    %194 = vector.shape_cast %193 : vector<1x1x1x32xf32> to vector<1x32xf32>
    %195 = vector.broadcast %194 : vector<1x32xf32> to vector<16x32xf32>
    %196 = arith.addf %192, %195 : vector<16x32xf32>
    %197 = vector.shape_cast %182 : vector<16x32xf32> to vector<2x8x32xf32>
    %198 = vector.shape_cast %189 : vector<16x32xf32> to vector<2x8x32xf32>
    %199 = vector.shape_cast %196 : vector<16x32xf32> to vector<2x8x32xf32>
    %200 = vector.extract_strided_slice %197 {offsets = [0, 0, 0], sizes = [2, 8, 8], strides = [1, 1, 1]} : vector<2x8x32xf32> to vector<2x8x8xf32>
    %201 = vector.extract_strided_slice %198 {offsets = [0, 0, 0], sizes = [2, 8, 8], strides = [1, 1, 1]} : vector<2x8x32xf32> to vector<2x8x8xf32>
    "tpu.trace_start"() <{level = 10 : i32, message = "bqd,bkd->bqk"}> : () -> ()
    %cst_105 = arith.constant dense<0.000000e+00> : vector<2x8x8xf32>
    %202 = tpu.matmul %200, %201, %cst_105 {dimension_numbers = #tpu.dot_dimension_numbers<[2], [2], [1], [1], [0, 0, 0, 1, 1, 1], [0], [0]>} : vector<2x8x8xf32>, vector<2x8x8xf32>, vector<2x8x8xf32> -> vector<2x8x8xf32>
    "tpu.trace_stop"() : () -> ()
    %cst_106 = arith.constant 0.353553385 : f32
    %203 = vector.broadcast %cst_106 : f32 to vector<2x8x8xf32>
    %204 = arith.mulf %202, %203 : vector<2x8x8xf32>
    %cst_107 = arith.constant dense<0xFF800000> : vector<2x8xf32>
    %205 = vector.multi_reduction <maximumf>, %204, %cst_107 [2] : vector<2x8x8xf32> to vector<2x8xf32>
    %206 = vector.shape_cast %205 : vector<2x8xf32> to vector<2x8x1xf32>
    %207 = vector.broadcast %206 : vector<2x8x1xf32> to vector<2x8x8xf32>
    %208 = arith.subf %204, %207 : vector<2x8x8xf32>
    %209 = math.exp %208 : vector<2x8x8xf32>
    %cst_108 = arith.constant dense<0.000000e+00> : vector<2x8xf32>
    %210 = vector.multi_reduction <add>, %209, %cst_108 [2] : vector<2x8x8xf32> to vector<2x8xf32>
    %211 = vector.shape_cast %210 : vector<2x8xf32> to vector<2x8x1xf32>
    %212 = tpu.reciprocal %211 {approx = true} : vector<2x8x1xf32> -> vector<2x8x1xf32>
    %213 = vector.broadcast %212 : vector<2x8x1xf32> to vector<2x8x8xf32>
    %214 = arith.mulf %209, %213 : vector<2x8x8xf32>
    %215 = vector.extract_strided_slice %199 {offsets = [0, 0, 0], sizes = [2, 8, 8], strides = [1, 1, 1]} : vector<2x8x32xf32> to vector<2x8x8xf32>
    "tpu.trace_start"() <{level = 10 : i32, message = "bqk,bkd->bqd"}> : () -> ()
    %cst_109 = arith.constant dense<0.000000e+00> : vector<2x8x8xf32>
    %216 = tpu.matmul %214, %215, %cst_109 {dimension_numbers = #tpu.dot_dimension_numbers<[2], [1], [1], [2], [0, 0, 0, 1, 1, 2], [0], [0]>} : vector<2x8x8xf32>, vector<2x8x8xf32>, vector<2x8x8xf32> -> vector<2x8x8xf32>
    "tpu.trace_stop"() : () -> ()
    %217 = vector.extract_strided_slice %197 {offsets = [0, 0, 8], sizes = [2, 8, 8], strides = [1, 1, 1]} : vector<2x8x32xf32> to vector<2x8x8xf32>
    %218 = vector.extract_strided_slice %198 {offsets = [0, 0, 8], sizes = [2, 8, 8], strides = [1, 1, 1]} : vector<2x8x32xf32> to vector<2x8x8xf32>
    "tpu.trace_start"() <{level = 10 : i32, message = "bqd,bkd->bqk"}> : () -> ()
    %cst_110 = arith.constant dense<0.000000e+00> : vector<2x8x8xf32>
    %219 = tpu.matmul %217, %218, %cst_110 {dimension_numbers = #tpu.dot_dimension_numbers<[2], [2], [1], [1], [0, 0, 0, 1, 1, 1], [0], [0]>} : vector<2x8x8xf32>, vector<2x8x8xf32>, vector<2x8x8xf32> -> vector<2x8x8xf32>
    "tpu.trace_stop"() : () -> ()
    %cst_111 = arith.constant 0.353553385 : f32
    %220 = vector.broadcast %cst_111 : f32 to vector<2x8x8xf32>
    %221 = arith.mulf %219, %220 : vector<2x8x8xf32>
    %cst_112 = arith.constant dense<0xFF800000> : vector<2x8xf32>
    %222 = vector.multi_reduction <maximumf>, %221, %cst_112 [2] : vector<2x8x8xf32> to vector<2x8xf32>
    %223 = vector.shape_cast %222 : vector<2x8xf32> to vector<2x8x1xf32>
    %224 = vector.broadcast %223 : vector<2x8x1xf32> to vector<2x8x8xf32>
    %225 = arith.subf %221, %224 : vector<2x8x8xf32>
    %226 = math.exp %225 : vector<2x8x8xf32>
    %cst_113 = arith.constant dense<0.000000e+00> : vector<2x8xf32>
    %227 = vector.multi_reduction <add>, %226, %cst_113 [2] : vector<2x8x8xf32> to vector<2x8xf32>
    %228 = vector.shape_cast %227 : vector<2x8xf32> to vector<2x8x1xf32>
    %229 = tpu.reciprocal %228 {approx = true} : vector<2x8x1xf32> -> vector<2x8x1xf32>
    %230 = vector.broadcast %229 : vector<2x8x1xf32> to vector<2x8x8xf32>
    %231 = arith.mulf %226, %230 : vector<2x8x8xf32>
    %232 = vector.extract_strided_slice %199 {offsets = [0, 0, 8], sizes = [2, 8, 8], strides = [1, 1, 1]} : vector<2x8x32xf32> to vector<2x8x8xf32>
    "tpu.trace_start"() <{level = 10 : i32, message = "bqk,bkd->bqd"}> : () -> ()
    %cst_114 = arith.constant dense<0.000000e+00> : vector<2x8x8xf32>
    %233 = tpu.matmul %231, %232, %cst_114 {dimension_numbers = #tpu.dot_dimension_numbers<[2], [1], [1], [2], [0, 0, 0, 1, 1, 2], [0], [0]>} : vector<2x8x8xf32>, vector<2x8x8xf32>, vector<2x8x8xf32> -> vector<2x8x8xf32>
    "tpu.trace_stop"() : () -> ()
    %234 = vector.extract_strided_slice %197 {offsets = [0, 0, 16], sizes = [2, 8, 8], strides = [1, 1, 1]} : vector<2x8x32xf32> to vector<2x8x8xf32>
    %235 = vector.extract_strided_slice %198 {offsets = [0, 0, 16], sizes = [2, 8, 8], strides = [1, 1, 1]} : vector<2x8x32xf32> to vector<2x8x8xf32>
    "tpu.trace_start"() <{level = 10 : i32, message = "bqd,bkd->bqk"}> : () -> ()
    %cst_115 = arith.constant dense<0.000000e+00> : vector<2x8x8xf32>
    %236 = tpu.matmul %234, %235, %cst_115 {dimension_numbers = #tpu.dot_dimension_numbers<[2], [2], [1], [1], [0, 0, 0, 1, 1, 1], [0], [0]>} : vector<2x8x8xf32>, vector<2x8x8xf32>, vector<2x8x8xf32> -> vector<2x8x8xf32>
    "tpu.trace_stop"() : () -> ()
    %cst_116 = arith.constant 0.353553385 : f32
    %237 = vector.broadcast %cst_116 : f32 to vector<2x8x8xf32>
    %238 = arith.mulf %236, %237 : vector<2x8x8xf32>
    %cst_117 = arith.constant dense<0xFF800000> : vector<2x8xf32>
    %239 = vector.multi_reduction <maximumf>, %238, %cst_117 [2] : vector<2x8x8xf32> to vector<2x8xf32>
    %240 = vector.shape_cast %239 : vector<2x8xf32> to vector<2x8x1xf32>
    %241 = vector.broadcast %240 : vector<2x8x1xf32> to vector<2x8x8xf32>
    %242 = arith.subf %238, %241 : vector<2x8x8xf32>
    %243 = math.exp %242 : vector<2x8x8xf32>
    %cst_118 = arith.constant dense<0.000000e+00> : vector<2x8xf32>
    %244 = vector.multi_reduction <add>, %243, %cst_118 [2] : vector<2x8x8xf32> to vector<2x8xf32>
    %245 = vector.shape_cast %244 : vector<2x8xf32> to vector<2x8x1xf32>
    %246 = tpu.reciprocal %245 {approx = true} : vector<2x8x1xf32> -> vector<2x8x1xf32>
    %247 = vector.broadcast %246 : vector<2x8x1xf32> to vector<2x8x8xf32>
    %248 = arith.mulf %243, %247 : vector<2x8x8xf32>
    %249 = vector.extract_strided_slice %199 {offsets = [0, 0, 16], sizes = [2, 8, 8], strides = [1, 1, 1]} : vector<2x8x32xf32> to vector<2x8x8xf32>
    "tpu.trace_start"() <{level = 10 : i32, message = "bqk,bkd->bqd"}> : () -> ()
    %cst_119 = arith.constant dense<0.000000e+00> : vector<2x8x8xf32>
    %250 = tpu.matmul %248, %249, %cst_119 {dimension_numbers = #tpu.dot_dimension_numbers<[2], [1], [1], [2], [0, 0, 0, 1, 1, 2], [0], [0]>} : vector<2x8x8xf32>, vector<2x8x8xf32>, vector<2x8x8xf32> -> vector<2x8x8xf32>
    "tpu.trace_stop"() : () -> ()
    %251 = vector.extract_strided_slice %197 {offsets = [0, 0, 24], sizes = [2, 8, 8], strides = [1, 1, 1]} : vector<2x8x32xf32> to vector<2x8x8xf32>
    %252 = vector.extract_strided_slice %198 {offsets = [0, 0, 24], sizes = [2, 8, 8], strides = [1, 1, 1]} : vector<2x8x32xf32> to vector<2x8x8xf32>
    "tpu.trace_start"() <{level = 10 : i32, message = "bqd,bkd->bqk"}> : () -> ()
    %cst_120 = arith.constant dense<0.000000e+00> : vector<2x8x8xf32>
    %253 = tpu.matmul %251, %252, %cst_120 {dimension_numbers = #tpu.dot_dimension_numbers<[2], [2], [1], [1], [0, 0, 0, 1, 1, 1], [0], [0]>} : vector<2x8x8xf32>, vector<2x8x8xf32>, vector<2x8x8xf32> -> vector<2x8x8xf32>
    "tpu.trace_stop"() : () -> ()
    %cst_121 = arith.constant 0.353553385 : f32
    %254 = vector.broadcast %cst_121 : f32 to vector<2x8x8xf32>
    %255 = arith.mulf %253, %254 : vector<2x8x8xf32>
    %cst_122 = arith.constant dense<0xFF800000> : vector<2x8xf32>
    %256 = vector.multi_reduction <maximumf>, %255, %cst_122 [2] : vector<2x8x8xf32> to vector<2x8xf32>
    %257 = vector.shape_cast %256 : vector<2x8xf32> to vector<2x8x1xf32>
    %258 = vector.broadcast %257 : vector<2x8x1xf32> to vector<2x8x8xf32>
    %259 = arith.subf %255, %258 : vector<2x8x8xf32>
    %260 = math.exp %259 : vector<2x8x8xf32>
    %cst_123 = arith.constant dense<0.000000e+00> : vector<2x8xf32>
    %261 = vector.multi_reduction <add>, %260, %cst_123 [2] : vector<2x8x8xf32> to vector<2x8xf32>
    %262 = vector.shape_cast %261 : vector<2x8xf32> to vector<2x8x1xf32>
    %263 = tpu.reciprocal %262 {approx = true} : vector<2x8x1xf32> -> vector<2x8x1xf32>
    %264 = vector.broadcast %263 : vector<2x8x1xf32> to vector<2x8x8xf32>
    %265 = arith.mulf %260, %264 : vector<2x8x8xf32>
    %266 = vector.extract_strided_slice %199 {offsets = [0, 0, 24], sizes = [2, 8, 8], strides = [1, 1, 1]} : vector<2x8x32xf32> to vector<2x8x8xf32>
    "tpu.trace_start"() <{level = 10 : i32, message = "bqk,bkd->bqd"}> : () -> ()
    %cst_124 = arith.constant dense<0.000000e+00> : vector<2x8x8xf32>
    %267 = tpu.matmul %265, %266, %cst_124 {dimension_numbers = #tpu.dot_dimension_numbers<[2], [1], [1], [2], [0, 0, 0, 1, 1, 2], [0], [0]>} : vector<2x8x8xf32>, vector<2x8x8xf32>, vector<2x8x8xf32> -> vector<2x8x8xf32>
    "tpu.trace_stop"() : () -> ()
    %268 = tpu.concatenate %216, %233, %250, %267 in 2 : vector<2x8x8xf32>, vector<2x8x8xf32>, vector<2x8x8xf32>, vector<2x8x8xf32> -> vector<2x8x32xf32>
    %269 = vector.shape_cast %268 : vector<2x8x32xf32> to vector<16x32xf32>
    %270 = arith.truncf %269 : vector<16x32xf32> to vector<16x32xbf16>
    %c0_125 = arith.constant 0 : index
    %c0_126 = arith.constant 0 : index
    %c0_127 = arith.constant 0 : index
    %271 = vector.load %arg13[%c0_125, %c0_126, %c0_127] : memref<2x32x32xbf16, #tpu.memory_space<vmem>>, vector<1x32x32xbf16>
    %272 = vector.shape_cast %271 : vector<1x32x32xbf16> to vector<32x32xbf16>
    %cst_128 = arith.constant dense<0.000000e+00> : vector<16x32xf32>
    %273 = tpu.matmul %270, %272, %cst_128 {dimension_numbers = #tpu.dot_dimension_numbers<[1], [0], [0], [1], [0, 0, 1, 1], [], []>} : vector<16x32xbf16>, vector<32x32xbf16>, vector<16x32xf32> -> vector<16x32xf32>
    %c0_129 = arith.constant 0 : index
    %c0_130 = arith.constant 0 : index
    %c0_131 = arith.constant 0 : index
    %274 = vector.load %arg14[%c0_129, %c0_130, %c0_131] : memref<2x1x32xf32, #tpu.memory_space<vmem>>, vector<1x1x32xf32>
    %275 = vector.shape_cast %274 : vector<1x1x32xf32> to vector<1x32xf32>
    %276 = vector.broadcast %275 : vector<1x32xf32> to vector<16x32xf32>
    %277 = arith.addf %273, %276 : vector<16x32xf32>
    %278 = vector.extract_strided_slice %20 {offsets = [1, 0], sizes = [1, 32], strides = [1, 1]} : vector<3x32xf32> to vector<1x32xf32>
    %279 = vector.extract_strided_slice %22 {offsets = [1, 0], sizes = [1, 32], strides = [1, 1]} : vector<3x32xf32> to vector<1x32xf32>
    %280 = arith.addf %174, %277 : vector<16x32xf32>
    %cst_132 = arith.constant dense<0.000000e+00> : vector<16xf32>
    %281 = vector.multi_reduction <add>, %280, %cst_132 [1] : vector<16x32xf32> to vector<16xf32>
    %282 = vector.shape_cast %281 : vector<16xf32> to vector<16x1xf32>
    %cst_133 = arith.constant 3.200000e+01 : f32
    %283 = vector.broadcast %cst_133 : f32 to vector<16x1xf32>
    %284 = arith.divf %282, %283 : vector<16x1xf32>
    %285 = arith.mulf %280, %280 : vector<16x32xf32>
    %cst_134 = arith.constant dense<0.000000e+00> : vector<16xf32>
    %286 = vector.multi_reduction <add>, %285, %cst_134 [1] : vector<16x32xf32> to vector<16xf32>
    %287 = vector.shape_cast %286 : vector<16xf32> to vector<16x1xf32>
    %cst_135 = arith.constant 3.200000e+01 : f32
    %288 = vector.broadcast %cst_135 : f32 to vector<16x1xf32>
    %289 = arith.divf %287, %288 : vector<16x1xf32>
    %290 = arith.mulf %284, %284 : vector<16x1xf32>
    %291 = arith.subf %289, %290 : vector<16x1xf32>
    %292 = vector.broadcast %284 : vector<16x1xf32> to vector<16x32xf32>
    %293 = arith.subf %280, %292 : vector<16x32xf32>
    %cst_136 = arith.constant 9.99999974E-6 : f32
    %294 = vector.broadcast %cst_136 : f32 to vector<16x1xf32>
    %295 = arith.addf %291, %294 : vector<16x1xf32>
    %296 = math.rsqrt %295 : vector<16x1xf32>
    %297 = vector.broadcast %296 : vector<16x1xf32> to vector<16x32xf32>
    %298 = arith.mulf %293, %297 : vector<16x32xf32>
    %299 = vector.broadcast %278 : vector<1x32xf32> to vector<16x32xf32>
    %300 = arith.mulf %298, %299 : vector<16x32xf32>
    %301 = vector.broadcast %279 : vector<1x32xf32> to vector<16x32xf32>
    %302 = arith.addf %300, %301 : vector<16x32xf32>
    %303 = arith.truncf %302 : vector<16x32xf32> to vector<16x32xbf16>
    %c0_137 = arith.constant 0 : index
    %c0_138 = arith.constant 0 : index
    %c0_139 = arith.constant 0 : index
    %304 = vector.load %arg20[%c0_137, %c0_138, %c0_139] : memref<2x1x32xf32, #tpu.memory_space<vmem>>, vector<1x1x32xf32>
    %305 = vector.shape_cast %304 : vector<1x1x32xf32> to vector<1x32xf32>
    %c0_140 = arith.constant 0 : index
    %c0_141 = arith.constant 0 : index
    %c0_142 = arith.constant 0 : index
    %306 = vector.load %arg17[%c0_140, %c0_141, %c0_142] : memref<2x32x2048xbf16, #tpu.memory_space<vmem>>, vector<1x32x512xbf16>
    %307 = vector.shape_cast %306 : vector<1x32x512xbf16> to vector<32x512xbf16>
    %cst_143 = arith.constant dense<0.000000e+00> : vector<16x512xf32>
    %308 = tpu.matmul %303, %307, %cst_143 {dimension_numbers = #tpu.dot_dimension_numbers<[1], [0], [0], [1], [0, 0, 1, 1], [], []>} : vector<16x32xbf16>, vector<32x512xbf16>, vector<16x512xf32> -> vector<16x512xf32>
    %c0_144 = arith.constant 0 : index
    %c0_145 = arith.constant 0 : index
    %c0_146 = arith.constant 0 : index
    %309 = vector.load %arg18[%c0_144, %c0_145, %c0_146] : memref<2x1x2048xf32, #tpu.memory_space<vmem>>, vector<1x1x512xf32>
    %310 = vector.shape_cast %309 : vector<1x1x512xf32> to vector<1x512xf32>
    %311 = vector.broadcast %310 : vector<1x512xf32> to vector<16x512xf32>
    %312 = arith.addf %308, %311 : vector<16x512xf32>
    %cst_147 = arith.constant 0.000000e+00 : f32
    %313 = vector.broadcast %cst_147 : f32 to vector<16x512xf32>
    %314 = arith.maximumf %312, %313 : vector<16x512xf32>
    %315 = arith.truncf %314 : vector<16x512xf32> to vector<16x512xbf16>
    %c0_148 = arith.constant 0 : index
    %c0_149 = arith.constant 0 : index
    %c0_150 = arith.constant 0 : index
    %316 = vector.load %arg19[%c0_148, %c0_149, %c0_150] : memref<2x2048x32xbf16, #tpu.memory_space<vmem>>, vector<1x512x32xbf16>
    %317 = vector.shape_cast %316 : vector<1x512x32xbf16> to vector<512x32xbf16>
    %cst_151 = arith.constant dense<0.000000e+00> : vector<16x32xf32>
    %318 = tpu.matmul %315, %317, %cst_151 {dimension_numbers = #tpu.dot_dimension_numbers<[1], [0], [0], [1], [0, 0, 1, 1], [], []>} : vector<16x512xbf16>, vector<512x32xbf16>, vector<16x32xf32> -> vector<16x32xf32>
    %319 = vector.broadcast %305 : vector<1x32xf32> to vector<16x32xf32>
    %320 = arith.addf %319, %318 : vector<16x32xf32>
    %c0_152 = arith.constant 0 : index
    %c0_153 = arith.constant 0 : index
    %c512 = arith.constant 512 : index
    %321 = vector.load %arg17[%c0_152, %c0_153, %c512] : memref<2x32x2048xbf16, #tpu.memory_space<vmem>>, vector<1x32x512xbf16>
    %322 = vector.shape_cast %321 : vector<1x32x512xbf16> to vector<32x512xbf16>
    %cst_154 = arith.constant dense<0.000000e+00> : vector<16x512xf32>
    %323 = tpu.matmul %303, %322, %cst_154 {dimension_numbers = #tpu.dot_dimension_numbers<[1], [0], [0], [1], [0, 0, 1, 1], [], []>} : vector<16x32xbf16>, vector<32x512xbf16>, vector<16x512xf32> -> vector<16x512xf32>
    %c0_155 = arith.constant 0 : index
    %c0_156 = arith.constant 0 : index
    %c512_157 = arith.constant 512 : index
    %324 = vector.load %arg18[%c0_155, %c0_156, %c512_157] : memref<2x1x2048xf32, #tpu.memory_space<vmem>>, vector<1x1x512xf32>
    %325 = vector.shape_cast %324 : vector<1x1x512xf32> to vector<1x512xf32>
    %326 = vector.broadcast %325 : vector<1x512xf32> to vector<16x512xf32>
    %327 = arith.addf %323, %326 : vector<16x512xf32>
    %cst_158 = arith.constant 0.000000e+00 : f32
    %328 = vector.broadcast %cst_158 : f32 to vector<16x512xf32>
    %329 = arith.maximumf %327, %328 : vector<16x512xf32>
    %330 = arith.truncf %329 : vector<16x512xf32> to vector<16x512xbf16>
    %c0_159 = arith.constant 0 : index
    %c512_160 = arith.constant 512 : index
    %c0_161 = arith.constant 0 : index
    %331 = vector.load %arg19[%c0_159, %c512_160, %c0_161] : memref<2x2048x32xbf16, #tpu.memory_space<vmem>>, vector<1x512x32xbf16>
    %332 = vector.shape_cast %331 : vector<1x512x32xbf16> to vector<512x32xbf16>
    %cst_162 = arith.constant dense<0.000000e+00> : vector<16x32xf32>
    %333 = tpu.matmul %330, %332, %cst_162 {dimension_numbers = #tpu.dot_dimension_numbers<[1], [0], [0], [1], [0, 0, 1, 1], [], []>} : vector<16x512xbf16>, vector<512x32xbf16>, vector<16x32xf32> -> vector<16x32xf32>
    %334 = arith.addf %320, %333 : vector<16x32xf32>
    %c0_163 = arith.constant 0 : index
    %c0_164 = arith.constant 0 : index
    %c1024 = arith.constant 1024 : index
    %335 = vector.load %arg17[%c0_163, %c0_164, %c1024] : memref<2x32x2048xbf16, #tpu.memory_space<vmem>>, vector<1x32x512xbf16>
    %336 = vector.shape_cast %335 : vector<1x32x512xbf16> to vector<32x512xbf16>
    %cst_165 = arith.constant dense<0.000000e+00> : vector<16x512xf32>
    %337 = tpu.matmul %303, %336, %cst_165 {dimension_numbers = #tpu.dot_dimension_numbers<[1], [0], [0], [1], [0, 0, 1, 1], [], []>} : vector<16x32xbf16>, vector<32x512xbf16>, vector<16x512xf32> -> vector<16x512xf32>
    %c0_166 = arith.constant 0 : index
    %c0_167 = arith.constant 0 : index
    %c1024_168 = arith.constant 1024 : index
    %338 = vector.load %arg18[%c0_166, %c0_167, %c1024_168] : memref<2x1x2048xf32, #tpu.memory_space<vmem>>, vector<1x1x512xf32>
    %339 = vector.shape_cast %338 : vector<1x1x512xf32> to vector<1x512xf32>
    %340 = vector.broadcast %339 : vector<1x512xf32> to vector<16x512xf32>
    %341 = arith.addf %337, %340 : vector<16x512xf32>
    %cst_169 = arith.constant 0.000000e+00 : f32
    %342 = vector.broadcast %cst_169 : f32 to vector<16x512xf32>
    %343 = arith.maximumf %341, %342 : vector<16x512xf32>
    %344 = arith.truncf %343 : vector<16x512xf32> to vector<16x512xbf16>
    %c0_170 = arith.constant 0 : index
    %c1024_171 = arith.constant 1024 : index
    %c0_172 = arith.constant 0 : index
    %345 = vector.load %arg19[%c0_170, %c1024_171, %c0_172] : memref<2x2048x32xbf16, #tpu.memory_space<vmem>>, vector<1x512x32xbf16>
    %346 = vector.shape_cast %345 : vector<1x512x32xbf16> to vector<512x32xbf16>
    %cst_173 = arith.constant dense<0.000000e+00> : vector<16x32xf32>
    %347 = tpu.matmul %344, %346, %cst_173 {dimension_numbers = #tpu.dot_dimension_numbers<[1], [0], [0], [1], [0, 0, 1, 1], [], []>} : vector<16x512xbf16>, vector<512x32xbf16>, vector<16x32xf32> -> vector<16x32xf32>
    %348 = arith.addf %334, %347 : vector<16x32xf32>
    %c0_174 = arith.constant 0 : index
    %c0_175 = arith.constant 0 : index
    %c1536 = arith.constant 1536 : index
    %349 = vector.load %arg17[%c0_174, %c0_175, %c1536] : memref<2x32x2048xbf16, #tpu.memory_space<vmem>>, vector<1x32x512xbf16>
    %350 = vector.shape_cast %349 : vector<1x32x512xbf16> to vector<32x512xbf16>
    %cst_176 = arith.constant dense<0.000000e+00> : vector<16x512xf32>
    %351 = tpu.matmul %303, %350, %cst_176 {dimension_numbers = #tpu.dot_dimension_numbers<[1], [0], [0], [1], [0, 0, 1, 1], [], []>} : vector<16x32xbf16>, vector<32x512xbf16>, vector<16x512xf32> -> vector<16x512xf32>
    %c0_177 = arith.constant 0 : index
    %c0_178 = arith.constant 0 : index
    %c1536_179 = arith.constant 1536 : index
    %352 = vector.load %arg18[%c0_177, %c0_178, %c1536_179] : memref<2x1x2048xf32, #tpu.memory_space<vmem>>, vector<1x1x512xf32>
    %353 = vector.shape_cast %352 : vector<1x1x512xf32> to vector<1x512xf32>
    %354 = vector.broadcast %353 : vector<1x512xf32> to vector<16x512xf32>
    %355 = arith.addf %351, %354 : vector<16x512xf32>
    %cst_180 = arith.constant 0.000000e+00 : f32
    %356 = vector.broadcast %cst_180 : f32 to vector<16x512xf32>
    %357 = arith.maximumf %355, %356 : vector<16x512xf32>
    %358 = arith.truncf %357 : vector<16x512xf32> to vector<16x512xbf16>
    %c0_181 = arith.constant 0 : index
    %c1536_182 = arith.constant 1536 : index
    %c0_183 = arith.constant 0 : index
    %359 = vector.load %arg19[%c0_181, %c1536_182, %c0_183] : memref<2x2048x32xbf16, #tpu.memory_space<vmem>>, vector<1x512x32xbf16>
    %360 = vector.shape_cast %359 : vector<1x512x32xbf16> to vector<512x32xbf16>
    %cst_184 = arith.constant dense<0.000000e+00> : vector<16x32xf32>
    %361 = tpu.matmul %358, %360, %cst_184 {dimension_numbers = #tpu.dot_dimension_numbers<[1], [0], [0], [1], [0, 0, 1, 1], [], []>} : vector<16x512xbf16>, vector<512x32xbf16>, vector<16x32xf32> -> vector<16x32xf32>
    %362 = arith.addf %348, %361 : vector<16x32xf32>
    %363 = vector.extract_strided_slice %20 {offsets = [2, 0], sizes = [1, 32], strides = [1, 1]} : vector<3x32xf32> to vector<1x32xf32>
    %364 = vector.extract_strided_slice %22 {offsets = [2, 0], sizes = [1, 32], strides = [1, 1]} : vector<3x32xf32> to vector<1x32xf32>
    %365 = arith.addf %302, %362 : vector<16x32xf32>
    %cst_185 = arith.constant dense<0.000000e+00> : vector<16xf32>
    %366 = vector.multi_reduction <add>, %365, %cst_185 [1] : vector<16x32xf32> to vector<16xf32>
    %367 = vector.shape_cast %366 : vector<16xf32> to vector<16x1xf32>
    %cst_186 = arith.constant 3.200000e+01 : f32
    %368 = vector.broadcast %cst_186 : f32 to vector<16x1xf32>
    %369 = arith.divf %367, %368 : vector<16x1xf32>
    %370 = arith.mulf %365, %365 : vector<16x32xf32>
    %cst_187 = arith.constant dense<0.000000e+00> : vector<16xf32>
    %371 = vector.multi_reduction <add>, %370, %cst_187 [1] : vector<16x32xf32> to vector<16xf32>
    %372 = vector.shape_cast %371 : vector<16xf32> to vector<16x1xf32>
    %cst_188 = arith.constant 3.200000e+01 : f32
    %373 = vector.broadcast %cst_188 : f32 to vector<16x1xf32>
    %374 = arith.divf %372, %373 : vector<16x1xf32>
    %375 = arith.mulf %369, %369 : vector<16x1xf32>
    %376 = arith.subf %374, %375 : vector<16x1xf32>
    %377 = vector.broadcast %369 : vector<16x1xf32> to vector<16x32xf32>
    %378 = arith.subf %365, %377 : vector<16x32xf32>
    %cst_189 = arith.constant 9.99999974E-6 : f32
    %379 = vector.broadcast %cst_189 : f32 to vector<16x1xf32>
    %380 = arith.addf %376, %379 : vector<16x1xf32>
    %381 = math.rsqrt %380 : vector<16x1xf32>
    %382 = vector.broadcast %381 : vector<16x1xf32> to vector<16x32xf32>
    %383 = arith.mulf %378, %382 : vector<16x32xf32>
    %384 = vector.broadcast %363 : vector<1x32xf32> to vector<16x32xf32>
    %385 = arith.mulf %383, %384 : vector<16x32xf32>
    %386 = vector.broadcast %364 : vector<1x32xf32> to vector<16x32xf32>
    %387 = arith.addf %385, %386 : vector<16x32xf32>
    %c1_190 = arith.constant 1 : index
    %c0_191 = arith.constant 0 : index
    %c0_192 = arith.constant 0 : index
    %388 = vector.load %arg15[%c1_190, %c0_191, %c0_192] : memref<2x3x32xf32, #tpu.memory_space<vmem>>, vector<1x3x32xf32>
    %389 = vector.shape_cast %388 : vector<1x3x32xf32> to vector<3x32xf32>
    %c1_193 = arith.constant 1 : index
    %c0_194 = arith.constant 0 : index
    %c0_195 = arith.constant 0 : index
    %390 = vector.load %arg16[%c1_193, %c0_194, %c0_195] : memref<2x3x32xf32, #tpu.memory_space<vmem>>, vector<1x3x32xf32>
    %391 = vector.shape_cast %390 : vector<1x3x32xf32> to vector<3x32xf32>
    %392 = arith.truncf %387 : vector<16x32xf32> to vector<16x32xbf16>
    %c1_196 = arith.constant 1 : index
    %c0_197 = arith.constant 0 : index
    %c0_198 = arith.constant 0 : index
    %c0_199 = arith.constant 0 : index
    %393 = vector.load %arg7[%c1_196, %c0_197, %c0_198, %c0_199] : memref<2x3x32x32xbf16, #tpu.memory_space<vmem>>, vector<1x1x32x32xbf16>
    %394 = vector.shape_cast %393 : vector<1x1x32x32xbf16> to vector<32x32xbf16>
    %cst_200 = arith.constant dense<0.000000e+00> : vector<16x32xf32>
    %395 = tpu.matmul %392, %394, %cst_200 {dimension_numbers = #tpu.dot_dimension_numbers<[1], [0], [0], [1], [0, 0, 1, 1], [], []>} : vector<16x32xbf16>, vector<32x32xbf16>, vector<16x32xf32> -> vector<16x32xf32>
    %c1_201 = arith.constant 1 : index
    %c0_202 = arith.constant 0 : index
    %c0_203 = arith.constant 0 : index
    %c0_204 = arith.constant 0 : index
    %396 = vector.load %arg8[%c1_201, %c0_202, %c0_203, %c0_204] : memref<2x3x1x32xf32, #tpu.memory_space<vmem>>, vector<1x1x1x32xf32>
    %397 = vector.shape_cast %396 : vector<1x1x1x32xf32> to vector<1x32xf32>
    %398 = vector.broadcast %397 : vector<1x32xf32> to vector<16x32xf32>
    %399 = arith.addf %395, %398 : vector<16x32xf32>
    %c1_205 = arith.constant 1 : index
    %c1_206 = arith.constant 1 : index
    %c0_207 = arith.constant 0 : index
    %c0_208 = arith.constant 0 : index
    %400 = vector.load %arg7[%c1_205, %c1_206, %c0_207, %c0_208] : memref<2x3x32x32xbf16, #tpu.memory_space<vmem>>, vector<1x1x32x32xbf16>
    %401 = vector.shape_cast %400 : vector<1x1x32x32xbf16> to vector<32x32xbf16>
    %cst_209 = arith.constant dense<0.000000e+00> : vector<16x32xf32>
    %402 = tpu.matmul %392, %401, %cst_209 {dimension_numbers = #tpu.dot_dimension_numbers<[1], [0], [0], [1], [0, 0, 1, 1], [], []>} : vector<16x32xbf16>, vector<32x32xbf16>, vector<16x32xf32> -> vector<16x32xf32>
    %c1_210 = arith.constant 1 : index
    %c1_211 = arith.constant 1 : index
    %c0_212 = arith.constant 0 : index
    %c0_213 = arith.constant 0 : index
    %403 = vector.load %arg8[%c1_210, %c1_211, %c0_212, %c0_213] : memref<2x3x1x32xf32, #tpu.memory_space<vmem>>, vector<1x1x1x32xf32>
    %404 = vector.shape_cast %403 : vector<1x1x1x32xf32> to vector<1x32xf32>
    %405 = vector.broadcast %404 : vector<1x32xf32> to vector<16x32xf32>
    %406 = arith.addf %402, %405 : vector<16x32xf32>
    %c1_214 = arith.constant 1 : index
    %c2_215 = arith.constant 2 : index
    %c0_216 = arith.constant 0 : index
    %c0_217 = arith.constant 0 : index
    %407 = vector.load %arg7[%c1_214, %c2_215, %c0_216, %c0_217] : memref<2x3x32x32xbf16, #tpu.memory_space<vmem>>, vector<1x1x32x32xbf16>
    %408 = vector.shape_cast %407 : vector<1x1x32x32xbf16> to vector<32x32xbf16>
    %cst_218 = arith.constant dense<0.000000e+00> : vector<16x32xf32>
    %409 = tpu.matmul %392, %408, %cst_218 {dimension_numbers = #tpu.dot_dimension_numbers<[1], [0], [0], [1], [0, 0, 1, 1], [], []>} : vector<16x32xbf16>, vector<32x32xbf16>, vector<16x32xf32> -> vector<16x32xf32>
    %c1_219 = arith.constant 1 : index
    %c2_220 = arith.constant 2 : index
    %c0_221 = arith.constant 0 : index
    %c0_222 = arith.constant 0 : index
    %410 = vector.load %arg8[%c1_219, %c2_220, %c0_221, %c0_222] : memref<2x3x1x32xf32, #tpu.memory_space<vmem>>, vector<1x1x1x32xf32>
    %411 = vector.shape_cast %410 : vector<1x1x1x32xf32> to vector<1x32xf32>
    %412 = vector.broadcast %411 : vector<1x32xf32> to vector<16x32xf32>
    %413 = arith.addf %409, %412 : vector<16x32xf32>
    %414 = vector.shape_cast %399 : vector<16x32xf32> to vector<2x8x32xf32>
    %415 = vector.shape_cast %406 : vector<16x32xf32> to vector<2x8x32xf32>
    %416 = vector.shape_cast %413 : vector<16x32xf32> to vector<2x8x32xf32>
    %417 = vector.extract_strided_slice %414 {offsets = [0, 0, 0], sizes = [2, 8, 8], strides = [1, 1, 1]} : vector<2x8x32xf32> to vector<2x8x8xf32>
    %418 = vector.extract_strided_slice %415 {offsets = [0, 0, 0], sizes = [2, 8, 8], strides = [1, 1, 1]} : vector<2x8x32xf32> to vector<2x8x8xf32>
    "tpu.trace_start"() <{level = 10 : i32, message = "bqd,bkd->bqk"}> : () -> ()
    %cst_223 = arith.constant dense<0.000000e+00> : vector<2x8x8xf32>
    %419 = tpu.matmul %417, %418, %cst_223 {dimension_numbers = #tpu.dot_dimension_numbers<[2], [2], [1], [1], [0, 0, 0, 1, 1, 1], [0], [0]>} : vector<2x8x8xf32>, vector<2x8x8xf32>, vector<2x8x8xf32> -> vector<2x8x8xf32>
    "tpu.trace_stop"() : () -> ()
    %cst_224 = arith.constant 0.353553385 : f32
    %420 = vector.broadcast %cst_224 : f32 to vector<2x8x8xf32>
    %421 = arith.mulf %419, %420 : vector<2x8x8xf32>
    %422 = vector.shape_cast %17 : vector<8x8xf32> to vector<1x8x8xf32>
    %423 = vector.broadcast %422 : vector<1x8x8xf32> to vector<2x8x8xf32>
    %424 = arith.addf %421, %423 : vector<2x8x8xf32>
    %425 = vector.shape_cast %18 : vector<2x8xf32> to vector<2x1x8xf32>
    %426 = vector.broadcast %425 : vector<2x1x8xf32> to vector<2x8x8xf32>
    %427 = arith.addf %424, %426 : vector<2x8x8xf32>
    %cst_225 = arith.constant dense<0xFF800000> : vector<2x8xf32>
    %428 = vector.multi_reduction <maximumf>, %427, %cst_225 [2] : vector<2x8x8xf32> to vector<2x8xf32>
    %429 = vector.shape_cast %428 : vector<2x8xf32> to vector<2x8x1xf32>
    %430 = vector.broadcast %429 : vector<2x8x1xf32> to vector<2x8x8xf32>
    %431 = arith.subf %427, %430 : vector<2x8x8xf32>
    %432 = math.exp %431 : vector<2x8x8xf32>
    %cst_226 = arith.constant dense<0.000000e+00> : vector<2x8xf32>
    %433 = vector.multi_reduction <add>, %432, %cst_226 [2] : vector<2x8x8xf32> to vector<2x8xf32>
    %434 = vector.shape_cast %433 : vector<2x8xf32> to vector<2x8x1xf32>
    %435 = tpu.reciprocal %434 {approx = true} : vector<2x8x1xf32> -> vector<2x8x1xf32>
    %436 = vector.broadcast %435 : vector<2x8x1xf32> to vector<2x8x8xf32>
    %437 = arith.mulf %432, %436 : vector<2x8x8xf32>
    %438 = vector.extract_strided_slice %416 {offsets = [0, 0, 0], sizes = [2, 8, 8], strides = [1, 1, 1]} : vector<2x8x32xf32> to vector<2x8x8xf32>
    "tpu.trace_start"() <{level = 10 : i32, message = "bqk,bkd->bqd"}> : () -> ()
    %cst_227 = arith.constant dense<0.000000e+00> : vector<2x8x8xf32>
    %439 = tpu.matmul %437, %438, %cst_227 {dimension_numbers = #tpu.dot_dimension_numbers<[2], [1], [1], [2], [0, 0, 0, 1, 1, 2], [0], [0]>} : vector<2x8x8xf32>, vector<2x8x8xf32>, vector<2x8x8xf32> -> vector<2x8x8xf32>
    "tpu.trace_stop"() : () -> ()
    %440 = vector.extract_strided_slice %414 {offsets = [0, 0, 8], sizes = [2, 8, 8], strides = [1, 1, 1]} : vector<2x8x32xf32> to vector<2x8x8xf32>
    %441 = vector.extract_strided_slice %415 {offsets = [0, 0, 8], sizes = [2, 8, 8], strides = [1, 1, 1]} : vector<2x8x32xf32> to vector<2x8x8xf32>
    "tpu.trace_start"() <{level = 10 : i32, message = "bqd,bkd->bqk"}> : () -> ()
    %cst_228 = arith.constant dense<0.000000e+00> : vector<2x8x8xf32>
    %442 = tpu.matmul %440, %441, %cst_228 {dimension_numbers = #tpu.dot_dimension_numbers<[2], [2], [1], [1], [0, 0, 0, 1, 1, 1], [0], [0]>} : vector<2x8x8xf32>, vector<2x8x8xf32>, vector<2x8x8xf32> -> vector<2x8x8xf32>
    "tpu.trace_stop"() : () -> ()
    %cst_229 = arith.constant 0.353553385 : f32
    %443 = vector.broadcast %cst_229 : f32 to vector<2x8x8xf32>
    %444 = arith.mulf %442, %443 : vector<2x8x8xf32>
    %445 = vector.shape_cast %17 : vector<8x8xf32> to vector<1x8x8xf32>
    %446 = vector.broadcast %445 : vector<1x8x8xf32> to vector<2x8x8xf32>
    %447 = arith.addf %444, %446 : vector<2x8x8xf32>
    %448 = vector.shape_cast %18 : vector<2x8xf32> to vector<2x1x8xf32>
    %449 = vector.broadcast %448 : vector<2x1x8xf32> to vector<2x8x8xf32>
    %450 = arith.addf %447, %449 : vector<2x8x8xf32>
    %cst_230 = arith.constant dense<0xFF800000> : vector<2x8xf32>
    %451 = vector.multi_reduction <maximumf>, %450, %cst_230 [2] : vector<2x8x8xf32> to vector<2x8xf32>
    %452 = vector.shape_cast %451 : vector<2x8xf32> to vector<2x8x1xf32>
    %453 = vector.broadcast %452 : vector<2x8x1xf32> to vector<2x8x8xf32>
    %454 = arith.subf %450, %453 : vector<2x8x8xf32>
    %455 = math.exp %454 : vector<2x8x8xf32>
    %cst_231 = arith.constant dense<0.000000e+00> : vector<2x8xf32>
    %456 = vector.multi_reduction <add>, %455, %cst_231 [2] : vector<2x8x8xf32> to vector<2x8xf32>
    %457 = vector.shape_cast %456 : vector<2x8xf32> to vector<2x8x1xf32>
    %458 = tpu.reciprocal %457 {approx = true} : vector<2x8x1xf32> -> vector<2x8x1xf32>
    %459 = vector.broadcast %458 : vector<2x8x1xf32> to vector<2x8x8xf32>
    %460 = arith.mulf %455, %459 : vector<2x8x8xf32>
    %461 = vector.extract_strided_slice %416 {offsets = [0, 0, 8], sizes = [2, 8, 8], strides = [1, 1, 1]} : vector<2x8x32xf32> to vector<2x8x8xf32>
    "tpu.trace_start"() <{level = 10 : i32, message = "bqk,bkd->bqd"}> : () -> ()
    %cst_232 = arith.constant dense<0.000000e+00> : vector<2x8x8xf32>
    %462 = tpu.matmul %460, %461, %cst_232 {dimension_numbers = #tpu.dot_dimension_numbers<[2], [1], [1], [2], [0, 0, 0, 1, 1, 2], [0], [0]>} : vector<2x8x8xf32>, vector<2x8x8xf32>, vector<2x8x8xf32> -> vector<2x8x8xf32>
    "tpu.trace_stop"() : () -> ()
    %463 = vector.extract_strided_slice %414 {offsets = [0, 0, 16], sizes = [2, 8, 8], strides = [1, 1, 1]} : vector<2x8x32xf32> to vector<2x8x8xf32>
    %464 = vector.extract_strided_slice %415 {offsets = [0, 0, 16], sizes = [2, 8, 8], strides = [1, 1, 1]} : vector<2x8x32xf32> to vector<2x8x8xf32>
    "tpu.trace_start"() <{level = 10 : i32, message = "bqd,bkd->bqk"}> : () -> ()
    %cst_233 = arith.constant dense<0.000000e+00> : vector<2x8x8xf32>
    %465 = tpu.matmul %463, %464, %cst_233 {dimension_numbers = #tpu.dot_dimension_numbers<[2], [2], [1], [1], [0, 0, 0, 1, 1, 1], [0], [0]>} : vector<2x8x8xf32>, vector<2x8x8xf32>, vector<2x8x8xf32> -> vector<2x8x8xf32>
    "tpu.trace_stop"() : () -> ()
    %cst_234 = arith.constant 0.353553385 : f32
    %466 = vector.broadcast %cst_234 : f32 to vector<2x8x8xf32>
    %467 = arith.mulf %465, %466 : vector<2x8x8xf32>
    %468 = vector.shape_cast %17 : vector<8x8xf32> to vector<1x8x8xf32>
    %469 = vector.broadcast %468 : vector<1x8x8xf32> to vector<2x8x8xf32>
    %470 = arith.addf %467, %469 : vector<2x8x8xf32>
    %471 = vector.shape_cast %18 : vector<2x8xf32> to vector<2x1x8xf32>
    %472 = vector.broadcast %471 : vector<2x1x8xf32> to vector<2x8x8xf32>
    %473 = arith.addf %470, %472 : vector<2x8x8xf32>
    %cst_235 = arith.constant dense<0xFF800000> : vector<2x8xf32>
    %474 = vector.multi_reduction <maximumf>, %473, %cst_235 [2] : vector<2x8x8xf32> to vector<2x8xf32>
    %475 = vector.shape_cast %474 : vector<2x8xf32> to vector<2x8x1xf32>
    %476 = vector.broadcast %475 : vector<2x8x1xf32> to vector<2x8x8xf32>
    %477 = arith.subf %473, %476 : vector<2x8x8xf32>
    %478 = math.exp %477 : vector<2x8x8xf32>
    %cst_236 = arith.constant dense<0.000000e+00> : vector<2x8xf32>
    %479 = vector.multi_reduction <add>, %478, %cst_236 [2] : vector<2x8x8xf32> to vector<2x8xf32>
    %480 = vector.shape_cast %479 : vector<2x8xf32> to vector<2x8x1xf32>
    %481 = tpu.reciprocal %480 {approx = true} : vector<2x8x1xf32> -> vector<2x8x1xf32>
    %482 = vector.broadcast %481 : vector<2x8x1xf32> to vector<2x8x8xf32>
    %483 = arith.mulf %478, %482 : vector<2x8x8xf32>
    %484 = vector.extract_strided_slice %416 {offsets = [0, 0, 16], sizes = [2, 8, 8], strides = [1, 1, 1]} : vector<2x8x32xf32> to vector<2x8x8xf32>
    "tpu.trace_start"() <{level = 10 : i32, message = "bqk,bkd->bqd"}> : () -> ()
    %cst_237 = arith.constant dense<0.000000e+00> : vector<2x8x8xf32>
    %485 = tpu.matmul %483, %484, %cst_237 {dimension_numbers = #tpu.dot_dimension_numbers<[2], [1], [1], [2], [0, 0, 0, 1, 1, 2], [0], [0]>} : vector<2x8x8xf32>, vector<2x8x8xf32>, vector<2x8x8xf32> -> vector<2x8x8xf32>
    "tpu.trace_stop"() : () -> ()
    %486 = vector.extract_strided_slice %414 {offsets = [0, 0, 24], sizes = [2, 8, 8], strides = [1, 1, 1]} : vector<2x8x32xf32> to vector<2x8x8xf32>
    %487 = vector.extract_strided_slice %415 {offsets = [0, 0, 24], sizes = [2, 8, 8], strides = [1, 1, 1]} : vector<2x8x32xf32> to vector<2x8x8xf32>
    "tpu.trace_start"() <{level = 10 : i32, message = "bqd,bkd->bqk"}> : () -> ()
    %cst_238 = arith.constant dense<0.000000e+00> : vector<2x8x8xf32>
    %488 = tpu.matmul %486, %487, %cst_238 {dimension_numbers = #tpu.dot_dimension_numbers<[2], [2], [1], [1], [0, 0, 0, 1, 1, 1], [0], [0]>} : vector<2x8x8xf32>, vector<2x8x8xf32>, vector<2x8x8xf32> -> vector<2x8x8xf32>
    "tpu.trace_stop"() : () -> ()
    %cst_239 = arith.constant 0.353553385 : f32
    %489 = vector.broadcast %cst_239 : f32 to vector<2x8x8xf32>
    %490 = arith.mulf %488, %489 : vector<2x8x8xf32>
    %491 = vector.shape_cast %17 : vector<8x8xf32> to vector<1x8x8xf32>
    %492 = vector.broadcast %491 : vector<1x8x8xf32> to vector<2x8x8xf32>
    %493 = arith.addf %490, %492 : vector<2x8x8xf32>
    %494 = vector.shape_cast %18 : vector<2x8xf32> to vector<2x1x8xf32>
    %495 = vector.broadcast %494 : vector<2x1x8xf32> to vector<2x8x8xf32>
    %496 = arith.addf %493, %495 : vector<2x8x8xf32>
    %cst_240 = arith.constant dense<0xFF800000> : vector<2x8xf32>
    %497 = vector.multi_reduction <maximumf>, %496, %cst_240 [2] : vector<2x8x8xf32> to vector<2x8xf32>
    %498 = vector.shape_cast %497 : vector<2x8xf32> to vector<2x8x1xf32>
    %499 = vector.broadcast %498 : vector<2x8x1xf32> to vector<2x8x8xf32>
    %500 = arith.subf %496, %499 : vector<2x8x8xf32>
    %501 = math.exp %500 : vector<2x8x8xf32>
    %cst_241 = arith.constant dense<0.000000e+00> : vector<2x8xf32>
    %502 = vector.multi_reduction <add>, %501, %cst_241 [2] : vector<2x8x8xf32> to vector<2x8xf32>
    %503 = vector.shape_cast %502 : vector<2x8xf32> to vector<2x8x1xf32>
    %504 = tpu.reciprocal %503 {approx = true} : vector<2x8x1xf32> -> vector<2x8x1xf32>
    %505 = vector.broadcast %504 : vector<2x8x1xf32> to vector<2x8x8xf32>
    %506 = arith.mulf %501, %505 : vector<2x8x8xf32>
    %507 = vector.extract_strided_slice %416 {offsets = [0, 0, 24], sizes = [2, 8, 8], strides = [1, 1, 1]} : vector<2x8x32xf32> to vector<2x8x8xf32>
    "tpu.trace_start"() <{level = 10 : i32, message = "bqk,bkd->bqd"}> : () -> ()
    %cst_242 = arith.constant dense<0.000000e+00> : vector<2x8x8xf32>
    %508 = tpu.matmul %506, %507, %cst_242 {dimension_numbers = #tpu.dot_dimension_numbers<[2], [1], [1], [2], [0, 0, 0, 1, 1, 2], [0], [0]>} : vector<2x8x8xf32>, vector<2x8x8xf32>, vector<2x8x8xf32> -> vector<2x8x8xf32>
    "tpu.trace_stop"() : () -> ()
    %509 = tpu.concatenate %439, %462, %485, %508 in 2 : vector<2x8x8xf32>, vector<2x8x8xf32>, vector<2x8x8xf32>, vector<2x8x8xf32> -> vector<2x8x32xf32>
    %510 = vector.shape_cast %509 : vector<2x8x32xf32> to vector<16x32xf32>
    %511 = arith.truncf %510 : vector<16x32xf32> to vector<16x32xbf16>
    %c1_243 = arith.constant 1 : index
    %c0_244 = arith.constant 0 : index
    %c0_245 = arith.constant 0 : index
    %512 = vector.load %arg9[%c1_243, %c0_244, %c0_245] : memref<2x32x32xbf16, #tpu.memory_space<vmem>>, vector<1x32x32xbf16>
    %513 = vector.shape_cast %512 : vector<1x32x32xbf16> to vector<32x32xbf16>
    %cst_246 = arith.constant dense<0.000000e+00> : vector<16x32xf32>
    %514 = tpu.matmul %511, %513, %cst_246 {dimension_numbers = #tpu.dot_dimension_numbers<[1], [0], [0], [1], [0, 0, 1, 1], [], []>} : vector<16x32xbf16>, vector<32x32xbf16>, vector<16x32xf32> -> vector<16x32xf32>
    %c1_247 = arith.constant 1 : index
    %c0_248 = arith.constant 0 : index
    %c0_249 = arith.constant 0 : index
    %515 = vector.load %arg10[%c1_247, %c0_248, %c0_249] : memref<2x1x32xf32, #tpu.memory_space<vmem>>, vector<1x1x32xf32>
    %516 = vector.shape_cast %515 : vector<1x1x32xf32> to vector<1x32xf32>
    %517 = vector.broadcast %516 : vector<1x32xf32> to vector<16x32xf32>
    %518 = arith.addf %514, %517 : vector<16x32xf32>
    %519 = vector.extract_strided_slice %389 {offsets = [0, 0], sizes = [1, 32], strides = [1, 1]} : vector<3x32xf32> to vector<1x32xf32>
    %520 = vector.extract_strided_slice %391 {offsets = [0, 0], sizes = [1, 32], strides = [1, 1]} : vector<3x32xf32> to vector<1x32xf32>
    %521 = arith.addf %387, %518 : vector<16x32xf32>
    %cst_250 = arith.constant dense<0.000000e+00> : vector<16xf32>
    %522 = vector.multi_reduction <add>, %521, %cst_250 [1] : vector<16x32xf32> to vector<16xf32>
    %523 = vector.shape_cast %522 : vector<16xf32> to vector<16x1xf32>
    %cst_251 = arith.constant 3.200000e+01 : f32
    %524 = vector.broadcast %cst_251 : f32 to vector<16x1xf32>
    %525 = arith.divf %523, %524 : vector<16x1xf32>
    %526 = arith.mulf %521, %521 : vector<16x32xf32>
    %cst_252 = arith.constant dense<0.000000e+00> : vector<16xf32>
    %527 = vector.multi_reduction <add>, %526, %cst_252 [1] : vector<16x32xf32> to vector<16xf32>
    %528 = vector.shape_cast %527 : vector<16xf32> to vector<16x1xf32>
    %cst_253 = arith.constant 3.200000e+01 : f32
    %529 = vector.broadcast %cst_253 : f32 to vector<16x1xf32>
    %530 = arith.divf %528, %529 : vector<16x1xf32>
    %531 = arith.mulf %525, %525 : vector<16x1xf32>
    %532 = arith.subf %530, %531 : vector<16x1xf32>
    %533 = vector.broadcast %525 : vector<16x1xf32> to vector<16x32xf32>
    %534 = arith.subf %521, %533 : vector<16x32xf32>
    %cst_254 = arith.constant 9.99999974E-6 : f32
    %535 = vector.broadcast %cst_254 : f32 to vector<16x1xf32>
    %536 = arith.addf %532, %535 : vector<16x1xf32>
    %537 = math.rsqrt %536 : vector<16x1xf32>
    %538 = vector.broadcast %537 : vector<16x1xf32> to vector<16x32xf32>
    %539 = arith.mulf %534, %538 : vector<16x32xf32>
    %540 = vector.broadcast %519 : vector<1x32xf32> to vector<16x32xf32>
    %541 = arith.mulf %539, %540 : vector<16x32xf32>
    %542 = vector.broadcast %520 : vector<1x32xf32> to vector<16x32xf32>
    %543 = arith.addf %541, %542 : vector<16x32xf32>
    %544 = arith.truncf %543 : vector<16x32xf32> to vector<16x32xbf16>
    %c1_255 = arith.constant 1 : index
    %c0_256 = arith.constant 0 : index
    %c0_257 = arith.constant 0 : index
    %c0_258 = arith.constant 0 : index
    %545 = vector.load %arg11[%c1_255, %c0_256, %c0_257, %c0_258] : memref<2x3x32x32xbf16, #tpu.memory_space<vmem>>, vector<1x1x32x32xbf16>
    %546 = vector.shape_cast %545 : vector<1x1x32x32xbf16> to vector<32x32xbf16>
    %cst_259 = arith.constant dense<0.000000e+00> : vector<16x32xf32>
    %547 = tpu.matmul %544, %546, %cst_259 {dimension_numbers = #tpu.dot_dimension_numbers<[1], [0], [0], [1], [0, 0, 1, 1], [], []>} : vector<16x32xbf16>, vector<32x32xbf16>, vector<16x32xf32> -> vector<16x32xf32>
    %c1_260 = arith.constant 1 : index
    %c0_261 = arith.constant 0 : index
    %c0_262 = arith.constant 0 : index
    %c0_263 = arith.constant 0 : index
    %548 = vector.load %arg12[%c1_260, %c0_261, %c0_262, %c0_263] : memref<2x3x1x32xf32, #tpu.memory_space<vmem>>, vector<1x1x1x32xf32>
    %549 = vector.shape_cast %548 : vector<1x1x1x32xf32> to vector<1x32xf32>
    %550 = vector.broadcast %549 : vector<1x32xf32> to vector<16x32xf32>
    %551 = arith.addf %547, %550 : vector<16x32xf32>
    %c1_264 = arith.constant 1 : index
    %c1_265 = arith.constant 1 : index
    %c0_266 = arith.constant 0 : index
    %c0_267 = arith.constant 0 : index
    %552 = vector.load %arg11[%c1_264, %c1_265, %c0_266, %c0_267] : memref<2x3x32x32xbf16, #tpu.memory_space<vmem>>, vector<1x1x32x32xbf16>
    %553 = vector.shape_cast %552 : vector<1x1x32x32xbf16> to vector<32x32xbf16>
    %cst_268 = arith.constant dense<0.000000e+00> : vector<16x32xf32>
    %554 = tpu.matmul %16, %553, %cst_268 {dimension_numbers = #tpu.dot_dimension_numbers<[1], [0], [0], [1], [0, 0, 1, 1], [], []>} : vector<16x32xbf16>, vector<32x32xbf16>, vector<16x32xf32> -> vector<16x32xf32>
    %c1_269 = arith.constant 1 : index
    %c1_270 = arith.constant 1 : index
    %c0_271 = arith.constant 0 : index
    %c0_272 = arith.constant 0 : index
    %555 = vector.load %arg12[%c1_269, %c1_270, %c0_271, %c0_272] : memref<2x3x1x32xf32, #tpu.memory_space<vmem>>, vector<1x1x1x32xf32>
    %556 = vector.shape_cast %555 : vector<1x1x1x32xf32> to vector<1x32xf32>
    %557 = vector.broadcast %556 : vector<1x32xf32> to vector<16x32xf32>
    %558 = arith.addf %554, %557 : vector<16x32xf32>
    %c1_273 = arith.constant 1 : index
    %c2_274 = arith.constant 2 : index
    %c0_275 = arith.constant 0 : index
    %c0_276 = arith.constant 0 : index
    %559 = vector.load %arg11[%c1_273, %c2_274, %c0_275, %c0_276] : memref<2x3x32x32xbf16, #tpu.memory_space<vmem>>, vector<1x1x32x32xbf16>
    %560 = vector.shape_cast %559 : vector<1x1x32x32xbf16> to vector<32x32xbf16>
    %cst_277 = arith.constant dense<0.000000e+00> : vector<16x32xf32>
    %561 = tpu.matmul %16, %560, %cst_277 {dimension_numbers = #tpu.dot_dimension_numbers<[1], [0], [0], [1], [0, 0, 1, 1], [], []>} : vector<16x32xbf16>, vector<32x32xbf16>, vector<16x32xf32> -> vector<16x32xf32>
    %c1_278 = arith.constant 1 : index
    %c2_279 = arith.constant 2 : index
    %c0_280 = arith.constant 0 : index
    %c0_281 = arith.constant 0 : index
    %562 = vector.load %arg12[%c1_278, %c2_279, %c0_280, %c0_281] : memref<2x3x1x32xf32, #tpu.memory_space<vmem>>, vector<1x1x1x32xf32>
    %563 = vector.shape_cast %562 : vector<1x1x1x32xf32> to vector<1x32xf32>
    %564 = vector.broadcast %563 : vector<1x32xf32> to vector<16x32xf32>
    %565 = arith.addf %561, %564 : vector<16x32xf32>
    %566 = vector.shape_cast %551 : vector<16x32xf32> to vector<2x8x32xf32>
    %567 = vector.shape_cast %558 : vector<16x32xf32> to vector<2x8x32xf32>
    %568 = vector.shape_cast %565 : vector<16x32xf32> to vector<2x8x32xf32>
    %569 = vector.extract_strided_slice %566 {offsets = [0, 0, 0], sizes = [2, 8, 8], strides = [1, 1, 1]} : vector<2x8x32xf32> to vector<2x8x8xf32>
    %570 = vector.extract_strided_slice %567 {offsets = [0, 0, 0], sizes = [2, 8, 8], strides = [1, 1, 1]} : vector<2x8x32xf32> to vector<2x8x8xf32>
    "tpu.trace_start"() <{level = 10 : i32, message = "bqd,bkd->bqk"}> : () -> ()
    %cst_282 = arith.constant dense<0.000000e+00> : vector<2x8x8xf32>
    %571 = tpu.matmul %569, %570, %cst_282 {dimension_numbers = #tpu.dot_dimension_numbers<[2], [2], [1], [1], [0, 0, 0, 1, 1, 1], [0], [0]>} : vector<2x8x8xf32>, vector<2x8x8xf32>, vector<2x8x8xf32> -> vector<2x8x8xf32>
    "tpu.trace_stop"() : () -> ()
    %cst_283 = arith.constant 0.353553385 : f32
    %572 = vector.broadcast %cst_283 : f32 to vector<2x8x8xf32>
    %573 = arith.mulf %571, %572 : vector<2x8x8xf32>
    %cst_284 = arith.constant dense<0xFF800000> : vector<2x8xf32>
    %574 = vector.multi_reduction <maximumf>, %573, %cst_284 [2] : vector<2x8x8xf32> to vector<2x8xf32>
    %575 = vector.shape_cast %574 : vector<2x8xf32> to vector<2x8x1xf32>
    %576 = vector.broadcast %575 : vector<2x8x1xf32> to vector<2x8x8xf32>
    %577 = arith.subf %573, %576 : vector<2x8x8xf32>
    %578 = math.exp %577 : vector<2x8x8xf32>
    %cst_285 = arith.constant dense<0.000000e+00> : vector<2x8xf32>
    %579 = vector.multi_reduction <add>, %578, %cst_285 [2] : vector<2x8x8xf32> to vector<2x8xf32>
    %580 = vector.shape_cast %579 : vector<2x8xf32> to vector<2x8x1xf32>
    %581 = tpu.reciprocal %580 {approx = true} : vector<2x8x1xf32> -> vector<2x8x1xf32>
    %582 = vector.broadcast %581 : vector<2x8x1xf32> to vector<2x8x8xf32>
    %583 = arith.mulf %578, %582 : vector<2x8x8xf32>
    %584 = vector.extract_strided_slice %568 {offsets = [0, 0, 0], sizes = [2, 8, 8], strides = [1, 1, 1]} : vector<2x8x32xf32> to vector<2x8x8xf32>
    "tpu.trace_start"() <{level = 10 : i32, message = "bqk,bkd->bqd"}> : () -> ()
    %cst_286 = arith.constant dense<0.000000e+00> : vector<2x8x8xf32>
    %585 = tpu.matmul %583, %584, %cst_286 {dimension_numbers = #tpu.dot_dimension_numbers<[2], [1], [1], [2], [0, 0, 0, 1, 1, 2], [0], [0]>} : vector<2x8x8xf32>, vector<2x8x8xf32>, vector<2x8x8xf32> -> vector<2x8x8xf32>
    "tpu.trace_stop"() : () -> ()
    %586 = vector.extract_strided_slice %566 {offsets = [0, 0, 8], sizes = [2, 8, 8], strides = [1, 1, 1]} : vector<2x8x32xf32> to vector<2x8x8xf32>
    %587 = vector.extract_strided_slice %567 {offsets = [0, 0, 8], sizes = [2, 8, 8], strides = [1, 1, 1]} : vector<2x8x32xf32> to vector<2x8x8xf32>
    "tpu.trace_start"() <{level = 10 : i32, message = "bqd,bkd->bqk"}> : () -> ()
    %cst_287 = arith.constant dense<0.000000e+00> : vector<2x8x8xf32>
    %588 = tpu.matmul %586, %587, %cst_287 {dimension_numbers = #tpu.dot_dimension_numbers<[2], [2], [1], [1], [0, 0, 0, 1, 1, 1], [0], [0]>} : vector<2x8x8xf32>, vector<2x8x8xf32>, vector<2x8x8xf32> -> vector<2x8x8xf32>
    "tpu.trace_stop"() : () -> ()
    %cst_288 = arith.constant 0.353553385 : f32
    %589 = vector.broadcast %cst_288 : f32 to vector<2x8x8xf32>
    %590 = arith.mulf %588, %589 : vector<2x8x8xf32>
    %cst_289 = arith.constant dense<0xFF800000> : vector<2x8xf32>
    %591 = vector.multi_reduction <maximumf>, %590, %cst_289 [2] : vector<2x8x8xf32> to vector<2x8xf32>
    %592 = vector.shape_cast %591 : vector<2x8xf32> to vector<2x8x1xf32>
    %593 = vector.broadcast %592 : vector<2x8x1xf32> to vector<2x8x8xf32>
    %594 = arith.subf %590, %593 : vector<2x8x8xf32>
    %595 = math.exp %594 : vector<2x8x8xf32>
    %cst_290 = arith.constant dense<0.000000e+00> : vector<2x8xf32>
    %596 = vector.multi_reduction <add>, %595, %cst_290 [2] : vector<2x8x8xf32> to vector<2x8xf32>
    %597 = vector.shape_cast %596 : vector<2x8xf32> to vector<2x8x1xf32>
    %598 = tpu.reciprocal %597 {approx = true} : vector<2x8x1xf32> -> vector<2x8x1xf32>
    %599 = vector.broadcast %598 : vector<2x8x1xf32> to vector<2x8x8xf32>
    %600 = arith.mulf %595, %599 : vector<2x8x8xf32>
    %601 = vector.extract_strided_slice %568 {offsets = [0, 0, 8], sizes = [2, 8, 8], strides = [1, 1, 1]} : vector<2x8x32xf32> to vector<2x8x8xf32>
    "tpu.trace_start"() <{level = 10 : i32, message = "bqk,bkd->bqd"}> : () -> ()
    %cst_291 = arith.constant dense<0.000000e+00> : vector<2x8x8xf32>
    %602 = tpu.matmul %600, %601, %cst_291 {dimension_numbers = #tpu.dot_dimension_numbers<[2], [1], [1], [2], [0, 0, 0, 1, 1, 2], [0], [0]>} : vector<2x8x8xf32>, vector<2x8x8xf32>, vector<2x8x8xf32> -> vector<2x8x8xf32>
    "tpu.trace_stop"() : () -> ()
    %603 = vector.extract_strided_slice %566 {offsets = [0, 0, 16], sizes = [2, 8, 8], strides = [1, 1, 1]} : vector<2x8x32xf32> to vector<2x8x8xf32>
    %604 = vector.extract_strided_slice %567 {offsets = [0, 0, 16], sizes = [2, 8, 8], strides = [1, 1, 1]} : vector<2x8x32xf32> to vector<2x8x8xf32>
    "tpu.trace_start"() <{level = 10 : i32, message = "bqd,bkd->bqk"}> : () -> ()
    %cst_292 = arith.constant dense<0.000000e+00> : vector<2x8x8xf32>
    %605 = tpu.matmul %603, %604, %cst_292 {dimension_numbers = #tpu.dot_dimension_numbers<[2], [2], [1], [1], [0, 0, 0, 1, 1, 1], [0], [0]>} : vector<2x8x8xf32>, vector<2x8x8xf32>, vector<2x8x8xf32> -> vector<2x8x8xf32>
    "tpu.trace_stop"() : () -> ()
    %cst_293 = arith.constant 0.353553385 : f32
    %606 = vector.broadcast %cst_293 : f32 to vector<2x8x8xf32>
    %607 = arith.mulf %605, %606 : vector<2x8x8xf32>
    %cst_294 = arith.constant dense<0xFF800000> : vector<2x8xf32>
    %608 = vector.multi_reduction <maximumf>, %607, %cst_294 [2] : vector<2x8x8xf32> to vector<2x8xf32>
    %609 = vector.shape_cast %608 : vector<2x8xf32> to vector<2x8x1xf32>
    %610 = vector.broadcast %609 : vector<2x8x1xf32> to vector<2x8x8xf32>
    %611 = arith.subf %607, %610 : vector<2x8x8xf32>
    %612 = math.exp %611 : vector<2x8x8xf32>
    %cst_295 = arith.constant dense<0.000000e+00> : vector<2x8xf32>
    %613 = vector.multi_reduction <add>, %612, %cst_295 [2] : vector<2x8x8xf32> to vector<2x8xf32>
    %614 = vector.shape_cast %613 : vector<2x8xf32> to vector<2x8x1xf32>
    %615 = tpu.reciprocal %614 {approx = true} : vector<2x8x1xf32> -> vector<2x8x1xf32>
    %616 = vector.broadcast %615 : vector<2x8x1xf32> to vector<2x8x8xf32>
    %617 = arith.mulf %612, %616 : vector<2x8x8xf32>
    %618 = vector.extract_strided_slice %568 {offsets = [0, 0, 16], sizes = [2, 8, 8], strides = [1, 1, 1]} : vector<2x8x32xf32> to vector<2x8x8xf32>
    "tpu.trace_start"() <{level = 10 : i32, message = "bqk,bkd->bqd"}> : () -> ()
    %cst_296 = arith.constant dense<0.000000e+00> : vector<2x8x8xf32>
    %619 = tpu.matmul %617, %618, %cst_296 {dimension_numbers = #tpu.dot_dimension_numbers<[2], [1], [1], [2], [0, 0, 0, 1, 1, 2], [0], [0]>} : vector<2x8x8xf32>, vector<2x8x8xf32>, vector<2x8x8xf32> -> vector<2x8x8xf32>
    "tpu.trace_stop"() : () -> ()
    %620 = vector.extract_strided_slice %566 {offsets = [0, 0, 24], sizes = [2, 8, 8], strides = [1, 1, 1]} : vector<2x8x32xf32> to vector<2x8x8xf32>
    %621 = vector.extract_strided_slice %567 {offsets = [0, 0, 24], sizes = [2, 8, 8], strides = [1, 1, 1]} : vector<2x8x32xf32> to vector<2x8x8xf32>
    "tpu.trace_start"() <{level = 10 : i32, message = "bqd,bkd->bqk"}> : () -> ()
    %cst_297 = arith.constant dense<0.000000e+00> : vector<2x8x8xf32>
    %622 = tpu.matmul %620, %621, %cst_297 {dimension_numbers = #tpu.dot_dimension_numbers<[2], [2], [1], [1], [0, 0, 0, 1, 1, 1], [0], [0]>} : vector<2x8x8xf32>, vector<2x8x8xf32>, vector<2x8x8xf32> -> vector<2x8x8xf32>
    "tpu.trace_stop"() : () -> ()
    %cst_298 = arith.constant 0.353553385 : f32
    %623 = vector.broadcast %cst_298 : f32 to vector<2x8x8xf32>
    %624 = arith.mulf %622, %623 : vector<2x8x8xf32>
    %cst_299 = arith.constant dense<0xFF800000> : vector<2x8xf32>
    %625 = vector.multi_reduction <maximumf>, %624, %cst_299 [2] : vector<2x8x8xf32> to vector<2x8xf32>
    %626 = vector.shape_cast %625 : vector<2x8xf32> to vector<2x8x1xf32>
    %627 = vector.broadcast %626 : vector<2x8x1xf32> to vector<2x8x8xf32>
    %628 = arith.subf %624, %627 : vector<2x8x8xf32>
    %629 = math.exp %628 : vector<2x8x8xf32>
    %cst_300 = arith.constant dense<0.000000e+00> : vector<2x8xf32>
    %630 = vector.multi_reduction <add>, %629, %cst_300 [2] : vector<2x8x8xf32> to vector<2x8xf32>
    %631 = vector.shape_cast %630 : vector<2x8xf32> to vector<2x8x1xf32>
    %632 = tpu.reciprocal %631 {approx = true} : vector<2x8x1xf32> -> vector<2x8x1xf32>
    %633 = vector.broadcast %632 : vector<2x8x1xf32> to vector<2x8x8xf32>
    %634 = arith.mulf %629, %633 : vector<2x8x8xf32>
    %635 = vector.extract_strided_slice %568 {offsets = [0, 0, 24], sizes = [2, 8, 8], strides = [1, 1, 1]} : vector<2x8x32xf32> to vector<2x8x8xf32>
    "tpu.trace_start"() <{level = 10 : i32, message = "bqk,bkd->bqd"}> : () -> ()
    %cst_301 = arith.constant dense<0.000000e+00> : vector<2x8x8xf32>
    %636 = tpu.matmul %634, %635, %cst_301 {dimension_numbers = #tpu.dot_dimension_numbers<[2], [1], [1], [2], [0, 0, 0, 1, 1, 2], [0], [0]>} : vector<2x8x8xf32>, vector<2x8x8xf32>, vector<2x8x8xf32> -> vector<2x8x8xf32>
    "tpu.trace_stop"() : () -> ()
    %637 = tpu.concatenate %585, %602, %619, %636 in 2 : vector<2x8x8xf32>, vector<2x8x8xf32>, vector<2x8x8xf32>, vector<2x8x8xf32> -> vector<2x8x32xf32>
    %638 = vector.shape_cast %637 : vector<2x8x32xf32> to vector<16x32xf32>
    %639 = arith.truncf %638 : vector<16x32xf32> to vector<16x32xbf16>
    %c1_302 = arith.constant 1 : index
    %c0_303 = arith.constant 0 : index
    %c0_304 = arith.constant 0 : index
    %640 = vector.load %arg13[%c1_302, %c0_303, %c0_304] : memref<2x32x32xbf16, #tpu.memory_space<vmem>>, vector<1x32x32xbf16>
    %641 = vector.shape_cast %640 : vector<1x32x32xbf16> to vector<32x32xbf16>
    %cst_305 = arith.constant dense<0.000000e+00> : vector<16x32xf32>
    %642 = tpu.matmul %639, %641, %cst_305 {dimension_numbers = #tpu.dot_dimension_numbers<[1], [0], [0], [1], [0, 0, 1, 1], [], []>} : vector<16x32xbf16>, vector<32x32xbf16>, vector<16x32xf32> -> vector<16x32xf32>
    %c1_306 = arith.constant 1 : index
    %c0_307 = arith.constant 0 : index
    %c0_308 = arith.constant 0 : index
    %643 = vector.load %arg14[%c1_306, %c0_307, %c0_308] : memref<2x1x32xf32, #tpu.memory_space<vmem>>, vector<1x1x32xf32>
    %644 = vector.shape_cast %643 : vector<1x1x32xf32> to vector<1x32xf32>
    %645 = vector.broadcast %644 : vector<1x32xf32> to vector<16x32xf32>
    %646 = arith.addf %642, %645 : vector<16x32xf32>
    %647 = vector.extract_strided_slice %389 {offsets = [1, 0], sizes = [1, 32], strides = [1, 1]} : vector<3x32xf32> to vector<1x32xf32>
    %648 = vector.extract_strided_slice %391 {offsets = [1, 0], sizes = [1, 32], strides = [1, 1]} : vector<3x32xf32> to vector<1x32xf32>
    %649 = arith.addf %543, %646 : vector<16x32xf32>
    %cst_309 = arith.constant dense<0.000000e+00> : vector<16xf32>
    %650 = vector.multi_reduction <add>, %649, %cst_309 [1] : vector<16x32xf32> to vector<16xf32>
    %651 = vector.shape_cast %650 : vector<16xf32> to vector<16x1xf32>
    %cst_310 = arith.constant 3.200000e+01 : f32
    %652 = vector.broadcast %cst_310 : f32 to vector<16x1xf32>
    %653 = arith.divf %651, %652 : vector<16x1xf32>
    %654 = arith.mulf %649, %649 : vector<16x32xf32>
    %cst_311 = arith.constant dense<0.000000e+00> : vector<16xf32>
    %655 = vector.multi_reduction <add>, %654, %cst_311 [1] : vector<16x32xf32> to vector<16xf32>
    %656 = vector.shape_cast %655 : vector<16xf32> to vector<16x1xf32>
    %cst_312 = arith.constant 3.200000e+01 : f32
    %657 = vector.broadcast %cst_312 : f32 to vector<16x1xf32>
    %658 = arith.divf %656, %657 : vector<16x1xf32>
    %659 = arith.mulf %653, %653 : vector<16x1xf32>
    %660 = arith.subf %658, %659 : vector<16x1xf32>
    %661 = vector.broadcast %653 : vector<16x1xf32> to vector<16x32xf32>
    %662 = arith.subf %649, %661 : vector<16x32xf32>
    %cst_313 = arith.constant 9.99999974E-6 : f32
    %663 = vector.broadcast %cst_313 : f32 to vector<16x1xf32>
    %664 = arith.addf %660, %663 : vector<16x1xf32>
    %665 = math.rsqrt %664 : vector<16x1xf32>
    %666 = vector.broadcast %665 : vector<16x1xf32> to vector<16x32xf32>
    %667 = arith.mulf %662, %666 : vector<16x32xf32>
    %668 = vector.broadcast %647 : vector<1x32xf32> to vector<16x32xf32>
    %669 = arith.mulf %667, %668 : vector<16x32xf32>
    %670 = vector.broadcast %648 : vector<1x32xf32> to vector<16x32xf32>
    %671 = arith.addf %669, %670 : vector<16x32xf32>
    %672 = arith.truncf %671 : vector<16x32xf32> to vector<16x32xbf16>
    %c1_314 = arith.constant 1 : index
    %c0_315 = arith.constant 0 : index
    %c0_316 = arith.constant 0 : index
    %673 = vector.load %arg20[%c1_314, %c0_315, %c0_316] : memref<2x1x32xf32, #tpu.memory_space<vmem>>, vector<1x1x32xf32>
    %674 = vector.shape_cast %673 : vector<1x1x32xf32> to vector<1x32xf32>
    %c1_317 = arith.constant 1 : index
    %c0_318 = arith.constant 0 : index
    %c0_319 = arith.constant 0 : index
    %675 = vector.load %arg17[%c1_317, %c0_318, %c0_319] : memref<2x32x2048xbf16, #tpu.memory_space<vmem>>, vector<1x32x512xbf16>
    %676 = vector.shape_cast %675 : vector<1x32x512xbf16> to vector<32x512xbf16>
    %cst_320 = arith.constant dense<0.000000e+00> : vector<16x512xf32>
    %677 = tpu.matmul %672, %676, %cst_320 {dimension_numbers = #tpu.dot_dimension_numbers<[1], [0], [0], [1], [0, 0, 1, 1], [], []>} : vector<16x32xbf16>, vector<32x512xbf16>, vector<16x512xf32> -> vector<16x512xf32>
    %c1_321 = arith.constant 1 : index
    %c0_322 = arith.constant 0 : index
    %c0_323 = arith.constant 0 : index
    %678 = vector.load %arg18[%c1_321, %c0_322, %c0_323] : memref<2x1x2048xf32, #tpu.memory_space<vmem>>, vector<1x1x512xf32>
    %679 = vector.shape_cast %678 : vector<1x1x512xf32> to vector<1x512xf32>
    %680 = vector.broadcast %679 : vector<1x512xf32> to vector<16x512xf32>
    %681 = arith.addf %677, %680 : vector<16x512xf32>
    %cst_324 = arith.constant 0.000000e+00 : f32
    %682 = vector.broadcast %cst_324 : f32 to vector<16x512xf32>
    %683 = arith.maximumf %681, %682 : vector<16x512xf32>
    %684 = arith.truncf %683 : vector<16x512xf32> to vector<16x512xbf16>
    %c1_325 = arith.constant 1 : index
    %c0_326 = arith.constant 0 : index
    %c0_327 = arith.constant 0 : index
    %685 = vector.load %arg19[%c1_325, %c0_326, %c0_327] : memref<2x2048x32xbf16, #tpu.memory_space<vmem>>, vector<1x512x32xbf16>
    %686 = vector.shape_cast %685 : vector<1x512x32xbf16> to vector<512x32xbf16>
    %cst_328 = arith.constant dense<0.000000e+00> : vector<16x32xf32>
    %687 = tpu.matmul %684, %686, %cst_328 {dimension_numbers = #tpu.dot_dimension_numbers<[1], [0], [0], [1], [0, 0, 1, 1], [], []>} : vector<16x512xbf16>, vector<512x32xbf16>, vector<16x32xf32> -> vector<16x32xf32>
    %688 = vector.broadcast %674 : vector<1x32xf32> to vector<16x32xf32>
    %689 = arith.addf %688, %687 : vector<16x32xf32>
    %c1_329 = arith.constant 1 : index
    %c0_330 = arith.constant 0 : index
    %c512_331 = arith.constant 512 : index
    %690 = vector.load %arg17[%c1_329, %c0_330, %c512_331] : memref<2x32x2048xbf16, #tpu.memory_space<vmem>>, vector<1x32x512xbf16>
    %691 = vector.shape_cast %690 : vector<1x32x512xbf16> to vector<32x512xbf16>
    %cst_332 = arith.constant dense<0.000000e+00> : vector<16x512xf32>
    %692 = tpu.matmul %672, %691, %cst_332 {dimension_numbers = #tpu.dot_dimension_numbers<[1], [0], [0], [1], [0, 0, 1, 1], [], []>} : vector<16x32xbf16>, vector<32x512xbf16>, vector<16x512xf32> -> vector<16x512xf32>
    %c1_333 = arith.constant 1 : index
    %c0_334 = arith.constant 0 : index
    %c512_335 = arith.constant 512 : index
    %693 = vector.load %arg18[%c1_333, %c0_334, %c512_335] : memref<2x1x2048xf32, #tpu.memory_space<vmem>>, vector<1x1x512xf32>
    %694 = vector.shape_cast %693 : vector<1x1x512xf32> to vector<1x512xf32>
    %695 = vector.broadcast %694 : vector<1x512xf32> to vector<16x512xf32>
    %696 = arith.addf %692, %695 : vector<16x512xf32>
    %cst_336 = arith.constant 0.000000e+00 : f32
    %697 = vector.broadcast %cst_336 : f32 to vector<16x512xf32>
    %698 = arith.maximumf %696, %697 : vector<16x512xf32>
    %699 = arith.truncf %698 : vector<16x512xf32> to vector<16x512xbf16>
    %c1_337 = arith.constant 1 : index
    %c512_338 = arith.constant 512 : index
    %c0_339 = arith.constant 0 : index
    %700 = vector.load %arg19[%c1_337, %c512_338, %c0_339] : memref<2x2048x32xbf16, #tpu.memory_space<vmem>>, vector<1x512x32xbf16>
    %701 = vector.shape_cast %700 : vector<1x512x32xbf16> to vector<512x32xbf16>
    %cst_340 = arith.constant dense<0.000000e+00> : vector<16x32xf32>
    %702 = tpu.matmul %699, %701, %cst_340 {dimension_numbers = #tpu.dot_dimension_numbers<[1], [0], [0], [1], [0, 0, 1, 1], [], []>} : vector<16x512xbf16>, vector<512x32xbf16>, vector<16x32xf32> -> vector<16x32xf32>
    %703 = arith.addf %689, %702 : vector<16x32xf32>
    %c1_341 = arith.constant 1 : index
    %c0_342 = arith.constant 0 : index
    %c1024_343 = arith.constant 1024 : index
    %704 = vector.load %arg17[%c1_341, %c0_342, %c1024_343] : memref<2x32x2048xbf16, #tpu.memory_space<vmem>>, vector<1x32x512xbf16>
    %705 = vector.shape_cast %704 : vector<1x32x512xbf16> to vector<32x512xbf16>
    %cst_344 = arith.constant dense<0.000000e+00> : vector<16x512xf32>
    %706 = tpu.matmul %672, %705, %cst_344 {dimension_numbers = #tpu.dot_dimension_numbers<[1], [0], [0], [1], [0, 0, 1, 1], [], []>} : vector<16x32xbf16>, vector<32x512xbf16>, vector<16x512xf32> -> vector<16x512xf32>
    %c1_345 = arith.constant 1 : index
    %c0_346 = arith.constant 0 : index
    %c1024_347 = arith.constant 1024 : index
    %707 = vector.load %arg18[%c1_345, %c0_346, %c1024_347] : memref<2x1x2048xf32, #tpu.memory_space<vmem>>, vector<1x1x512xf32>
    %708 = vector.shape_cast %707 : vector<1x1x512xf32> to vector<1x512xf32>
    %709 = vector.broadcast %708 : vector<1x512xf32> to vector<16x512xf32>
    %710 = arith.addf %706, %709 : vector<16x512xf32>
    %cst_348 = arith.constant 0.000000e+00 : f32
    %711 = vector.broadcast %cst_348 : f32 to vector<16x512xf32>
    %712 = arith.maximumf %710, %711 : vector<16x512xf32>
    %713 = arith.truncf %712 : vector<16x512xf32> to vector<16x512xbf16>
    %c1_349 = arith.constant 1 : index
    %c1024_350 = arith.constant 1024 : index
    %c0_351 = arith.constant 0 : index
    %714 = vector.load %arg19[%c1_349, %c1024_350, %c0_351] : memref<2x2048x32xbf16, #tpu.memory_space<vmem>>, vector<1x512x32xbf16>
    %715 = vector.shape_cast %714 : vector<1x512x32xbf16> to vector<512x32xbf16>
    %cst_352 = arith.constant dense<0.000000e+00> : vector<16x32xf32>
    %716 = tpu.matmul %713, %715, %cst_352 {dimension_numbers = #tpu.dot_dimension_numbers<[1], [0], [0], [1], [0, 0, 1, 1], [], []>} : vector<16x512xbf16>, vector<512x32xbf16>, vector<16x32xf32> -> vector<16x32xf32>
    %717 = arith.addf %703, %716 : vector<16x32xf32>
    %c1_353 = arith.constant 1 : index
    %c0_354 = arith.constant 0 : index
    %c1536_355 = arith.constant 1536 : index
    %718 = vector.load %arg17[%c1_353, %c0_354, %c1536_355] : memref<2x32x2048xbf16, #tpu.memory_space<vmem>>, vector<1x32x512xbf16>
    %719 = vector.shape_cast %718 : vector<1x32x512xbf16> to vector<32x512xbf16>
    %cst_356 = arith.constant dense<0.000000e+00> : vector<16x512xf32>
    %720 = tpu.matmul %672, %719, %cst_356 {dimension_numbers = #tpu.dot_dimension_numbers<[1], [0], [0], [1], [0, 0, 1, 1], [], []>} : vector<16x32xbf16>, vector<32x512xbf16>, vector<16x512xf32> -> vector<16x512xf32>
    %c1_357 = arith.constant 1 : index
    %c0_358 = arith.constant 0 : index
    %c1536_359 = arith.constant 1536 : index
    %721 = vector.load %arg18[%c1_357, %c0_358, %c1536_359] : memref<2x1x2048xf32, #tpu.memory_space<vmem>>, vector<1x1x512xf32>
    %722 = vector.shape_cast %721 : vector<1x1x512xf32> to vector<1x512xf32>
    %723 = vector.broadcast %722 : vector<1x512xf32> to vector<16x512xf32>
    %724 = arith.addf %720, %723 : vector<16x512xf32>
    %cst_360 = arith.constant 0.000000e+00 : f32
    %725 = vector.broadcast %cst_360 : f32 to vector<16x512xf32>
    %726 = arith.maximumf %724, %725 : vector<16x512xf32>
    %727 = arith.truncf %726 : vector<16x512xf32> to vector<16x512xbf16>
    %c1_361 = arith.constant 1 : index
    %c1536_362 = arith.constant 1536 : index
    %c0_363 = arith.constant 0 : index
    %728 = vector.load %arg19[%c1_361, %c1536_362, %c0_363] : memref<2x2048x32xbf16, #tpu.memory_space<vmem>>, vector<1x512x32xbf16>
    %729 = vector.shape_cast %728 : vector<1x512x32xbf16> to vector<512x32xbf16>
    %cst_364 = arith.constant dense<0.000000e+00> : vector<16x32xf32>
    %730 = tpu.matmul %727, %729, %cst_364 {dimension_numbers = #tpu.dot_dimension_numbers<[1], [0], [0], [1], [0, 0, 1, 1], [], []>} : vector<16x512xbf16>, vector<512x32xbf16>, vector<16x32xf32> -> vector<16x32xf32>
    %731 = arith.addf %717, %730 : vector<16x32xf32>
    %732 = vector.extract_strided_slice %389 {offsets = [2, 0], sizes = [1, 32], strides = [1, 1]} : vector<3x32xf32> to vector<1x32xf32>
    %733 = vector.extract_strided_slice %391 {offsets = [2, 0], sizes = [1, 32], strides = [1, 1]} : vector<3x32xf32> to vector<1x32xf32>
    %734 = arith.addf %671, %731 : vector<16x32xf32>
    %cst_365 = arith.constant dense<0.000000e+00> : vector<16xf32>
    %735 = vector.multi_reduction <add>, %734, %cst_365 [1] : vector<16x32xf32> to vector<16xf32>
    %736 = vector.shape_cast %735 : vector<16xf32> to vector<16x1xf32>
    %cst_366 = arith.constant 3.200000e+01 : f32
    %737 = vector.broadcast %cst_366 : f32 to vector<16x1xf32>
    %738 = arith.divf %736, %737 : vector<16x1xf32>
    %739 = arith.mulf %734, %734 : vector<16x32xf32>
    %cst_367 = arith.constant dense<0.000000e+00> : vector<16xf32>
    %740 = vector.multi_reduction <add>, %739, %cst_367 [1] : vector<16x32xf32> to vector<16xf32>
    %741 = vector.shape_cast %740 : vector<16xf32> to vector<16x1xf32>
    %cst_368 = arith.constant 3.200000e+01 : f32
    %742 = vector.broadcast %cst_368 : f32 to vector<16x1xf32>
    %743 = arith.divf %741, %742 : vector<16x1xf32>
    %744 = arith.mulf %738, %738 : vector<16x1xf32>
    %745 = arith.subf %743, %744 : vector<16x1xf32>
    %746 = vector.broadcast %738 : vector<16x1xf32> to vector<16x32xf32>
    %747 = arith.subf %734, %746 : vector<16x32xf32>
    %cst_369 = arith.constant 9.99999974E-6 : f32
    %748 = vector.broadcast %cst_369 : f32 to vector<16x1xf32>
    %749 = arith.addf %745, %748 : vector<16x1xf32>
    %750 = math.rsqrt %749 : vector<16x1xf32>
    %751 = vector.broadcast %750 : vector<16x1xf32> to vector<16x32xf32>
    %752 = arith.mulf %747, %751 : vector<16x32xf32>
    %753 = vector.broadcast %732 : vector<1x32xf32> to vector<16x32xf32>
    %754 = arith.mulf %752, %753 : vector<16x32xf32>
    %755 = vector.broadcast %733 : vector<1x32xf32> to vector<16x32xf32>
    %756 = arith.addf %754, %755 : vector<16x32xf32>
    %757 = arith.truncf %756 : vector<16x32xf32> to vector<16x32xbf16>
    %c0_370 = arith.constant 0 : index
    %c0_371 = arith.constant 0 : index
    %758 = vector.load %arg21[%c0_370, %c0_371] : memref<32x128xbf16, #tpu.memory_space<vmem>>, vector<32x128xbf16>
    %cst_372 = arith.constant dense<0.000000e+00> : vector<16x128xf32>
    %759 = tpu.matmul %757, %758, %cst_372 {dimension_numbers = #tpu.dot_dimension_numbers<[1], [0], [0], [1], [0, 0, 1, 1], [], []>} : vector<16x32xbf16>, vector<32x128xbf16>, vector<16x128xf32> -> vector<16x128xf32>
    %c0_373 = arith.constant 0 : index
    %c0_374 = arith.constant 0 : index
    %760 = vector.load %arg22[%c0_373, %c0_374] : memref<1x128xf32, #tpu.memory_space<vmem>>, vector<1x128xf32>
    %761 = vector.broadcast %760 : vector<1x128xf32> to vector<16x128xf32>
    %762 = arith.addf %759, %761 : vector<16x128xf32>
    %c0_375 = arith.constant 0 : index
    %c0_376 = arith.constant 0 : index
    %763 = vector.load %arg23[%c0_375, %c0_376] : memref<16x128xf32, #tpu.memory_space<vmem>>, vector<16x128xf32>
    tpu.vector_store %arg23[%c0_375, %c0_376], %762 {strides = array<i32>} : memref<16x128xf32, #tpu.memory_space<vmem>>, vector<16x128xf32>,
    return
  }
  func.func @transform_0(%arg0: i32) -> (i32, i32) {
    %c0_i32 = arith.constant 0 : i32
    %c0_i32_0 = arith.constant 0 : i32
    %c0_i32_1 = arith.constant 0 : i32
    return %c0_i32, %c0_i32_0 : i32, i32
  }
  func.func @transform_1(%arg0: i32) -> (i32, i32, i32) {
    %c0_i32 = arith.constant 0 : i32
    %c0_i32_0 = arith.constant 0 : i32
    %c0_i32_1 = arith.constant 0 : i32
    %c0_i32_2 = arith.constant 0 : i32
    return %c0_i32, %c0_i32_0, %c0_i32_1 : i32, i32, i32
  }
  func.func @transform_2(%arg0: i32) -> (i32, i32) {
    %c0_i32 = arith.constant 0 : i32
    %c0_i32_0 = arith.constant 0 : i32
    %c0_i32_1 = arith.constant 0 : i32
    return %c0_i32, %c0_i32_0 : i32, i32
  }
  func.func @transform_3(%arg0: i32) -> (i32, i32) {
    %c0_i32 = arith.constant 0 : i32
    %c0_i32_0 = arith.constant 0 : i32
    %c0_i32_1 = arith.constant 0 : i32
    return %c0_i32, %c0_i32_0 : i32, i32
  }
  func.func @transform_4(%arg0: i32) -> (i32, i32, i32) {
    %c0_i32 = arith.constant 0 : i32
    %c0_i32_0 = arith.constant 0 : i32
    %c0_i32_1 = arith.constant 0 : i32
    %c0_i32_2 = arith.constant 0 : i32
    return %c0_i32, %c0_i32_0, %c0_i32_1 : i32, i32, i32
  }
  func.func @transform_5(%arg0: i32) -> (i32, i32) {
    %c0_i32 = arith.constant 0 : i32
    %c0_i32_0 = arith.constant 0 : i32
    %c0_i32_1 = arith.constant 0 : i32
    return %c0_i32, %c0_i32_0 : i32, i32
  }
  func.func @transform_6(%arg0: i32) -> (i32, i32, i32, i32) {
    %c0_i32 = arith.constant 0 : i32
    %c0_i32_0 = arith.constant 0 : i32
    %c0_i32_1 = arith.constant 0 : i32
    %c0_i32_2 = arith.constant 0 : i32
    %c0_i32_3 = arith.constant 0 : i32
    return %c0_i32, %c0_i32_0, %c0_i32_1, %c0_i32_2 : i32, i32, i32, i32
  }
  func.func @transform_7(%arg0: i32) -> (i32, i32, i32, i32) {
    %c0_i32 = arith.constant 0 : i32
    %c0_i32_0 = arith.constant 0 : i32
    %c0_i32_1 = arith.constant 0 : i32
    %c0_i32_2 = arith.constant 0 : i32
    %c0_i32_3 = arith.constant 0 : i32
    return %c0_i32, %c0_i32_0, %c0_i32_1, %c0_i32_2 : i32, i32, i32, i32
  }
  func.func @transform_8(%arg0: i32) -> (i32, i32, i32) {
    %c0_i32 = arith.constant 0 : i32
    %c0_i32_0 = arith.constant 0 : i32
    %c0_i32_1 = arith.constant 0 : i32
    %c0_i32_2 = arith.constant 0 : i32
    return %c0_i32, %c0_i32_0, %c0_i32_1 : i32, i32, i32
  }
  func.func @transform_9(%arg0: i32) -> (i32, i32, i32) {
    %c0_i32 = arith.constant 0 : i32
    %c0_i32_0 = arith.constant 0 : i32
    %c0_i32_1 = arith.constant 0 : i32
    %c0_i32_2 = arith.constant 0 : i32
    return %c0_i32, %c0_i32_0, %c0_i32_1 : i32, i32, i32
  }
  func.func @transform_10(%arg0: i32) -> (i32, i32, i32, i32) {
    %c0_i32 = arith.constant 0 : i32
    %c0_i32_0 = arith.constant 0 : i32
    %c0_i32_1 = arith.constant 0 : i32
    %c0_i32_2 = arith.constant 0 : i32
    %c0_i32_3 = arith.constant 0 : i32
    return %c0_i32, %c0_i32_0, %c0_i32_1, %c0_i32_2 : i32, i32, i32, i32
  }
  func.func @transform_11(%arg0: i32) -> (i32, i32, i32, i32) {
    %c0_i32 = arith.constant 0 : i32
    %c0_i32_0 = arith.constant 0 : i32
    %c0_i32_1 = arith.constant 0 : i32
    %c0_i32_2 = arith.constant 0 : i32
    %c0_i32_3 = arith.constant 0 : i32
    return %c0_i32, %c0_i32_0, %c0_i32_1, %c0_i32_2 : i32, i32, i32, i32
  }
  func.func @transform_12(%arg0: i32) -> (i32, i32, i32) {
    %c0_i32 = arith.constant 0 : i32
    %c0_i32_0 = arith.constant 0 : i32
    %c0_i32_1 = arith.constant 0 : i32
    %c0_i32_2 = arith.constant 0 : i32
    return %c0_i32, %c0_i32_0, %c0_i32_1 : i32, i32, i32
  }
  func.func @transform_13(%arg0: i32) -> (i32, i32, i32) {
    %c0_i32 = arith.constant 0 : i32
    %c0_i32_0 = arith.constant 0 : i32
    %c0_i32_1 = arith.constant 0 : i32
    %c0_i32_2 = arith.constant 0 : i32
    return %c0_i32, %c0_i32_0, %c0_i32_1 : i32, i32, i32
  }
  func.func @transform_14(%arg0: i32) -> (i32, i32, i32) {
    %c0_i32 = arith.constant 0 : i32
    %c0_i32_0 = arith.constant 0 : i32
    %c0_i32_1 = arith.constant 0 : i32
    %c0_i32_2 = arith.constant 0 : i32
    return %c0_i32, %c0_i32_0, %c0_i32_1 : i32, i32, i32
  }
  func.func @transform_15(%arg0: i32) -> (i32, i32, i32) {
    %c0_i32 = arith.constant 0 : i32
    %c0_i32_0 = arith.constant 0 : i32
    %c0_i32_1 = arith.constant 0 : i32
    %c0_i32_2 = arith.constant 0 : i32
    return %c0_i32, %c0_i32_0, %c0_i32_1 : i32, i32, i32
  }
  func.func @transform_16(%arg0: i32) -> (i32, i32, i32) {
    %c0_i32 = arith.constant 0 : i32
    %c0_i32_0 = arith.constant 0 : i32
    %c0_i32_1 = arith.constant 0 : i32
    %c0_i32_2 = arith.constant 0 : i32
    return %c0_i32, %c0_i32_0, %c0_i32_1 : i32, i32, i32
  }
  func.func @transform_17(%arg0: i32) -> (i32, i32, i32) {
    %c0_i32 = arith.constant 0 : i32
    %c0_i32_0 = arith.constant 0 : i32
    %c0_i32_1 = arith.constant 0 : i32
    %c0_i32_2 = arith.constant 0 : i32
    return %c0_i32, %c0_i32_0, %c0_i32_1 : i32, i32, i32
  }
  func.func @transform_18(%arg0: i32) -> (i32, i32, i32) {
    %c0_i32 = arith.constant 0 : i32
    %c0_i32_0 = arith.constant 0 : i32
    %c0_i32_1 = arith.constant 0 : i32
    %c0_i32_2 = arith.constant 0 : i32
    return %c0_i32, %c0_i32_0, %c0_i32_1 : i32, i32, i32
  }
  func.func @transform_19(%arg0: i32) -> (i32, i32, i32) {
    %c0_i32 = arith.constant 0 : i32
    %c0_i32_0 = arith.constant 0 : i32
    %c0_i32_1 = arith.constant 0 : i32
    %c0_i32_2 = arith.constant 0 : i32
    return %c0_i32, %c0_i32_0, %c0_i32_1 : i32, i32, i32
  }
  func.func @transform_20(%arg0: i32) -> (i32, i32) {
    %c0_i32 = arith.constant 0 : i32
    %c0_i32_0 = arith.constant 0 : i32
    %c0_i32_1 = arith.constant 0 : i32
    return %c0_i32, %c0_i32_0 : i32, i32
  }
  func.func @transform_21(%arg0: i32) -> (i32, i32) {
    %c0_i32 = arith.constant 0 : i32
    %c0_i32_0 = arith.constant 0 : i32
    %c0_i32_1 = arith.constant 0 : i32
    return %c0_i32, %c0_i32_0 : i32, i32
  }
  func.func @transform_22(%arg0: i32) -> (i32, i32) {
    %c0_i32 = arith.constant 0 : i32
    %c0_i32_0 = arith.constant 0 : i32
    %c0_i32_1 = arith.constant 0 : i32
    return %c0_i32, %c0_i32_0 : i32, i32
  }
}

</mosaic_0001>

<bundles_post_ra>
// kernel: decoder_forward.1
= control target key start
LH: loop header
LB: loop body
LE: loop exit
PB: predicated region body
PF: predicated region fallthrough
CT: control target
= control target key end

     0   :  { %v13593_v0 = vmov 0   ;;  %v13594_v6 = vmov 0.0   ;;  %v74_v20 = vlaneseq  ;;  %v13595_v23 = vmov 1.0   ;;  %s16109_s25 = smov 112   ;;  %s16105_s27 = smov 8   ;;  %s16073_s0 = inlined_call_operand.vmem [shape: s32[16,1], index: 0, kind: input, shape index: {}]   ;;  %s16074_s5 = inlined_call_operand.vmem [shape: f32[128,32], index: 5, kind: input, shape index: {}]   ;;  %s16075_s6 = inlined_call_operand.vmem [shape: bf16[2,3,32,32], index: 6, kind: input, shape index: {}]   ;;  %s16076_s4 = inlined_call_operand.vmem [shape: f32[1,16,32], index: 4, kind: input, shape index: {}]   ;;  %s16077_s7 = inlined_call_operand.vmem [shape: f32[2,3,1,32], index: 7, kind: input, shape index: {}]   ;;  %s16078_s3 = inlined_call_operand.vmem [shape: f32[2,8], index: 3, kind: input, shape index: {}]   ;;  %s16079_s2 = inlined_call_operand.vmem [shape: f32[8,8], index: 2, kind: input, shape index: {}]   ;;  %s16080_s8 = inlined_call_operand.vmem [shape: bf16[2,32,32], index: 8, kind: input, shape index: {}]   ;;  %s16081_s9 = inlined_call_operand.vmem [shape: f32[2,1,32], index: 9, kind: input, shape index: {}]   ;;  %s16082_s10 = inlined_call_operand.vmem [shape: bf16[2,3,32,32], index: 10, kind: input, shape index: {}]   ;;  %s16083_s1 = inlined_call_operand.vmem [shape: f32[2,8,32], index: 1, kind: input, shape index: {}]   ;;  %s16084_s14 = inlined_call_operand.vmem [shape: f32[2,3,32], index: 14, kind: input, shape index: {}]   ;;  %s16085_s15 = inlined_call_operand.vmem [shape: f32[2,3,32], index: 15, kind: input, shape index: {}]   ;;  %s16086_s11 = inlined_call_operand.vmem [shape: f32[2,3,1,32], index: 11, kind: input, shape index: {}]   ;;  %s16087_s12 = inlined_call_operand.vmem [shape: bf16[2,32,32], index: 12, kind: input, shape index: {}]   ;;  %s16088_s13 = inlined_call_operand.vmem [shape: f32[2,1,32], index: 13, kind: input, shape index: {}]   ;;  %s16089_s16 = inlined_call_operand.vmem [shape: bf16[2,32,2048], index: 16, kind: input, shape index: {}]   ;;  %s16090_s18 = inlined_call_operand.vmem [shape: bf16[2,2048,32], index: 18, kind: input, shape index: {}]   ;;  %s16091_s17 = inlined_call_operand.vmem [shape: f32[2,1,2048], index: 17, kind: input, shape index: {}]   ;;  %s16092_s19 = inlined_call_operand.vmem [shape: f32[2,1,32], index: 19, kind: input, shape index: {}]   ;;  %s16093_s20 = inlined_call_operand.vmem [shape: bf16[32,128], index: 20, kind: input, shape index: {}]   ;;  %s16094_s21 = inlined_call_operand.vmem [shape: f32[1,128], index: 21, kind: input, shape index: {}]   ;;  %s16095_s22 = inlined_call_operand.vmem [shape: f32[16,128], index: 22, kind: output, shape index: {}]  }
   0x1   :  { %16114 = sst [smem:[#allocation2_spill]] %s16073_s0  ;;  %13083 = vset.pattern.permute.xlu0 %v13593_v0  ;;  %12616 = vmatprep.subr.bf16.mxu1 %v13594_v6  ;;  %vm13596_vm2 = vmmov 0   ;;  %vm211_vm3 = vcmask 261120   ;;  %vm388_vm4 = vcmask 64512   ;;  %v13597_v58 = vmov 1966171168  }
   0x2   :  { %16115 = sst [smem:[#allocation3_spill]] %s16074_s5  ;;  %v75_v21 = vand.u32 127, %v74_v20  ;;  %12620 = vmatprep.mubr.msk.bf16.mxu1 %vm13596_vm2, %v13594_v6  ;;  %v555_v59 = vunpack.c.l.s4 %v13597_v58  ;;  %v13863_v61 = vshrl.u32 %v74_v20, 7  ;;  %vm1784_vm5 = vcmask 130048   ;;  %s16131_s30 = smov 16  }
   0x3   :  { %16116 = sst [smem:[#allocation4_spill]] %s16075_s6  ;;  %vm1787_vm6 = vcmask 195584  }
   0x4   :  { %16117 = sst [smem:[#allocation5_spill]] %s16076_s4  ;;  %v556_v60 = vunpack.c.0.s8 %v555_v59  ;;  %s16103_s4 = smov 16  }
   0x5   :  { %16118 = sst [smem:[#allocation6_spill]] %s16077_s7 }
   0x6   :  { %16119 = sst [smem:[#allocation7_spill]] %s16078_s3  ;;  %v559_v62 = vsub.s32 %v556_v60, %v13863_v61 }
   0x7   :  { %16120 = sst [smem:[#allocation8_spill]] %s16079_s2  ;;  %s16111_s2 = smov 120  }
   0x8   :  { %16121 = sst [smem:[#allocation9_spill]] %s16095_s22 }
   0x9   :  { %s16122_s29 = sld [smem:[#allocation2_spill]] }
   0xa   :  { %s16123_s0 = sld [smem:[#allocation3_spill]] }
   0xb   :  { %s16124_s26 = sld [smem:[#allocation4_spill]] }
   0xc   :  { %s16125_s28 = sld [smem:[#allocation5_spill]] }
   0xd   :  { %s16126_s6 = sld [smem:[#allocation6_spill]] }
   0xe   :  { %s16127_s3 = sld [smem:[#allocation7_spill]] }
   0xf   :  { %v72_v1 = vld [vmem:[%s16122_s29] sm:$0xff]  ;;  %v73_v4 = vld [vmem:[%s16122_s29 + $0x8] sm:$0xff]  ;;  %s16128_s24 = sld [smem:[#allocation8_spill]]  ;;  %s16132_s29 = smov 24  }
  0x10   :  { %v101_v2 = vld [vmem:[%s16123_s0 + $0x78] sm:$0xff]  ;;  %77 = vperm.xlu0 %13083, %v72_v1   ;;  %v100_v3 = vld [vmem:[%s16123_s0 + $0x70] sm:$0xff]  ;;  %v99_v5 = vld [vmem:[%s16123_s0 + $0x68] sm:$0xff] }
  0x11   :  { %12581 = vmatprep.subr.mxu0 %v101_v2  ;;  %v98_v7 = vld [vmem:[%s16123_s0 + $0x60] sm:$0xff]  ;;  %v97_v8 = vld [vmem:[%s16123_s0 + $0x58] sm:$0xff]  ;;  %v96_v9 = vld [vmem:[%s16123_s0 + $0x50] sm:$0xff] }
  0x12   :  { %12582 = vmatpush3.msra.mxu0 %v101_v2  ;;  %v95_v10 = vld [vmem:[%s16123_s0 + $0x48] sm:$0xff]  ;;  %v94_v11 = vld [vmem:[%s16123_s0 + $0x40] sm:$0xff]  ;;  %v93_v12 = vld [vmem:[%s16123_s0 + $0x38] sm:$0xff] }
  0x13   :  { %12583 = vmatprep.subr.mxu0 %v100_v3  ;;  %v92_v13 = vld [vmem:[%s16123_s0 + $0x30] sm:$0xff]  ;;  %v91_v14 = vld [vmem:[%s16123_s0 + $0x28] sm:$0xff]  ;;  %v90_v15 = vld [vmem:[%s16123_s0 + $0x20] sm:$0xff] }
  0x14   :  { %12584 = vmatpush3.msra.mxu0 %v100_v3  ;;  %80 = vperm.xlu0 %13083, %v73_v4   ;;  %v89_v16 = vld [vmem:[%s16123_s0 + $0x18] sm:$0xff]  ;;  %v88_v17 = vld [vmem:[%s16123_s0 + $0x10] sm:$0xff]  ;;  %v87_v18 = vld [vmem:[%s16123_s0 + $0x8] sm:$0xff]  ;;  %v13870_v3 = vsub.s32 0, %v13863_v61 }
  0x15   :  { %12585 = vmatprep.subr.mxu0 %v99_v5  ;;  %v86_v19 = vld [vmem:[%s16123_s0] sm:$0xff]  ;;  %v13144_v25 = vld [vmem:[%s16124_s26 + $0x8] sm:$0xff]   ;;  %v13146_v32 = vld [vmem:[%s16124_s26 + $0x18] sm:$0xff]   ;;  %s16107_s0 = smov 104  }
  0x16   :  { %12586 = vmatpush3.msra.mxu0 %v99_v5  ;;  %12617 = vmatpush3.bf16.msra.mxu1 %v13144_v25  ;;  %v13145_v26 = vld [vmem:[%s16124_s26] sm:$0xff]   ;;  %v13147_v34 = vld [vmem:[%s16124_s26 + $0x10] sm:$0xff]   ;;  %v13148_v35 = vld [vmem:[%s16124_s26 + $0x28] sm:$0xff]  }
  0x17   :  { %12587 = vmatprep.subr.mxu0 %v98_v7  ;;  %12618 = vmatprep.subr.bf16.mxu1 %v13594_v6  ;;  %v177_v28 = vld [vmem:[%s16125_s28] sm:$0xff]  ;;  %s16133_s28 = smov 120  }
  0x18   :  { %12588 = vmatpush3.msra.mxu0 %v98_v7  ;;  %v13149_v36 = vld [vmem:[%s16124_s26 + $0x20] sm:$0xff]  }
  0x19   :  { %12589 = vmatprep.subr.mxu0 %v97_v8  ;;  %v11183_v41 = vld [vmem:[%s16126_s6 + $0x1] ss:$0 sm:$0xff]  ;;  %v11174_v43 = vld [vmem:[%s16126_s6] ss:$0 sm:$0xff]  ;;  %v11192_v50 = vld [vmem:[%s16126_s6 + $0x2] ss:$0 sm:$0xff] }
  0x1a   :  { %12590 = vmatpush3.msra.mxu0 %v97_v8  ;;  %12619 = vmatpush3.bf16.msra.mxu1 %v13145_v26  ;;  %v11200_v63 = vld.sshfl [vmem:[%s16127_s3] sm:$0x11 pattern:$0x75316420]  ;;  %s16101_s3 = smov 24  }
  0x1b   :  { %12591 = vmatprep.subr.mxu0 %v96_v9  ;;  %12624 = vmatprep.subr.bf16.mxu1 %v13594_v6  ;;  %v553_v1 = vcombine.high %v11200_v63, %v11200_v63  ;;  %v560_v2 = vrot.slane %v11200_v63, %v559_v62  ;;  %v13875_v4 = vld [vmem:[%s16128_s24] sm:$0xff] }
  0x1c   :  { %12592 = vmatpush3.msra.mxu0 %v96_v9 }
  0x1d   :  { %12593 = vmatprep.subr.mxu0 %v95_v10  ;;  %v567_v7 = vrot.slane %v553_v1, %v559_v62  ;;  %v13878_v8 = vrot.slane %v560_v2, %v13870_v3 }
  0x1e   :  { %12594 = vmatpush3.msra.mxu0 %v95_v10 }
  0x1f   :  { %12595 = vmatprep.subr.mxu0 %v94_v11 }
  0x20   :  { %12596 = vmatpush3.msra.mxu0 %v94_v11 }
  0x21   :  { %12597 = vmatprep.subr.mxu0 %v93_v12 }
  0x22   :  { %12598 = vmatpush3.msra.mxu0 %v93_v12 }
  0x23   :  { %12599 = vmatprep.subr.mxu0 %v92_v13 }
  0x24   :  { %12600 = vmatpush3.msra.mxu0 %v92_v13  ;;  %v13882_v13 = vrot.slane %v567_v7, %v13870_v3 }
  0x25   :  { %12601 = vmatprep.subr.mxu0 %v91_v14 }
  0x26   :  { %12602 = vmatpush3.msra.mxu0 %v91_v14 }
  0x27   :  { %12603 = vmatprep.subr.mxu0 %v90_v15 }
  0x28   :  { %12604 = vmatpush3.msra.mxu0 %v90_v15 }
  0x29   :  { %12605 = vmatprep.subr.mxu0 %v89_v16 }
  0x2a   :  { %12606 = vmatpush3.msra.mxu0 %v89_v16 }
  0x2b   :  { %12607 = vmatprep.subr.mxu0 %v88_v17 }
  0x2c   :  { %12608 = vmatpush3.msra.mxu0 %v88_v17 }
  0x2d   :  { %12609 = vmatprep.subr.mxu0 %v87_v18 }
  0x2e   :  { %12610 = vmatpush3.msra.mxu0 %v87_v18 }
  0x2f   :  { %12611 = vmatprep.subr.mxu0 %v86_v19 }
  0x30   :  { %12612 = vmatpush3.msra.mxu0 %v86_v19 }
  0x31   :  { %12645 = vmatprep.subr.mxu0 %v13594_v6 }
  0x8b   :  { %v78_v22 = vpop.permute.xlu0 %77 }
  0x8c   :  { %vm82_vm0 = vcmp.eq.s32.totalorder %v78_v22, %v75_v21 }
  0x8d   :  { %12613 = vmatprep.mubr.msk.f32.mxu0 %vm82_vm0, %v13595_v23 }
  0x8f   :  { %v81_v24 = vpop.permute.xlu0 %80 }
  0x90   :  { %vm83_vm1 = vcmp.eq.s32.totalorder %v81_v24, %v75_v21 }
  0x91   :  { %12614 = vmatmul.mubr.msk.f32.vlgmr.msra.gmra.mxu0 %vm83_vm1, %v13595_v23 }
  0x92   :  { %12647 = vmatprep.mubr.msk.f32.mxu0 %vm13596_vm2, %v13594_v6 }
 0x151   :  { %v12615_v27 = vpop.f32.mrf.mxu0 }
 0x152   :  { %v13792_v30 = vadd.f32 %v12615_v27, %v177_v28 }
 0x153   :  { %v168_v29 = vpop.f32.mrf.mxu0 }
 0x154   :  { %v13794_v31 = vadd.f32 %v177_v28, %v168_v29 }
 0x156   :  { %v187_v33 = vpack.c.bf16 %v13792_v30, %v13794_v31 }
 0x158   :  { %12621 = vmatmul.mubr.msk.bf16.vlgmr.msra.gmra.mxu1 %vm211_vm3, %v187_v33 }
 0x159   :  { %12625 = vmatpush3.bf16.msra.mxu1 %v13146_v32  ;;  %12628 = vmatprep.mubr.msk.bf16.mxu1 %vm13596_vm2, %v13594_v6 }
 0x15a   :  { %12626 = vmatprep.subr.bf16.mxu1 %v13594_v6 }
 0x15d   :  { %12627 = vmatpush3.bf16.msra.mxu1 %v13147_v34 }
 0x15e   :  { %12632 = vmatprep.subr.bf16.mxu1 %v13594_v6 }
 0x160   :  { %12629 = vmatmul.mubr.msk.bf16.vlgmr.msra.gmra.mxu1 %vm211_vm3, %v187_v33 }
 0x161   :  { %12633 = vmatpush3.bf16.msra.mxu1 %v13148_v35  ;;  %12636 = vmatprep.mubr.msk.bf16.mxu1 %vm13596_vm2, %v13594_v6 }
 0x162   :  { %12634 = vmatprep.subr.bf16.mxu1 %v13594_v6 }
 0x165   :  { %12635 = vmatpush3.bf16.msra.mxu1 %v13149_v36 }
 0x166   :  { %12640 = vmatprep.subr.mxu1 %v13594_v6 }
 0x168   :  { %12637 = vmatmul.mubr.msk.bf16.vlgmr.msra.gmra.mxu1 %vm211_vm3, %v187_v33 }
 0x169   :  { %12642 = vmatprep.mubr.msk.f32.mxu1 %vm13596_vm2, %v13594_v6 }
 0x218   :  { %v249_v37 = vpop.f32.mrf.mxu1 }
 0x219   :  { %v13833_v46 = vadd.f32 %v11174_v43, %v249_v37 }
 0x21a   :  { %v12622_v38 = vpop.f32.mrf.mxu1 }
 0x21c   :  { %v252_v39 = vpop.f32.mrf.mxu1 }
 0x21d   :  { %v13847_v51 = vadd.f32 %v11174_v43, %v252_v39 }
 0x21e   :  { %v12623_v40 = vpop.f32.mrf.mxu1 }
 0x220   :  { %v315_v42 = vpop.f32.mrf.mxu1 }
 0x221   :  { %v13829_v44 = vadd.f32 %v11183_v41, %v315_v42 }
 0x222   :  { %v12630_v45 = vpop.f32.mrf.mxu1 }
 0x223   :  { %12641 = vmatpush3.xpose.msk.msra.mxu1 %vm388_vm4, %v13829_v44 }
 0x224   :  { %v318_v47 = vpop.f32.mrf.mxu1  ;;  %12650 = vmatprep.subr.mxu1 %v13594_v6 }
 0x225   :  { %v13836_v48 = vadd.f32 %v11183_v41, %v318_v47 }
 0x226   :  { %v12631_v49 = vpop.f32.mrf.mxu1  ;;  %12643 = vmatmul.mubr.msk.f32.vlgmr.msra.gmra.mxu1 %vm388_vm4, %v13833_v46 }
 0x227   :  { %12646 = vmatpush3.xpose.msk.msra.mxu0 %vm388_vm4, %v13836_v48  ;;  %12652 = vmatprep.mubr.msk.f32.mxu1 %vm13596_vm2, %v13594_v6 }
 0x228   :  { %v381_v52 = vpop.f32.mrf.mxu1  ;;  %12655 = vmatprep.subr.mxu0 %v13594_v6 }
 0x229   :  { %v13850_v53 = vadd.f32 %v11192_v50, %v381_v52 }
 0x22a   :  { %v12638_v54 = vpop.f32.mrf.mxu1  ;;  %12648 = vmatmul.mubr.msk.f32.vlgmr.msra.gmra.mxu0 %vm388_vm4, %v13847_v51 }
 0x22b   :  { %12651 = vmatpush3.msra.mxu1 %v13850_v53  ;;  %12657 = vmatprep.mubr.msk.f32.mxu0 %vm13596_vm2, %v13594_v6 }
 0x22c   :  { %v384_v55 = vpop.f32.mrf.mxu1  ;;  %12660 = vmatprep.subr.mxu1 %v13594_v6 }
 0x22d   :  { %v13858_v56 = vadd.f32 %v11192_v50, %v384_v55 }
 0x22e   :  { %v12639_v57 = vpop.f32.mrf.mxu1 }
 0x22f   :  { %12656 = vmatpush3.msra.mxu0 %v13858_v56 }
 0x230   :  { %12665 = vmatprep.subr.mxu0 %v13594_v6 }
 0x2e6   :  { %v461_v5 = vpop.f32.mrf.mxu1 }
 0x2e7   :  { %v541_v9 = vmul.f32 0.35355338, %v461_v5 }
 0x2e8   :  { %v12644_v10 = vpop.f32.mrf.mxu1 }
 0x2e9   :  { %v543_v11 = vadd.f32 %v541_v9, %v13875_v4 }
 0x2ea   :  { %v537_v12 = vpop.f32.mrf.mxu0 }
 0x2eb   :  { %v542_v14 = vmul.f32 0.35355338, %v537_v12  ;;  %v578_v15 = vadd.f32 %v13878_v8, %v543_v11 }
 0x2ec   :  { %v12649_v16 = vpop.f32.mrf.mxu0 }
 0x2ed   :  { %v544_v17 = vadd.f32 %v542_v14, %v13875_v4  ;;  %v580_v18 = vsel %vm388_vm4, %v578_v15, -inf }
 0x2ee   :  { %581 = vmax.xlane.f32.xlu1 %v580_v18 }
 0x2ef   :  { %v579_v19 = vadd.f32 %v13882_v13, %v544_v17 }
 0x2f1   :  { %v583_v20 = vsel %vm388_vm4, %v579_v19, -inf }
 0x2f2   :  { %584 = vmax.xlane.f32.xlu1 %v583_v20 }
 0x303   :  { %750 = vrot.lane.b32.xlu1 %v13829_v44, %s16111_s2 }
 0x307   :  { %828 = vrot.lane.b32.xlu1 %v13836_v48, %s16111_s2 }
 0x30b   :  { %748 = vrot.lane.b32.xlu1 %v13833_v46, %s16111_s2 }
 0x377   :  { %v582_v21 = vpop.xlane.xlu1 %581 }
 0x378   :  { %v586_v22 = vsub.f32 %v578_v15, %v582_v21 }
 0x37a   :  { %v588_v23 = vmul.f32 1.442695, %v586_v22 }
 0x37b   :  { %v585_v24 = vpop.xlane.xlu1 %584 }
 0x37c   :  { %13434 = vpow2.f32 %v588_v23  ;;  %v587_v25 = vsub.f32 %v579_v19, %v585_v24 }
 0x37e   :  { %v590_v26 = vmul.f32 1.442695, %v587_v25 }
 0x37f   :  { %v751_v33 = vpop.permute.xlu1 %750 }
 0x380   :  { %13436 = vpow2.f32 %v590_v26 }
 0x383   :  { %v829_v34 = vpop.permute.xlu1 %828 }
 0x387   :  { %v749_v35 = vpop.permute.xlu1 %748 }
 0x389   :  { %v13435_v27 = vpop.eup %13434 }
 0x38a   :  { %v592_v28 = vsel %vm388_vm4, %v13435_v27, 0.0 }
 0x38b   :  { %593 = vadd.xlane.f32.xlu0 %v592_v28 }
 0x38d   :  { %v13437_v29 = vpop.eup %13436 }
 0x38e   :  { %v595_v32 = vsel %vm388_vm4, %v13437_v29, 0.0 }
 0x38f   :  { %596 = vadd.xlane.f32.xlu1 %v595_v32 }
 0x3a0   :  { %826 = vrot.lane.b32.xlu1 %v13847_v51, %s16111_s2 }
 0x414   :  { %v594_v36 = vpop.xlane.xlu0 %593 }
 0x415   :  { %13438 = vrcp.f32 %v594_v36 }
 0x418   :  { %v597_v37 = vpop.xlane.xlu1 %596 }
 0x419   :  { %13440 = vrcp.f32 %v597_v37 }
 0x41c   :  { %v827_v42 = vpop.permute.xlu1 %826 }
 0x422   :  { %v13439_v38 = vpop.eup %13438 }
 0x423   :  { %v600_v39 = vmul.f32 %v13439_v38, %v13435_v27 }
 0x425   :  { %12653 = vmatmul.mubr.msk.f32.vlgmr.msra.gmra.mxu1 %vm388_vm4, %v600_v39 }
 0x426   :  { %v13441_v40 = vpop.eup %13440  ;;  %12661 = vmatpush3.xpose.msk.msra.mxu1 %vm388_vm4, %v751_v33  ;;  %12662 = vmatprep.mubr.msk.f32.mxu1 %vm13596_vm2, %v13594_v6 }
 0x427   :  { %v601_v41 = vmul.f32 %v13441_v40, %v13437_v29  ;;  %12670 = vmatprep.subr.mxu1 %v13594_v6 }
 0x429   :  { %12658 = vmatmul.mubr.msk.f32.vlgmr.msra.gmra.mxu0 %vm388_vm4, %v601_v41  ;;  %12663 = vmatmul.mubr.msk.f32.vlgmr.msra.gmra.mxu1 %vm388_vm4, %v749_v35 }
 0x42a   :  { %12666 = vmatpush3.xpose.msk.msra.mxu0 %vm388_vm4, %v829_v34  ;;  %12667 = vmatprep.mubr.msk.f32.mxu0 %vm13596_vm2, %v13594_v6 }
 0x42b   :  { %12675 = vmatprep.subr.mxu0 %v13594_v6  ;;  %12672 = vmatprep.mubr.msk.f32.mxu1 %vm13596_vm2, %v13594_v6 }
 0x42d   :  { %12668 = vmatmul.mubr.msk.f32.vlgmr.msra.gmra.mxu0 %vm388_vm4, %v827_v42 }
 0x42e   :  { %12677 = vmatprep.mubr.msk.f32.mxu0 %vm13596_vm2, %v13594_v6 }
 0x4e5   :  { %v13915_v43 = vpop.f32.mrf.mxu1 }
 0x4e7   :  { %v12654_v45 = vpop.f32.mrf.mxu1 }
 0x4e9   :  { %v13917_v47 = vpop.f32.mrf.mxu0  ;;  %v822_v49 = vpop.f32.mrf.mxu1 }
 0x4ea   :  { %v904_v50 = vmul.f32 0.35355338, %v822_v49 }
 0x4eb   :  { %v12659_v52 = vpop.f32.mrf.mxu0  ;;  %v12664_v54 = vpop.f32.mrf.mxu1 }
 0x4ec   :  { %v906_v55 = vadd.f32 %v904_v50, %v13875_v4 }
 0x4ed   :  { %v900_v57 = vpop.f32.mrf.mxu0 }
 0x4ee   :  { %v905_v58 = vmul.f32 0.35355338, %v900_v57  ;;  %v908_v59 = vadd.f32 %v906_v55, %v13878_v8 }
 0x4ef   :  { %v12669_v60 = vpop.f32.mrf.mxu0 }
 0x4f0   :  { %v907_v62 = vadd.f32 %v905_v58, %v13875_v4  ;;  %v910_v63 = vsel %vm388_vm4, %v908_v59, -inf }
 0x4f1   :  { %911 = vmax.xlane.f32.xlu0 %v910_v63 }
 0x4f2   :  { %v909_v1 = vadd.f32 %v907_v62, %v13882_v13 }
 0x4f4   :  { %v913_v2 = vsel %vm388_vm4, %v909_v1, -inf }
 0x4f5   :  { %914 = vmax.xlane.f32.xlu1 %v913_v2 }
 0x506   :  { %1166 = vrot.lane.b32.xlu1 %v13836_v48, %s16109_s25 }
 0x507   :  { %933 = vrot.lane.b32.xlu0 %v13850_v53, %s16111_s2 }
 0x50b   :  { %1010 = vrot.lane.b32.xlu0 %v13858_v56, %s16111_s2 }
 0x50f   :  { %1088 = vrot.lane.b32.xlu0 %v13829_v44, %s16109_s25 }
 0x57a   :  { %v912_v5 = vpop.xlane.xlu0 %911 }
 0x57b   :  { %v916_v7 = vsub.f32 %v908_v59, %v912_v5 }
 0x57d   :  { %v918_v9 = vmul.f32 1.442695, %v916_v7 }
 0x57e   :  { %v915_v10 = vpop.xlane.xlu1 %914  ;;  %v934_v11 = vpop.permute.xlu0 %933 }
 0x57f   :  { %13442 = vpow2.f32 %v918_v9  ;;  %v917_v12 = vsub.f32 %v909_v1, %v915_v10  ;;  %12671 = vmatpush3.msra.mxu1 %v934_v11 }
 0x580   :  { %12680 = vmatprep.subr.mxu1 %v13594_v6 }
 0x581   :  { %v920_v14 = vmul.f32 1.442695, %v917_v12 }
 0x582   :  { %v1011_v15 = vpop.permute.xlu0 %1010  ;;  %v1167_v28 = vpop.permute.xlu1 %1166 }
 0x583   :  { %13444 = vpow2.f32 %v920_v14  ;;  %12676 = vmatpush3.msra.mxu0 %v1011_v15 }
 0x584   :  { %12685 = vmatprep.subr.mxu0 %v13594_v6 }
 0x586   :  { %v1089_v20 = vpop.permute.xlu0 %1088 }
 0x58c   :  { %v13443_v16 = vpop.eup %13442 }
 0x58d   :  { %v922_v17 = vsel %vm388_vm4, %v13443_v16, 0.0 }
 0x58e   :  { %923 = vadd.xlane.f32.xlu0 %v922_v17 }
 0x590   :  { %v13445_v18 = vpop.eup %13444 }
 0x591   :  { %v925_v19 = vsel %vm388_vm4, %v13445_v18, 0.0 }
 0x592   :  { %926 = vadd.xlane.f32.xlu0 %v925_v19 }
 0x5a8   :  { %1086 = vrot.lane.b32.xlu0 %v13833_v46, %s16109_s25 }
 0x5ac   :  { %1164 = vrot.lane.b32.xlu0 %v13847_v51, %s16109_s25 }
 0x617   :  { %v924_v21 = vpop.xlane.xlu0 %923 }
 0x618   :  { %13446 = vrcp.f32 %v924_v21 }
 0x61b   :  { %v927_v22 = vpop.xlane.xlu0 %926 }
 0x61c   :  { %13448 = vrcp.f32 %v927_v22 }
 0x61f   :  { %v1087_v26 = vpop.permute.xlu0 %1086 }
 0x623   :  { %v1165_v29 = vpop.permute.xlu0 %1164 }
 0x625   :  { %v13447_v23 = vpop.eup %13446 }
 0x626   :  { %v930_v24 = vmul.f32 %v13447_v23, %v13443_v16 }
 0x628   :  { %12673 = vmatmul.mubr.msk.f32.vlgmr.msra.gmra.mxu1 %vm388_vm4, %v930_v24 }
 0x629   :  { %v13449_v25 = vpop.eup %13448  ;;  %12681 = vmatpush3.xpose.msk.msra.mxu1 %vm388_vm4, %v1089_v20  ;;  %12682 = vmatprep.mubr.msk.f32.mxu1 %vm13596_vm2, %v13594_v6 }
 0x62a   :  { %v931_v27 = vmul.f32 %v13449_v25, %v13445_v18  ;;  %12690 = vmatprep.subr.mxu1 %v13594_v6 }
 0x62c   :  { %12678 = vmatmul.mubr.msk.f32.vlgmr.msra.gmra.mxu0 %vm388_vm4, %v931_v27  ;;  %12683 = vmatmul.mubr.msk.f32.vlgmr.msra.gmra.mxu1 %vm388_vm4, %v1087_v26 }
 0x62d   :  { %12686 = vmatpush3.xpose.msk.msra.mxu0 %vm388_vm4, %v1167_v28  ;;  %12687 = vmatprep.mubr.msk.f32.mxu0 %vm13596_vm2, %v13594_v6 }
 0x62e   :  { %12695 = vmatprep.subr.mxu0 %v13594_v6  ;;  %12692 = vmatprep.mubr.msk.f32.mxu1 %vm13596_vm2, %v13594_v6 }
 0x630   :  { %12688 = vmatmul.mubr.msk.f32.vlgmr.msra.gmra.mxu0 %vm388_vm4, %v1165_v29 }
 0x631   :  { %12697 = vmatprep.mubr.msk.f32.mxu0 %vm13596_vm2, %v13594_v6 }
 0x6e8   :  { %v13957_v32 = vpop.f32.mrf.mxu1 }
 0x6ea   :  { %v12674_v33 = vpop.f32.mrf.mxu1 }
 0x6ec   :  { %v13959_v34 = vpop.f32.mrf.mxu0  ;;  %v1160_v35 = vpop.f32.mrf.mxu1 }
 0x6ed   :  { %v13084_v36 = vpack.i.bf16 %v13959_v34, %v13957_v32  ;;  %v1242_v37 = vmul.f32 0.35355338, %v1160_v35 }
 0x6ee   :  { %v12679_v38 = vpop.f32.mrf.mxu0  ;;  %v12684_v39 = vpop.f32.mrf.mxu1 }
 0x6ef   :  { %v1244_v40 = vadd.f32 %v1242_v37, %v13875_v4 }
 0x6f0   :  { %v1238_v41 = vpop.f32.mrf.mxu0 }
 0x6f1   :  { %v1243_v42 = vmul.f32 0.35355338, %v1238_v41  ;;  %v1246_v45 = vadd.f32 %v1244_v40, %v13878_v8 }
 0x6f2   :  { %v12689_v49 = vpop.f32.mrf.mxu0 }
 0x6f3   :  { %v1245_v50 = vadd.f32 %v1243_v42, %v13875_v4  ;;  %v1248_v52 = vsel %vm388_vm4, %v1246_v45, -inf }
 0x6f4   :  { %1249 = vmax.xlane.f32.xlu0 %v1248_v52 }
 0x6f5   :  { %v1247_v54 = vadd.f32 %v1245_v50, %v13882_v13 }
 0x6f7   :  { %v1251_v55 = vsel %vm388_vm4, %v1247_v54, -inf }
 0x6f8   :  { %1252 = vmax.xlane.f32.xlu1 %v1251_v55 }
 0x709   :  { %1346 = vrot.lane.b32.xlu1 %v13858_v56, %s16109_s25 }
 0x70a   :  { %1270 = vrot.lane.b32.xlu0 %v13850_v53, %s16109_s25 }
 0x70d   :  { %1424 = vrot.lane.b32.xlu1 %v13829_v44, %s16107_s0 }
 0x711   :  { %1422 = vrot.lane.b32.xlu1 %v13833_v46, %s16107_s0 }
 0x77d   :  { %v1250_v57 = vpop.xlane.xlu0 %1249 }
 0x77e   :  { %v1254_v58 = vsub.f32 %v1246_v45, %v1250_v57 }
 0x780   :  { %v1256_v59 = vmul.f32 1.442695, %v1254_v58 }
 0x781   :  { %v1253_v60 = vpop.xlane.xlu1 %1252  ;;  %v1271_v62 = vpop.permute.xlu0 %1270 }
 0x782   :  { %13450 = vpow2.f32 %v1256_v59  ;;  %v1255_v63 = vsub.f32 %v1247_v54, %v1253_v60  ;;  %12691 = vmatpush3.msra.mxu1 %v1271_v62  ;;  %v13151_v62 = vld [vmem:[%s16080_s8] sm:$0xff]  }
 0x783   :  { %12700 = vmatprep.subr.mxu1 %v13594_v6 }
 0x784   :  { %v1258_v1 = vmul.f32 1.442695, %v1255_v63 }
 0x785   :  { %v1347_v2 = vpop.permute.xlu1 %1346 }
 0x786   :  { %13452 = vpow2.f32 %v1258_v1  ;;  %12696 = vmatpush3.msra.mxu0 %v1347_v2 }
 0x787   :  { %12705 = vmatprep.subr.mxu0 %v13594_v6 }
 0x789   :  { %v1425_v12 = vpop.permute.xlu1 %1424 }
 0x78f   :  { %v13451_v44 = vpop.eup %13450 }
 0x790   :  { %v1260_v5 = vsel %vm388_vm4, %v13451_v44, 0.0 }
 0x791   :  { %1261 = vadd.xlane.f32.xlu0 %v1260_v5 }
 0x793   :  { %v13453_v46 = vpop.eup %13452 }
 0x794   :  { %v1263_v7 = vsel %vm388_vm4, %v13453_v46, 0.0 }
 0x795   :  { %1264 = vadd.xlane.f32.xlu0 %v1263_v7 }
 0x7ab   :  { %1502 = vrot.lane.b32.xlu0 %v13836_v48, %s16107_s0 }
 0x7af   :  { %1500 = vrot.lane.b32.xlu0 %v13847_v51, %s16107_s0  ;;  %v1423_v51 = vpop.permute.xlu1 %1422 }
 0x81a   :  { %v1262_v9 = vpop.xlane.xlu0 %1261 }
 0x81b   :  { %13454 = vrcp.f32 %v1262_v9 }
 0x81e   :  { %v1265_v10 = vpop.xlane.xlu0 %1264 }
 0x81f   :  { %13456 = vrcp.f32 %v1265_v10 }
 0x822   :  { %v1503_v16 = vpop.permute.xlu0 %1502 }
 0x826   :  { %v1501_v17 = vpop.permute.xlu0 %1500 }
 0x828   :  { %v13455_v11 = vpop.eup %13454 }
 0x829   :  { %v1268_v14 = vmul.f32 %v13455_v11, %v13451_v44 }
 0x82b   :  { %12693 = vmatmul.mubr.msk.f32.vlgmr.msra.gmra.mxu1 %vm388_vm4, %v1268_v14 }
 0x82c   :  { %v13457_v15 = vpop.eup %13456  ;;  %12701 = vmatpush3.xpose.msk.msra.mxu1 %vm388_vm4, %v1425_v12  ;;  %12702 = vmatprep.mubr.msk.f32.mxu1 %vm13596_vm2, %v13594_v6 }
 0x82d   :  { %v1269_v48 = vmul.f32 %v13457_v15, %v13453_v46  ;;  %12710 = vmatprep.subr.mxu1 %v13594_v6 }
 0x82f   :  { %12698 = vmatmul.mubr.msk.f32.vlgmr.msra.gmra.mxu0 %vm388_vm4, %v1269_v48  ;;  %12703 = vmatmul.mubr.msk.f32.vlgmr.msra.gmra.mxu1 %vm388_vm4, %v1423_v51 }
 0x830   :  { %12706 = vmatpush3.xpose.msk.msra.mxu0 %vm388_vm4, %v1503_v16  ;;  %12707 = vmatprep.mubr.msk.f32.mxu0 %vm13596_vm2, %v13594_v6 }
 0x831   :  { %12715 = vmatprep.subr.mxu0 %v13594_v6  ;;  %12712 = vmatprep.mubr.msk.f32.mxu1 %vm13596_vm2, %v13594_v6 }
 0x833   :  { %12708 = vmatmul.mubr.msk.f32.vlgmr.msra.gmra.mxu0 %vm388_vm4, %v1501_v17 }
 0x834   :  { %12717 = vmatprep.mubr.msk.f32.mxu0 %vm13596_vm2, %v13594_v6 }
 0x8eb   :  { %v1342_v18 = vpop.f32.mrf.mxu1 }
 0x8ed   :  { %v12694_v19 = vpop.f32.mrf.mxu1 }
 0x8ef   :  { %v1418_v20 = vpop.f32.mrf.mxu0  ;;  %v1496_v21 = vpop.f32.mrf.mxu1 }
 0x8f0   :  { %v13089_v22 = vpack.i.bf16 %v1418_v20, %v1342_v18  ;;  %v1578_v23 = vmul.f32 0.35355338, %v1496_v21 }
 0x8f1   :  { %v12699_v24 = vpop.f32.mrf.mxu0  ;;  %v12704_v25 = vpop.f32.mrf.mxu1 }
 0x8f2   :  { %v1580_v26 = vadd.f32 %v1578_v23, %v13875_v4 }
 0x8f3   :  { %v1574_v27 = vpop.f32.mrf.mxu0 }
 0x8f4   :  { %v1579_v28 = vmul.f32 0.35355338, %v1574_v27  ;;  %v1582_v29 = vadd.f32 %v1580_v26, %v13878_v8 }
 0x8f5   :  { %v12709_v33 = vpop.f32.mrf.mxu0 }
 0x8f6   :  { %v1581_v35 = vadd.f32 %v1579_v28, %v13875_v4  ;;  %v1584_v37 = vsel %vm388_vm4, %v1582_v29, -inf }
 0x8f7   :  { %1585 = vmax.xlane.f32.xlu1 %v1584_v37 }
 0x8f8   :  { %v1583_v38 = vadd.f32 %v1581_v35, %v13882_v13 }
 0x8fa   :  { %v1587_v39 = vsel %vm388_vm4, %v1583_v38, -inf }
 0x8fb   :  { %1588 = vmax.xlane.f32.xlu0 %v1587_v39 }
 0x980   :  { %v1586_v40 = vpop.xlane.xlu1 %1585 }
 0x981   :  { %v1590_v41 = vsub.f32 %v1582_v29, %v1586_v40  ;;  %v13153_v40 = vld [vmem:[%s16082_s10 + $0x10] sm:$0xff]  }
 0x983   :  { %v1592_v42 = vmul.f32 1.442695, %v1590_v41  ;;  %v181_v41 = vld [vmem:[%s16083_s1 + $0x8] sm:$0xff] }
 0x984   :  { %v1589_v45 = vpop.xlane.xlu0 %1588 }
 0x985   :  { %13458 = vpow2.f32 %v1592_v42  ;;  %v1591_v49 = vsub.f32 %v1583_v38, %v1589_v45  ;;  %v13154_v42 = vld [vmem:[%s16082_s10 + $0x8] sm:$0xff]  }
 0x987   :  { %v1594_v50 = vmul.f32 1.442695, %v1591_v49  ;;  %v13155_v49 = vld [vmem:[%s16082_s10] sm:$0xff]  }
 0x989   :  { %13460 = vpow2.f32 %v1594_v50 }
 0x992   :  { %v13459_v52 = vpop.eup %13458 }
 0x993   :  { %v1596_v54 = vsel %vm388_vm4, %v13459_v52, 0.0 }
 0x994   :  { %1597 = vadd.xlane.f32.xlu0 %v1596_v54 }
 0x996   :  { %v13461_v4 = vpop.eup %13460 }
 0x997   :  { %v1599_v55 = vsel %vm388_vm4, %v13461_v4, 0.0 }
 0x998   :  { %1600 = vadd.xlane.f32.xlu1 %v1599_v55 }
 0x9a9   :  { %1682 = vrot.lane.b32.xlu1 %v13858_v56, %s16107_s0 }
 0x9aa   :  { %1606 = vrot.lane.b32.xlu0 %v13850_v53, %s16107_s0 }
 0x9ad   :  { %13085 = vrot.lane.b32.xlu1 %v13084_v36, %s16105_s27  ;;  %v13150_v36 = vld [vmem:[%s16080_s8 + $0x8] sm:$0xff]  }
 0x9ae   :  { %13090 = vrot.lane.b32.xlu0 %v13089_v22, %s16103_s4  ;;  %s16129_s4 = smov 104  }
 0xa1d   :  { %v1598_v57 = vpop.xlane.xlu0 %1597 }
 0xa1e   :  { %13462 = vrcp.f32 %v1598_v57 }
 0xa21   :  { %v1607_v58 = vpop.permute.xlu0 %1606  ;;  %v1601_v59 = vpop.xlane.xlu1 %1600 }
 0xa22   :  { %13464 = vrcp.f32 %v1601_v59  ;;  %12711 = vmatpush3.msra.mxu1 %v1607_v58 }
 0xa23   :  { %12720 = vmatprep.subr.bf16.mxu1 %v13594_v6 }
 0xa25   :  { %v1683_v56 = vpop.permute.xlu1 %1682  ;;  %v13091_v10 = vpop.permute.xlu0 %13090 }
 0xa26   :  { %12716 = vmatpush3.msra.mxu0 %v1683_v56  ;;  %v13093_v14 = vunpack.i.h.bf16 %v13091_v10  ;;  %v13092_v15 = vunpack.i.l.bf16 %v13091_v10 }
 0xa27   :  { %12728 = vmatprep.subr.bf16.mxu0 %v13594_v6 }
 0xa29   :  { %v13086_v46 = vpop.permute.xlu1 %13085 }
 0xa2a   :  { %v13088_v7 = vunpack.i.h.bf16 %v13086_v46  ;;  %v13087_v9 = vunpack.i.l.bf16 %v13086_v46 }
 0xa2b   :  { %v13463_v53 = vpop.eup %13462 }
 0xa2c   :  { %v1604_v60 = vmul.f32 %v13463_v53, %v13459_v52  ;;  %v1783_v11 = vsel %vm388_vm4, %v13917_v47, %v13088_v7  ;;  %v1782_v12 = vsel %vm388_vm4, %v13915_v43, %v13087_v9  ;;  %v11221_v43 = vld [vmem:[%s16081_s9] ss:$0 sm:$0xff] }
 0xa2d   :  { %v1785_v17 = vsel %vm1784_vm5, %v1782_v12, %v13092_v15  ;;  %v1786_v18 = vsel %vm1784_vm5, %v1783_v11, %v13093_v14 }
 0xa2e   :  { %12713 = vmatmul.mubr.msk.f32.vlgmr.msra.gmra.mxu1 %vm388_vm4, %v1604_v60 }
 0xa2f   :  { %v13465_v32 = vpop.eup %13464  ;;  %12724 = vmatprep.mubr.msk.bf16.mxu1 %vm13596_vm2, %v13594_v6  ;;  %12721 = vmatpush3.bf16.msra.mxu1 %v13150_v36 }
 0xa30   :  { %v1605_v34 = vmul.f32 %v13465_v32, %v13461_v4  ;;  %12722 = vmatprep.subr.bf16.mxu1 %v13594_v6 }
 0xa32   :  { %12718 = vmatmul.mubr.msk.f32.vlgmr.msra.gmra.mxu0 %vm388_vm4, %v1605_v34 }
 0xa33   :  { %12732 = vmatprep.mubr.msk.bf16.mxu0 %vm13596_vm2, %v13594_v6  ;;  %12723 = vmatpush3.bf16.msra.mxu1 %v13151_v62  ;;  %v185_v62 = vld [vmem:[%s16084_s14] sm:$0x7] }
 0xa34   :  { %12736 = vmatprep.subr.bf16.mxu1 %v13594_v6  ;;  %12729 = vmatpush3.bf16.msra.mxu0 %v13154_v42 }
 0xa35   :  { %12730 = vmatprep.subr.bf16.mxu0 %v13594_v6 }
 0xa38   :  { %12731 = vmatpush3.bf16.msra.mxu0 %v13155_v49 }
 0xa39   :  { %12744 = vmatprep.subr.bf16.mxu0 %v13594_v6 }
 0xaee   :  { %v1678_v63 = vpop.f32.mrf.mxu1 }
 0xaf0   :  { %v12714_v1 = vpop.f32.mrf.mxu1 }
 0xaf2   :  { %v1754_v2 = vpop.f32.mrf.mxu0 }
 0xaf3   :  { %v13094_v44 = vpack.i.bf16 %v1754_v2, %v1678_v63 }
 0xaf4   :  { %v12719_v5 = vpop.f32.mrf.mxu0 }
 0xaf5   :  { %13095 = vrot.lane.b32.xlu1 %v13094_v44, %s16101_s3  ;;  %v1894_v44 = vrot.slane %v185_v62, %v13870_v3  ;;  %v186_v5 = vld [vmem:[%s16085_s15] sm:$0x7]  ;;  %s16130_s3 = smov 8  }
 0xaf6   :  { %v1900_v11 = vrot.slane %v186_v5, %v13870_v3 }
 0xb67   :  { %v13096_v16 = vpop.permute.xlu1 %13095 }
 0xb68   :  { %v13098_v48 = vunpack.i.h.bf16 %v13096_v16  ;;  %v13097_v51 = vunpack.i.l.bf16 %v13096_v16  ;;  %v13156_v16 = vld [vmem:[%s16082_s10 + $0x28] sm:$0xff]  }
 0xb6a   :  { %v1789_v19 = vsel %vm1787_vm6, %v1786_v18, %v13098_v48  ;;  %v1788_v20 = vsel %vm1787_vm6, %v1785_v17, %v13097_v51  ;;  %v13157_v51 = vld [vmem:[%s16082_s10 + $0x20] sm:$0xff]  }
 0xb6b   :  { %v1790_v21 = vpack.c.bf16 %v1789_v19, %v1788_v20  ;;  %v11234_v17 = vld [vmem:[%s16086_s11 + $0x1] ss:$0 sm:$0xff] }
 0xb6d   :  { %12725 = vmatmul.mubr.msk.bf16.vlgmr.msra.gmra.mxu1 %vm211_vm3, %v1790_v21 }
 0xb6e   :  { %12740 = vmatprep.mubr.msk.bf16.mxu1 %vm13596_vm2, %v13594_v6 }
 0xc2d   :  { %v1851_v47 = vpop.f32.mrf.mxu1 }
 0xc2e   :  { %v1852_v22 = vadd.f32 %v11221_v43, %v1851_v47 }
 0xc2f   :  { %v12726_v23 = vpop.f32.mrf.mxu1 }
 0xc30   :  { %v1858_v24 = vadd.f32 %v1852_v22, %v13794_v31  ;;  %v13152_v31 = vld [vmem:[%s16082_s10 + $0x18] sm:$0xff]   ;;  %v11225_v22 = vld [vmem:[%s16086_s11] ss:$0 sm:$0xff] }
 0xc31   :  { %v1854_v25 = vpop.f32.mrf.mxu1  ;;  %12737 = vmatpush3.bf16.msra.mxu1 %v13152_v31 }
 0xc32   :  { %v1855_v26 = vadd.f32 %v11221_v43, %v1854_v25  ;;  %v1860_v27 = vsel %vm211_vm3, %v1858_v24, 0.0  ;;  %v1869_v28 = vmul.f32 %v1858_v24, %v1858_v24  ;;  %12738 = vmatprep.subr.bf16.mxu1 %v13594_v6 }
 0xc33   :  { %1861 = vadd.xlane.f32.xlu0 %v1860_v27  ;;  %v12727_v29 = vpop.f32.mrf.mxu1 }
 0xc34   :  { %v1859_v33 = vadd.f32 %v1855_v26, %v13792_v30  ;;  %v1871_v35 = vsel %vm211_vm3, %v1869_v28, 0.0  ;;  %v180_v30 = vld [vmem:[%s16083_s1] sm:$0xff] }
 0xc35   :  { %v14071_v45 = vpack.c.bf16 %v181_v41, %v180_v30  ;;  %12739 = vmatpush3.bf16.msra.mxu1 %v13153_v40  ;;  %v11243_v29 = vld [vmem:[%s16086_s11 + $0x2] ss:$0 sm:$0xff] }
 0xc36   :  { %v1863_v37 = vsel %vm211_vm3, %v1859_v33, 0.0  ;;  %v1870_v38 = vmul.f32 %v1859_v33, %v1859_v33  ;;  %12752 = vmatprep.subr.mxu1 %v13594_v6 }
 0xc37   :  { %1872 = vadd.xlane.f32.xlu0 %v1871_v35  ;;  %1864 = vadd.xlane.f32.xlu1 %v1863_v37 }
 0xc38   :  { %v1874_v39 = vsel %vm211_vm3, %v1870_v38, 0.0  ;;  %12741 = vmatmul.mubr.msk.bf16.vlgmr.msra.gmra.mxu1 %vm211_vm3, %v14071_v45 }
 0xc39   :  { %12754 = vmatprep.mubr.msk.f32.mxu1 %vm13596_vm2, %v13594_v6 }
 0xc3b   :  { %1875 = vadd.xlane.f32.xlu0 %v1874_v39 }
 0xcbc   :  { %v1862_v50 = vpop.xlane.xlu0 %1861 }
 0xcbd   :  { %v1867_v52 = vmul.f32 0.03125, %v1862_v50 }
 0xcbf   :  { %v1879_v55 = vmul.f32 %v1867_v52, %v1867_v52  ;;  %v1883_v63 = vsub.f32 %v1858_v24, %v1867_v52 }
 0xcc0   :  { %v1873_v54 = vpop.xlane.xlu0 %1872  ;;  %v1865_v4 = vpop.xlane.xlu1 %1864 }
 0xcc1   :  { %v1877_v57 = vmul.f32 0.03125, %v1873_v54  ;;  %v1868_v58 = vmul.f32 0.03125, %v1865_v4 }
 0xcc3   :  { %v1881_v59 = vsub.f32 %v1877_v57, %v1879_v55  ;;  %v1880_v60 = vmul.f32 %v1868_v58, %v1868_v58  ;;  %v1884_v46 = vsub.f32 %v1859_v33, %v1868_v58 }
 0xcc4   :  { %v1876_v56 = vpop.xlane.xlu0 %1875 }
 0xcc5   :  { %v1885_v53 = vadd.f32 1e-05, %v1881_v59  ;;  %v1878_v32 = vmul.f32 0.03125, %v1876_v56 }
 0xcc7   :  { %13466 = vrsqrt.f32 %v1885_v53  ;;  %v1882_v34 = vsub.f32 %v1878_v32, %v1880_v60 }
 0xcc9   :  { %v1886_v36 = vadd.f32 1e-05, %v1882_v34 }
 0xccb   :  { %13468 = vrsqrt.f32 %v1886_v36 }
 0xcd4   :  { %v13467_v1 = vpop.eup %13466 }
 0xcd5   :  { %v1889_v2 = vmul.f32 %v13467_v1, %v1883_v63 }
 0xcd7   :  { %v1895_v10 = vmul.f32 %v1894_v44, %v1889_v2 }
 0xcd8   :  { %v13469_v7 = vpop.eup %13468 }
 0xcd9   :  { %v1890_v9 = vmul.f32 %v13469_v7, %v1884_v46  ;;  %v14091_v14 = vadd.f32 %v1900_v11, %v1895_v10 }
 0xcdb   :  { %v1896_v12 = vmul.f32 %v1894_v44, %v1890_v9 }
 0xcdd   :  { %v14093_v15 = vadd.f32 %v1900_v11, %v1896_v12 }
 0xcdf   :  { %v1903_v48 = vpack.c.bf16 %v14093_v15, %v14091_v14 }
 0xce1   :  { %12733 = vmatmul.mubr.msk.bf16.vlgmr.msra.gmra.mxu0 %vm211_vm3, %v1903_v48 }
 0xce2   :  { %12745 = vmatpush3.bf16.msra.mxu0 %v13156_v16  ;;  %12748 = vmatprep.mubr.msk.bf16.mxu0 %vm13596_vm2, %v13594_v6 }
 0xce3   :  { %12746 = vmatprep.subr.bf16.mxu0 %v13594_v6 }
 0xce6   :  { %12747 = vmatpush3.bf16.msra.mxu0 %v13157_v51 }
 0xce7   :  { %12757 = vmatprep.subr.mxu0 %v13594_v6 }
 0xce9   :  { %12749 = vmatmul.mubr.msk.bf16.vlgmr.msra.gmra.mxu0 %vm211_vm3, %v14071_v45 }
 0xcea   :  { %12759 = vmatprep.mubr.msk.f32.mxu0 %vm13596_vm2, %v13594_v6 }
 0xcf8   :  { %v2033_v18 = vpop.f32.mrf.mxu1 }
 0xcf9   :  { %v14115_v19 = vadd.f32 %v11234_v17, %v2033_v18 }
 0xcfa   :  { %v12742_v20 = vpop.f32.mrf.mxu1 }
 0xcfb   :  { %12753 = vmatpush3.xpose.msk.msra.mxu1 %vm388_vm4, %v14115_v19 }
 0xcfc   :  { %v2036_v21 = vpop.f32.mrf.mxu1  ;;  %12762 = vmatprep.subr.mxu1 %v13594_v6 }
 0xcfd   :  { %v14120_v43 = vadd.f32 %v11234_v17, %v2036_v21 }
 0xcfe   :  { %v12743_v47 = vpop.f32.mrf.mxu1 }
 0xcff   :  { %12758 = vmatpush3.xpose.msk.msra.mxu0 %vm388_vm4, %v14120_v43 }
 0xd00   :  { %12767 = vmatprep.subr.mxu0 %v13594_v6 }
 0xda1   :  { %v1964_v23 = vpop.f32.mrf.mxu0 }
 0xda2   :  { %v14128_v24 = vadd.f32 %v11225_v22, %v1964_v23 }
 0xda3   :  { %v12734_v25 = vpop.f32.mrf.mxu0 }
 0xda4   :  { %12755 = vmatmul.mubr.msk.f32.vlgmr.msra.gmra.mxu1 %vm388_vm4, %v14128_v24 }
 0xda5   :  { %v1967_v26 = vpop.f32.mrf.mxu0  ;;  %12764 = vmatprep.mubr.msk.f32.mxu1 %vm13596_vm2, %v13594_v6 }
 0xda6   :  { %v14134_v27 = vadd.f32 %v11225_v22, %v1967_v26 }
 0xda7   :  { %v12735_v28 = vpop.f32.mrf.mxu0 }
 0xda8   :  { %12760 = vmatmul.mubr.msk.f32.vlgmr.msra.gmra.mxu0 %vm388_vm4, %v14134_v27 }
 0xda9   :  { %v2099_v33 = vpop.f32.mrf.mxu0  ;;  %12769 = vmatprep.mubr.msk.f32.mxu0 %vm13596_vm2, %v13594_v6 }
 0xdaa   :  { %v14143_v35 = vadd.f32 %v11243_v29, %v2099_v33 }
 0xdab   :  { %v12750_v37 = vpop.f32.mrf.mxu0 }
 0xdac   :  { %12763 = vmatpush3.msra.mxu1 %v14143_v35 }
 0xdad   :  { %v2102_v38 = vpop.f32.mrf.mxu0  ;;  %12772 = vmatprep.subr.mxu1 %v13594_v6 }
 0xdae   :  { %v14147_v39 = vadd.f32 %v11243_v29, %v2102_v38 }
 0xdaf   :  { %v12751_v31 = vpop.f32.mrf.mxu0 }
 0xdb0   :  { %12768 = vmatpush3.msra.mxu0 %v14147_v39 }
 0xdb1   :  { %12777 = vmatprep.subr.mxu0 %v13594_v6 }
 0xe64   :  { %v2178_v40 = vpop.f32.mrf.mxu1 }
 0xe65   :  { %v2258_v30 = vmul.f32 0.35355338, %v2178_v40 }
 0xe66   :  { %v12756_v41 = vpop.f32.mrf.mxu1 }
 0xe67   :  { %v2260_v42 = vsel %vm388_vm4, %v2258_v30, -inf }
 0xe68   :  { %v2254_v49 = vpop.f32.mrf.mxu0  ;;  %2261 = vmax.xlane.f32.xlu1 %v2260_v42 }
 0xe69   :  { %v2259_v50 = vmul.f32 0.35355338, %v2254_v49 }
 0xe6a   :  { %v12761_v52 = vpop.f32.mrf.mxu0 }
 0xe6b   :  { %v2263_v54 = vsel %vm388_vm4, %v2259_v50, -inf }
 0xe6c   :  { %2264 = vmax.xlane.f32.xlu0 %v2263_v54 }
 0xe79   :  { %2430 = vrot.lane.b32.xlu1 %v14115_v19, %s16111_s2 }
 0xef1   :  { %v2262_v4 = vpop.xlane.xlu1 %2261 }
 0xef2   :  { %v2266_v55 = vsub.f32 %v2258_v30, %v2262_v4 }
 0xef4   :  { %v2268_v57 = vmul.f32 1.442695, %v2266_v55 }
 0xef5   :  { %v2265_v58 = vpop.xlane.xlu0 %2264  ;;  %v2431_v36 = vpop.permute.xlu1 %2430 }
 0xef6   :  { %13470 = vpow2.f32 %v2268_v57  ;;  %v2267_v59 = vsub.f32 %v2259_v50, %v2265_v58 }
 0xef8   :  { %v2270_v56 = vmul.f32 1.442695, %v2267_v59 }
 0xefa   :  { %13472 = vpow2.f32 %v2270_v56 }
 0xf03   :  { %v13471_v53 = vpop.eup %13470 }
 0xf04   :  { %v2272_v60 = vsel %vm388_vm4, %v13471_v53, 0.0 }
 0xf05   :  { %2273 = vadd.xlane.f32.xlu1 %v2272_v60 }
 0xf07   :  { %v13473_v32 = vpop.eup %13472 }
 0xf08   :  { %v2275_v34 = vsel %vm388_vm4, %v13473_v32, 0.0 }
 0xf09   :  { %2276 = vadd.xlane.f32.xlu0 %v2275_v34 }
 0xf16   :  { %2428 = vrot.lane.b32.xlu1 %v14128_v24, %s16111_s2 }
 0xf1a   :  { %2506 = vrot.lane.b32.xlu1 %v14134_v27, %s16111_s2 }
 0xf1f   :  { %2508 = vrot.lane.b32.xlu0 %v14120_v43, %s16111_s2 }
 0xf8e   :  { %v2274_v62 = vpop.xlane.xlu1 %2273 }
 0xf8f   :  { %13474 = vrcp.f32 %v2274_v62 }
 0xf92   :  { %v2277_v63 = vpop.xlane.xlu0 %2276  ;;  %v2429_v5 = vpop.permute.xlu1 %2428 }
 0xf93   :  { %13476 = vrcp.f32 %v2277_v63 }
 0xf96   :  { %v2509_v7 = vpop.permute.xlu0 %2508  ;;  %v2507_v9 = vpop.permute.xlu1 %2506 }
 0xf9c   :  { %v13475_v1 = vpop.eup %13474 }
 0xf9d   :  { %v2280_v2 = vmul.f32 %v13475_v1, %v13471_v53 }
 0xf9f   :  { %12765 = vmatmul.mubr.msk.f32.vlgmr.msra.gmra.mxu1 %vm388_vm4, %v2280_v2 }
 0xfa0   :  { %v13477_v44 = vpop.eup %13476  ;;  %12773 = vmatpush3.xpose.msk.msra.mxu1 %vm388_vm4, %v2431_v36  ;;  %12774 = vmatprep.mubr.msk.f32.mxu1 %vm13596_vm2, %v13594_v6 }
 0xfa1   :  { %v2281_v46 = vmul.f32 %v13477_v44, %v13473_v32  ;;  %12782 = vmatprep.subr.mxu1 %v13594_v6 }
 0xfa3   :  { %12770 = vmatmul.mubr.msk.f32.vlgmr.msra.gmra.mxu0 %vm388_vm4, %v2281_v46  ;;  %12775 = vmatmul.mubr.msk.f32.vlgmr.msra.gmra.mxu1 %vm388_vm4, %v2429_v5 }
 0xfa4   :  { %12778 = vmatpush3.xpose.msk.msra.mxu0 %vm388_vm4, %v2509_v7  ;;  %12779 = vmatprep.mubr.msk.f32.mxu0 %vm13596_vm2, %v13594_v6 }
 0xfa5   :  { %12787 = vmatprep.subr.mxu0 %v13594_v6  ;;  %12784 = vmatprep.mubr.msk.f32.mxu1 %vm13596_vm2, %v13594_v6 }
 0xfa7   :  { %12780 = vmatmul.mubr.msk.f32.vlgmr.msra.gmra.mxu0 %vm388_vm4, %v2507_v9 }
 0xfa8   :  { %12789 = vmatprep.mubr.msk.f32.mxu0 %vm13596_vm2, %v13594_v6 }
0x105f   :  { %v14179_v10 = vpop.f32.mrf.mxu1 }
0x1061   :  { %v12766_v11 = vpop.f32.mrf.mxu1 }
0x1063   :  { %v14181_v12 = vpop.f32.mrf.mxu0  ;;  %v2502_v16 = vpop.f32.mrf.mxu1 }
0x1064   :  { %v2584_v48 = vmul.f32 0.35355338, %v2502_v16 }
0x1065   :  { %v12771_v51 = vpop.f32.mrf.mxu0  ;;  %v12776_v17 = vpop.f32.mrf.mxu1 }
0x1066   :  { %v2586_v18 = vsel %vm388_vm4, %v2584_v48, -inf }
0x1067   :  { %v2580_v20 = vpop.f32.mrf.mxu0  ;;  %2587 = vmax.xlane.f32.xlu0 %v2586_v18 }
0x1068   :  { %v2585_v21 = vmul.f32 0.35355338, %v2580_v20 }
0x1069   :  { %v12781_v47 = vpop.f32.mrf.mxu0 }
0x106a   :  { %v2589_v22 = vsel %vm388_vm4, %v2585_v21, -inf }
0x106b   :  { %2590 = vmax.xlane.f32.xlu1 %v2589_v22 }
0x107c   :  { %2609 = vrot.lane.b32.xlu1 %v14143_v35, %s16111_s2 }
0x1080   :  { %2764 = vrot.lane.b32.xlu1 %v14115_v19, %s16109_s25 }
0x1084   :  { %2842 = vrot.lane.b32.xlu1 %v14120_v43, %s16109_s25 }
0x1088   :  { %2840 = vrot.lane.b32.xlu1 %v14134_v27, %s16109_s25 }
0x10f0   :  { %v2588_v23 = vpop.xlane.xlu0 %2587 }
0x10f1   :  { %v2592_v25 = vsub.f32 %v2584_v48, %v2588_v23 }
0x10f3   :  { %v2594_v26 = vmul.f32 1.442695, %v2592_v25 }
0x10f4   :  { %v2591_v28 = vpop.xlane.xlu1 %2590 }
0x10f5   :  { %13478 = vpow2.f32 %v2594_v26  ;;  %v2593_v29 = vsub.f32 %v2585_v21, %v2591_v28 }
0x10f7   :  { %v2596_v33 = vmul.f32 1.442695, %v2593_v29 }
0x10f8   :  { %v2610_v37 = vpop.permute.xlu1 %2609 }
0x10f9   :  { %13480 = vpow2.f32 %v2596_v33  ;;  %12783 = vmatpush3.msra.mxu1 %v2610_v37 }
0x10fa   :  { %12792 = vmatprep.subr.mxu1 %v13594_v6 }
0x10fc   :  { %v2765_v50 = vpop.permute.xlu1 %2764 }
0x1100   :  { %v2843_v55 = vpop.permute.xlu1 %2842 }
0x1102   :  { %v13479_v38 = vpop.eup %13478 }
0x1103   :  { %v2598_v31 = vsel %vm388_vm4, %v13479_v38, 0.0 }
0x1104   :  { %2599 = vadd.xlane.f32.xlu0 %v2598_v31  ;;  %v2841_v59 = vpop.permute.xlu1 %2840 }
0x1106   :  { %v13481_v40 = vpop.eup %13480 }
0x1107   :  { %v2601_v30 = vsel %vm388_vm4, %v13481_v40, 0.0 }
0x1108   :  { %2602 = vadd.xlane.f32.xlu0 %v2601_v30 }
0x111e   :  { %2686 = vrot.lane.b32.xlu0 %v14147_v39, %s16111_s2 }
0x1122   :  { %2762 = vrot.lane.b32.xlu0 %v14128_v24, %s16109_s25 }
0x118d   :  { %v2600_v41 = vpop.xlane.xlu0 %2599 }
0x118e   :  { %13482 = vrcp.f32 %v2600_v41 }
0x1191   :  { %v2603_v42 = vpop.xlane.xlu0 %2602 }
0x1192   :  { %13484 = vrcp.f32 %v2603_v42 }
0x1195   :  { %v2687_v49 = vpop.permute.xlu0 %2686 }
0x1196   :  { %12788 = vmatpush3.msra.mxu0 %v2687_v49 }
0x1197   :  { %12797 = vmatprep.subr.mxu0 %v13594_v6 }
0x1199   :  { %v2763_v58 = vpop.permute.xlu0 %2762 }
0x119b   :  { %v13483_v52 = vpop.eup %13482 }
0x119c   :  { %v2606_v54 = vmul.f32 %v13483_v52, %v13479_v38 }
0x119e   :  { %12785 = vmatmul.mubr.msk.f32.vlgmr.msra.gmra.mxu1 %vm388_vm4, %v2606_v54 }
0x119f   :  { %v13485_v4 = vpop.eup %13484  ;;  %12793 = vmatpush3.xpose.msk.msra.mxu1 %vm388_vm4, %v2765_v50  ;;  %12794 = vmatprep.mubr.msk.f32.mxu1 %vm13596_vm2, %v13594_v6 }
0x11a0   :  { %v2607_v57 = vmul.f32 %v13485_v4, %v13481_v40  ;;  %12802 = vmatprep.subr.mxu1 %v13594_v6 }
0x11a2   :  { %12790 = vmatmul.mubr.msk.f32.vlgmr.msra.gmra.mxu0 %vm388_vm4, %v2607_v57  ;;  %12795 = vmatmul.mubr.msk.f32.vlgmr.msra.gmra.mxu1 %vm388_vm4, %v2763_v58 }
0x11a3   :  { %12798 = vmatpush3.xpose.msk.msra.mxu0 %vm388_vm4, %v2843_v55  ;;  %12799 = vmatprep.mubr.msk.f32.mxu0 %vm13596_vm2, %v13594_v6 }
0x11a4   :  { %12807 = vmatprep.subr.mxu0 %v13594_v6  ;;  %12804 = vmatprep.mubr.msk.f32.mxu1 %vm13596_vm2, %v13594_v6 }
0x11a6   :  { %12800 = vmatmul.mubr.msk.f32.vlgmr.msra.gmra.mxu0 %vm388_vm4, %v2841_v59 }
0x11a7   :  { %12809 = vmatprep.mubr.msk.f32.mxu0 %vm13596_vm2, %v13594_v6 }
0x125e   :  { %v14217_v56 = vpop.f32.mrf.mxu1 }
0x1260   :  { %v12786_v53 = vpop.f32.mrf.mxu1 }
0x1262   :  { %v14219_v60 = vpop.f32.mrf.mxu0  ;;  %v2836_v32 = vpop.f32.mrf.mxu1 }
0x1263   :  { %v13099_v34 = vpack.i.bf16 %v14219_v60, %v14217_v56  ;;  %v2918_v36 = vmul.f32 0.35355338, %v2836_v32 }
0x1264   :  { %v12791_v62 = vpop.f32.mrf.mxu0  ;;  %v12796_v63 = vpop.f32.mrf.mxu1 }
0x1265   :  { %v2920_v1 = vsel %vm388_vm4, %v2918_v36, -inf }
0x1266   :  { %v2914_v2 = vpop.f32.mrf.mxu0  ;;  %2921 = vmax.xlane.f32.xlu0 %v2920_v1 }
0x1267   :  { %v2919_v44 = vmul.f32 0.35355338, %v2914_v2 }
0x1268   :  { %v12801_v5 = vpop.f32.mrf.mxu0 }
0x1269   :  { %v2923_v46 = vsel %vm388_vm4, %v2919_v44, -inf }
0x126a   :  { %2924 = vmax.xlane.f32.xlu1 %v2923_v46 }
0x127b   :  { %2942 = vrot.lane.b32.xlu1 %v14143_v35, %s16109_s25 }
0x127f   :  { %3096 = vrot.lane.b32.xlu1 %v14115_v19, %s16129_s4 }
0x1283   :  { %3174 = vrot.lane.b32.xlu1 %v14120_v43, %s16129_s4 }
0x1287   :  { %3172 = vrot.lane.b32.xlu1 %v14134_v27, %s16129_s4 }
0x12ef   :  { %v2922_v7 = vpop.xlane.xlu0 %2921 }
0x12f0   :  { %v2926_v9 = vsub.f32 %v2918_v36, %v2922_v7 }
0x12f2   :  { %v2928_v11 = vmul.f32 1.442695, %v2926_v9  ;;  %v13159_v9 = vld [vmem:[%s16087_s12] sm:$0xff]  }
0x12f3   :  { %v2925_v16 = vpop.xlane.xlu1 %2924 }
0x12f4   :  { %13486 = vpow2.f32 %v2928_v11  ;;  %v2927_v48 = vsub.f32 %v2919_v44, %v2925_v16 }
0x12f6   :  { %v2930_v51 = vmul.f32 1.442695, %v2927_v48 }
0x12f7   :  { %v2943_v17 = vpop.permute.xlu1 %2942 }
0x12f8   :  { %13488 = vpow2.f32 %v2930_v51  ;;  %12803 = vmatpush3.msra.mxu1 %v2943_v17 }
0x12f9   :  { %12812 = vmatprep.subr.mxu1 %v13594_v6 }
0x12fb   :  { %v3097_v22 = vpop.permute.xlu1 %3096 }
0x12ff   :  { %v3175_v28 = vpop.permute.xlu1 %3174 }
0x1301   :  { %v13487_v18 = vpop.eup %13486 }
0x1302   :  { %v2932_v19 = vsel %vm388_vm4, %v13487_v18, 0.0 }
0x1303   :  { %2933 = vadd.xlane.f32.xlu0 %v2932_v19  ;;  %v3173_v33 = vpop.permute.xlu1 %3172 }
0x1305   :  { %v13489_v43 = vpop.eup %13488 }
0x1306   :  { %v2935_v20 = vsel %vm388_vm4, %v13489_v43, 0.0 }
0x1307   :  { %2936 = vadd.xlane.f32.xlu0 %v2935_v20 }
0x131d   :  { %3018 = vrot.lane.b32.xlu0 %v14147_v39, %s16109_s25 }
0x1321   :  { %3094 = vrot.lane.b32.xlu0 %v14128_v24, %s16129_s4 }
0x138c   :  { %v2934_v27 = vpop.xlane.xlu0 %2933 }
0x138d   :  { %13490 = vrcp.f32 %v2934_v27 }
0x1390   :  { %v2937_v21 = vpop.xlane.xlu0 %2936 }
0x1391   :  { %13492 = vrcp.f32 %v2937_v21 }
0x1394   :  { %v3019_v47 = vpop.permute.xlu0 %3018 }
0x1395   :  { %12808 = vmatpush3.msra.mxu0 %v3019_v47 }
0x1396   :  { %12817 = vmatprep.subr.mxu0 %v13594_v6 }
0x1398   :  { %v3095_v29 = vpop.permute.xlu0 %3094 }
0x139a   :  { %v13491_v23 = vpop.eup %13490 }
0x139b   :  { %v2940_v25 = vmul.f32 %v13491_v23, %v13487_v18 }
0x139d   :  { %12805 = vmatmul.mubr.msk.f32.vlgmr.msra.gmra.mxu1 %vm388_vm4, %v2940_v25 }
0x139e   :  { %v13493_v26 = vpop.eup %13492  ;;  %12813 = vmatpush3.xpose.msk.msra.mxu1 %vm388_vm4, %v3097_v22  ;;  %12814 = vmatprep.mubr.msk.f32.mxu1 %vm13596_vm2, %v13594_v6 }
0x139f   :  { %v2941_v24 = vmul.f32 %v13493_v26, %v13489_v43  ;;  %12822 = vmatprep.subr.mxu1 %v13594_v6 }
0x13a1   :  { %12810 = vmatmul.mubr.msk.f32.vlgmr.msra.gmra.mxu0 %vm388_vm4, %v2941_v24  ;;  %12815 = vmatmul.mubr.msk.f32.vlgmr.msra.gmra.mxu1 %vm388_vm4, %v3095_v29 }
0x13a2   :  { %12818 = vmatpush3.xpose.msk.msra.mxu0 %vm388_vm4, %v3175_v28  ;;  %12819 = vmatprep.mubr.msk.f32.mxu0 %vm13596_vm2, %v13594_v6 }
0x13a3   :  { %12827 = vmatprep.subr.mxu0 %v13594_v6  ;;  %12824 = vmatprep.mubr.msk.f32.mxu1 %vm13596_vm2, %v13594_v6 }
0x13a5   :  { %12820 = vmatmul.mubr.msk.f32.vlgmr.msra.gmra.mxu0 %vm388_vm4, %v3173_v33 }
0x13a6   :  { %12829 = vmatprep.mubr.msk.f32.mxu0 %vm13596_vm2, %v13594_v6 }
0x145d   :  { %v3014_v37 = vpop.f32.mrf.mxu1 }
0x145f   :  { %v12806_v38 = vpop.f32.mrf.mxu1 }
0x1461   :  { %v3090_v31 = vpop.f32.mrf.mxu0  ;;  %v3168_v40 = vpop.f32.mrf.mxu1 }
0x1462   :  { %v3250_v30 = vmul.f32 0.35355338, %v3168_v40  ;;  %v13104_v55 = vpack.i.bf16 %v3090_v31, %v3014_v37 }
0x1463   :  { %v12811_v41 = vpop.f32.mrf.mxu0  ;;  %v12816_v42 = vpop.f32.mrf.mxu1 }
0x1464   :  { %v3252_v49 = vsel %vm388_vm4, %v3250_v30, -inf }
0x1465   :  { %v3246_v50 = vpop.f32.mrf.mxu0  ;;  %3253 = vmax.xlane.f32.xlu0 %v3252_v49 }
0x1466   :  { %v3251_v52 = vmul.f32 0.35355338, %v3246_v50 }
0x1467   :  { %v12821_v54 = vpop.f32.mrf.mxu0 }
0x1468   :  { %v3255_v4 = vsel %vm388_vm4, %v3251_v52, -inf }
0x1469   :  { %3256 = vmax.xlane.f32.xlu1 %v3255_v4 }
0x147a   :  { %3274 = vrot.lane.b32.xlu1 %v14143_v35, %s16129_s4 }
0x147e   :  { %13100 = vrot.lane.b32.xlu1 %v13099_v34, %s16130_s3 }
0x1482   :  { %13105 = vrot.lane.b32.xlu1 %v13104_v55, %s16131_s30 }
0x14ee   :  { %v3254_v57 = vpop.xlane.xlu0 %3253 }
0x14ef   :  { %v3258_v58 = vsub.f32 %v3250_v30, %v3254_v57  ;;  %v3574_v57 = vld [vmem:[%s16089_s16 + $0x80] sm:$0xff] }
0x14f1   :  { %v3260_v59 = vmul.f32 1.442695, %v3258_v58  ;;  %v3575_v58 = vld [vmem:[%s16089_s16 + $0x88] sm:$0xff] }
0x14f2   :  { %v3257_v53 = vpop.xlane.xlu1 %3256 }
0x14f3   :  { %13494 = vpow2.f32 %v3260_v59  ;;  %v3259_v32 = vsub.f32 %v3251_v52, %v3257_v53  ;;  %v3577_v53 = vld [vmem:[%s16089_s16 + $0xc8] sm:$0xff] }
0x14f5   :  { %v3262_v36 = vmul.f32 1.442695, %v3259_v32 }
0x14f6   :  { %v3275_v62 = vpop.permute.xlu1 %3274 }
0x14f7   :  { %13496 = vpow2.f32 %v3262_v36  ;;  %12823 = vmatpush3.msra.mxu1 %v3275_v62  ;;  %v11281_v36 = vcombine.low %v3575_v58, %v3577_v53  ;;  %v11282_v62 = vcombine.high %v3575_v58, %v3577_v53  ;;  %v13173_v58 = vld [vmem:[%s16090_s18 + $0xe0] sm:$0xff]  }
0x14f8   :  { %12832 = vmatprep.subr.bf16.mxu1 %v13594_v6  ;;  %v13175_v53 = vld [vmem:[%s16090_s18 + $0xa0] sm:$0xff]  }
0x14fa   :  { %v13101_v18 = vpop.permute.xlu1 %13100 }
0x14fb   :  { %v13103_v43 = vunpack.i.h.bf16 %v13101_v18  ;;  %v13102_v20 = vunpack.i.l.bf16 %v13101_v18  ;;  %v14339_v18 = vsub.s32 1, %v13863_v61 }
0x14fd   :  { %v3451_v22 = vsel %vm388_vm4, %v14181_v12, %v13103_v43  ;;  %v3450_v23 = vsel %vm388_vm4, %v14179_v10, %v13102_v20  ;;  %v11271_v12 = vld [vmem:[%s16088_s13] ss:$0 sm:$0xff] }
0x14fe   :  { %v13106_v19 = vpop.permute.xlu1 %13105 }
0x14ff   :  { %v13108_v27 = vunpack.i.h.bf16 %v13106_v19  ;;  %v13107_v21 = vunpack.i.l.bf16 %v13106_v19 }
0x1500   :  { %v13495_v35 = vpop.eup %13494 }
0x1501   :  { %v3264_v63 = vsel %vm388_vm4, %v13495_v35, 0.0  ;;  %v3453_v28 = vsel %vm1784_vm5, %v3451_v22, %v13108_v27  ;;  %v3452_v24 = vsel %vm1784_vm5, %v3450_v23, %v13107_v21  ;;  %v13586_v23 = vld [vmem:[%s16084_s14] sm:$0x7] }
0x1502   :  { %3265 = vadd.xlane.f32.xlu0 %v3264_v63  ;;  %v3572_v63 = vld [vmem:[%s16089_s16 + $0x40] sm:$0xff] }
0x1504   :  { %v13497_v56 = vpop.eup %13496 }
0x1505   :  { %v3267_v60 = vsel %vm388_vm4, %v13497_v56, 0.0 }
0x1506   :  { %3268 = vadd.xlane.f32.xlu0 %v3267_v60 }
0x151c   :  { %3350 = vrot.lane.b32.xlu0 %v14147_v39, %s16129_s4  ;;  %v13158_v39 = vld [vmem:[%s16087_s12 + $0x8] sm:$0xff]  }
0x158b   :  { %v3266_v34 = vpop.xlane.xlu0 %3265 }
0x158c   :  { %13498 = vrcp.f32 %v3266_v34  ;;  %v3573_v34 = vld [vmem:[%s16089_s16 + $0x48] sm:$0xff] }
0x158f   :  { %v3269_v1 = vpop.xlane.xlu0 %3268 }
0x1590   :  { %13500 = vrcp.f32 %v3269_v1 }
0x1593   :  { %v3351_v2 = vpop.permute.xlu0 %3350 }
0x1594   :  { %12828 = vmatpush3.msra.mxu0 %v3351_v2 }
0x1599   :  { %v13499_v44 = vpop.eup %13498 }
0x159a   :  { %v3272_v5 = vmul.f32 %v13499_v44, %v13495_v35  ;;  %v3570_v35 = vld [vmem:[%s16089_s16] sm:$0xff] }
0x159b   :  { %v11276_v60 = vcombine.high %v3570_v35, %v3572_v63  ;;  %v11275_v1 = vcombine.low %v3570_v35, %v3572_v63  ;;  %v13179_v35 = vld [vmem:[%s16090_s18 + $0x98] sm:$0xff]   ;;  %v13180_v63 = vld [vmem:[%s16090_s18 + $0x50] sm:$0xff]  }
0x159c   :  { %12825 = vmatmul.mubr.msk.f32.vlgmr.msra.gmra.mxu1 %vm388_vm4, %v3272_v5  ;;  %v13160_v5 = vld [vmem:[%s16090_s18 + $0x78] sm:$0xff]  }
0x159d   :  { %v13501_v46 = vpop.eup %13500  ;;  %12836 = vmatprep.mubr.msk.bf16.mxu1 %vm13596_vm2, %v13594_v6  ;;  %12833 = vmatpush3.bf16.msra.mxu1 %v13158_v39 }
0x159e   :  { %v3273_v7 = vmul.f32 %v13501_v46, %v13497_v56  ;;  %12834 = vmatprep.subr.bf16.mxu1 %v13594_v6  ;;  %v3571_v56 = vld [vmem:[%s16089_s16 + $0x8] sm:$0xff]  ;;  %v13161_v46 = vld [vmem:[%s16090_s18 + $0xf8] sm:$0xff]  }
0x159f   :  { %v11277_v2 = vcombine.low %v3571_v56, %v3573_v34  ;;  %v11278_v44 = vcombine.high %v3571_v56, %v3573_v34  ;;  %v13181_v56 = vld [vmem:[%s16090_s18 + $0xd0] sm:$0xff]  }
0x15a0   :  { %12830 = vmatmul.mubr.msk.f32.vlgmr.msra.gmra.mxu0 %vm388_vm4, %v3273_v7  ;;  %v13183_v34 = vld [vmem:[%s16090_s18 + $0x90] sm:$0xff]  }
0x15a1   :  { %3675 = vmatprep.mubr.bf16.mxu0 %v13593_v0  ;;  %12835 = vmatpush3.bf16.msra.mxu1 %v13159_v9 }
0x15a2   :  { %3698 = vmatprep.subr.bf16.mxu1 %v11282_v62  ;;  %v13178_v62 = vld [vmem:[%s16090_s18 + $0x18] sm:$0xff]  }
0x165c   :  { %v3346_v11 = vpop.f32.mrf.mxu1 }
0x165e   :  { %v12826_v16 = vpop.f32.mrf.mxu1 }
0x1660   :  { %v3422_v48 = vpop.f32.mrf.mxu0 }
0x1661   :  { %v13109_v51 = vpack.i.bf16 %v3422_v48, %v3346_v11 }
0x1662   :  { %v12831_v17 = vpop.f32.mrf.mxu0 }
0x1663   :  { %13110 = vrot.lane.b32.xlu0 %v13109_v51, %s16132_s29 }
0x16d5   :  { %v13111_v47 = vpop.permute.xlu0 %13110 }
0x16d6   :  { %v13113_v25 = vunpack.i.h.bf16 %v13111_v47  ;;  %v13112_v26 = vunpack.i.l.bf16 %v13111_v47 }
0x16d8   :  { %v3455_v29 = vsel %vm1787_vm6, %v3453_v28, %v13113_v25  ;;  %v3454_v33 = vsel %vm1787_vm6, %v3452_v24, %v13112_v26  ;;  %v3559_v25 = vrot.slane %v13586_v23, %v14339_v18 }
0x16d9   :  { %v3456_v37 = vpack.c.bf16 %v3455_v29, %v3454_v33  ;;  %v13587_v33 = vld [vmem:[%s16085_s15] sm:$0x7] }
0x16db   :  { %12837 = vmatmul.mubr.msk.bf16.vlgmr.msra.gmra.mxu1 %vm211_vm3, %v3456_v37  ;;  %v3565_v37 = vrot.slane %v13587_v33, %v14339_v18 }
0x16dc   :  { %3718 = vmatprep.mubr.bf16.mxu1 %v13593_v0  ;;  %3699 = vmatpush1.bf16.msra.mxu1 %v11281_v36  ;;  %v13177_v36 = vld [vmem:[%s16090_s18 + $0xd8] sm:$0xff]  }
0x16dd   :  { %3700 = vmatprep.subr.bf16.mxu1 %v11278_v44  ;;  %v13186_v44 = vld [vmem:[%s16090_s18 + $0x8] sm:$0xff]  }
0x16e0   :  { %3701 = vmatpush1.bf16.msra.mxu1 %v11277_v2  ;;  %v13185_v2 = vld [vmem:[%s16090_s18 + $0xc8] sm:$0xff]  }
0x16e1   :  { %12160 = vmatprep.subr.bf16.mxu1 %v13161_v46  ;;  %v13188_v46 = vld [vmem:[%s16090_s18 + $0x40] sm:$0xff]  }
0x179b   :  { %v3517_v10 = vpop.f32.mrf.mxu1 }
0x179c   :  { %v3518_v38 = vadd.f32 %v11271_v12, %v3517_v10 }
0x179d   :  { %v12838_v31 = vpop.f32.mrf.mxu1 }
0x179e   :  { %v14298_v40 = vadd.f32 %v3518_v38, %v14091_v14  ;;  %v13162_v31 = vld [vmem:[%s16090_s18 + $0x38] sm:$0xff]  }
0x179f   :  { %v3520_v30 = vpop.f32.mrf.mxu1 }
0x17a0   :  { %v3521_v41 = vadd.f32 %v11271_v12, %v3520_v30  ;;  %v3526_v42 = vsel %vm211_vm3, %v14298_v40, 0.0  ;;  %v3534_v4 = vmul.f32 %v14298_v40, %v14298_v40  ;;  %v13163_v30 = vld [vmem:[%s16090_s18 + $0xb8] sm:$0xff]  }
0x17a1   :  { %3527 = vadd.xlane.f32.xlu1 %v3526_v42  ;;  %v12839_v49 = vpop.f32.mrf.mxu1  ;;  %v13164_v42 = vld [vmem:[%s16090_s18 + $0x70] sm:$0xff]  }
0x17a2   :  { %v3525_v50 = vadd.f32 %v3521_v41, %v14093_v15  ;;  %v3536_v14 = vsel %vm211_vm3, %v3534_v4, 0.0  ;;  %v3576_v15 = vld [vmem:[%s16089_s16 + $0xc0] sm:$0xff]  ;;  %v13165_v49 = vld [vmem:[%s16090_s18 + $0xf0] sm:$0xff]   ;;  %v13168_v4 = vld [vmem:[%s16090_s18 + $0x68] sm:$0xff]  }
0x17a3   :  { %v11280_v59 = vcombine.high %v3574_v57, %v3576_v15  ;;  %v11279_v32 = vcombine.low %v3574_v57, %v3576_v15  ;;  %v13171_v57 = vld [vmem:[%s16090_s18 + $0xa8] sm:$0xff]   ;;  %v13172_v15 = vld [vmem:[%s16090_s18 + $0x60] sm:$0xff]  }
0x17a4   :  { %v3529_v52 = vsel %vm211_vm3, %v3525_v50, 0.0  ;;  %v3535_v54 = vmul.f32 %v3525_v50, %v3525_v50 }
0x17a5   :  { %3530 = vadd.xlane.f32.xlu0 %v3529_v52  ;;  %3655 = vmatprep.subr.bf16.mxu0 %v11280_v59  ;;  %v13166_v52 = vld [vmem:[%s16090_s18 + $0x30] sm:$0xff]   ;;  %v13174_v59 = vld [vmem:[%s16090_s18 + $0x20] sm:$0xff]  }
0x17a6   :  { %v3539_v55 = vsel %vm211_vm3, %v3535_v54, 0.0  ;;  %3656 = vmatpush1.bf16.msra.mxu0 %v11279_v32  ;;  %v13167_v54 = vld [vmem:[%s16090_s18 + $0xb0] sm:$0xff]   ;;  %v13176_v32 = vld [vmem:[%s16090_s18 + $0x58] sm:$0xff]  }
0x17a7   :  { %3540 = vadd.xlane.f32.xlu1 %v3539_v55  ;;  %3657 = vmatprep.subr.bf16.mxu0 %v11276_v60  ;;  %v13169_v55 = vld [vmem:[%s16090_s18 + $0xe8] sm:$0xff]   ;;  %v13182_v60 = vld [vmem:[%s16090_s18 + $0x10] sm:$0xff]  }
0x17a9   :  { %3537 = vadd.xlane.f32.xlu0 %v3536_v14  ;;  %v13170_v14 = vld [vmem:[%s16090_s18 + $0x28] sm:$0xff]  }
0x17aa   :  { %3658 = vmatpush1.bf16.msra.mxu0 %v11275_v1  ;;  %v13184_v1 = vld [vmem:[%s16090_s18 + $0x48] sm:$0xff]  }
0x17ab   :  { %12138 = vmatprep.subr.bf16.mxu0 %v13160_v5  ;;  %v13187_v5 = vld [vmem:[%s16090_s18 + $0x88] sm:$0xff]  }
0x182a   :  { %v3528_v7 = vpop.xlane.xlu1 %3527 }
0x182b   :  { %v3532_v9 = vmul.f32 0.03125, %v3528_v7  ;;  %v13189_v7 = vld [vmem:[%s16090_s18 + $0xc0] sm:$0xff]  }
0x182d   :  { %v3544_v19 = vmul.f32 %v3532_v9, %v3532_v9  ;;  %v3548_v28 = vsub.f32 %v14298_v40, %v3532_v9  ;;  %v13191_v9 = vld [vmem:[%s16090_s18 + $0x80] sm:$0xff]  }
0x182e   :  { %v3531_v39 = vpop.xlane.xlu0 %3530 }
0x182f   :  { %v3533_v11 = vmul.f32 0.03125, %v3531_v39  ;;  %v13190_v39 = vld [vmem:[%s16090_s18] sm:$0xff]  }
0x1830   :  { %v3541_v16 = vpop.xlane.xlu1 %3540 }
0x1831   :  { %v3545_v48 = vmul.f32 %v3533_v11, %v3533_v11  ;;  %v3543_v51 = vmul.f32 0.03125, %v3541_v16  ;;  %v3549_v22 = vsub.f32 %v3525_v50, %v3533_v11  ;;  %v4091_v11 = vld [vmem:[%s16089_s16 + $0x90] sm:$0xff] }
0x1832   :  { %v3538_v17 = vpop.xlane.xlu0 %3537  ;;  %v4093_v16 = vld [vmem:[%s16089_s16 + $0xd0] sm:$0xff] }
0x1833   :  { %v3547_v43 = vsub.f32 %v3543_v51, %v3545_v48  ;;  %v3542_v20 = vmul.f32 0.03125, %v3538_v17  ;;  %v4092_v48 = vld [vmem:[%s16089_s16 + $0x98] sm:$0xff]  ;;  %v11323_v51 = vcombine.high %v4091_v11, %v4093_v16 }
0x1834   :  { %v4094_v17 = vld [vmem:[%s16089_s16 + $0xd8] sm:$0xff] }
0x1835   :  { %v3551_v27 = vadd.f32 1e-05, %v3547_v43  ;;  %v3546_v21 = vsub.f32 %v3542_v20, %v3544_v19  ;;  %v11322_v19 = vcombine.low %v4091_v11, %v4093_v16  ;;  %v11324_v43 = vcombine.low %v4092_v48, %v4094_v17  ;;  %v13195_v11 = vld [vmem:[%s16090_s18 + $0x1b8] sm:$0xff]   ;;  %v13196_v16 = vld [vmem:[%s16090_s18 + $0x170] sm:$0xff]  }
0x1836   :  { %v11325_v20 = vcombine.high %v4092_v48, %v4094_v17  ;;  %v13197_v48 = vld [vmem:[%s16090_s18 + $0x1f0] sm:$0xff]  }
0x1837   :  { %13502 = vrsqrt.f32 %v3551_v27  ;;  %v3550_v47 = vadd.f32 1e-05, %v3546_v21  ;;  %v14465_v27 = vsub.s32 3, %v13863_v61  ;;  %v14468_v21 = vsub.s32 2, %v13863_v61  ;;  %v13199_v17 = vld [vmem:[%s16090_s18 + $0x1b0] sm:$0xff]  }
0x1839   :  { %13504 = vrsqrt.f32 %v3550_v47  ;;  %v3578_v47 = vld [vmem:[%s16091_s17] sm:$0xf] }
0x1844   :  { %v13503_v26 = vpop.eup %13502 }
0x1845   :  { %v3555_v24 = vmul.f32 %v13503_v26, %v3549_v22  ;;  %v3595_v26 = vrot.slane %v3578_v47, %v14465_v27 }
0x1846   :  { %v13505_v29 = vpop.eup %13504 }
0x1847   :  { %v3561_v12 = vmul.f32 %v3559_v25, %v3555_v24  ;;  %v3554_v10 = vmul.f32 %v13505_v29, %v3548_v28  ;;  %v3583_v28 = vrot.slane %v3578_v47, %v13870_v3  ;;  %v3591_v24 = vrot.slane %v3578_v47, %v14468_v21 }
0x1849   :  { %v3560_v38 = vmul.f32 %v3559_v25, %v3554_v10  ;;  %v14356_v40 = vadd.f32 %v3565_v37, %v3561_v12  ;;  %v3587_v25 = vrot.slane %v3578_v47, %v14339_v18  ;;  %v13203_v47 = vld [vmem:[%s16090_s18 + $0x1a8] sm:$0xff]  }
0x184b   :  { %v14358_v41 = vadd.f32 %v3565_v37, %v3560_v38 }
0x184d   :  { %v14368_v50 = vpack.c.bf16 %v14356_v40, %v14358_v41 }
0x184f   :  { %11283 = vmatmul.mubr.msk.bf16.vlgmr.msra.gmra.mxu0 %vm211_vm3, %v14368_v50  ;;  %11284 = vmatmul.mubr.msk.bf16.vlgmr.msra.gmra.mxu1 %vm211_vm3, %v14368_v50 }
0x1850   :  { %12139 = vmatpush3.bf16.msra.mxu0 %v13162_v31  ;;  %12161 = vmatpush3.bf16.msra.mxu1 %v13163_v30 }
0x1851   :  { %12140 = vmatprep.subr.bf16.mxu0 %v13164_v42  ;;  %12162 = vmatprep.subr.bf16.mxu1 %v13165_v49 }
0x1854   :  { %12141 = vmatpush3.bf16.msra.mxu0 %v13166_v52  ;;  %12163 = vmatpush3.bf16.msra.mxu1 %v13167_v54 }
0x1855   :  { %12142 = vmatprep.subr.bf16.mxu0 %v13168_v4  ;;  %12164 = vmatprep.subr.bf16.mxu1 %v13169_v55 }
0x1858   :  { %12143 = vmatpush3.bf16.msra.mxu0 %v13170_v14  ;;  %12165 = vmatpush3.bf16.msra.mxu1 %v13171_v57  ;;  %v4087_v57 = vld [vmem:[%s16089_s16 + $0x10] sm:$0xff] }
0x1859   :  { %12144 = vmatprep.subr.bf16.mxu0 %v13172_v15  ;;  %12166 = vmatprep.subr.bf16.mxu1 %v13173_v58  ;;  %v4089_v15 = vld [vmem:[%s16089_s16 + $0x50] sm:$0xff] }
0x185c   :  { %12145 = vmatpush3.bf16.msra.mxu0 %v13174_v59  ;;  %12167 = vmatpush3.bf16.msra.mxu1 %v13175_v53 }
0x185d   :  { %12146 = vmatprep.subr.bf16.mxu0 %v13176_v32  ;;  %12168 = vmatprep.subr.bf16.mxu1 %v13177_v36  ;;  %v4088_v36 = vld [vmem:[%s16089_s16 + $0x18] sm:$0xff] }
0x1860   :  { %12147 = vmatpush3.bf16.msra.mxu0 %v13178_v62  ;;  %12169 = vmatpush3.bf16.msra.mxu1 %v13179_v35  ;;  %v4090_v62 = vld [vmem:[%s16089_s16 + $0x58] sm:$0xff] }
0x1861   :  { %12148 = vmatprep.subr.bf16.mxu0 %v13180_v63  ;;  %12170 = vmatprep.subr.bf16.mxu1 %v13181_v56 }
0x1864   :  { %12149 = vmatpush3.bf16.msra.mxu0 %v13182_v60  ;;  %12171 = vmatpush3.bf16.msra.mxu1 %v13183_v34 }
0x1865   :  { %12150 = vmatprep.subr.bf16.mxu0 %v13184_v1  ;;  %12172 = vmatprep.subr.bf16.mxu1 %v13185_v2  ;;  %v11319_v2 = vcombine.high %v4087_v57, %v4089_v15 }
0x1868   :  { %12151 = vmatpush3.bf16.msra.mxu0 %v13186_v44  ;;  %12173 = vmatpush3.bf16.msra.mxu1 %v13187_v5  ;;  %v11321_v44 = vcombine.high %v4088_v36, %v4090_v62  ;;  %v11318_v5 = vcombine.low %v4087_v57, %v4089_v15  ;;  %v14604_v57 = vld [vmem:[%s16089_s16 + $0xa8] sm:$0xff] }
0x1869   :  { %12152 = vmatprep.subr.bf16.mxu0 %v13188_v46  ;;  %12174 = vmatprep.subr.bf16.mxu1 %v13189_v7  ;;  %v11320_v46 = vcombine.low %v4088_v36, %v4090_v62  ;;  %v13192_v7 = vld [vmem:[%s16090_s18 + $0x178] sm:$0xff]  }
0x186c   :  { %12153 = vmatpush3.bf16.msra.mxu0 %v13190_v39  ;;  %12175 = vmatpush3.bf16.msra.mxu1 %v13191_v9  ;;  %v13193_v39 = vld [vmem:[%s16090_s18 + $0x1f8] sm:$0xff]  }
0x186d   :  { %4169 = vmatprep.subr.bf16.mxu0 %v11323_v51  ;;  %4212 = vmatprep.subr.bf16.mxu1 %v11325_v20  ;;  %v13194_v9 = vld [vmem:[%s16090_s18 + $0x138] sm:$0xff]   ;;  %v13198_v51 = vld [vmem:[%s16090_s18 + $0x130] sm:$0xff]   ;;  %v13202_v20 = vld [vmem:[%s16090_s18 + $0x128] sm:$0xff]  }
0x190f   :  { %v3677_v22 = vpop.f32.mrf.mxu0  ;;  %v3720_v23 = vpop.f32.mrf.mxu1 }
0x1910   :  { %v3678_v30 = vadd.f32 %v3677_v22, %v3583_v28  ;;  %v3721_v42 = vadd.f32 %v3720_v23, %v3591_v24  ;;  %v13204_v22 = vld [vmem:[%s16090_s18 + $0x160] sm:$0xff]  }
0x1911   :  { %v3679_v29 = vpop.f32.mrf.mxu0  ;;  %v3722_v33 = vpop.f32.mrf.mxu1  ;;  %v13205_v23 = vld [vmem:[%s16090_s18 + $0x1e0] sm:$0xff]  }
0x1912   :  { %v3680_v61 = vadd.f32 %v3679_v29, %v3587_v25  ;;  %v3723_v10 = vadd.f32 %v3722_v33, %v3595_v26  ;;  %v3729_v35 = vmax.f32 %v3678_v30, 0.0  ;;  %v3731_v63 = vmax.f32 %v3721_v42, 0.0  ;;  %v13210_v29 = vld [vmem:[%s16090_s18 + $0x118] sm:$0xff]   ;;  %v13218_v30 = vld [vmem:[%s16090_s18 + $0x108] sm:$0xff]  }
0x1913   :  { %v3681_v37 = vpop.f32.mrf.mxu0  ;;  %v3724_v12 = vpop.f32.mrf.mxu1  ;;  %v13211_v33 = vld [vmem:[%s16090_s18 + $0x198] sm:$0xff]   ;;  %v13219_v42 = vld [vmem:[%s16090_s18 + $0x188] sm:$0xff]  }
0x1914   :  { %v3682_v38 = vadd.f32 %v3681_v37, %v3583_v28  ;;  %v3725_v31 = vadd.f32 %v3724_v12, %v3591_v24  ;;  %v3730_v58 = vmax.f32 %v3680_v61, 0.0  ;;  %v3732_v59 = vmax.f32 %v3723_v10, 0.0  ;;  %v13208_v28 = vld [vmem:[%s16090_s18 + $0x158] sm:$0xff]   ;;  %v13212_v37 = vld [vmem:[%s16090_s18 + $0x150] sm:$0xff]  }
0x1915   :  { %v3683_v49 = vpop.f32.mrf.mxu0  ;;  %v3726_v52 = vpop.f32.mrf.mxu1  ;;  %v13209_v24 = vld [vmem:[%s16090_s18 + $0x1d8] sm:$0xff]   ;;  %v13213_v12 = vld [vmem:[%s16090_s18 + $0x1d0] sm:$0xff]  }
0x1916   :  { %v3684_v54 = vadd.f32 %v3683_v49, %v3587_v25  ;;  %v3727_v4 = vadd.f32 %v3726_v52, %v3595_v26  ;;  %v3733_v55 = vmax.f32 %v3682_v38, 0.0  ;;  %v3735_v14 = vmax.f32 %v3725_v31, 0.0  ;;  %v13206_v25 = vld [vmem:[%s16090_s18 + $0x120] sm:$0xff]   ;;  %v13214_v61 = vld [vmem:[%s16090_s18 + $0x110] sm:$0xff]   ;;  %v13216_v38 = vld [vmem:[%s16090_s18 + $0x148] sm:$0xff]  }
0x1917   :  { %v13207_v26 = vld [vmem:[%s16090_s18 + $0x1a0] sm:$0xff]   ;;  %v13215_v10 = vld [vmem:[%s16090_s18 + $0x190] sm:$0xff]   ;;  %v13217_v31 = vld [vmem:[%s16090_s18 + $0x1c8] sm:$0xff]  }
0x1918   :  { %v3734_v53 = vmax.f32 %v3684_v54, 0.0  ;;  %v3736_v32 = vmax.f32 %v3727_v4, 0.0  ;;  %v3737_v34 = vpack.c.bf16 %v3733_v55, %v3729_v35  ;;  %v3739_v1 = vpack.c.bf16 %v3735_v14, %v3731_v63  ;;  %v13220_v49 = vld [vmem:[%s16090_s18 + $0x140] sm:$0xff]  }
0x1919   :  { %v13221_v52 = vld [vmem:[%s16090_s18 + $0x1c0] sm:$0xff]  }
0x191a   :  { %v3740_v56 = vpack.c.bf16 %v3736_v32, %v3732_v59  ;;  %v3738_v60 = vpack.c.bf16 %v3734_v53, %v3730_v58  ;;  %v13222_v54 = vld [vmem:[%s16090_s18 + $0x100] sm:$0xff]   ;;  %v14611_v58 = vld [vmem:[%s16089_s16 + $0xe8] sm:$0xff] }
0x191b   :  { %v13223_v4 = vld [vmem:[%s16090_s18 + $0x180] sm:$0xff]   ;;  %v11366_v53 = vcombine.low %v14604_v57, %v14611_v58  ;;  %v11367_v32 = vcombine.high %v14604_v57, %v14611_v58 }
0x191c   :  { %4029 = vmatprep.mubr.bf16.mxu0 %v3738_v60  ;;  %4070 = vmatprep.mubr.bf16.mxu1 %v3740_v56  ;;  %v14594_v55 = vld [vmem:[%s16089_s16 + $0xa0] sm:$0xff] }
0x191d   :  { %4030 = vmatmul.mubr.bf16.vlgmr.msra.gmra.mxu0 %v3737_v34  ;;  %4071 = vmatmul.mubr.bf16.vlgmr.msra.gmra.mxu1 %v3739_v1  ;;  %v14599_v14 = vld [vmem:[%s16089_s16 + $0xe0] sm:$0xff] }
0x191e   :  { %4170 = vmatpush1.bf16.msra.mxu0 %v11322_v19  ;;  %4213 = vmatpush1.bf16.msra.mxu1 %v11324_v43  ;;  %v13200_v19 = vld [vmem:[%s16090_s18 + $0x168] sm:$0xff]   ;;  %v11365_v15 = vcombine.high %v14594_v55, %v14599_v14  ;;  %v11364_v59 = vcombine.low %v14594_v55, %v14599_v14 }
0x191f   :  { %4171 = vmatprep.subr.bf16.mxu0 %v11319_v2  ;;  %4214 = vmatprep.subr.bf16.mxu1 %v11321_v44  ;;  %v13201_v43 = vld [vmem:[%s16090_s18 + $0x1e8] sm:$0xff]  }
0x1920   :  { %4189 = vmatprep.mubr.bf16.mxu0 %v13593_v0  ;;  %4232 = vmatprep.mubr.bf16.mxu1 %v13593_v0  ;;  %v4598_v55 = vld [vmem:[%s16089_s16 + $0x68] sm:$0xff] }
0x1922   :  { %4172 = vmatpush1.bf16.msra.mxu0 %v11318_v5  ;;  %4215 = vmatpush1.bf16.msra.mxu1 %v11320_v46 }
0x1923   :  { %12182 = vmatprep.subr.bf16.mxu0 %v13192_v7  ;;  %12204 = vmatprep.subr.bf16.mxu1 %v13193_v39  ;;  %v4095_v39 = vld [vmem:[%s16091_s17 + $0x4] sm:$0xf] }
0x1925   :  { %11326 = vmatmul.mubr.msk.bf16.vlgmr.msra.gmra.mxu0 %vm211_vm3, %v14368_v50  ;;  %11327 = vmatmul.mubr.msk.bf16.vlgmr.msra.gmra.mxu1 %vm211_vm3, %v14368_v50 }
0x1926   :  { %12183 = vmatpush3.bf16.msra.mxu0 %v13194_v9  ;;  %12205 = vmatpush3.bf16.msra.mxu1 %v13195_v11 }
0x1927   :  { %12184 = vmatprep.subr.bf16.mxu0 %v13196_v16  ;;  %12206 = vmatprep.subr.bf16.mxu1 %v13197_v48  ;;  %v4104_v48 = vrot.slane %v4095_v39, %v14339_v18 }
0x192a   :  { %12185 = vmatpush3.bf16.msra.mxu0 %v13198_v51  ;;  %12207 = vmatpush3.bf16.msra.mxu1 %v13199_v17  ;;  %v4112_v51 = vrot.slane %v4095_v39, %v14465_v27  ;;  %v4100_v17 = vrot.slane %v4095_v39, %v13870_v3 }
0x192b   :  { %12186 = vmatprep.subr.bf16.mxu0 %v13200_v19  ;;  %12208 = vmatprep.subr.bf16.mxu1 %v13201_v43  ;;  %v4108_v19 = vrot.slane %v4095_v39, %v14468_v21  ;;  %v13233_v39 = vld [vmem:[%s16090_s18 + $0x2e8] sm:$0xff]  }
0x192e   :  { %12187 = vmatpush3.bf16.msra.mxu0 %v13202_v20  ;;  %12209 = vmatpush3.bf16.msra.mxu1 %v13203_v47 }
0x192f   :  { %12188 = vmatprep.subr.bf16.mxu0 %v13204_v22  ;;  %12210 = vmatprep.subr.bf16.mxu1 %v13205_v23 }
0x1932   :  { %12189 = vmatpush3.bf16.msra.mxu0 %v13206_v25  ;;  %12211 = vmatpush3.bf16.msra.mxu1 %v13207_v26 }
0x1933   :  { %12190 = vmatprep.subr.bf16.mxu0 %v13208_v28  ;;  %12212 = vmatprep.subr.bf16.mxu1 %v13209_v24 }
0x1936   :  { %12191 = vmatpush3.bf16.msra.mxu0 %v13210_v29  ;;  %12213 = vmatpush3.bf16.msra.mxu1 %v13211_v33 }
0x1937   :  { %12192 = vmatprep.subr.bf16.mxu0 %v13212_v37  ;;  %12214 = vmatprep.subr.bf16.mxu1 %v13213_v12 }
0x193a   :  { %12193 = vmatpush3.bf16.msra.mxu0 %v13214_v61  ;;  %12215 = vmatpush3.bf16.msra.mxu1 %v13215_v10 }
0x193b   :  { %12194 = vmatprep.subr.bf16.mxu0 %v13216_v38  ;;  %12216 = vmatprep.subr.bf16.mxu1 %v13217_v31  ;;  %v4595_v31 = vld [vmem:[%s16089_s16 + $0x20] sm:$0xff] }
0x193e   :  { %12195 = vmatpush3.bf16.msra.mxu0 %v13218_v30  ;;  %12217 = vmatpush3.bf16.msra.mxu1 %v13219_v42  ;;  %v4597_v30 = vld [vmem:[%s16089_s16 + $0x60] sm:$0xff] }
0x193f   :  { %12196 = vmatprep.subr.bf16.mxu0 %v13220_v49  ;;  %12218 = vmatprep.subr.bf16.mxu1 %v13221_v52 }
0x1942   :  { %12197 = vmatpush3.bf16.msra.mxu0 %v13222_v54  ;;  %12219 = vmatpush3.bf16.msra.mxu1 %v13223_v4  ;;  %v4596_v4 = vld [vmem:[%s16089_s16 + $0x28] sm:$0xff] }
0x1943   :  { %4677 = vmatprep.subr.bf16.mxu0 %v11365_v15  ;;  %4720 = vmatprep.subr.bf16.mxu1 %v11367_v32 }
0x19dd   :  { %v12154_v36 = vpop.f32.mrf.mxu0  ;;  %v12176_v62 = vpop.f32.mrf.mxu1 }
0x19df   :  { %v12155_v35 = vpop.f32.mrf.mxu0  ;;  %v12177_v63 = vpop.f32.mrf.mxu1 }
0x19e0   :  { %v12156_v56 = vadd.f32 %v12155_v35, %v12154_v36  ;;  %v12178_v60 = vadd.f32 %v12177_v63, %v12176_v62  ;;  %v11361_v62 = vcombine.high %v4595_v31, %v4597_v30  ;;  %v11363_v35 = vcombine.high %v4596_v4, %v4598_v55 }
0x19e1   :  { %v12157_v34 = vpop.f32.mrf.mxu0  ;;  %v12179_v1 = vpop.f32.mrf.mxu1  ;;  %v11360_v63 = vcombine.low %v4595_v31, %v4597_v30  ;;  %v14747_v31 = vld [vmem:[%s16089_s16 + $0xb0] sm:$0xff] }
0x19e2   :  { %v14619_v2 = vadd.f32 %v12178_v60, %v12156_v56  ;;  %v11362_v56 = vcombine.low %v4596_v4, %v4598_v55  ;;  %v13224_v60 = vld [vmem:[%s16090_s18 + $0x278] sm:$0xff]   ;;  %v14752_v30 = vld [vmem:[%s16089_s16 + $0xf0] sm:$0xff] }
0x19e3   :  { %v12158_v44 = vpop.f32.mrf.mxu0  ;;  %v12180_v5 = vpop.f32.mrf.mxu1 }
0x19e4   :  { %v12159_v46 = vadd.f32 %v12158_v44, %v12157_v34  ;;  %v12181_v7 = vadd.f32 %v12180_v5, %v12179_v1  ;;  %v13225_v34 = vld [vmem:[%s16090_s18 + $0x2f8] sm:$0xff]   ;;  %v13228_v1 = vld [vmem:[%s16090_s18 + $0x270] sm:$0xff]  }
0x19e5   :  { %v4191_v9 = vpop.f32.mrf.mxu0  ;;  %v4234_v11 = vpop.f32.mrf.mxu1  ;;  %v13229_v44 = vld [vmem:[%s16090_s18 + $0x2f0] sm:$0xff]  }
0x19e6   :  { %v14624_v16 = vadd.f32 %v12181_v7, %v12159_v46  ;;  %v4192_v24 = vadd.f32 %v4191_v9, %v4100_v17  ;;  %v4235_v29 = vadd.f32 %v4234_v11, %v4108_v19  ;;  %v13230_v5 = vld [vmem:[%s16090_s18 + $0x230] sm:$0xff]   ;;  %v13232_v7 = vld [vmem:[%s16090_s18 + $0x268] sm:$0xff]  }
0x19e7   :  { %v4193_v43 = vpop.f32.mrf.mxu0  ;;  %v4236_v20 = vpop.f32.mrf.mxu1  ;;  %v13231_v46 = vld [vmem:[%s16090_s18 + $0x2b0] sm:$0xff]   ;;  %v13234_v9 = vld [vmem:[%s16090_s18 + $0x228] sm:$0xff]  }
0x19e8   :  { %v4194_v23 = vadd.f32 %v4193_v43, %v4104_v48  ;;  %v4237_v25 = vadd.f32 %v4236_v20, %v4112_v51  ;;  %v4243_v14 = vmax.f32 %v4192_v24, 0.0  ;;  %v4245_v57 = vmax.f32 %v4235_v29, 0.0  ;;  %v13235_v11 = vld [vmem:[%s16090_s18 + $0x2a8] sm:$0xff]   ;;  %v13240_v43 = vld [vmem:[%s16090_s18 + $0x258] sm:$0xff]  }
0x19e9   :  { %v4195_v47 = vpop.f32.mrf.mxu0  ;;  %v4238_v22 = vpop.f32.mrf.mxu1  ;;  %v13241_v20 = vld [vmem:[%s16090_s18 + $0x2d8] sm:$0xff]   ;;  %v13248_v24 = vld [vmem:[%s16090_s18 + $0x248] sm:$0xff]  }
0x19ea   :  { %v4196_v26 = vadd.f32 %v4195_v47, %v4100_v17  ;;  %v4239_v28 = vadd.f32 %v4238_v22, %v4108_v19  ;;  %v4244_v42 = vmax.f32 %v4194_v23, 0.0  ;;  %v4246_v49 = vmax.f32 %v4237_v25, 0.0  ;;  %v13238_v17 = vld [vmem:[%s16090_s18 + $0x220] sm:$0xff]   ;;  %v13242_v47 = vld [vmem:[%s16090_s18 + $0x218] sm:$0xff]   ;;  %v13244_v23 = vld [vmem:[%s16090_s18 + $0x250] sm:$0xff]  }
0x19eb   :  { %v4197_v33 = vpop.f32.mrf.mxu0  ;;  %v4240_v37 = vpop.f32.mrf.mxu1  ;;  %v13239_v19 = vld [vmem:[%s16090_s18 + $0x2a0] sm:$0xff]   ;;  %v13243_v22 = vld [vmem:[%s16090_s18 + $0x298] sm:$0xff]   ;;  %v13245_v25 = vld [vmem:[%s16090_s18 + $0x2d0] sm:$0xff]  }
0x19ec   :  { %v4198_v12 = vadd.f32 %v4197_v33, %v4104_v48  ;;  %v4241_v61 = vadd.f32 %v4240_v37, %v4112_v51  ;;  %v4247_v10 = vmax.f32 %v4196_v26, 0.0  ;;  %v4249_v38 = vmax.f32 %v4239_v28, 0.0  ;;  %v13236_v48 = vld [vmem:[%s16090_s18 + $0x260] sm:$0xff]   ;;  %v13246_v26 = vld [vmem:[%s16090_s18 + $0x210] sm:$0xff]   ;;  %v13249_v29 = vld [vmem:[%s16090_s18 + $0x2c8] sm:$0xff]  }
0x19ed   :  { %v13237_v51 = vld [vmem:[%s16090_s18 + $0x2e0] sm:$0xff]   ;;  %v13247_v28 = vld [vmem:[%s16090_s18 + $0x290] sm:$0xff]   ;;  %v13250_v33 = vld [vmem:[%s16090_s18 + $0x208] sm:$0xff]  }
0x19ee   :  { %v4248_v52 = vmax.f32 %v4198_v12, 0.0  ;;  %v4250_v54 = vmax.f32 %v4241_v61, 0.0  ;;  %v4251_v32 = vpack.c.bf16 %v4247_v10, %v4243_v14  ;;  %v4253_v36 = vpack.c.bf16 %v4249_v38, %v4245_v57  ;;  %v13251_v37 = vld [vmem:[%s16090_s18 + $0x288] sm:$0xff]   ;;  %v13252_v12 = vld [vmem:[%s16090_s18 + $0x240] sm:$0xff]  }
0x19ef   :  { %v13253_v61 = vld [vmem:[%s16090_s18 + $0x2c0] sm:$0xff]  }
0x19f0   :  { %v4252_v15 = vpack.c.bf16 %v4248_v52, %v4244_v42  ;;  %v4254_v58 = vpack.c.bf16 %v4250_v54, %v4246_v49  ;;  %v13254_v10 = vld [vmem:[%s16090_s18 + $0x200] sm:$0xff]   ;;  %v14757_v42 = vld [vmem:[%s16089_s16 + $0xb8] sm:$0xff]  ;;  %v11407_v49 = vcombine.high %v14747_v31, %v14752_v30  ;;  %v11406_v54 = vcombine.low %v14747_v31, %v14752_v30 }
0x19f1   :  { %v13255_v38 = vld [vmem:[%s16090_s18 + $0x280] sm:$0xff]   ;;  %v14764_v52 = vld [vmem:[%s16089_s16 + $0xf8] sm:$0xff] }
0x19f2   :  { %4543 = vmatprep.mubr.bf16.mxu0 %v4252_v15  ;;  %4584 = vmatprep.mubr.bf16.mxu1 %v4254_v58  ;;  %v11408_v4 = vcombine.low %v14757_v42, %v14764_v52  ;;  %v11409_v55 = vcombine.high %v14757_v42, %v14764_v52  ;;  %v11317_v15 = vld [vmem:[%s16092_s19] ss:$0 sm:$0xff]  ;;  %v13258_v31 = vld [vmem:[%s16090_s18 + $0x338] sm:$0xff]   ;;  %v13260_v42 = vld [vmem:[%s16090_s18 + $0x370] sm:$0xff]  }
0x19f3   :  { %4544 = vmatmul.mubr.bf16.vlgmr.msra.gmra.mxu0 %v4251_v32  ;;  %4585 = vmatmul.mubr.bf16.vlgmr.msra.gmra.mxu1 %v4253_v36  ;;  %v13259_v30 = vld [vmem:[%s16090_s18 + $0x3b8] sm:$0xff]   ;;  %v13261_v52 = vld [vmem:[%s16090_s18 + $0x3f0] sm:$0xff]  }
0x19f4   :  { %4678 = vmatpush1.bf16.msra.mxu0 %v11364_v59  ;;  %4721 = vmatpush1.bf16.msra.mxu1 %v11366_v53  ;;  %v13226_v59 = vld [vmem:[%s16090_s18 + $0x238] sm:$0xff]  }
0x19f5   :  { %4679 = vmatprep.subr.bf16.mxu0 %v11361_v62  ;;  %4722 = vmatprep.subr.bf16.mxu1 %v11363_v35  ;;  %v13227_v53 = vld [vmem:[%s16090_s18 + $0x2b8] sm:$0xff]  }
0x19f6   :  { %4697 = vmatprep.mubr.bf16.mxu0 %v13593_v0  ;;  %4740 = vmatprep.mubr.bf16.mxu1 %v13593_v0 }
0x19f8   :  { %4680 = vmatpush1.bf16.msra.mxu0 %v11360_v63  ;;  %4723 = vmatpush1.bf16.msra.mxu1 %v11362_v56  ;;  %v4085_v56 = vadd.f32 %v11317_v15, %v14619_v2 }
0x19f9   :  { %12226 = vmatprep.subr.bf16.mxu0 %v13224_v60  ;;  %12248 = vmatprep.subr.bf16.mxu1 %v13225_v34 }
0x19fb   :  { %11368 = vmatmul.mubr.msk.bf16.vlgmr.msra.gmra.mxu0 %vm211_vm3, %v14368_v50  ;;  %11369 = vmatmul.mubr.msk.bf16.vlgmr.msra.gmra.mxu1 %vm211_vm3, %v14368_v50 }
0x19fc   :  { %12227 = vmatpush3.bf16.msra.mxu0 %v13226_v59  ;;  %12249 = vmatpush3.bf16.msra.mxu1 %v13227_v53 }
0x19fd   :  { %12228 = vmatprep.subr.bf16.mxu0 %v13228_v1  ;;  %12250 = vmatprep.subr.bf16.mxu1 %v13229_v44 }
0x1a00   :  { %12229 = vmatpush3.bf16.msra.mxu0 %v13230_v5  ;;  %12251 = vmatpush3.bf16.msra.mxu1 %v13231_v46  ;;  %v4603_v5 = vld [vmem:[%s16091_s17 + $0x8] sm:$0xf] }
0x1a01   :  { %12230 = vmatprep.subr.bf16.mxu0 %v13232_v7  ;;  %12252 = vmatprep.subr.bf16.mxu1 %v13233_v39  ;;  %v4086_v39 = vadd.f32 %v11317_v15, %v14624_v16  ;;  %v4620_v2 = vrot.slane %v4603_v5, %v14465_v27  ;;  %v5104_v15 = vld [vmem:[%s16089_s16 + $0x38] sm:$0xff] }
0x1a04   :  { %12231 = vmatpush3.bf16.msra.mxu0 %v13234_v9  ;;  %12253 = vmatpush3.bf16.msra.mxu1 %v13235_v11  ;;  %v4612_v11 = vrot.slane %v4603_v5, %v14339_v18 }
0x1a05   :  { %12232 = vmatprep.subr.bf16.mxu0 %v13236_v48  ;;  %12254 = vmatprep.subr.bf16.mxu1 %v13237_v51  ;;  %v4608_v48 = vrot.slane %v4603_v5, %v13870_v3  ;;  %v4616_v51 = vrot.slane %v4603_v5, %v14468_v21  ;;  %v13257_v5 = vld [vmem:[%s16090_s18 + $0x3f8] sm:$0xff]  }
0x1a08   :  { %12233 = vmatpush3.bf16.msra.mxu0 %v13238_v17  ;;  %12255 = vmatpush3.bf16.msra.mxu1 %v13239_v19 }
0x1a09   :  { %12234 = vmatprep.subr.bf16.mxu0 %v13240_v43  ;;  %12256 = vmatprep.subr.bf16.mxu1 %v13241_v20 }
0x1a0c   :  { %12235 = vmatpush3.bf16.msra.mxu0 %v13242_v47  ;;  %12257 = vmatpush3.bf16.msra.mxu1 %v13243_v22 }
0x1a0d   :  { %12236 = vmatprep.subr.bf16.mxu0 %v13244_v23  ;;  %12258 = vmatprep.subr.bf16.mxu1 %v13245_v25 }
0x1a10   :  { %12237 = vmatpush3.bf16.msra.mxu0 %v13246_v26  ;;  %12259 = vmatpush3.bf16.msra.mxu1 %v13247_v28 }
0x1a11   :  { %12238 = vmatprep.subr.bf16.mxu0 %v13248_v24  ;;  %12260 = vmatprep.subr.bf16.mxu1 %v13249_v29 }
0x1a14   :  { %12239 = vmatpush3.bf16.msra.mxu0 %v13250_v33  ;;  %12261 = vmatpush3.bf16.msra.mxu1 %v13251_v37 }
0x1a15   :  { %12240 = vmatprep.subr.bf16.mxu0 %v13252_v12  ;;  %12262 = vmatprep.subr.bf16.mxu1 %v13253_v61 }
0x1a18   :  { %12241 = vmatpush3.bf16.msra.mxu0 %v13254_v10  ;;  %12263 = vmatpush3.bf16.msra.mxu1 %v13255_v38  ;;  %v5103_v10 = vld [vmem:[%s16089_s16 + $0x30] sm:$0xff] }
0x1a19   :  { %5185 = vmatprep.subr.bf16.mxu0 %v11407_v49  ;;  %5228 = vmatprep.subr.bf16.mxu1 %v11409_v55  ;;  %v5105_v38 = vld [vmem:[%s16089_s16 + $0x70] sm:$0xff] }
0x1ab3   :  { %v12198_v14 = vpop.f32.mrf.mxu0  ;;  %v12220_v57 = vpop.f32.mrf.mxu1 }
0x1ab5   :  { %v12199_v58 = vpop.f32.mrf.mxu0  ;;  %v12221_v32 = vpop.f32.mrf.mxu1 }
0x1ab6   :  { %v12200_v36 = vadd.f32 %v12199_v58, %v12198_v14  ;;  %v12222_v62 = vadd.f32 %v12221_v32, %v12220_v57  ;;  %v5106_v58 = vld [vmem:[%s16089_s16 + $0x78] sm:$0xff] }
0x1ab7   :  { %v12201_v35 = vpop.f32.mrf.mxu0  ;;  %v12223_v63 = vpop.f32.mrf.mxu1 }
0x1ab8   :  { %v4587_v60 = vadd.f32 %v12222_v62, %v12200_v36 }
0x1ab9   :  { %v12202_v34 = vpop.f32.mrf.mxu0  ;;  %v12224_v59 = vpop.f32.mrf.mxu1 }
0x1aba   :  { %v14776_v53 = vadd.f32 %v4587_v60, %v4085_v56  ;;  %v12203_v1 = vadd.f32 %v12202_v34, %v12201_v35  ;;  %v12225_v44 = vadd.f32 %v12224_v59, %v12223_v63  ;;  %v11403_v60 = vcombine.high %v5103_v10, %v5105_v38 }
0x1abb   :  { %v4699_v46 = vpop.f32.mrf.mxu0  ;;  %v4742_v7 = vpop.f32.mrf.mxu1  ;;  %v11405_v34 = vcombine.high %v5104_v15, %v5106_v58  ;;  %v11402_v59 = vcombine.low %v5103_v10, %v5105_v38 }
0x1abc   :  { %v4590_v9 = vadd.f32 %v12225_v44, %v12203_v1  ;;  %v4700_v16 = vadd.f32 %v4699_v46, %v4608_v48  ;;  %v4743_v28 = vadd.f32 %v4742_v7, %v4616_v51  ;;  %v11404_v1 = vcombine.low %v5104_v15, %v5106_v58  ;;  %v13256_v44 = vld [vmem:[%s16090_s18 + $0x378] sm:$0xff]   ;;  %v13264_v46 = vld [vmem:[%s16090_s18 + $0x368] sm:$0xff]  }
0x1abd   :  { %v4701_v17 = vpop.f32.mrf.mxu0  ;;  %v4744_v19 = vpop.f32.mrf.mxu1  ;;  %v13266_v7 = vld [vmem:[%s16090_s18 + $0x328] sm:$0xff]  }
0x1abe   :  { %v14786_v43 = vadd.f32 %v4590_v9, %v4086_v39  ;;  %v4702_v22 = vadd.f32 %v4701_v17, %v4612_v11  ;;  %v4745_v23 = vadd.f32 %v4744_v19, %v4620_v2  ;;  %v4751_v32 = vmax.f32 %v4700_v16, 0.0  ;;  %v13267_v39 = vld [vmem:[%s16090_s18 + $0x3a8] sm:$0xff]   ;;  %v13268_v9 = vld [vmem:[%s16090_s18 + $0x360] sm:$0xff]   ;;  %v13273_v17 = vld [vmem:[%s16090_s18 + $0x3d8] sm:$0xff]  }
0x1abf   :  { %v4703_v20 = vpop.f32.mrf.mxu0  ;;  %v4746_v47 = vpop.f32.mrf.mxu1  ;;  %v4753_v36 = vmax.f32 %v4743_v28, 0.0  ;;  %v13274_v19 = vld [vmem:[%s16090_s18 + $0x318] sm:$0xff]   ;;  %v13281_v16 = vld [vmem:[%s16090_s18 + $0x3c8] sm:$0xff]  }
0x1ac0   :  { %v4704_v25 = vadd.f32 %v4703_v20, %v4608_v48  ;;  %v4747_v26 = vadd.f32 %v4746_v47, %v4616_v51  ;;  %v4752_v49 = vmax.f32 %v4702_v22, 0.0  ;;  %v4754_v55 = vmax.f32 %v4745_v23, 0.0  ;;  %v13271_v48 = vld [vmem:[%s16090_s18 + $0x3a0] sm:$0xff]   ;;  %v13272_v51 = vld [vmem:[%s16090_s18 + $0x358] sm:$0xff]   ;;  %v13276_v47 = vld [vmem:[%s16090_s18 + $0x350] sm:$0xff]  }
0x1ac1   :  { %v4705_v24 = vpop.f32.mrf.mxu0  ;;  %v4748_v29 = vpop.f32.mrf.mxu1  ;;  %v13275_v20 = vld [vmem:[%s16090_s18 + $0x398] sm:$0xff]   ;;  %v13277_v22 = vld [vmem:[%s16090_s18 + $0x3d0] sm:$0xff]   ;;  %v13282_v28 = vld [vmem:[%s16090_s18 + $0x308] sm:$0xff]  }
0x1ac2   :  { %v4706_v33 = vadd.f32 %v4705_v24, %v4612_v11  ;;  %v4749_v37 = vadd.f32 %v4748_v29, %v4620_v2  ;;  %v4755_v12 = vmax.f32 %v4704_v25, 0.0  ;;  %v4757_v61 = vmax.f32 %v4747_v26, 0.0  ;;  %v13269_v11 = vld [vmem:[%s16090_s18 + $0x3e0] sm:$0xff]   ;;  %v13278_v23 = vld [vmem:[%s16090_s18 + $0x310] sm:$0xff]   ;;  %v13280_v26 = vld [vmem:[%s16090_s18 + $0x348] sm:$0xff]  }
0x1ac3   :  { %v13270_v2 = vld [vmem:[%s16090_s18 + $0x320] sm:$0xff]   ;;  %v13279_v25 = vld [vmem:[%s16090_s18 + $0x390] sm:$0xff]   ;;  %v13283_v24 = vld [vmem:[%s16090_s18 + $0x388] sm:$0xff]  }
0x1ac4   :  { %v4756_v14 = vmax.f32 %v4706_v33, 0.0  ;;  %v4758_v57 = vmax.f32 %v4749_v37, 0.0  ;;  %v4759_v63 = vpack.c.bf16 %v4755_v12, %v4751_v32  ;;  %v4761_v56 = vpack.c.bf16 %v4757_v61, %v4753_v36  ;;  %v13284_v29 = vld [vmem:[%s16090_s18 + $0x340] sm:$0xff]  }
0x1ac5   :  { %v13285_v33 = vld [vmem:[%s16090_s18 + $0x3c0] sm:$0xff]  }
0x1ac6   :  { %v4760_v62 = vpack.c.bf16 %v4756_v14, %v4752_v49  ;;  %v4762_v35 = vpack.c.bf16 %v4758_v57, %v4754_v55  ;;  %v13286_v37 = vld [vmem:[%s16090_s18 + $0x300] sm:$0xff]  }
0x1ac7   :  { %v13287_v12 = vld [vmem:[%s16090_s18 + $0x380] sm:$0xff]  }
0x1ac8   :  { %5051 = vmatprep.mubr.bf16.mxu0 %v4760_v62  ;;  %5092 = vmatprep.mubr.bf16.mxu1 %v4762_v35 }
0x1ac9   :  { %5052 = vmatmul.mubr.bf16.vlgmr.msra.gmra.mxu0 %v4759_v63  ;;  %5093 = vmatmul.mubr.bf16.vlgmr.msra.gmra.mxu1 %v4761_v56  ;;  %v5111_v56 = vld [vmem:[%s16091_s17 + $0xc] sm:$0xf] }
0x1aca   :  { %5186 = vmatpush1.bf16.msra.mxu0 %v11406_v54  ;;  %5229 = vmatpush1.bf16.msra.mxu1 %v11408_v4  ;;  %v13262_v54 = vld [vmem:[%s16090_s18 + $0x330] sm:$0xff]  }
0x1acb   :  { %5187 = vmatprep.subr.bf16.mxu0 %v11403_v60  ;;  %5230 = vmatprep.subr.bf16.mxu1 %v11405_v34  ;;  %v13263_v4 = vld [vmem:[%s16090_s18 + $0x3b0] sm:$0xff]  }
0x1acc   :  { %5205 = vmatprep.mubr.bf16.mxu0 %v13593_v0  ;;  %5248 = vmatprep.mubr.bf16.mxu1 %v13593_v0 }
0x1ace   :  { %5188 = vmatpush1.bf16.msra.mxu0 %v11402_v59  ;;  %5231 = vmatpush1.bf16.msra.mxu1 %v11404_v1  ;;  %v5120_v1 = vrot.slane %v5111_v56, %v14339_v18 }
0x1acf   :  { %12270 = vmatprep.subr.bf16.mxu0 %v13256_v44  ;;  %12292 = vmatprep.subr.bf16.mxu1 %v13257_v5  ;;  %v5128_v44 = vrot.slane %v5111_v56, %v14465_v27  ;;  %v5116_v5 = vrot.slane %v5111_v56, %v13870_v3 }
0x1ad1   :  { %11410 = vmatmul.mubr.msk.bf16.vlgmr.msra.gmra.mxu0 %vm211_vm3, %v14368_v50  ;;  %11411 = vmatmul.mubr.msk.bf16.vlgmr.msra.gmra.mxu1 %vm211_vm3, %v14368_v50  ;;  %v13265_v50 = vld [vmem:[%s16090_s18 + $0x3e8] sm:$0xff]  }
0x1ad2   :  { %12271 = vmatpush3.bf16.msra.mxu0 %v13258_v31  ;;  %12293 = vmatpush3.bf16.msra.mxu1 %v13259_v30  ;;  %v5124_v31 = vrot.slane %v5111_v56, %v14468_v21 }
0x1ad3   :  { %12272 = vmatprep.subr.bf16.mxu0 %v13260_v42  ;;  %12294 = vmatprep.subr.bf16.mxu1 %v13261_v52 }
0x1ad6   :  { %12273 = vmatpush3.bf16.msra.mxu0 %v13262_v54  ;;  %12295 = vmatpush3.bf16.msra.mxu1 %v13263_v4 }
0x1ad7   :  { %12274 = vmatprep.subr.bf16.mxu0 %v13264_v46  ;;  %12296 = vmatprep.subr.bf16.mxu1 %v13265_v50 }
0x1ada   :  { %12275 = vmatpush3.bf16.msra.mxu0 %v13266_v7  ;;  %12297 = vmatpush3.bf16.msra.mxu1 %v13267_v39 }
0x1adb   :  { %12276 = vmatprep.subr.bf16.mxu0 %v13268_v9  ;;  %12298 = vmatprep.subr.bf16.mxu1 %v13269_v11 }
0x1ade   :  { %12277 = vmatpush3.bf16.msra.mxu0 %v13270_v2  ;;  %12299 = vmatpush3.bf16.msra.mxu1 %v13271_v48 }
0x1adf   :  { %12278 = vmatprep.subr.bf16.mxu0 %v13272_v51  ;;  %12300 = vmatprep.subr.bf16.mxu1 %v13273_v17 }
0x1ae2   :  { %12279 = vmatpush3.bf16.msra.mxu0 %v13274_v19  ;;  %12301 = vmatpush3.bf16.msra.mxu1 %v13275_v20 }
0x1ae3   :  { %12280 = vmatprep.subr.bf16.mxu0 %v13276_v47  ;;  %12302 = vmatprep.subr.bf16.mxu1 %v13277_v22 }
0x1ae6   :  { %12281 = vmatpush3.bf16.msra.mxu0 %v13278_v23  ;;  %12303 = vmatpush3.bf16.msra.mxu1 %v13279_v25 }
0x1ae7   :  { %12282 = vmatprep.subr.bf16.mxu0 %v13280_v26  ;;  %12304 = vmatprep.subr.bf16.mxu1 %v13281_v16 }
0x1aea   :  { %12283 = vmatpush3.bf16.msra.mxu0 %v13282_v28  ;;  %12305 = vmatpush3.bf16.msra.mxu1 %v13283_v24 }
0x1aeb   :  { %12284 = vmatprep.subr.bf16.mxu0 %v13284_v29  ;;  %12306 = vmatprep.subr.bf16.mxu1 %v13285_v33 }
0x1aee   :  { %12285 = vmatpush3.bf16.msra.mxu0 %v13286_v37  ;;  %12307 = vmatpush3.bf16.msra.mxu1 %v13287_v12 }
0x1aef   :  { %12840 = vmatprep.subr.bf16.mxu0 %v13594_v6  ;;  %12848 = vmatprep.subr.bf16.mxu1 %v13594_v6 }
0x1b89   :  { %v12242_v61 = vpop.f32.mrf.mxu0  ;;  %v12264_v10 = vpop.f32.mrf.mxu1 }
0x1b8b   :  { %v12243_v38 = vpop.f32.mrf.mxu0  ;;  %v12265_v49 = vpop.f32.mrf.mxu1 }
0x1b8c   :  { %v12244_v55 = vadd.f32 %v12243_v38, %v12242_v61  ;;  %v12266_v14 = vadd.f32 %v12265_v49, %v12264_v10 }
0x1b8d   :  { %v12245_v57 = vpop.f32.mrf.mxu0  ;;  %v12267_v15 = vpop.f32.mrf.mxu1 }
0x1b8e   :  { %v5095_v58 = vadd.f32 %v12266_v14, %v12244_v55 }
0x1b8f   :  { %v12246_v32 = vpop.f32.mrf.mxu0  ;;  %v12268_v36 = vpop.f32.mrf.mxu1 }
0x1b90   :  { %v5101_v62 = vadd.f32 %v5095_v58, %v14776_v53  ;;  %v12247_v35 = vadd.f32 %v12246_v32, %v12245_v57  ;;  %v12269_v63 = vadd.f32 %v12268_v36, %v12267_v15 }
0x1b91   :  { %v5207_v60 = vpop.f32.mrf.mxu0  ;;  %v5250_v34 = vpop.f32.mrf.mxu1 }
0x1b92   :  { %v5098_v59 = vadd.f32 %v12269_v63, %v12247_v35  ;;  %v5208_v39 = vadd.f32 %v5207_v60, %v5116_v5  ;;  %v5251_v9 = vadd.f32 %v5250_v34, %v5124_v31 }
0x1b93   :  { %v5209_v30 = vpop.f32.mrf.mxu0  ;;  %v5252_v42 = vpop.f32.mrf.mxu1 }
0x1b94   :  { %v5102_v53 = vadd.f32 %v5098_v59, %v14786_v43  ;;  %v5210_v4 = vadd.f32 %v5209_v30, %v5120_v1  ;;  %v5253_v46 = vadd.f32 %v5252_v42, %v5128_v44  ;;  %v5259_v25 = vmax.f32 %v5208_v39, 0.0 }
0x1b95   :  { %v5211_v52 = vpop.f32.mrf.mxu0  ;;  %v5254_v54 = vpop.f32.mrf.mxu1  ;;  %v5261_v43 = vmax.f32 %v5251_v9, 0.0 }
0x1b96   :  { %v5212_v50 = vadd.f32 %v5211_v52, %v5116_v5  ;;  %v5255_v7 = vadd.f32 %v5254_v54, %v5124_v31  ;;  %v5260_v20 = vmax.f32 %v5210_v4, 0.0  ;;  %v5262_v47 = vmax.f32 %v5253_v46, 0.0  ;;  %v13289_v5 = vld [vmem:[%s16124_s26 + $0x48] sm:$0xff]   ;;  %v13291_v31 = vld [vmem:[%s16124_s26 + $0x40] sm:$0xff]  }
0x1b97   :  { %v5213_v11 = vpop.f32.mrf.mxu0  ;;  %v5256_v2 = vpop.f32.mrf.mxu1 }
0x1b98   :  { %v5214_v48 = vadd.f32 %v5213_v11, %v5120_v1  ;;  %v5257_v51 = vadd.f32 %v5256_v2, %v5128_v44  ;;  %v5263_v17 = vmax.f32 %v5212_v50, 0.0  ;;  %v5265_v19 = vmax.f32 %v5255_v7, 0.0 }
0x1b9a   :  { %v5264_v22 = vmax.f32 %v5214_v48, 0.0  ;;  %v5266_v23 = vmax.f32 %v5257_v51, 0.0  ;;  %v5267_v28 = vpack.c.bf16 %v5263_v17, %v5259_v25  ;;  %v5269_v24 = vpack.c.bf16 %v5265_v19, %v5261_v43 }
0x1b9c   :  { %v5268_v26 = vpack.c.bf16 %v5264_v22, %v5260_v20  ;;  %v5270_v16 = vpack.c.bf16 %v5266_v23, %v5262_v47  ;;  %v13588_v20 = vld [vmem:[%s16084_s14] sm:$0x7] }
0x1b9d   :  { %v5646_v47 = vrot.slane %v13588_v20, %v14468_v21 }
0x1b9e   :  { %5559 = vmatprep.mubr.bf16.mxu0 %v5268_v26  ;;  %5600 = vmatprep.mubr.bf16.mxu1 %v5270_v16  ;;  %v13589_v26 = vld [vmem:[%s16085_s15] sm:$0x7] }
0x1b9f   :  { %5560 = vmatmul.mubr.bf16.vlgmr.msra.gmra.mxu0 %v5267_v28  ;;  %5601 = vmatmul.mubr.bf16.vlgmr.msra.gmra.mxu1 %v5269_v24  ;;  %v5652_v16 = vrot.slane %v13589_v26, %v14468_v21 }
0x1ba0   :  { %12844 = vmatprep.mubr.msk.bf16.mxu0 %vm13596_vm2, %v13594_v6  ;;  %12852 = vmatprep.mubr.msk.bf16.mxu1 %vm13596_vm2, %v13594_v6 }
0x1ba1   :  { %12849 = vmatpush3.bf16.msra.mxu1 %v13289_v5 }
0x1ba2   :  { %12850 = vmatprep.subr.bf16.mxu1 %v13594_v6 }
0x1ba5   :  { %12851 = vmatpush3.bf16.msra.mxu1 %v13291_v31 }
0x1ba6   :  { %12864 = vmatprep.subr.mxu1 %v13594_v6 }
0x1c5f   :  { %v12286_v29 = vpop.f32.mrf.mxu0  ;;  %v12308_v33 = vpop.f32.mrf.mxu1 }
0x1c61   :  { %v12287_v37 = vpop.f32.mrf.mxu0  ;;  %v12309_v12 = vpop.f32.mrf.mxu1 }
0x1c62   :  { %v12288_v61 = vadd.f32 %v12287_v37, %v12286_v29  ;;  %v12310_v10 = vadd.f32 %v12309_v12, %v12308_v33  ;;  %v13292_v33 = vld [vmem:[%s16124_s26 + $0x58] sm:$0xff]   ;;  %v13293_v12 = vld [vmem:[%s16124_s26 + $0x50] sm:$0xff]  }
0x1c63   :  { %v12289_v38 = vpop.f32.mrf.mxu0  ;;  %v12311_v49 = vpop.f32.mrf.mxu1 }
0x1c64   :  { %v5603_v55 = vadd.f32 %v12310_v10, %v12288_v61  ;;  %v11460_v61 = vld [vmem:[%s16126_s6 + $0x4] ss:$0 sm:$0xff] }
0x1c65   :  { %v12290_v14 = vpop.f32.mrf.mxu0  ;;  %v12312_v57 = vpop.f32.mrf.mxu1 }
0x1c66   :  { %v5609_v15 = vadd.f32 %v5603_v55, %v5101_v62  ;;  %v12291_v58 = vadd.f32 %v12290_v14, %v12289_v38  ;;  %v12313_v32 = vadd.f32 %v12312_v57, %v12311_v49  ;;  %v11451_v49 = vld [vmem:[%s16126_s6 + $0x3] ss:$0 sm:$0xff] }
0x1c68   :  { %v5606_v36 = vadd.f32 %v12313_v32, %v12291_v58  ;;  %v5611_v35 = vadd.f32 %v5609_v15, %v14358_v41  ;;  %v13288_v41 = vld [vmem:[%s16124_s26 + $0x38] sm:$0xff]  }
0x1c69   :  { %12841 = vmatpush3.bf16.msra.mxu0 %v13288_v41 }
0x1c6a   :  { %v5610_v63 = vadd.f32 %v5606_v36, %v5102_v53  ;;  %v5613_v56 = vsel %vm211_vm3, %v5611_v35, 0.0  ;;  %v5621_v60 = vmul.f32 %v5611_v35, %v5611_v35  ;;  %12842 = vmatprep.subr.bf16.mxu0 %v13594_v6 }
0x1c6b   :  { %5614 = vadd.xlane.f32.xlu0 %v5613_v56  ;;  %v11469_v56 = vld [vmem:[%s16126_s6 + $0x5] ss:$0 sm:$0xff] }
0x1c6c   :  { %v5612_v34 = vadd.f32 %v5610_v63, %v14356_v40  ;;  %v5623_v1 = vsel %vm211_vm3, %v5621_v60, 0.0  ;;  %v13290_v40 = vld [vmem:[%s16124_s26 + $0x30] sm:$0xff]  }
0x1c6d   :  { %12843 = vmatpush3.bf16.msra.mxu0 %v13290_v40 }
0x1c6e   :  { %v5616_v59 = vsel %vm211_vm3, %v5612_v34, 0.0  ;;  %v5622_v44 = vmul.f32 %v5612_v34, %v5612_v34  ;;  %12856 = vmatprep.subr.bf16.mxu0 %v13594_v6 }
0x1c6f   :  { %5617 = vadd.xlane.f32.xlu1 %v5616_v59  ;;  %5624 = vadd.xlane.f32.xlu0 %v5623_v1 }
0x1c70   :  { %v5626_v62 = vsel %vm211_vm3, %v5622_v44, 0.0 }
0x1c73   :  { %5627 = vadd.xlane.f32.xlu1 %v5626_v62 }
0x1cf4   :  { %v5615_v30 = vpop.xlane.xlu0 %5614 }
0x1cf5   :  { %v5619_v42 = vmul.f32 0.03125, %v5615_v30  ;;  %v15018_v30 = vld [vmem:[%s16128_s24] sm:$0xff]  ;;  %s16134_s24 = smov 112  }
0x1cf7   :  { %v5631_v54 = vmul.f32 %v5619_v42, %v5619_v42  ;;  %v5635_v51 = vsub.f32 %v5611_v35, %v5619_v42 }
0x1cf8   :  { %v5618_v53 = vpop.xlane.xlu1 %5617  ;;  %v5625_v52 = vpop.xlane.xlu0 %5624 }
0x1cf9   :  { %v5620_v4 = vmul.f32 0.03125, %v5618_v53  ;;  %v5629_v46 = vmul.f32 0.03125, %v5625_v52 }
0x1cfb   :  { %v5633_v50 = vsub.f32 %v5629_v46, %v5631_v54  ;;  %v5632_v39 = vmul.f32 %v5620_v4, %v5620_v4  ;;  %v5636_v22 = vsub.f32 %v5612_v34, %v5620_v4 }
0x1cfc   :  { %v5628_v7 = vpop.xlane.xlu1 %5627 }
0x1cfd   :  { %v5637_v9 = vadd.f32 1e-05, %v5633_v50  ;;  %v5630_v11 = vmul.f32 0.03125, %v5628_v7 }
0x1cff   :  { %13506 = vrsqrt.f32 %v5637_v9  ;;  %v5634_v2 = vsub.f32 %v5630_v11, %v5632_v39 }
0x1d01   :  { %v5638_v48 = vadd.f32 1e-05, %v5634_v2 }
0x1d03   :  { %13508 = vrsqrt.f32 %v5638_v48 }
0x1d0c   :  { %v13507_v17 = vpop.eup %13506 }
0x1d0d   :  { %v5641_v19 = vmul.f32 %v13507_v17, %v5635_v51 }
0x1d0f   :  { %v5647_v43 = vmul.f32 %v5646_v47, %v5641_v19 }
0x1d10   :  { %v13509_v23 = vpop.eup %13508 }
0x1d11   :  { %v5642_v25 = vmul.f32 %v13509_v23, %v5636_v22  ;;  %v14953_v24 = vadd.f32 %v5652_v16, %v5647_v43 }
0x1d13   :  { %v5648_v28 = vmul.f32 %v5646_v47, %v5642_v25 }
0x1d15   :  { %v14955_v29 = vadd.f32 %v5652_v16, %v5648_v28 }
0x1d17   :  { %v5659_v37 = vpack.c.bf16 %v14955_v29, %v14953_v24 }
0x1d19   :  { %12845 = vmatmul.mubr.msk.bf16.vlgmr.msra.gmra.mxu0 %vm211_vm3, %v5659_v37  ;;  %12853 = vmatmul.mubr.msk.bf16.vlgmr.msra.gmra.mxu1 %vm211_vm3, %v5659_v37 }
0x1d1a   :  { %12857 = vmatpush3.bf16.msra.mxu0 %v13292_v33  ;;  %12860 = vmatprep.mubr.msk.bf16.mxu0 %vm13596_vm2, %v13594_v6 }
0x1d1b   :  { %12858 = vmatprep.subr.bf16.mxu0 %v13594_v6  ;;  %12866 = vmatprep.mubr.msk.f32.mxu1 %vm13596_vm2, %v13594_v6 }
0x1d1e   :  { %12859 = vmatpush3.bf16.msra.mxu0 %v13293_v12 }
0x1d1f   :  { %12869 = vmatprep.subr.mxu0 %v13594_v6 }
0x1d21   :  { %12861 = vmatmul.mubr.msk.bf16.vlgmr.msra.gmra.mxu0 %vm211_vm3, %v5659_v37 }
0x1d22   :  { %12871 = vmatprep.mubr.msk.f32.mxu0 %vm13596_vm2, %v13594_v6 }
0x1dd9   :  { %v5722_v10 = vpop.f32.mrf.mxu0  ;;  %v5788_v38 = vpop.f32.mrf.mxu1 }
0x1dda   :  { %v14982_v55 = vadd.f32 %v11460_v61, %v5788_v38  ;;  %v14986_v15 = vadd.f32 %v11451_v49, %v5722_v10 }
0x1ddb   :  { %v12846_v14 = vpop.f32.mrf.mxu0  ;;  %v12854_v57 = vpop.f32.mrf.mxu1 }
0x1ddc   :  { %12865 = vmatpush3.xpose.msk.msra.mxu1 %vm388_vm4, %v14982_v55 }
0x1ddd   :  { %v5725_v58 = vpop.f32.mrf.mxu0  ;;  %v5791_v32 = vpop.f32.mrf.mxu1  ;;  %12874 = vmatprep.subr.mxu1 %v13594_v6 }
0x1dde   :  { %v14989_v36 = vadd.f32 %v11460_v61, %v5791_v32  ;;  %v15000_v60 = vadd.f32 %v11451_v49, %v5725_v58 }
0x1ddf   :  { %v12847_v35 = vpop.f32.mrf.mxu0  ;;  %v12855_v63 = vpop.f32.mrf.mxu1  ;;  %12867 = vmatmul.mubr.msk.f32.vlgmr.msra.gmra.mxu1 %vm388_vm4, %v14986_v15 }
0x1de0   :  { %12870 = vmatpush3.xpose.msk.msra.mxu0 %vm388_vm4, %v14989_v36  ;;  %12876 = vmatprep.mubr.msk.f32.mxu1 %vm13596_vm2, %v13594_v6 }
0x1de1   :  { %v5854_v34 = vpop.f32.mrf.mxu0  ;;  %12879 = vmatprep.subr.mxu0 %v13594_v6 }
0x1de2   :  { %v15003_v59 = vadd.f32 %v11469_v56, %v5854_v34 }
0x1de3   :  { %v12862_v1 = vpop.f32.mrf.mxu0  ;;  %12872 = vmatmul.mubr.msk.f32.vlgmr.msra.gmra.mxu0 %vm388_vm4, %v15000_v60 }
0x1de4   :  { %12875 = vmatpush3.msra.mxu1 %v15003_v59  ;;  %12881 = vmatprep.mubr.msk.f32.mxu0 %vm13596_vm2, %v13594_v6 }
0x1de5   :  { %v5857_v44 = vpop.f32.mrf.mxu0  ;;  %12884 = vmatprep.subr.mxu1 %v13594_v6 }
0x1de6   :  { %v15011_v62 = vadd.f32 %v11469_v56, %v5857_v44 }
0x1de7   :  { %v12863_v41 = vpop.f32.mrf.mxu0 }
0x1de8   :  { %12880 = vmatpush3.msra.mxu0 %v15011_v62 }
0x1de9   :  { %12889 = vmatprep.subr.mxu0 %v13594_v6 }
0x1e9f   :  { %v5933_v5 = vpop.f32.mrf.mxu1 }
0x1ea0   :  { %v6013_v40 = vmul.f32 0.35355338, %v5933_v5 }
0x1ea1   :  { %v12868_v31 = vpop.f32.mrf.mxu1 }
0x1ea2   :  { %v6015_v42 = vadd.f32 %v15018_v30, %v6013_v40 }
0x1ea3   :  { %v6009_v53 = vpop.f32.mrf.mxu0 }
0x1ea4   :  { %v6014_v52 = vmul.f32 0.35355338, %v6009_v53  ;;  %v6017_v54 = vadd.f32 %v6015_v42, %v13878_v8 }
0x1ea5   :  { %v12873_v4 = vpop.f32.mrf.mxu0 }
0x1ea6   :  { %v6016_v46 = vadd.f32 %v15018_v30, %v6014_v52  ;;  %v6019_v50 = vsel %vm388_vm4, %v6017_v54, -inf }
0x1ea7   :  { %6020 = vmax.xlane.f32.xlu0 %v6019_v50 }
0x1ea8   :  { %v6018_v7 = vadd.f32 %v6016_v46, %v13882_v13 }
0x1eaa   :  { %v6022_v39 = vsel %vm388_vm4, %v6018_v7, -inf }
0x1eab   :  { %6023 = vmax.xlane.f32.xlu1 %v6022_v39 }
0x1ebc   :  { %6267 = vrot.lane.b32.xlu1 %v14989_v36, %s16133_s28 }
0x1f30   :  { %v6021_v9 = vpop.xlane.xlu0 %6020 }
0x1f31   :  { %v6025_v11 = vsub.f32 %v6017_v54, %v6021_v9 }
0x1f33   :  { %v6027_v2 = vmul.f32 1.442695, %v6025_v11 }
0x1f34   :  { %v6024_v48 = vpop.xlane.xlu1 %6023 }
0x1f35   :  { %13510 = vpow2.f32 %v6027_v2  ;;  %v6026_v51 = vsub.f32 %v6018_v7, %v6024_v48 }
0x1f37   :  { %v6029_v17 = vmul.f32 1.442695, %v6026_v51 }
0x1f38   :  { %v6268_v23 = vpop.permute.xlu1 %6267 }
0x1f39   :  { %13512 = vpow2.f32 %v6029_v17 }
0x1f42   :  { %v13511_v19 = vpop.eup %13510 }
0x1f43   :  { %v6031_v20 = vsel %vm388_vm4, %v13511_v19, 0.0 }
0x1f44   :  { %6032 = vadd.xlane.f32.xlu0 %v6031_v20 }
0x1f46   :  { %v13513_v47 = vpop.eup %13512 }
0x1f47   :  { %v6034_v22 = vsel %vm388_vm4, %v13513_v47, 0.0 }
0x1f48   :  { %6035 = vadd.xlane.f32.xlu1 %v6034_v22 }
0x1f59   :  { %6187 = vrot.lane.b32.xlu1 %v14986_v15, %s16133_s28 }
0x1f5a   :  { %6189 = vrot.lane.b32.xlu0 %v14982_v55, %s16133_s28 }
0x1f5e   :  { %6265 = vrot.lane.b32.xlu0 %v15000_v60, %s16133_s28 }
0x1fcd   :  { %v6033_v25 = vpop.xlane.xlu0 %6032 }
0x1fce   :  { %13514 = vrcp.f32 %v6033_v25 }
0x1fd1   :  { %v6036_v43 = vpop.xlane.xlu1 %6035  ;;  %v6190_v28 = vpop.permute.xlu0 %6189 }
0x1fd2   :  { %13516 = vrcp.f32 %v6036_v43 }
0x1fd5   :  { %v6188_v12 = vpop.permute.xlu1 %6187  ;;  %v6266_v61 = vpop.permute.xlu0 %6265 }
0x1fdb   :  { %v13515_v26 = vpop.eup %13514 }
0x1fdc   :  { %v6039_v16 = vmul.f32 %v13515_v26, %v13511_v19 }
0x1fde   :  { %12877 = vmatmul.mubr.msk.f32.vlgmr.msra.gmra.mxu1 %vm388_vm4, %v6039_v16 }
0x1fdf   :  { %v13517_v33 = vpop.eup %13516  ;;  %12885 = vmatpush3.xpose.msk.msra.mxu1 %vm388_vm4, %v6190_v28  ;;  %12886 = vmatprep.mubr.msk.f32.mxu1 %vm13596_vm2, %v13594_v6 }
0x1fe0   :  { %v6040_v37 = vmul.f32 %v13517_v33, %v13513_v47  ;;  %12894 = vmatprep.subr.mxu1 %v13594_v6 }
0x1fe2   :  { %12882 = vmatmul.mubr.msk.f32.vlgmr.msra.gmra.mxu0 %vm388_vm4, %v6040_v37  ;;  %12887 = vmatmul.mubr.msk.f32.vlgmr.msra.gmra.mxu1 %vm388_vm4, %v6188_v12 }
0x1fe3   :  { %12890 = vmatpush3.xpose.msk.msra.mxu0 %vm388_vm4, %v6268_v23  ;;  %12891 = vmatprep.mubr.msk.f32.mxu0 %vm13596_vm2, %v13594_v6 }
0x1fe4   :  { %12899 = vmatprep.subr.mxu0 %v13594_v6  ;;  %12896 = vmatprep.mubr.msk.f32.mxu1 %vm13596_vm2, %v13594_v6 }
0x1fe6   :  { %12892 = vmatmul.mubr.msk.f32.vlgmr.msra.gmra.mxu0 %vm388_vm4, %v6266_v61 }
0x1fe7   :  { %12901 = vmatprep.mubr.msk.f32.mxu0 %vm13596_vm2, %v13594_v6 }
0x209e   :  { %v15052_v10 = vpop.f32.mrf.mxu1 }
0x20a0   :  { %v12878_v38 = vpop.f32.mrf.mxu1 }
0x20a2   :  { %v15054_v49 = vpop.f32.mrf.mxu0  ;;  %v6261_v14 = vpop.f32.mrf.mxu1 }
0x20a3   :  { %v6343_v57 = vmul.f32 0.35355338, %v6261_v14 }
0x20a4   :  { %v12883_v58 = vpop.f32.mrf.mxu0  ;;  %v12888_v32 = vpop.f32.mrf.mxu1 }
0x20a5   :  { %v6345_v35 = vadd.f32 %v15018_v30, %v6343_v57 }
0x20a6   :  { %v6339_v63 = vpop.f32.mrf.mxu0 }
0x20a7   :  { %v6344_v56 = vmul.f32 0.35355338, %v6339_v63  ;;  %v6347_v34 = vadd.f32 %v6345_v35, %v13878_v8 }
0x20a8   :  { %v12893_v1 = vpop.f32.mrf.mxu0 }
0x20a9   :  { %v6346_v44 = vadd.f32 %v15018_v30, %v6344_v56  ;;  %v6349_v41 = vsel %vm388_vm4, %v6347_v34, -inf }
0x20aa   :  { %6350 = vmax.xlane.f32.xlu1 %v6349_v41 }
0x20ab   :  { %v6348_v5 = vadd.f32 %v6346_v44, %v13882_v13 }
0x20ad   :  { %v6352_v40 = vsel %vm388_vm4, %v6348_v5, -inf }
0x20ae   :  { %6353 = vmax.xlane.f32.xlu0 %v6352_v40 }
0x20bb   :  { %6449 = vrot.lane.b32.xlu1 %v15011_v62, %s16133_s28 }
0x20bf   :  { %6527 = vrot.lane.b32.xlu1 %v14982_v55, %s16134_s24 }
0x20c4   :  { %6372 = vrot.lane.b32.xlu0 %v15003_v59, %s16133_s28 }
0x2133   :  { %v6351_v31 = vpop.xlane.xlu1 %6350 }
0x2134   :  { %v6355_v42 = vsub.f32 %v6347_v34, %v6351_v31 }
0x2136   :  { %v6357_v53 = vmul.f32 1.442695, %v6355_v42 }
0x2137   :  { %v6450_v52 = vpop.permute.xlu1 %6449  ;;  %v6354_v54 = vpop.xlane.xlu0 %6353 }
0x2138   :  { %13518 = vpow2.f32 %v6357_v53  ;;  %v6356_v4 = vsub.f32 %v6348_v5, %v6354_v54  ;;  %12900 = vmatpush3.msra.mxu0 %v6450_v52 }
0x2139   :  { %12909 = vmatprep.subr.mxu0 %v13594_v6 }
0x213a   :  { %v6359_v46 = vmul.f32 1.442695, %v6356_v4 }
0x213b   :  { %v6373_v50 = vpop.permute.xlu0 %6372  ;;  %v6528_v2 = vpop.permute.xlu1 %6527 }
0x213c   :  { %13520 = vpow2.f32 %v6359_v46  ;;  %12895 = vmatpush3.msra.mxu1 %v6373_v50 }
0x213d   :  { %12904 = vmatprep.subr.mxu1 %v13594_v6 }
0x2145   :  { %v13519_v7 = vpop.eup %13518 }
0x2146   :  { %v6361_v39 = vsel %vm388_vm4, %v13519_v7, 0.0 }
0x2147   :  { %6362 = vadd.xlane.f32.xlu0 %v6361_v39 }
0x2149   :  { %v13521_v9 = vpop.eup %13520 }
0x214a   :  { %v6364_v11 = vsel %vm388_vm4, %v13521_v9, 0.0 }
0x214b   :  { %6365 = vadd.xlane.f32.xlu1 %v6364_v11 }
0x215c   :  { %6525 = vrot.lane.b32.xlu1 %v14986_v15, %s16134_s24 }
0x215d   :  { %6605 = vrot.lane.b32.xlu0 %v14989_v36, %s16134_s24 }
0x2161   :  { %6603 = vrot.lane.b32.xlu0 %v15000_v60, %s16134_s24 }
0x21d0   :  { %v6363_v48 = vpop.xlane.xlu0 %6362 }
0x21d1   :  { %13522 = vrcp.f32 %v6363_v48 }
0x21d4   :  { %v6366_v51 = vpop.xlane.xlu1 %6365  ;;  %v6606_v47 = vpop.permute.xlu0 %6605 }
0x21d5   :  { %13524 = vrcp.f32 %v6366_v51 }
0x21d8   :  { %v6526_v23 = vpop.permute.xlu1 %6525  ;;  %v6604_v25 = vpop.permute.xlu0 %6603 }
0x21de   :  { %v13523_v17 = vpop.eup %13522 }
0x21df   :  { %v6369_v19 = vmul.f32 %v13523_v17, %v13519_v7 }
0x21e1   :  { %12897 = vmatmul.mubr.msk.f32.vlgmr.msra.gmra.mxu1 %vm388_vm4, %v6369_v19 }
0x21e2   :  { %v13525_v20 = vpop.eup %13524  ;;  %12905 = vmatpush3.xpose.msk.msra.mxu1 %vm388_vm4, %v6528_v2  ;;  %12906 = vmatprep.mubr.msk.f32.mxu1 %vm13596_vm2, %v13594_v6 }
0x21e3   :  { %v6370_v22 = vmul.f32 %v13525_v20, %v13521_v9  ;;  %12914 = vmatprep.subr.mxu1 %v13594_v6 }
0x21e5   :  { %12902 = vmatmul.mubr.msk.f32.vlgmr.msra.gmra.mxu0 %vm388_vm4, %v6370_v22  ;;  %12907 = vmatmul.mubr.msk.f32.vlgmr.msra.gmra.mxu1 %vm388_vm4, %v6526_v23 }
0x21e6   :  { %12910 = vmatpush3.xpose.msk.msra.mxu0 %vm388_vm4, %v6606_v47  ;;  %12911 = vmatprep.mubr.msk.f32.mxu0 %vm13596_vm2, %v13594_v6 }
0x21e7   :  { %12919 = vmatprep.subr.mxu0 %v13594_v6  ;;  %12916 = vmatprep.mubr.msk.f32.mxu1 %vm13596_vm2, %v13594_v6 }
0x21e9   :  { %12912 = vmatmul.mubr.msk.f32.vlgmr.msra.gmra.mxu0 %vm388_vm4, %v6604_v25 }
0x21ea   :  { %12921 = vmatprep.mubr.msk.f32.mxu0 %vm13596_vm2, %v13594_v6 }
0x22a1   :  { %v15094_v43 = vpop.f32.mrf.mxu1 }
0x22a3   :  { %v12898_v26 = vpop.f32.mrf.mxu1 }
0x22a5   :  { %v15096_v16 = vpop.f32.mrf.mxu0  ;;  %v6599_v28 = vpop.f32.mrf.mxu1 }
0x22a6   :  { %v13114_v33 = vpack.i.bf16 %v15096_v16, %v15094_v43  ;;  %v6681_v37 = vmul.f32 0.35355338, %v6599_v28 }
0x22a7   :  { %v12903_v12 = vpop.f32.mrf.mxu0  ;;  %v12908_v61 = vpop.f32.mrf.mxu1 }
0x22a8   :  { %v6683_v38 = vadd.f32 %v15018_v30, %v6681_v37 }
0x22a9   :  { %v6677_v14 = vpop.f32.mrf.mxu0 }
0x22aa   :  { %v6682_v57 = vmul.f32 0.35355338, %v6677_v14  ;;  %v6685_v58 = vadd.f32 %v6683_v38, %v13878_v8 }
0x22ab   :  { %v12913_v32 = vpop.f32.mrf.mxu0 }
0x22ac   :  { %v6684_v35 = vadd.f32 %v15018_v30, %v6682_v57  ;;  %v6687_v63 = vsel %vm388_vm4, %v6685_v58, -inf }
0x22ad   :  { %6688 = vmax.xlane.f32.xlu1 %v6687_v63 }
0x22ae   :  { %v6686_v56 = vadd.f32 %v6684_v35, %v13882_v13 }
0x22b0   :  { %v6690_v34 = vsel %vm388_vm4, %v6686_v56, -inf }
0x22b1   :  { %6691 = vmax.xlane.f32.xlu0 %v6690_v34 }
0x22be   :  { %6785 = vrot.lane.b32.xlu1 %v15011_v62, %s16134_s24 }
0x22c2   :  { %6863 = vrot.lane.b32.xlu1 %v14982_v55, %s16129_s4 }
0x22c7   :  { %6709 = vrot.lane.b32.xlu0 %v15003_v59, %s16134_s24 }
0x2336   :  { %v6689_v1 = vpop.xlane.xlu1 %6688 }
0x2337   :  { %v6693_v44 = vsub.f32 %v6685_v58, %v6689_v1 }
0x2339   :  { %v6695_v41 = vmul.f32 1.442695, %v6693_v44 }
0x233a   :  { %v6786_v5 = vpop.permute.xlu1 %6785  ;;  %v6692_v40 = vpop.xlane.xlu0 %6691 }
0x233b   :  { %13526 = vpow2.f32 %v6695_v41  ;;  %v6694_v31 = vsub.f32 %v6686_v56, %v6692_v40  ;;  %12920 = vmatpush3.msra.mxu0 %v6786_v5 }
0x233c   :  { %12929 = vmatprep.subr.mxu0 %v13594_v6 }
0x233d   :  { %v6697_v42 = vmul.f32 1.442695, %v6694_v31  ;;  %v13295_v31 = vld [vmem:[%s16080_s8 + $0x10] sm:$0xff]  }
0x233e   :  { %v6710_v53 = vpop.permute.xlu0 %6709  ;;  %v6864_v46 = vpop.permute.xlu1 %6863 }
0x233f   :  { %13528 = vpow2.f32 %v6697_v42  ;;  %12915 = vmatpush3.msra.mxu1 %v6710_v53 }
0x2340   :  { %12924 = vmatprep.subr.mxu1 %v13594_v6 }
0x2348   :  { %v13527_v55 = vpop.eup %13526 }
0x2349   :  { %v6699_v52 = vsel %vm388_vm4, %v13527_v55, 0.0 }
0x234a   :  { %6700 = vadd.xlane.f32.xlu0 %v6699_v52 }
0x234c   :  { %v13529_v54 = vpop.eup %13528 }
0x234d   :  { %v6702_v4 = vsel %vm388_vm4, %v13529_v54, 0.0 }
0x234e   :  { %6703 = vadd.xlane.f32.xlu1 %v6702_v4 }
0x235f   :  { %6861 = vrot.lane.b32.xlu1 %v14986_v15, %s16129_s4 }
0x2360   :  { %6941 = vrot.lane.b32.xlu0 %v14989_v36, %s16129_s4 }
0x2364   :  { %6939 = vrot.lane.b32.xlu0 %v15000_v60, %s16129_s4 }
0x23d3   :  { %v6701_v50 = vpop.xlane.xlu0 %6700 }
0x23d4   :  { %13530 = vrcp.f32 %v6701_v50 }
0x23d7   :  { %v6704_v7 = vpop.xlane.xlu1 %6703  ;;  %v6942_v2 = vpop.permute.xlu0 %6941 }
0x23d8   :  { %13532 = vrcp.f32 %v6704_v7 }
0x23db   :  { %v6862_v36 = vpop.permute.xlu1 %6861  ;;  %v6940_v60 = vpop.permute.xlu0 %6939 }
0x23e1   :  { %v13531_v39 = vpop.eup %13530 }
0x23e2   :  { %v6707_v9 = vmul.f32 %v13531_v39, %v13527_v55 }
0x23e4   :  { %12917 = vmatmul.mubr.msk.f32.vlgmr.msra.gmra.mxu1 %vm388_vm4, %v6707_v9 }
0x23e5   :  { %v13533_v11 = vpop.eup %13532  ;;  %12925 = vmatpush3.xpose.msk.msra.mxu1 %vm388_vm4, %v6864_v46  ;;  %12926 = vmatprep.mubr.msk.f32.mxu1 %vm13596_vm2, %v13594_v6 }
0x23e6   :  { %v6708_v15 = vmul.f32 %v13533_v11, %v13529_v54  ;;  %12934 = vmatprep.subr.mxu1 %v13594_v6 }
0x23e8   :  { %12922 = vmatmul.mubr.msk.f32.vlgmr.msra.gmra.mxu0 %vm388_vm4, %v6708_v15  ;;  %12927 = vmatmul.mubr.msk.f32.vlgmr.msra.gmra.mxu1 %vm388_vm4, %v6862_v36 }
0x23e9   :  { %12930 = vmatpush3.xpose.msk.msra.mxu0 %vm388_vm4, %v6942_v2  ;;  %12931 = vmatprep.mubr.msk.f32.mxu0 %vm13596_vm2, %v13594_v6 }
0x23ea   :  { %12939 = vmatprep.subr.mxu0 %v13594_v6  ;;  %12936 = vmatprep.mubr.msk.f32.mxu1 %vm13596_vm2, %v13594_v6 }
0x23ec   :  { %12932 = vmatmul.mubr.msk.f32.vlgmr.msra.gmra.mxu0 %vm388_vm4, %v6940_v60 }
0x23ed   :  { %12941 = vmatprep.mubr.msk.f32.mxu0 %vm13596_vm2, %v13594_v6 }
0x24a4   :  { %v6781_v48 = vpop.f32.mrf.mxu1 }
0x24a6   :  { %v12918_v51 = vpop.f32.mrf.mxu1 }
0x24a8   :  { %v6857_v17 = vpop.f32.mrf.mxu0  ;;  %v6935_v19 = vpop.f32.mrf.mxu1 }
0x24a9   :  { %v13119_v20 = vpack.i.bf16 %v6857_v17, %v6781_v48  ;;  %v7017_v47 = vmul.f32 0.35355338, %v6935_v19 }
0x24aa   :  { %v12923_v22 = vpop.f32.mrf.mxu0  ;;  %v12928_v23 = vpop.f32.mrf.mxu1 }
0x24ab   :  { %v7019_v25 = vadd.f32 %v15018_v30, %v7017_v47 }
0x24ac   :  { %v7013_v26 = vpop.f32.mrf.mxu0 }
0x24ad   :  { %v7018_v28 = vmul.f32 0.35355338, %v7013_v26  ;;  %v7021_v37 = vadd.f32 %v7019_v25, %v13878_v8 }
0x24ae   :  { %v12933_v12 = vpop.f32.mrf.mxu0 }
0x24af   :  { %v7020_v61 = vadd.f32 %v15018_v30, %v7018_v28  ;;  %v7023_v38 = vsel %vm388_vm4, %v7021_v37, -inf }
0x24b0   :  { %7024 = vmax.xlane.f32.xlu1 %v7023_v38 }
0x24b1   :  { %v7022_v14 = vadd.f32 %v7020_v61, %v13882_v13 }
0x24b3   :  { %v7026_v57 = vsel %vm388_vm4, %v7022_v14, -inf }
0x24b4   :  { %7027 = vmax.xlane.f32.xlu0 %v7026_v57 }
0x2539   :  { %v7025_v58 = vpop.xlane.xlu1 %7024 }
0x253a   :  { %v7029_v32 = vsub.f32 %v7021_v37, %v7025_v58 }
0x253c   :  { %v7031_v35 = vmul.f32 1.442695, %v7029_v32  ;;  %v13298_v32 = vld [vmem:[%s16082_s10 + $0x38] sm:$0xff]  }
0x253d   :  { %v7028_v63 = vpop.xlane.xlu0 %7027 }
0x253e   :  { %13534 = vpow2.f32 %v7031_v35  ;;  %v7030_v56 = vsub.f32 %v7022_v14, %v7028_v63  ;;  %v13299_v35 = vld [vmem:[%s16082_s10 + $0x30] sm:$0xff]  }
0x2540   :  { %v7033_v34 = vmul.f32 1.442695, %v7030_v56 }
0x2542   :  { %13536 = vpow2.f32 %v7033_v34 }
0x254b   :  { %v13535_v8 = vpop.eup %13534 }
0x254c   :  { %v7035_v1 = vsel %vm388_vm4, %v13535_v8, 0.0 }
0x254d   :  { %7036 = vadd.xlane.f32.xlu0 %v7035_v1 }
0x254f   :  { %v13537_v30 = vpop.eup %13536 }
0x2550   :  { %v7038_v44 = vsel %vm388_vm4, %v13537_v30, 0.0 }
0x2551   :  { %7039 = vadd.xlane.f32.xlu1 %v7038_v44 }
0x2562   :  { %7121 = vrot.lane.b32.xlu1 %v15011_v62, %s16129_s4 }
0x2563   :  { %7045 = vrot.lane.b32.xlu0 %v15003_v59, %s16129_s4 }
0x2566   :  { %13115 = vrot.lane.b32.xlu1 %v13114_v33, %s16130_s3  ;;  %v13294_v33 = vld [vmem:[%s16080_s8 + $0x18] sm:$0xff]  }
0x2567   :  { %13120 = vrot.lane.b32.xlu0 %v13119_v20, %s16131_s30 }
0x25d6   :  { %v7037_v13 = vpop.xlane.xlu0 %7036 }
0x25d7   :  { %13538 = vrcp.f32 %v7037_v13 }
0x25da   :  { %v7040_v41 = vpop.xlane.xlu1 %7039  ;;  %v7046_v5 = vpop.permute.xlu0 %7045 }
0x25db   :  { %13540 = vrcp.f32 %v7040_v41  ;;  %12935 = vmatpush3.msra.mxu1 %v7046_v5 }
0x25dc   :  { %12944 = vmatprep.subr.bf16.mxu1 %v13594_v6 }
0x25de   :  { %v7122_v40 = vpop.permute.xlu1 %7121  ;;  %v13121_v7 = vpop.permute.xlu0 %13120 }
0x25df   :  { %12940 = vmatpush3.msra.mxu0 %v7122_v40  ;;  %v13123_v11 = vunpack.i.h.bf16 %v13121_v7  ;;  %v13122_v2 = vunpack.i.l.bf16 %v13121_v7 }
0x25e0   :  { %12952 = vmatprep.subr.bf16.mxu0 %v13594_v6 }
0x25e2   :  { %v13116_v4 = vpop.permute.xlu1 %13115 }
0x25e3   :  { %v13118_v46 = vunpack.i.h.bf16 %v13116_v4  ;;  %v13117_v50 = vunpack.i.l.bf16 %v13116_v4 }
0x25e4   :  { %v13539_v59 = vpop.eup %13538 }
0x25e5   :  { %v7043_v62 = vmul.f32 %v13539_v59, %v13535_v8  ;;  %v7222_v39 = vsel %vm388_vm4, %v15054_v49, %v13118_v46  ;;  %v7221_v9 = vsel %vm388_vm4, %v15052_v10, %v13117_v50  ;;  %v11502_v10 = vld [vmem:[%s16081_s9 + $0x1] ss:$0 sm:$0xff] }
0x25e6   :  { %v7223_v48 = vsel %vm1784_vm5, %v7221_v9, %v13122_v2  ;;  %v7224_v51 = vsel %vm1784_vm5, %v7222_v39, %v13123_v11  ;;  %v13300_v11 = vld [vmem:[%s16082_s10 + $0x58] sm:$0xff]  }
0x25e7   :  { %12937 = vmatmul.mubr.msk.f32.vlgmr.msra.gmra.mxu1 %vm388_vm4, %v7043_v62 }
0x25e8   :  { %v13541_v43 = vpop.eup %13540  ;;  %12948 = vmatprep.mubr.msk.bf16.mxu1 %vm13596_vm2, %v13594_v6  ;;  %12945 = vmatpush3.bf16.msra.mxu1 %v13294_v33 }
0x25e9   :  { %v7044_v16 = vmul.f32 %v13541_v43, %v13537_v30  ;;  %12946 = vmatprep.subr.bf16.mxu1 %v13594_v6 }
0x25eb   :  { %12942 = vmatmul.mubr.msk.f32.vlgmr.msra.gmra.mxu0 %vm388_vm4, %v7044_v16  ;;  %v15215_v16 = vld [vmem:[%s16084_s14 + $0x4] sm:$0x7] }
0x25ec   :  { %12956 = vmatprep.mubr.msk.bf16.mxu0 %vm13596_vm2, %v13594_v6  ;;  %12947 = vmatpush3.bf16.msra.mxu1 %v13295_v31 }
0x25ed   :  { %12960 = vmatprep.subr.bf16.mxu1 %v13594_v6  ;;  %12953 = vmatpush3.bf16.msra.mxu0 %v13298_v32 }
0x25ee   :  { %12954 = vmatprep.subr.bf16.mxu0 %v13594_v6 }
0x25f1   :  { %12955 = vmatpush3.bf16.msra.mxu0 %v13299_v35 }
0x25f2   :  { %12968 = vmatprep.subr.bf16.mxu0 %v13594_v6 }
0x26a7   :  { %v7117_v42 = vpop.f32.mrf.mxu1 }
0x26a9   :  { %v12938_v53 = vpop.f32.mrf.mxu1 }
0x26aa   :  { %v7332_v53 = vrot.slane %v15215_v16, %v13870_v3 }
0x26ab   :  { %v7193_v55 = vpop.f32.mrf.mxu0 }
0x26ac   :  { %v13124_v52 = vpack.i.bf16 %v7193_v55, %v7117_v42  ;;  %v15222_v55 = vld [vmem:[%s16085_s15 + $0x4] sm:$0x7] }
0x26ad   :  { %v12943_v54 = vpop.f32.mrf.mxu0  ;;  %v7338_v50 = vrot.slane %v15222_v55, %v13870_v3 }
0x26ae   :  { %13125 = vrot.lane.b32.xlu1 %v13124_v52, %s16132_s29 }
0x2720   :  { %v13126_v15 = vpop.permute.xlu1 %13125 }
0x2721   :  { %v13128_v36 = vunpack.i.h.bf16 %v13126_v15  ;;  %v13127_v60 = vunpack.i.l.bf16 %v13126_v15  ;;  %v13301_v15 = vld [vmem:[%s16082_s10 + $0x50] sm:$0xff]  }
0x2723   :  { %v7226_v17 = vsel %vm1787_vm6, %v7224_v51, %v13128_v36  ;;  %v7225_v19 = vsel %vm1787_vm6, %v7223_v48, %v13127_v60  ;;  %v11520_v36 = vld [vmem:[%s16086_s11 + $0x4] ss:$0 sm:$0xff] }
0x2724   :  { %v7227_v20 = vpack.c.bf16 %v7226_v17, %v7225_v19 }
0x2726   :  { %12949 = vmatmul.mubr.msk.bf16.vlgmr.msra.gmra.mxu1 %vm211_vm3, %v7227_v20  ;;  %v11511_v20 = vld [vmem:[%s16086_s11 + $0x3] ss:$0 sm:$0xff] }
0x2727   :  { %12964 = vmatprep.mubr.msk.bf16.mxu1 %vm13596_vm2, %v13594_v6 }
0x27e6   :  { %v7290_v49 = vpop.f32.mrf.mxu1 }
0x27e7   :  { %v7291_v47 = vadd.f32 %v11502_v10, %v7290_v49 }
0x27e8   :  { %v12950_v22 = vpop.f32.mrf.mxu1 }
0x27e9   :  { %v7297_v23 = vadd.f32 %v7291_v47, %v14953_v24  ;;  %v13296_v24 = vld [vmem:[%s16082_s10 + $0x48] sm:$0xff]  }
0x27ea   :  { %v7293_v25 = vpop.f32.mrf.mxu1  ;;  %12961 = vmatpush3.bf16.msra.mxu1 %v13296_v24 }
0x27eb   :  { %v7294_v26 = vadd.f32 %v11502_v10, %v7293_v25  ;;  %v7299_v28 = vsel %vm211_vm3, %v7297_v23, 0.0  ;;  %v7307_v37 = vmul.f32 %v7297_v23, %v7297_v23  ;;  %12962 = vmatprep.subr.bf16.mxu1 %v13594_v6 }
0x27ec   :  { %7300 = vadd.xlane.f32.xlu0 %v7299_v28  ;;  %v12951_v12 = vpop.f32.mrf.mxu1 }
0x27ed   :  { %v7298_v61 = vadd.f32 %v7294_v26, %v14955_v29  ;;  %v7309_v38 = vsel %vm211_vm3, %v7307_v37, 0.0  ;;  %v13297_v29 = vld [vmem:[%s16082_s10 + $0x40] sm:$0xff]  }
0x27ee   :  { %12963 = vmatpush3.bf16.msra.mxu1 %v13297_v29  ;;  %v11529_v26 = vld [vmem:[%s16086_s11 + $0x5] ss:$0 sm:$0xff] }
0x27ef   :  { %v7302_v14 = vsel %vm211_vm3, %v7298_v61, 0.0  ;;  %v7308_v57 = vmul.f32 %v7298_v61, %v7298_v61  ;;  %12976 = vmatprep.subr.mxu1 %v13594_v6 }
0x27f0   :  { %7310 = vadd.xlane.f32.xlu0 %v7309_v38  ;;  %7303 = vadd.xlane.f32.xlu1 %v7302_v14 }
0x27f1   :  { %v7312_v58 = vsel %vm211_vm3, %v7308_v57, 0.0  ;;  %12965 = vmatmul.mubr.msk.bf16.vlgmr.msra.gmra.mxu1 %vm211_vm3, %v14071_v45 }
0x27f2   :  { %12978 = vmatprep.mubr.msk.f32.mxu1 %vm13596_vm2, %v13594_v6 }
0x27f4   :  { %7313 = vadd.xlane.f32.xlu0 %v7312_v58 }
0x2875   :  { %v7301_v63 = vpop.xlane.xlu0 %7300 }
0x2876   :  { %v7305_v56 = vmul.f32 0.03125, %v7301_v63 }
0x2878   :  { %v7317_v1 = vmul.f32 %v7305_v56, %v7305_v56  ;;  %v7321_v33 = vsub.f32 %v7297_v23, %v7305_v56 }
0x2879   :  { %v7311_v34 = vpop.xlane.xlu0 %7310  ;;  %v7304_v8 = vpop.xlane.xlu1 %7303 }
0x287a   :  { %v7315_v30 = vmul.f32 0.03125, %v7311_v34  ;;  %v7306_v44 = vmul.f32 0.03125, %v7304_v8 }
0x287c   :  { %v7319_v13 = vsub.f32 %v7315_v30, %v7317_v1  ;;  %v7318_v40 = vmul.f32 %v7306_v44, %v7306_v44  ;;  %v7322_v52 = vsub.f32 %v7298_v61, %v7306_v44 }
0x287d   :  { %v7314_v41 = vpop.xlane.xlu0 %7313 }
0x287e   :  { %v7323_v5 = vadd.f32 1e-05, %v7319_v13  ;;  %v7316_v59 = vmul.f32 0.03125, %v7314_v41 }
0x2880   :  { %13542 = vrsqrt.f32 %v7323_v5  ;;  %v7320_v62 = vsub.f32 %v7316_v59, %v7318_v40 }
0x2882   :  { %v7324_v43 = vadd.f32 1e-05, %v7320_v62 }
0x2884   :  { %13544 = vrsqrt.f32 %v7324_v43 }
0x288d   :  { %v13543_v31 = vpop.eup %13542 }
0x288e   :  { %v7327_v42 = vmul.f32 %v13543_v31, %v7321_v33 }
0x2890   :  { %v7333_v46 = vmul.f32 %v7332_v53, %v7327_v42 }
0x2891   :  { %v13545_v54 = vpop.eup %13544 }
0x2892   :  { %v7328_v4 = vmul.f32 %v13545_v54, %v7322_v52  ;;  %v15226_v39 = vadd.f32 %v7338_v50, %v7333_v46 }
0x2894   :  { %v7334_v7 = vmul.f32 %v7332_v53, %v7328_v4 }
0x2896   :  { %v15228_v9 = vadd.f32 %v7338_v50, %v7334_v7 }
0x2898   :  { %v7341_v2 = vpack.c.bf16 %v15228_v9, %v15226_v39 }
0x289a   :  { %12957 = vmatmul.mubr.msk.bf16.vlgmr.msra.gmra.mxu0 %vm211_vm3, %v7341_v2 }
0x289b   :  { %12969 = vmatpush3.bf16.msra.mxu0 %v13300_v11  ;;  %12972 = vmatprep.mubr.msk.bf16.mxu0 %vm13596_vm2, %v13594_v6 }
0x289c   :  { %12970 = vmatprep.subr.bf16.mxu0 %v13594_v6 }
0x289f   :  { %12971 = vmatpush3.bf16.msra.mxu0 %v13301_v15 }
0x28a0   :  { %12981 = vmatprep.subr.mxu0 %v13594_v6 }
0x28a2   :  { %12973 = vmatmul.mubr.msk.bf16.vlgmr.msra.gmra.mxu0 %vm211_vm3, %v14071_v45 }
0x28a3   :  { %12983 = vmatprep.mubr.msk.f32.mxu0 %vm13596_vm2, %v13594_v6 }
0x28b1   :  { %v7470_v60 = vpop.f32.mrf.mxu1 }
0x28b2   :  { %v15250_v48 = vadd.f32 %v11520_v36, %v7470_v60 }
0x28b3   :  { %v12966_v51 = vpop.f32.mrf.mxu1 }
0x28b4   :  { %12977 = vmatpush3.xpose.msk.msra.mxu1 %vm388_vm4, %v15250_v48 }
0x28b5   :  { %v7473_v17 = vpop.f32.mrf.mxu1  ;;  %12986 = vmatprep.subr.mxu1 %v13594_v6 }
0x28b6   :  { %v15255_v19 = vadd.f32 %v11520_v36, %v7473_v17 }
0x28b7   :  { %v12967_v45 = vpop.f32.mrf.mxu1 }
0x28b8   :  { %12982 = vmatpush3.xpose.msk.msra.mxu0 %vm388_vm4, %v15255_v19 }
0x28b9   :  { %12991 = vmatprep.subr.mxu0 %v13594_v6 }
0x295a   :  { %v7404_v10 = vpop.f32.mrf.mxu0 }
0x295b   :  { %v15263_v49 = vadd.f32 %v11511_v20, %v7404_v10 }
0x295c   :  { %v12958_v47 = vpop.f32.mrf.mxu0 }
0x295d   :  { %12979 = vmatmul.mubr.msk.f32.vlgmr.msra.gmra.mxu1 %vm388_vm4, %v15263_v49 }
0x295e   :  { %v7407_v22 = vpop.f32.mrf.mxu0  ;;  %12988 = vmatprep.mubr.msk.f32.mxu1 %vm13596_vm2, %v13594_v6 }
0x295f   :  { %v15269_v23 = vadd.f32 %v11511_v20, %v7407_v22 }
0x2960   :  { %v12959_v25 = vpop.f32.mrf.mxu0 }
0x2961   :  { %12984 = vmatmul.mubr.msk.f32.vlgmr.msra.gmra.mxu0 %vm388_vm4, %v15269_v23 }
0x2962   :  { %v7536_v28 = vpop.f32.mrf.mxu0  ;;  %12993 = vmatprep.mubr.msk.f32.mxu0 %vm13596_vm2, %v13594_v6 }
0x2963   :  { %v15278_v37 = vadd.f32 %v11529_v26, %v7536_v28 }
0x2964   :  { %v12974_v12 = vpop.f32.mrf.mxu0 }
0x2965   :  { %12987 = vmatpush3.msra.mxu1 %v15278_v37 }
0x2966   :  { %v7539_v61 = vpop.f32.mrf.mxu0  ;;  %12996 = vmatprep.subr.mxu1 %v13594_v6 }
0x2967   :  { %v15282_v38 = vadd.f32 %v11529_v26, %v7539_v61 }
0x2968   :  { %v12975_v14 = vpop.f32.mrf.mxu0 }
0x2969   :  { %12992 = vmatpush3.msra.mxu0 %v15282_v38 }
0x296a   :  { %13001 = vmatprep.subr.mxu0 %v13594_v6 }
0x2a1d   :  { %v7615_v57 = vpop.f32.mrf.mxu1 }
0x2a1e   :  { %v7695_v58 = vmul.f32 0.35355338, %v7615_v57 }
0x2a1f   :  { %v12980_v24 = vpop.f32.mrf.mxu1 }
0x2a20   :  { %v7697_v29 = vsel %vm388_vm4, %v7695_v58, -inf }
0x2a21   :  { %7698 = vmax.xlane.f32.xlu1 %v7697_v29  ;;  %v7691_v32 = vpop.f32.mrf.mxu0 }
0x2a22   :  { %v7696_v35 = vmul.f32 0.35355338, %v7691_v32 }
0x2a23   :  { %v12985_v63 = vpop.f32.mrf.mxu0 }
0x2a24   :  { %v7700_v56 = vsel %vm388_vm4, %v7696_v35, -inf }
0x2a25   :  { %7701 = vmax.xlane.f32.xlu0 %v7700_v56 }
0x2a32   :  { %7867 = vrot.lane.b32.xlu1 %v15250_v48, %s16133_s28 }
0x2aaa   :  { %v7699_v34 = vpop.xlane.xlu1 %7698 }
0x2aab   :  { %v7703_v8 = vsub.f32 %v7695_v58, %v7699_v34 }
0x2aad   :  { %v7705_v1 = vmul.f32 1.442695, %v7703_v8 }
0x2aae   :  { %v7702_v30 = vpop.xlane.xlu0 %7701  ;;  %v7868_v62 = vpop.permute.xlu1 %7867 }
0x2aaf   :  { %13546 = vpow2.f32 %v7705_v1  ;;  %v7704_v44 = vsub.f32 %v7696_v35, %v7702_v30 }
0x2ab1   :  { %v7707_v13 = vmul.f32 1.442695, %v7704_v44 }
0x2ab3   :  { %13548 = vpow2.f32 %v7707_v13 }
0x2abc   :  { %v13547_v41 = vpop.eup %13546 }
0x2abd   :  { %v7709_v5 = vsel %vm388_vm4, %v13547_v41, 0.0 }
0x2abe   :  { %7710 = vadd.xlane.f32.xlu1 %v7709_v5 }
0x2ac0   :  { %v13549_v40 = vpop.eup %13548 }
0x2ac1   :  { %v7712_v59 = vsel %vm388_vm4, %v13549_v40, 0.0 }
0x2ac2   :  { %7713 = vadd.xlane.f32.xlu0 %v7712_v59 }
0x2acf   :  { %7865 = vrot.lane.b32.xlu1 %v15263_v49, %s16133_s28 }
0x2ad3   :  { %7943 = vrot.lane.b32.xlu1 %v15269_v23, %s16133_s28 }
0x2ad8   :  { %7945 = vrot.lane.b32.xlu0 %v15255_v19, %s16133_s28 }
0x2b47   :  { %v7711_v43 = vpop.xlane.xlu1 %7710 }
0x2b48   :  { %13550 = vrcp.f32 %v7711_v43 }
0x2b4b   :  { %v7714_v33 = vpop.xlane.xlu0 %7713  ;;  %v7866_v52 = vpop.permute.xlu1 %7865 }
0x2b4c   :  { %13552 = vrcp.f32 %v7714_v33 }
0x2b4f   :  { %v7946_v4 = vpop.permute.xlu0 %7945  ;;  %v7944_v46 = vpop.permute.xlu1 %7943 }
0x2b55   :  { %v13551_v31 = vpop.eup %13550 }
0x2b56   :  { %v7717_v42 = vmul.f32 %v13551_v31, %v13547_v41 }
0x2b58   :  { %12989 = vmatmul.mubr.msk.f32.vlgmr.msra.gmra.mxu1 %vm388_vm4, %v7717_v42 }
0x2b59   :  { %v13553_v53 = vpop.eup %13552  ;;  %12997 = vmatpush3.xpose.msk.msra.mxu1 %vm388_vm4, %v7868_v62  ;;  %12998 = vmatprep.mubr.msk.f32.mxu1 %vm13596_vm2, %v13594_v6 }
0x2b5a   :  { %v7718_v54 = vmul.f32 %v13553_v53, %v13549_v40  ;;  %13006 = vmatprep.subr.mxu1 %v13594_v6 }
0x2b5c   :  { %12994 = vmatmul.mubr.msk.f32.vlgmr.msra.gmra.mxu0 %vm388_vm4, %v7718_v54  ;;  %12999 = vmatmul.mubr.msk.f32.vlgmr.msra.gmra.mxu1 %vm388_vm4, %v7866_v52 }
0x2b5d   :  { %13002 = vmatpush3.xpose.msk.msra.mxu0 %vm388_vm4, %v7946_v4  ;;  %13003 = vmatprep.mubr.msk.f32.mxu0 %vm13596_vm2, %v13594_v6 }
0x2b5e   :  { %13011 = vmatprep.subr.mxu0 %v13594_v6  ;;  %13008 = vmatprep.mubr.msk.f32.mxu1 %vm13596_vm2, %v13594_v6 }
0x2b60   :  { %13004 = vmatmul.mubr.msk.f32.vlgmr.msra.gmra.mxu0 %vm388_vm4, %v7944_v46 }
0x2b61   :  { %13013 = vmatprep.mubr.msk.f32.mxu0 %vm13596_vm2, %v13594_v6 }
0x2c18   :  { %v15314_v50 = vpop.f32.mrf.mxu1 }
0x2c1a   :  { %v12990_v7 = vpop.f32.mrf.mxu1 }
0x2c1c   :  { %v15316_v11 = vpop.f32.mrf.mxu0  ;;  %v7939_v2 = vpop.f32.mrf.mxu1 }
0x2c1d   :  { %v8021_v15 = vmul.f32 0.35355338, %v7939_v2 }
0x2c1e   :  { %v12995_v36 = vpop.f32.mrf.mxu0  ;;  %v13000_v60 = vpop.f32.mrf.mxu1 }
0x2c1f   :  { %v8023_v51 = vsel %vm388_vm4, %v8021_v15, -inf }
0x2c20   :  { %8024 = vmax.xlane.f32.xlu0 %v8023_v51  ;;  %v8017_v17 = vpop.f32.mrf.mxu0 }
0x2c21   :  { %v8022_v45 = vmul.f32 0.35355338, %v8017_v17 }
0x2c22   :  { %v13005_v20 = vpop.f32.mrf.mxu0 }
0x2c23   :  { %v8026_v10 = vsel %vm388_vm4, %v8022_v45, -inf }
0x2c24   :  { %8027 = vmax.xlane.f32.xlu1 %v8026_v10 }
0x2c35   :  { %8046 = vrot.lane.b32.xlu1 %v15278_v37, %s16133_s28 }
0x2c39   :  { %8201 = vrot.lane.b32.xlu1 %v15250_v48, %s16134_s24 }
0x2c3d   :  { %8279 = vrot.lane.b32.xlu1 %v15255_v19, %s16134_s24 }
0x2c41   :  { %8277 = vrot.lane.b32.xlu1 %v15269_v23, %s16134_s24 }
0x2ca9   :  { %v8025_v47 = vpop.xlane.xlu0 %8024 }
0x2caa   :  { %v8029_v22 = vsub.f32 %v8021_v15, %v8025_v47 }
0x2cac   :  { %v8031_v25 = vmul.f32 1.442695, %v8029_v22 }
0x2cad   :  { %v8028_v26 = vpop.xlane.xlu1 %8027 }
0x2cae   :  { %13554 = vpow2.f32 %v8031_v25  ;;  %v8030_v28 = vsub.f32 %v8022_v45, %v8028_v26 }
0x2cb0   :  { %v8033_v12 = vmul.f32 1.442695, %v8030_v28 }
0x2cb1   :  { %v8047_v61 = vpop.permute.xlu1 %8046 }
0x2cb2   :  { %13556 = vpow2.f32 %v8033_v12  ;;  %13007 = vmatpush3.msra.mxu1 %v8047_v61 }
0x2cb3   :  { %13016 = vmatprep.subr.mxu1 %v13594_v6 }
0x2cb5   :  { %v8202_v63 = vpop.permute.xlu1 %8201 }
0x2cb9   :  { %v8280_v1 = vpop.permute.xlu1 %8279 }
0x2cbb   :  { %v13555_v14 = vpop.eup %13554 }
0x2cbc   :  { %v8035_v57 = vsel %vm388_vm4, %v13555_v14, 0.0 }
0x2cbd   :  { %8036 = vadd.xlane.f32.xlu0 %v8035_v57  ;;  %v8278_v13 = vpop.permute.xlu1 %8277 }
0x2cbf   :  { %v13557_v58 = vpop.eup %13556 }
0x2cc0   :  { %v8038_v24 = vsel %vm388_vm4, %v13557_v58, 0.0 }
0x2cc1   :  { %8039 = vadd.xlane.f32.xlu0 %v8038_v24 }
0x2cd7   :  { %8123 = vrot.lane.b32.xlu0 %v15282_v38, %s16133_s28 }
0x2cdb   :  { %8199 = vrot.lane.b32.xlu0 %v15263_v49, %s16134_s24 }
0x2d46   :  { %v8037_v29 = vpop.xlane.xlu0 %8036 }
0x2d47   :  { %13558 = vrcp.f32 %v8037_v29 }
0x2d4a   :  { %v8040_v32 = vpop.xlane.xlu0 %8039 }
0x2d4b   :  { %13560 = vrcp.f32 %v8040_v32 }
0x2d4e   :  { %v8124_v35 = vpop.permute.xlu0 %8123 }
0x2d4f   :  { %13012 = vmatpush3.msra.mxu0 %v8124_v35 }
0x2d50   :  { %13021 = vmatprep.subr.mxu0 %v13594_v6 }
0x2d52   :  { %v8200_v44 = vpop.permute.xlu0 %8199 }
0x2d54   :  { %v13559_v56 = vpop.eup %13558 }
0x2d55   :  { %v8043_v34 = vmul.f32 %v13559_v56, %v13555_v14 }
0x2d57   :  { %13009 = vmatmul.mubr.msk.f32.vlgmr.msra.gmra.mxu1 %vm388_vm4, %v8043_v34 }
0x2d58   :  { %v13561_v8 = vpop.eup %13560  ;;  %13017 = vmatpush3.xpose.msk.msra.mxu1 %vm388_vm4, %v8202_v63  ;;  %13018 = vmatprep.mubr.msk.f32.mxu1 %vm13596_vm2, %v13594_v6 }
0x2d59   :  { %v8044_v30 = vmul.f32 %v13561_v8, %v13557_v58  ;;  %13026 = vmatprep.subr.mxu1 %v13594_v6 }
0x2d5b   :  { %13014 = vmatmul.mubr.msk.f32.vlgmr.msra.gmra.mxu0 %vm388_vm4, %v8044_v30  ;;  %13019 = vmatmul.mubr.msk.f32.vlgmr.msra.gmra.mxu1 %vm388_vm4, %v8200_v44 }
0x2d5c   :  { %13022 = vmatpush3.xpose.msk.msra.mxu0 %vm388_vm4, %v8280_v1  ;;  %13023 = vmatprep.mubr.msk.f32.mxu0 %vm13596_vm2, %v13594_v6 }
0x2d5d   :  { %13031 = vmatprep.subr.mxu0 %v13594_v6  ;;  %13028 = vmatprep.mubr.msk.f32.mxu1 %vm13596_vm2, %v13594_v6 }
0x2d5f   :  { %13024 = vmatmul.mubr.msk.f32.vlgmr.msra.gmra.mxu0 %vm388_vm4, %v8278_v13 }
0x2d60   :  { %13033 = vmatprep.mubr.msk.f32.mxu0 %vm13596_vm2, %v13594_v6 }
0x2e17   :  { %v15352_v41 = vpop.f32.mrf.mxu1 }
0x2e19   :  { %v13010_v5 = vpop.f32.mrf.mxu1 }
0x2e1b   :  { %v15354_v40 = vpop.f32.mrf.mxu0  ;;  %v8273_v59 = vpop.f32.mrf.mxu1 }
0x2e1c   :  { %v13129_v62 = vpack.i.bf16 %v15354_v40, %v15352_v41  ;;  %v8355_v43 = vmul.f32 0.35355338, %v8273_v59 }
0x2e1d   :  { %v13015_v33 = vpop.f32.mrf.mxu0  ;;  %v13020_v31 = vpop.f32.mrf.mxu1 }
0x2e1e   :  { %v8357_v42 = vsel %vm388_vm4, %v8355_v43, -inf }
0x2e1f   :  { %8358 = vmax.xlane.f32.xlu0 %v8357_v42  ;;  %v8351_v53 = vpop.f32.mrf.mxu0 }
0x2e20   :  { %v8356_v52 = vmul.f32 0.35355338, %v8351_v53 }
0x2e21   :  { %v13025_v54 = vpop.f32.mrf.mxu0 }
0x2e22   :  { %v8360_v4 = vsel %vm388_vm4, %v8356_v52, -inf }
0x2e23   :  { %8361 = vmax.xlane.f32.xlu1 %v8360_v4 }
0x2e34   :  { %8379 = vrot.lane.b32.xlu1 %v15278_v37, %s16134_s24 }
0x2e38   :  { %8533 = vrot.lane.b32.xlu1 %v15250_v48, %s16129_s4 }
0x2e3c   :  { %8611 = vrot.lane.b32.xlu1 %v15255_v19, %s16129_s4 }
0x2e40   :  { %8609 = vrot.lane.b32.xlu1 %v15269_v23, %s16129_s4 }
0x2ea8   :  { %v8359_v46 = vpop.xlane.xlu0 %8358 }
0x2ea9   :  { %v8363_v7 = vsub.f32 %v8355_v43, %v8359_v46 }
0x2eab   :  { %v8365_v2 = vmul.f32 1.442695, %v8363_v7 }
0x2eac   :  { %v8362_v15 = vpop.xlane.xlu1 %8361 }
0x2ead   :  { %13562 = vpow2.f32 %v8365_v2  ;;  %v8364_v36 = vsub.f32 %v8356_v52, %v8362_v15  ;;  %v13303_v2 = vld [vmem:[%s16087_s12 + $0x10] sm:$0xff]  }
0x2eaf   :  { %v8367_v60 = vmul.f32 1.442695, %v8364_v36 }
0x2eb0   :  { %v8380_v51 = vpop.permute.xlu1 %8379 }
0x2eb1   :  { %13564 = vpow2.f32 %v8367_v60  ;;  %13027 = vmatpush3.msra.mxu1 %v8380_v51 }
0x2eb2   :  { %13036 = vmatprep.subr.mxu1 %v13594_v6 }
0x2eb4   :  { %v8534_v47 = vpop.permute.xlu1 %8533 }
0x2eb8   :  { %v8612_v28 = vpop.permute.xlu1 %8611 }
0x2eba   :  { %v13563_v17 = vpop.eup %13562 }
0x2ebb   :  { %v8369_v48 = vsel %vm388_vm4, %v13563_v17, 0.0 }
0x2ebc   :  { %8370 = vadd.xlane.f32.xlu0 %v8369_v48  ;;  %v8610_v61 = vpop.permute.xlu1 %8609 }
0x2ebe   :  { %v13565_v19 = vpop.eup %13564 }
0x2ebf   :  { %v8372_v45 = vsel %vm388_vm4, %v13565_v19, 0.0 }
0x2ec0   :  { %8373 = vadd.xlane.f32.xlu0 %v8372_v45 }
0x2ed6   :  { %8455 = vrot.lane.b32.xlu0 %v15282_v38, %s16134_s24 }
0x2eda   :  { %8531 = vrot.lane.b32.xlu0 %v15263_v49, %s16129_s4 }
0x2f45   :  { %v8371_v23 = vpop.xlane.xlu0 %8370 }
0x2f46   :  { %13566 = vrcp.f32 %v8371_v23 }
0x2f49   :  { %v8374_v20 = vpop.xlane.xlu0 %8373 }
0x2f4a   :  { %13568 = vrcp.f32 %v8374_v20 }
0x2f4d   :  { %v8456_v10 = vpop.permute.xlu0 %8455 }
0x2f4e   :  { %13032 = vmatpush3.msra.mxu0 %v8456_v10 }
0x2f4f   :  { %13041 = vmatprep.subr.mxu0 %v13594_v6 }
0x2f51   :  { %v8532_v12 = vpop.permute.xlu0 %8531 }
0x2f53   :  { %v13567_v22 = vpop.eup %13566 }
0x2f54   :  { %v8377_v25 = vmul.f32 %v13567_v22, %v13563_v17 }
0x2f56   :  { %13029 = vmatmul.mubr.msk.f32.vlgmr.msra.gmra.mxu1 %vm388_vm4, %v8377_v25 }
0x2f57   :  { %v13569_v26 = vpop.eup %13568  ;;  %13037 = vmatpush3.xpose.msk.msra.mxu1 %vm388_vm4, %v8534_v47  ;;  %13038 = vmatprep.mubr.msk.f32.mxu1 %vm13596_vm2, %v13594_v6 }
0x2f58   :  { %v8378_v49 = vmul.f32 %v13569_v26, %v13565_v19  ;;  %13046 = vmatprep.subr.mxu1 %v13594_v6 }
0x2f5a   :  { %13034 = vmatmul.mubr.msk.f32.vlgmr.msra.gmra.mxu0 %vm388_vm4, %v8378_v49  ;;  %13039 = vmatmul.mubr.msk.f32.vlgmr.msra.gmra.mxu1 %vm388_vm4, %v8532_v12 }
0x2f5b   :  { %13042 = vmatpush3.xpose.msk.msra.mxu0 %vm388_vm4, %v8612_v28  ;;  %13043 = vmatprep.mubr.msk.f32.mxu0 %vm13596_vm2, %v13594_v6 }
0x2f5c   :  { %13051 = vmatprep.subr.mxu0 %v13594_v6  ;;  %13048 = vmatprep.mubr.msk.f32.mxu1 %vm13596_vm2, %v13594_v6 }
0x2f5e   :  { %13044 = vmatmul.mubr.msk.f32.vlgmr.msra.gmra.mxu0 %vm388_vm4, %v8610_v61 }
0x2f5f   :  { %13053 = vmatprep.mubr.msk.f32.mxu0 %vm13596_vm2, %v13594_v6 }
0x3016   :  { %v8451_v14 = vpop.f32.mrf.mxu1 }
0x3018   :  { %v13030_v57 = vpop.f32.mrf.mxu1 }
0x301a   :  { %v8527_v58 = vpop.f32.mrf.mxu0  ;;  %v8605_v24 = vpop.f32.mrf.mxu1 }
0x301b   :  { %v8687_v29 = vmul.f32 0.35355338, %v8605_v24  ;;  %v13134_v30 = vpack.i.bf16 %v8527_v58, %v8451_v14 }
0x301c   :  { %v13035_v32 = vpop.f32.mrf.mxu0  ;;  %v13040_v35 = vpop.f32.mrf.mxu1 }
0x301d   :  { %v8689_v63 = vsel %vm388_vm4, %v8687_v29, -inf }
0x301e   :  { %8690 = vmax.xlane.f32.xlu0 %v8689_v63  ;;  %v8683_v56 = vpop.f32.mrf.mxu0 }
0x301f   :  { %v8688_v34 = vmul.f32 0.35355338, %v8683_v56 }
0x3020   :  { %v13045_v8 = vpop.f32.mrf.mxu0 }
0x3021   :  { %v8692_v1 = vsel %vm388_vm4, %v8688_v34, -inf }
0x3022   :  { %8693 = vmax.xlane.f32.xlu1 %v8692_v1 }
0x3033   :  { %8711 = vrot.lane.b32.xlu1 %v15278_v37, %s16129_s4 }
0x3037   :  { %13130 = vrot.lane.b32.xlu1 %v13129_v62, %s16130_s3 }
0x303b   :  { %13135 = vrot.lane.b32.xlu1 %v13134_v30, %s16131_s30 }
0x30a7   :  { %v8691_v44 = vpop.xlane.xlu0 %8690 }
0x30a8   :  { %v8695_v13 = vsub.f32 %v8687_v29, %v8691_v44 }
0x30aa   :  { %v8697_v5 = vmul.f32 1.442695, %v8695_v13  ;;  %v11571_v13 = vld [vmem:[%s16089_s16 + $0x180] sm:$0xff] }
0x30ab   :  { %v8694_v59 = vpop.xlane.xlu1 %8693 }
0x30ac   :  { %13570 = vpow2.f32 %v8697_v5  ;;  %v8696_v43 = vsub.f32 %v8688_v34, %v8694_v59  ;;  %v11572_v5 = vld [vmem:[%s16089_s16 + $0x188] sm:$0xff] }
0x30ae   :  { %v8699_v33 = vmul.f32 1.442695, %v8696_v43  ;;  %v11574_v43 = vld [vmem:[%s16089_s16 + $0x1c8] sm:$0xff] }
0x30af   :  { %v8712_v31 = vpop.permute.xlu1 %8711 }
0x30b0   :  { %13572 = vpow2.f32 %v8699_v33  ;;  %13047 = vmatpush3.msra.mxu1 %v8712_v31  ;;  %v11582_v31 = vcombine.low %v11572_v5, %v11574_v43 }
0x30b1   :  { %13056 = vmatprep.subr.bf16.mxu1 %v13594_v6 }
0x30b3   :  { %v13131_v48 = vpop.permute.xlu1 %13130 }
0x30b4   :  { %v13133_v45 = vunpack.i.h.bf16 %v13131_v48  ;;  %v13132_v23 = vunpack.i.l.bf16 %v13131_v48 }
0x30b6   :  { %v8888_v22 = vsel %vm388_vm4, %v15316_v11, %v13133_v45  ;;  %v8887_v25 = vsel %vm388_vm4, %v15314_v50, %v13132_v23  ;;  %v11562_v11 = vld [vmem:[%s16088_s13 + $0x1] ss:$0 sm:$0xff] }
0x30b7   :  { %v13136_v19 = vpop.permute.xlu1 %13135 }
0x30b8   :  { %v13138_v20 = vunpack.i.h.bf16 %v13136_v19  ;;  %v13137_v10 = vunpack.i.l.bf16 %v13136_v19 }
0x30b9   :  { %v13571_v37 = vpop.eup %13570 }
0x30ba   :  { %v8701_v42 = vsel %vm388_vm4, %v13571_v37, 0.0  ;;  %v8889_v49 = vsel %vm1784_vm5, %v8887_v25, %v13137_v10  ;;  %v8890_v12 = vsel %vm1784_vm5, %v8888_v22, %v13138_v20  ;;  %v8998_v25 = vrot.slane %v15215_v16, %v14339_v18  ;;  %v13307_v16 = vld [vmem:[%s16090_s18 + $0x4b8] sm:$0xff]  }
0x30bb   :  { %8702 = vadd.xlane.f32.xlu0 %v8701_v42  ;;  %v11567_v42 = vld [vmem:[%s16089_s16 + $0x100] sm:$0xff] }
0x30bd   :  { %v13573_v41 = vpop.eup %13572 }
0x30be   :  { %v8704_v40 = vsel %vm388_vm4, %v13573_v41, 0.0 }
0x30bf   :  { %8705 = vadd.xlane.f32.xlu0 %v8704_v40  ;;  %v11568_v40 = vld [vmem:[%s16089_s16 + $0x108] sm:$0xff] }
0x30d5   :  { %8787 = vrot.lane.b32.xlu0 %v15282_v38, %s16129_s4  ;;  %v13302_v38 = vld [vmem:[%s16087_s12 + $0x18] sm:$0xff]  }
0x3144   :  { %v8703_v62 = vpop.xlane.xlu0 %8702 }
0x3145   :  { %13574 = vrcp.f32 %v8703_v62 }
0x3148   :  { %v8706_v53 = vpop.xlane.xlu0 %8705 }
0x3149   :  { %13576 = vrcp.f32 %v8706_v53  ;;  %v11570_v53 = vld [vmem:[%s16089_s16 + $0x148] sm:$0xff] }
0x314c   :  { %v8788_v52 = vpop.permute.xlu0 %8787 }
0x314d   :  { %13052 = vmatpush3.msra.mxu0 %v8788_v52 }
0x3152   :  { %v13575_v54 = vpop.eup %13574 }
0x3153   :  { %v8709_v4 = vmul.f32 %v13575_v54, %v13571_v37  ;;  %v11583_v37 = vcombine.high %v11572_v5, %v11574_v43  ;;  %v11578_v54 = vcombine.low %v11568_v40, %v11570_v53  ;;  %v13321_v5 = vld [vmem:[%s16090_s18 + $0x4d8] sm:$0xff]  }
0x3154   :  { %v13323_v43 = vld [vmem:[%s16090_s18 + $0x498] sm:$0xff]  }
0x3155   :  { %13049 = vmatmul.mubr.msk.f32.vlgmr.msra.gmra.mxu1 %vm388_vm4, %v8709_v4  ;;  %v11579_v4 = vcombine.high %v11568_v40, %v11570_v53  ;;  %v13329_v40 = vld [vmem:[%s16090_s18 + $0x4c8] sm:$0xff]  }
0x3156   :  { %v13577_v46 = vpop.eup %13576  ;;  %13060 = vmatprep.mubr.msk.bf16.mxu1 %vm13596_vm2, %v13594_v6  ;;  %13057 = vmatpush3.bf16.msra.mxu1 %v13302_v38  ;;  %v13331_v53 = vld [vmem:[%s16090_s18 + $0x488] sm:$0xff]  }
0x3157   :  { %v8710_v7 = vmul.f32 %v13577_v46, %v13573_v41  ;;  %13058 = vmatprep.subr.bf16.mxu1 %v13594_v6  ;;  %v11569_v41 = vld [vmem:[%s16089_s16 + $0x140] sm:$0xff]  ;;  %v13304_v46 = vld [vmem:[%s16090_s18 + $0x478] sm:$0xff]  }
0x3158   :  { %v11577_v62 = vcombine.high %v11567_v42, %v11569_v41  ;;  %v11576_v52 = vcombine.low %v11567_v42, %v11569_v41  ;;  %v13327_v42 = vld [vmem:[%s16090_s18 + $0x490] sm:$0xff]   ;;  %v13328_v41 = vld [vmem:[%s16090_s18 + $0x448] sm:$0xff]  }
0x3159   :  { %13054 = vmatmul.mubr.msk.f32.vlgmr.msra.gmra.mxu0 %vm388_vm4, %v8710_v7  ;;  %v13305_v7 = vld [vmem:[%s16090_s18 + $0x4f8] sm:$0xff]  }
0x315a   :  { %9117 = vmatprep.mubr.bf16.mxu0 %v13593_v0  ;;  %13059 = vmatpush3.bf16.msra.mxu1 %v13303_v2 }
0x315b   :  { %9140 = vmatprep.subr.bf16.mxu1 %v11583_v37  ;;  %v13326_v37 = vld [vmem:[%s16090_s18 + $0x410] sm:$0xff]  }
0x3215   :  { %v8783_v15 = vpop.f32.mrf.mxu1 }
0x3217   :  { %v13050_v36 = vpop.f32.mrf.mxu1 }
0x3219   :  { %v8859_v60 = vpop.f32.mrf.mxu0 }
0x321a   :  { %v13139_v51 = vpack.i.bf16 %v8859_v60, %v8783_v15 }
0x321b   :  { %v13055_v17 = vpop.f32.mrf.mxu0 }
0x321c   :  { %13140 = vrot.lane.b32.xlu0 %v13139_v51, %s16132_s29 }
0x328e   :  { %v13141_v47 = vpop.permute.xlu0 %13140 }
0x328f   :  { %v13143_v26 = vunpack.i.h.bf16 %v13141_v47  ;;  %v13142_v28 = vunpack.i.l.bf16 %v13141_v47 }
0x3291   :  { %v8892_v61 = vsel %vm1787_vm6, %v8890_v12, %v13143_v26  ;;  %v8891_v14 = vsel %vm1787_vm6, %v8889_v49, %v13142_v28 }
0x3292   :  { %v8893_v57 = vpack.c.bf16 %v8892_v61, %v8891_v14  ;;  %v9004_v61 = vrot.slane %v15222_v55, %v14339_v18  ;;  %v13308_v55 = vld [vmem:[%s16090_s18 + $0x470] sm:$0xff]  }
0x3294   :  { %13061 = vmatmul.mubr.msk.bf16.vlgmr.msra.gmra.mxu1 %vm211_vm3, %v8893_v57 }
0x3295   :  { %9160 = vmatprep.mubr.bf16.mxu1 %v13593_v0  ;;  %9141 = vmatpush1.bf16.msra.mxu1 %v11582_v31  ;;  %v13325_v31 = vld [vmem:[%s16090_s18 + $0x4d0] sm:$0xff]  }
0x3296   :  { %9142 = vmatprep.subr.bf16.mxu1 %v11579_v4  ;;  %v13334_v4 = vld [vmem:[%s16090_s18 + $0x400] sm:$0xff]  }
0x3299   :  { %9143 = vmatpush1.bf16.msra.mxu1 %v11578_v54  ;;  %v13333_v54 = vld [vmem:[%s16090_s18 + $0x4c0] sm:$0xff]  }
0x329a   :  { %12424 = vmatprep.subr.bf16.mxu1 %v13305_v7  ;;  %v11687_v7 = vld [vmem:[%s16089_s16 + $0x190] sm:$0xff] }
0x3354   :  { %v8956_v50 = vpop.f32.mrf.mxu1 }
0x3355   :  { %v8957_v58 = vadd.f32 %v11562_v11, %v8956_v50 }
0x3356   :  { %v13062_v24 = vpop.f32.mrf.mxu1 }
0x3357   :  { %v15433_v29 = vadd.f32 %v8957_v58, %v15226_v39  ;;  %v13306_v24 = vld [vmem:[%s16090_s18 + $0x438] sm:$0xff]  }
0x3358   :  { %v8959_v32 = vpop.f32.mrf.mxu1 }
0x3359   :  { %v8960_v35 = vadd.f32 %v11562_v11, %v8959_v32  ;;  %v8965_v63 = vsel %vm211_vm3, %v15433_v29, 0.0  ;;  %v8973_v30 = vmul.f32 %v15433_v29, %v15433_v29  ;;  %v13309_v32 = vld [vmem:[%s16090_s18 + $0x4f0] sm:$0xff]  }
0x335a   :  { %8966 = vadd.xlane.f32.xlu1 %v8965_v63  ;;  %v13063_v56 = vpop.f32.mrf.mxu1  ;;  %v13311_v63 = vld [vmem:[%s16090_s18 + $0x4b0] sm:$0xff]  }
0x335b   :  { %v8964_v34 = vadd.f32 %v8960_v35, %v15228_v9  ;;  %v8975_v39 = vsel %vm211_vm3, %v8973_v30, 0.0  ;;  %v11573_v9 = vld [vmem:[%s16089_s16 + $0x1c0] sm:$0xff]  ;;  %v13310_v35 = vld [vmem:[%s16090_s18 + $0x430] sm:$0xff]   ;;  %v13312_v56 = vld [vmem:[%s16090_s18 + $0x468] sm:$0xff]  }
0x335c   :  { %v11581_v59 = vcombine.high %v11571_v13, %v11573_v9  ;;  %v11580_v33 = vcombine.low %v11571_v13, %v11573_v9  ;;  %v13316_v30 = vld [vmem:[%s16090_s18 + $0x460] sm:$0xff]   ;;  %v13320_v9 = vld [vmem:[%s16090_s18 + $0x458] sm:$0xff]  }
0x335d   :  { %v8968_v8 = vsel %vm211_vm3, %v8964_v34, 0.0  ;;  %v8974_v1 = vmul.f32 %v8964_v34, %v8964_v34  ;;  %v13319_v13 = vld [vmem:[%s16090_s18 + $0x4a0] sm:$0xff]  }
0x335e   :  { %8969 = vadd.xlane.f32.xlu0 %v8968_v8  ;;  %9097 = vmatprep.subr.bf16.mxu0 %v11581_v59  ;;  %v13314_v8 = vld [vmem:[%s16090_s18 + $0x428] sm:$0xff]   ;;  %v13322_v59 = vld [vmem:[%s16090_s18 + $0x418] sm:$0xff]  }
0x335f   :  { %v8978_v44 = vsel %vm211_vm3, %v8974_v1, 0.0  ;;  %9098 = vmatpush1.bf16.msra.mxu0 %v11580_v33  ;;  %v13315_v1 = vld [vmem:[%s16090_s18 + $0x4a8] sm:$0xff]   ;;  %v13324_v33 = vld [vmem:[%s16090_s18 + $0x450] sm:$0xff]  }
0x3360   :  { %8979 = vadd.xlane.f32.xlu1 %v8978_v44  ;;  %9099 = vmatprep.subr.bf16.mxu0 %v11577_v62  ;;  %v13317_v44 = vld [vmem:[%s16090_s18 + $0x4e0] sm:$0xff]   ;;  %v13330_v62 = vld [vmem:[%s16090_s18 + $0x408] sm:$0xff]  }
0x3362   :  { %8976 = vadd.xlane.f32.xlu0 %v8975_v39  ;;  %v13318_v39 = vld [vmem:[%s16090_s18 + $0x420] sm:$0xff]  }
0x3363   :  { %9100 = vmatpush1.bf16.msra.mxu0 %v11576_v52  ;;  %v13332_v52 = vld [vmem:[%s16090_s18 + $0x440] sm:$0xff]  }
0x3364   :  { %12402 = vmatprep.subr.bf16.mxu0 %v13304_v46  ;;  %v13335_v46 = vld [vmem:[%s16090_s18 + $0x480] sm:$0xff]  }
0x33e3   :  { %v8967_v38 = vpop.xlane.xlu1 %8966 }
0x33e4   :  { %v8971_v15 = vmul.f32 0.03125, %v8967_v38  ;;  %v11689_v38 = vld [vmem:[%s16089_s16 + $0x1d0] sm:$0xff] }
0x33e6   :  { %v8983_v19 = vmul.f32 %v8971_v15, %v8971_v15  ;;  %v8987_v28 = vsub.f32 %v15433_v29, %v8971_v15  ;;  %v11697_v15 = vcombine.high %v11687_v7, %v11689_v38 }
0x33e7   :  { %v8970_v2 = vpop.xlane.xlu0 %8969 }
0x33e8   :  { %v8972_v36 = vmul.f32 0.03125, %v8970_v2  ;;  %v11688_v2 = vld [vmem:[%s16089_s16 + $0x198] sm:$0xff] }
0x33e9   :  { %v8980_v60 = vpop.xlane.xlu1 %8979 }
0x33ea   :  { %v8984_v51 = vmul.f32 %v8972_v36, %v8972_v36  ;;  %v8982_v17 = vmul.f32 0.03125, %v8980_v60  ;;  %v8988_v22 = vsub.f32 %v8964_v34, %v8972_v36  ;;  %v13313_v34 = vld [vmem:[%s16090_s18 + $0x4e8] sm:$0xff]   ;;  %v11690_v36 = vld [vmem:[%s16089_s16 + $0x1d8] sm:$0xff]  ;;  %v11696_v60 = vcombine.low %v11687_v7, %v11689_v38  ;;  %v13342_v7 = vld [vmem:[%s16090_s18 + $0x530] sm:$0xff]  }
0x33eb   :  { %v8977_v48 = vpop.xlane.xlu0 %8976  ;;  %v13343_v38 = vld [vmem:[%s16090_s18 + $0x5b0] sm:$0xff]  }
0x33ec   :  { %v8986_v45 = vsub.f32 %v8982_v17, %v8984_v51  ;;  %v8981_v23 = vmul.f32 0.03125, %v8977_v48  ;;  %v11698_v51 = vcombine.low %v11688_v2, %v11690_v36  ;;  %v11699_v17 = vcombine.high %v11688_v2, %v11690_v36  ;;  %v11575_v48 = vld [vmem:[%s16091_s17 + $0x10] sm:$0xf]  ;;  %v13344_v2 = vld [vmem:[%s16090_s18 + $0x568] sm:$0xff]  }
0x33ed   :  { %v13346_v36 = vld [vmem:[%s16090_s18 + $0x528] sm:$0xff]  }
0x33ee   :  { %v8990_v20 = vadd.f32 1e-05, %v8986_v45  ;;  %v8985_v10 = vsub.f32 %v8981_v23, %v8983_v19  ;;  %v9029_v23 = vrot.slane %v11575_v48, %v14339_v18 }
0x33f0   :  { %13578 = vrsqrt.f32 %v8990_v20  ;;  %v8989_v47 = vadd.f32 1e-05, %v8985_v10  ;;  %v9037_v20 = vrot.slane %v11575_v48, %v14465_v27  ;;  %v9025_v10 = vrot.slane %v11575_v48, %v13870_v3 }
0x33f2   :  { %13580 = vrsqrt.f32 %v8989_v47  ;;  %v9033_v47 = vrot.slane %v11575_v48, %v14468_v21  ;;  %v13350_v48 = vld [vmem:[%s16090_s18 + $0x520] sm:$0xff]  }
0x33fd   :  { %v13579_v26 = vpop.eup %13578 }
0x33fe   :  { %v8994_v49 = vmul.f32 %v13579_v26, %v8988_v22 }
0x33ff   :  { %v13581_v12 = vpop.eup %13580 }
0x3400   :  { %v9000_v14 = vmul.f32 %v8998_v25, %v8994_v49  ;;  %v8993_v57 = vmul.f32 %v13581_v12, %v8987_v28 }
0x3402   :  { %v8999_v11 = vmul.f32 %v8998_v25, %v8993_v57  ;;  %v15478_v50 = vadd.f32 %v9004_v61, %v9000_v14 }
0x3404   :  { %v15480_v58 = vadd.f32 %v9004_v61, %v8999_v11 }
0x3406   :  { %v15490_v29 = vpack.c.bf16 %v15478_v50, %v15480_v58 }
0x3408   :  { %11584 = vmatmul.mubr.msk.bf16.vlgmr.msra.gmra.mxu0 %vm211_vm3, %v15490_v29  ;;  %11585 = vmatmul.mubr.msk.bf16.vlgmr.msra.gmra.mxu1 %vm211_vm3, %v15490_v29 }
0x3409   :  { %12403 = vmatpush3.bf16.msra.mxu0 %v13306_v24  ;;  %12425 = vmatpush3.bf16.msra.mxu1 %v13307_v16 }
0x340a   :  { %12404 = vmatprep.subr.bf16.mxu0 %v13308_v55  ;;  %12426 = vmatprep.subr.bf16.mxu1 %v13309_v32 }
0x340d   :  { %12405 = vmatpush3.bf16.msra.mxu0 %v13310_v35  ;;  %12427 = vmatpush3.bf16.msra.mxu1 %v13311_v63 }
0x340e   :  { %12406 = vmatprep.subr.bf16.mxu0 %v13312_v56  ;;  %12428 = vmatprep.subr.bf16.mxu1 %v13313_v34  ;;  %v11683_v56 = vld [vmem:[%s16089_s16 + $0x110] sm:$0xff] }
0x340f   :  { %v11685_v34 = vld [vmem:[%s16089_s16 + $0x150] sm:$0xff] }
0x3411   :  { %12407 = vmatpush3.bf16.msra.mxu0 %v13314_v8  ;;  %12429 = vmatpush3.bf16.msra.mxu1 %v13315_v1 }
0x3412   :  { %12408 = vmatprep.subr.bf16.mxu0 %v13316_v30  ;;  %12430 = vmatprep.subr.bf16.mxu1 %v13317_v44 }
0x3415   :  { %12409 = vmatpush3.bf16.msra.mxu0 %v13318_v39  ;;  %12431 = vmatpush3.bf16.msra.mxu1 %v13319_v13  ;;  %v11684_v39 = vld [vmem:[%s16089_s16 + $0x118] sm:$0xff] }
0x3416   :  { %12410 = vmatprep.subr.bf16.mxu0 %v13320_v9  ;;  %12432 = vmatprep.subr.bf16.mxu1 %v13321_v5  ;;  %v11686_v13 = vld [vmem:[%s16089_s16 + $0x158] sm:$0xff] }
0x3419   :  { %12411 = vmatpush3.bf16.msra.mxu0 %v13322_v59  ;;  %12433 = vmatpush3.bf16.msra.mxu1 %v13323_v43 }
0x341a   :  { %12412 = vmatprep.subr.bf16.mxu0 %v13324_v33  ;;  %12434 = vmatprep.subr.bf16.mxu1 %v13325_v31 }
0x341d   :  { %12413 = vmatpush3.bf16.msra.mxu0 %v13326_v37  ;;  %12435 = vmatpush3.bf16.msra.mxu1 %v13327_v42  ;;  %v11693_v37 = vcombine.high %v11683_v56, %v11685_v34  ;;  %v11695_v42 = vcombine.high %v11684_v39, %v11686_v13 }
0x341e   :  { %12414 = vmatprep.subr.bf16.mxu0 %v13328_v41  ;;  %12436 = vmatprep.subr.bf16.mxu1 %v13329_v40  ;;  %v11692_v41 = vcombine.low %v11683_v56, %v11685_v34  ;;  %v11694_v40 = vcombine.low %v11684_v39, %v11686_v13 }
0x3421   :  { %12415 = vmatpush3.bf16.msra.mxu0 %v13330_v62  ;;  %12437 = vmatpush3.bf16.msra.mxu1 %v13331_v53  ;;  %v13336_v62 = vld [vmem:[%s16090_s18 + $0x578] sm:$0xff]  }
0x3422   :  { %12416 = vmatprep.subr.bf16.mxu0 %v13332_v52  ;;  %12438 = vmatprep.subr.bf16.mxu1 %v13333_v54  ;;  %v13337_v53 = vld [vmem:[%s16090_s18 + $0x5f8] sm:$0xff]  }
0x3423   :  { %v13338_v52 = vld [vmem:[%s16090_s18 + $0x538] sm:$0xff]  }
0x3424   :  { %v13339_v54 = vld [vmem:[%s16090_s18 + $0x5b8] sm:$0xff]  }
0x3425   :  { %12417 = vmatpush3.bf16.msra.mxu0 %v13334_v4  ;;  %12439 = vmatpush3.bf16.msra.mxu1 %v13335_v46  ;;  %v13340_v4 = vld [vmem:[%s16090_s18 + $0x570] sm:$0xff]  }
0x3426   :  { %9612 = vmatprep.subr.bf16.mxu0 %v11697_v15  ;;  %9655 = vmatprep.subr.bf16.mxu1 %v11699_v17  ;;  %v13341_v46 = vld [vmem:[%s16090_s18 + $0x5f0] sm:$0xff]   ;;  %v13345_v15 = vld [vmem:[%s16090_s18 + $0x5e8] sm:$0xff]   ;;  %v13349_v17 = vld [vmem:[%s16090_s18 + $0x5e0] sm:$0xff]  }
0x34c8   :  { %v9119_v19 = vpop.f32.mrf.mxu0  ;;  %v9162_v45 = vpop.f32.mrf.mxu1 }
0x34c9   :  { %v9120_v57 = vadd.f32 %v9119_v19, %v9025_v10  ;;  %v9163_v11 = vadd.f32 %v9162_v45, %v9033_v47  ;;  %v13351_v19 = vld [vmem:[%s16090_s18 + $0x5a0] sm:$0xff]   ;;  %v13352_v45 = vld [vmem:[%s16090_s18 + $0x558] sm:$0xff]  }
0x34ca   :  { %v9121_v22 = vpop.f32.mrf.mxu0  ;;  %v9164_v25 = vpop.f32.mrf.mxu1 }
0x34cb   :  { %v9122_v49 = vadd.f32 %v9121_v22, %v9029_v23  ;;  %v9165_v12 = vadd.f32 %v9164_v25, %v9037_v20  ;;  %v9171_v9 = vmax.f32 %v9120_v57, 0.0  ;;  %v9173_v5 = vmax.f32 %v9163_v11, 0.0  ;;  %v13357_v22 = vld [vmem:[%s16090_s18 + $0x5d0] sm:$0xff]   ;;  %v13365_v57 = vld [vmem:[%s16090_s18 + $0x5c0] sm:$0xff]  }
0x34cc   :  { %v9123_v26 = vpop.f32.mrf.mxu0  ;;  %v9166_v28 = vpop.f32.mrf.mxu1  ;;  %v13358_v25 = vld [vmem:[%s16090_s18 + $0x510] sm:$0xff]   ;;  %v13366_v11 = vld [vmem:[%s16090_s18 + $0x500] sm:$0xff]  }
0x34cd   :  { %v9124_v61 = vadd.f32 %v9123_v26, %v9025_v10  ;;  %v9167_v14 = vadd.f32 %v9166_v28, %v9033_v47  ;;  %v9172_v8 = vmax.f32 %v9122_v49, 0.0  ;;  %v9174_v1 = vmax.f32 %v9165_v12, 0.0  ;;  %v13355_v10 = vld [vmem:[%s16090_s18 + $0x598] sm:$0xff]   ;;  %v13356_v47 = vld [vmem:[%s16090_s18 + $0x550] sm:$0xff]   ;;  %v13360_v28 = vld [vmem:[%s16090_s18 + $0x548] sm:$0xff]  }
0x34ce   :  { %v9125_v24 = vpop.f32.mrf.mxu0  ;;  %v9168_v16 = vpop.f32.mrf.mxu1  ;;  %v13359_v26 = vld [vmem:[%s16090_s18 + $0x590] sm:$0xff]   ;;  %v13361_v49 = vld [vmem:[%s16090_s18 + $0x5c8] sm:$0xff]  }
0x34cf   :  { %v9126_v55 = vadd.f32 %v9125_v24, %v9029_v23  ;;  %v9169_v32 = vadd.f32 %v9168_v16, %v9037_v20  ;;  %v9175_v35 = vmax.f32 %v9124_v61, 0.0  ;;  %v9177_v63 = vmax.f32 %v9167_v14, 0.0  ;;  %v13353_v23 = vld [vmem:[%s16090_s18 + $0x5d8] sm:$0xff]   ;;  %v13362_v12 = vld [vmem:[%s16090_s18 + $0x508] sm:$0xff]   ;;  %v13364_v14 = vld [vmem:[%s16090_s18 + $0x540] sm:$0xff]  }
0x34d0   :  { %v13354_v20 = vld [vmem:[%s16090_s18 + $0x518] sm:$0xff]   ;;  %v13363_v61 = vld [vmem:[%s16090_s18 + $0x588] sm:$0xff]   ;;  %v13367_v24 = vld [vmem:[%s16090_s18 + $0x580] sm:$0xff]  }
0x34d1   :  { %v9176_v30 = vmax.f32 %v9126_v55, 0.0  ;;  %v9178_v44 = vmax.f32 %v9169_v32, 0.0  ;;  %v9179_v33 = vpack.c.bf16 %v9175_v35, %v9171_v9  ;;  %v9181_v31 = vpack.c.bf16 %v9177_v63, %v9173_v5  ;;  %v15716_v16 = vld [vmem:[%s16089_s16 + $0x1a0] sm:$0xff]  ;;  %v15726_v32 = vld [vmem:[%s16089_s16 + $0x1a8] sm:$0xff] }
0x34d2   :  { %v15721_v55 = vld [vmem:[%s16089_s16 + $0x1e0] sm:$0xff]  ;;  %v15733_v63 = vld [vmem:[%s16089_s16 + $0x1e8] sm:$0xff] }
0x34d3   :  { %v9180_v59 = vpack.c.bf16 %v9176_v30, %v9172_v8  ;;  %v9182_v43 = vpack.c.bf16 %v9178_v44, %v9174_v1  ;;  %v11812_v35 = vcombine.high %v15716_v16, %v15721_v55  ;;  %v11811_v56 = vcombine.low %v15716_v16, %v15721_v55 }
0x34d4   :  { %v11813_v34 = vcombine.low %v15726_v32, %v15733_v63  ;;  %v11814_v8 = vcombine.high %v15726_v32, %v15733_v63 }
0x34d5   :  { %9472 = vmatprep.mubr.bf16.mxu0 %v9180_v59  ;;  %9513 = vmatprep.mubr.bf16.mxu1 %v9182_v43 }
0x34d6   :  { %9473 = vmatmul.mubr.bf16.vlgmr.msra.gmra.mxu0 %v9179_v33  ;;  %9514 = vmatmul.mubr.bf16.vlgmr.msra.gmra.mxu1 %v9181_v31 }
0x34d7   :  { %9613 = vmatpush1.bf16.msra.mxu0 %v11696_v60  ;;  %9656 = vmatpush1.bf16.msra.mxu1 %v11698_v51  ;;  %v13347_v60 = vld [vmem:[%s16090_s18 + $0x5a8] sm:$0xff]   ;;  %v13348_v51 = vld [vmem:[%s16090_s18 + $0x560] sm:$0xff]  }
0x34d8   :  { %9614 = vmatprep.subr.bf16.mxu0 %v11693_v37  ;;  %9657 = vmatprep.subr.bf16.mxu1 %v11695_v42 }
0x34d9   :  { %9632 = vmatprep.mubr.bf16.mxu0 %v13593_v0  ;;  %9675 = vmatprep.mubr.bf16.mxu1 %v13593_v0 }
0x34db   :  { %9615 = vmatpush1.bf16.msra.mxu0 %v11692_v41  ;;  %9658 = vmatpush1.bf16.msra.mxu1 %v11694_v40  ;;  %v11691_v41 = vld [vmem:[%s16091_s17 + $0x14] sm:$0xf] }
0x34dc   :  { %12446 = vmatprep.subr.bf16.mxu0 %v13336_v62  ;;  %12468 = vmatprep.subr.bf16.mxu1 %v13337_v53 }
0x34de   :  { %11700 = vmatmul.mubr.msk.bf16.vlgmr.msra.gmra.mxu0 %vm211_vm3, %v15490_v29  ;;  %11701 = vmatmul.mubr.msk.bf16.vlgmr.msra.gmra.mxu1 %vm211_vm3, %v15490_v29 }
0x34df   :  { %12447 = vmatpush3.bf16.msra.mxu0 %v13338_v52  ;;  %12469 = vmatpush3.bf16.msra.mxu1 %v13339_v54  ;;  %v9547_v52 = vrot.slane %v11691_v41, %v14339_v18  ;;  %v9555_v54 = vrot.slane %v11691_v41, %v14465_v27 }
0x34e0   :  { %12448 = vmatprep.subr.bf16.mxu0 %v13340_v4  ;;  %12470 = vmatprep.subr.bf16.mxu1 %v13341_v46  ;;  %v9543_v4 = vrot.slane %v11691_v41, %v13870_v3  ;;  %v9551_v46 = vrot.slane %v11691_v41, %v14468_v21  ;;  %v13380_v41 = vld [vmem:[%s16090_s18 + $0x660] sm:$0xff]  }
0x34e3   :  { %12449 = vmatpush3.bf16.msra.mxu0 %v13342_v7  ;;  %12471 = vmatpush3.bf16.msra.mxu1 %v13343_v38 }
0x34e4   :  { %12450 = vmatprep.subr.bf16.mxu0 %v13344_v2  ;;  %12472 = vmatprep.subr.bf16.mxu1 %v13345_v15 }
0x34e7   :  { %12451 = vmatpush3.bf16.msra.mxu0 %v13346_v36  ;;  %12473 = vmatpush3.bf16.msra.mxu1 %v13347_v60 }
0x34e8   :  { %12452 = vmatprep.subr.bf16.mxu0 %v13348_v51  ;;  %12474 = vmatprep.subr.bf16.mxu1 %v13349_v17 }
0x34eb   :  { %12453 = vmatpush3.bf16.msra.mxu0 %v13350_v48  ;;  %12475 = vmatpush3.bf16.msra.mxu1 %v13351_v19 }
0x34ec   :  { %12454 = vmatprep.subr.bf16.mxu0 %v13352_v45  ;;  %12476 = vmatprep.subr.bf16.mxu1 %v13353_v23 }
0x34ef   :  { %12455 = vmatpush3.bf16.msra.mxu0 %v13354_v20  ;;  %12477 = vmatpush3.bf16.msra.mxu1 %v13355_v10 }
0x34f0   :  { %12456 = vmatprep.subr.bf16.mxu0 %v13356_v47  ;;  %12478 = vmatprep.subr.bf16.mxu1 %v13357_v22 }
0x34f3   :  { %12457 = vmatpush3.bf16.msra.mxu0 %v13358_v25  ;;  %12479 = vmatpush3.bf16.msra.mxu1 %v13359_v26  ;;  %v11798_v25 = vld [vmem:[%s16089_s16 + $0x120] sm:$0xff] }
0x34f4   :  { %12458 = vmatprep.subr.bf16.mxu0 %v13360_v28  ;;  %12480 = vmatprep.subr.bf16.mxu1 %v13361_v49  ;;  %v11800_v26 = vld [vmem:[%s16089_s16 + $0x160] sm:$0xff] }
0x34f5   :  { %v11808_v63 = vcombine.high %v11798_v25, %v11800_v26 }
0x34f7   :  { %12459 = vmatpush3.bf16.msra.mxu0 %v13362_v12  ;;  %12481 = vmatpush3.bf16.msra.mxu1 %v13363_v61 }
0x34f8   :  { %12460 = vmatprep.subr.bf16.mxu0 %v13364_v14  ;;  %12482 = vmatprep.subr.bf16.mxu1 %v13365_v57  ;;  %v11799_v14 = vld [vmem:[%s16089_s16 + $0x128] sm:$0xff] }
0x34f9   :  { %v11801_v57 = vld [vmem:[%s16089_s16 + $0x168] sm:$0xff] }
0x34fb   :  { %12461 = vmatpush3.bf16.msra.mxu0 %v13366_v11  ;;  %12483 = vmatpush3.bf16.msra.mxu1 %v13367_v24 }
0x34fc   :  { %10120 = vmatprep.subr.bf16.mxu0 %v11812_v35  ;;  %10163 = vmatprep.subr.bf16.mxu1 %v11814_v8  ;;  %v11810_v8 = vcombine.high %v11799_v14, %v11801_v57 }
0x3596   :  { %v12418_v1 = vpop.f32.mrf.mxu0  ;;  %v12440_v30 = vpop.f32.mrf.mxu1 }
0x3598   :  { %v12419_v44 = vpop.f32.mrf.mxu0  ;;  %v12441_v39 = vpop.f32.mrf.mxu1 }
0x3599   :  { %v12420_v13 = vadd.f32 %v12419_v44, %v12418_v1  ;;  %v12442_v9 = vadd.f32 %v12441_v39, %v12440_v30  ;;  %v11807_v1 = vcombine.low %v11798_v25, %v11800_v26  ;;  %v11809_v30 = vcombine.low %v11799_v14, %v11801_v57  ;;  %v13368_v44 = vld [vmem:[%s16090_s18 + $0x678] sm:$0xff]   ;;  %v11682_v57 = vld [vmem:[%s16092_s19 + $0x1] ss:$0 sm:$0xff] }
0x359a   :  { %v12421_v5 = vpop.f32.mrf.mxu0  ;;  %v12443_v59 = vpop.f32.mrf.mxu1  ;;  %v13369_v39 = vld [vmem:[%s16090_s18 + $0x6f8] sm:$0xff]  }
0x359b   :  { %v15741_v43 = vadd.f32 %v12442_v9, %v12420_v13  ;;  %v13372_v13 = vld [vmem:[%s16090_s18 + $0x670] sm:$0xff]   ;;  %v15886_v26 = vld [vmem:[%s16089_s16 + $0x1f8] sm:$0xff] }
0x359c   :  { %v12422_v33 = vpop.f32.mrf.mxu0  ;;  %v12444_v31 = vpop.f32.mrf.mxu1  ;;  %v13373_v9 = vld [vmem:[%s16090_s18 + $0x6f0] sm:$0xff]  }
0x359d   :  { %v12423_v37 = vadd.f32 %v12422_v33, %v12421_v5  ;;  %v12445_v42 = vadd.f32 %v12444_v31, %v12443_v59  ;;  %v13374_v5 = vld [vmem:[%s16090_s18 + $0x630] sm:$0xff]   ;;  %v13376_v33 = vld [vmem:[%s16090_s18 + $0x668] sm:$0xff]  }
0x359e   :  { %v9634_v40 = vpop.f32.mrf.mxu0  ;;  %v9677_v62 = vpop.f32.mrf.mxu1  ;;  %v13375_v59 = vld [vmem:[%s16090_s18 + $0x6b0] sm:$0xff]   ;;  %v13377_v31 = vld [vmem:[%s16090_s18 + $0x6e8] sm:$0xff]  }
0x359f   :  { %v15746_v53 = vadd.f32 %v12445_v42, %v12423_v37  ;;  %v9635_v48 = vadd.f32 %v9634_v40, %v9543_v4  ;;  %v9678_v19 = vadd.f32 %v9677_v62, %v9551_v46  ;;  %v13378_v37 = vld [vmem:[%s16090_s18 + $0x628] sm:$0xff]   ;;  %v13381_v40 = vld [vmem:[%s16090_s18 + $0x6e0] sm:$0xff]  }
0x35a0   :  { %v9636_v7 = vpop.f32.mrf.mxu0  ;;  %v9679_v38 = vpop.f32.mrf.mxu1  ;;  %v13379_v42 = vld [vmem:[%s16090_s18 + $0x6a8] sm:$0xff]   ;;  %v13382_v62 = vld [vmem:[%s16090_s18 + $0x620] sm:$0xff]  }
0x35a1   :  { %v9637_v36 = vadd.f32 %v9636_v7, %v9547_v52  ;;  %v9680_v60 = vadd.f32 %v9679_v38, %v9555_v54  ;;  %v9686_v11 = vmax.f32 %v9635_v48, 0.0  ;;  %v9688_v24 = vmax.f32 %v9678_v19, 0.0  ;;  %v13387_v7 = vld [vmem:[%s16090_s18 + $0x698] sm:$0xff]   ;;  %v13388_v38 = vld [vmem:[%s16090_s18 + $0x650] sm:$0xff]   ;;  %v13395_v48 = vld [vmem:[%s16090_s18 + $0x688] sm:$0xff]  }
0x35a2   :  { %v9638_v2 = vpop.f32.mrf.mxu0  ;;  %v9681_v15 = vpop.f32.mrf.mxu1  ;;  %v13396_v19 = vld [vmem:[%s16090_s18 + $0x640] sm:$0xff]  }
0x35a3   :  { %v9639_v51 = vadd.f32 %v9638_v2, %v9543_v4  ;;  %v9682_v17 = vadd.f32 %v9681_v15, %v9551_v46  ;;  %v9687_v28 = vmax.f32 %v9637_v36, 0.0  ;;  %v9689_v49 = vmax.f32 %v9680_v60, 0.0  ;;  %v13385_v4 = vld [vmem:[%s16090_s18 + $0x6d8] sm:$0xff]   ;;  %v13389_v2 = vld [vmem:[%s16090_s18 + $0x6d0] sm:$0xff]   ;;  %v13392_v60 = vld [vmem:[%s16090_s18 + $0x648] sm:$0xff]  }
0x35a4   :  { %v9640_v45 = vpop.f32.mrf.mxu0  ;;  %v9683_v23 = vpop.f32.mrf.mxu1  ;;  %v13386_v46 = vld [vmem:[%s16090_s18 + $0x618] sm:$0xff]   ;;  %v13390_v15 = vld [vmem:[%s16090_s18 + $0x610] sm:$0xff]  }
0x35a5   :  { %v9641_v20 = vadd.f32 %v9640_v45, %v9547_v52  ;;  %v9684_v10 = vadd.f32 %v9683_v23, %v9555_v54  ;;  %v9690_v47 = vmax.f32 %v9639_v51, 0.0  ;;  %v9692_v22 = vmax.f32 %v9682_v17, 0.0  ;;  %v13383_v52 = vld [vmem:[%s16090_s18 + $0x6a0] sm:$0xff]   ;;  %v13384_v54 = vld [vmem:[%s16090_s18 + $0x658] sm:$0xff]   ;;  %v13391_v36 = vld [vmem:[%s16090_s18 + $0x690] sm:$0xff]  }
0x35a6   :  { %v13393_v51 = vld [vmem:[%s16090_s18 + $0x6c8] sm:$0xff]   ;;  %v13397_v45 = vld [vmem:[%s16090_s18 + $0x6c0] sm:$0xff]  }
0x35a7   :  { %v9691_v12 = vmax.f32 %v9641_v20, 0.0  ;;  %v9693_v61 = vmax.f32 %v9684_v10, 0.0  ;;  %v9694_v32 = vpack.c.bf16 %v9690_v47, %v9686_v11  ;;  %v9696_v35 = vpack.c.bf16 %v9692_v22, %v9688_v24  ;;  %v13394_v17 = vld [vmem:[%s16090_s18 + $0x608] sm:$0xff]   ;;  %v13398_v23 = vld [vmem:[%s16090_s18 + $0x600] sm:$0xff]   ;;  %v15869_v10 = vld [vmem:[%s16089_s16 + $0x1b0] sm:$0xff] }
0x35a8   :  { %v13399_v20 = vld [vmem:[%s16090_s18 + $0x680] sm:$0xff]   ;;  %v15874_v47 = vld [vmem:[%s16089_s16 + $0x1f0] sm:$0xff]  ;;  %v15879_v22 = vld [vmem:[%s16089_s16 + $0x1b8] sm:$0xff] }
0x35a9   :  { %v9695_v16 = vpack.c.bf16 %v9691_v12, %v9687_v28  ;;  %v9697_v55 = vpack.c.bf16 %v9693_v61, %v9689_v49  ;;  %v11927_v25 = vcombine.high %v15869_v10, %v15874_v47  ;;  %v11926_v28 = vcombine.low %v15869_v10, %v15874_v47  ;;  %v13402_v10 = vld [vmem:[%s16090_s18 + $0x738] sm:$0xff]  }
0x35aa   :  { %v11928_v49 = vcombine.low %v15879_v22, %v15886_v26  ;;  %v11929_v12 = vcombine.high %v15879_v22, %v15886_v26  ;;  %v13403_v47 = vld [vmem:[%s16090_s18 + $0x7b8] sm:$0xff]   ;;  %v13404_v22 = vld [vmem:[%s16090_s18 + $0x770] sm:$0xff]  }
0x35ab   :  { %9986 = vmatprep.mubr.bf16.mxu0 %v9695_v16  ;;  %10027 = vmatprep.mubr.bf16.mxu1 %v9697_v55  ;;  %v13406_v26 = vld [vmem:[%s16090_s18 + $0x730] sm:$0xff]  }
0x35ac   :  { %9987 = vmatmul.mubr.bf16.vlgmr.msra.gmra.mxu0 %v9694_v32  ;;  %10028 = vmatmul.mubr.bf16.vlgmr.msra.gmra.mxu1 %v9696_v35 }
0x35ad   :  { %10121 = vmatpush1.bf16.msra.mxu0 %v11811_v56  ;;  %10164 = vmatpush1.bf16.msra.mxu1 %v11813_v34  ;;  %v13370_v56 = vld [vmem:[%s16090_s18 + $0x638] sm:$0xff]  }
0x35ae   :  { %10122 = vmatprep.subr.bf16.mxu0 %v11808_v63  ;;  %10165 = vmatprep.subr.bf16.mxu1 %v11810_v8  ;;  %v13371_v34 = vld [vmem:[%s16090_s18 + $0x6b8] sm:$0xff]   ;;  %v9528_v63 = vadd.f32 %v11682_v57, %v15741_v43 }
0x35af   :  { %10140 = vmatprep.mubr.bf16.mxu0 %v13593_v0  ;;  %10183 = vmatprep.mubr.bf16.mxu1 %v13593_v0 }
0x35b1   :  { %10123 = vmatpush1.bf16.msra.mxu0 %v11807_v1  ;;  %10166 = vmatpush1.bf16.msra.mxu1 %v11809_v30 }
0x35b2   :  { %12490 = vmatprep.subr.bf16.mxu0 %v13368_v44  ;;  %12512 = vmatprep.subr.bf16.mxu1 %v13369_v39 }
0x35b4   :  { %11815 = vmatmul.mubr.msk.bf16.vlgmr.msra.gmra.mxu0 %vm211_vm3, %v15490_v29  ;;  %11816 = vmatmul.mubr.msk.bf16.vlgmr.msra.gmra.mxu1 %vm211_vm3, %v15490_v29 }
0x35b5   :  { %12491 = vmatpush3.bf16.msra.mxu0 %v13370_v56  ;;  %12513 = vmatpush3.bf16.msra.mxu1 %v13371_v34  ;;  %v11806_v34 = vld [vmem:[%s16091_s17 + $0x18] sm:$0xf] }
0x35b6   :  { %12492 = vmatprep.subr.bf16.mxu0 %v13372_v13  ;;  %12514 = vmatprep.subr.bf16.mxu1 %v13373_v9  ;;  %v10063_v43 = vrot.slane %v11806_v34, %v14465_v27 }
0x35b9   :  { %12493 = vmatpush3.bf16.msra.mxu0 %v13374_v5  ;;  %12515 = vmatpush3.bf16.msra.mxu1 %v13375_v59  ;;  %v9529_v5 = vadd.f32 %v11682_v57, %v15746_v53 }
0x35ba   :  { %12494 = vmatprep.subr.bf16.mxu0 %v13376_v33  ;;  %12516 = vmatprep.subr.bf16.mxu1 %v13377_v31  ;;  %v10055_v33 = vrot.slane %v11806_v34, %v14339_v18  ;;  %v10051_v31 = vrot.slane %v11806_v34, %v13870_v3 }
0x35bd   :  { %12495 = vmatpush3.bf16.msra.mxu0 %v13378_v37  ;;  %12517 = vmatpush3.bf16.msra.mxu1 %v13379_v42  ;;  %v10059_v37 = vrot.slane %v11806_v34, %v14468_v21  ;;  %v13412_v34 = vld [vmem:[%s16090_s18 + $0x760] sm:$0xff]  }
0x35be   :  { %12496 = vmatprep.subr.bf16.mxu0 %v13380_v41  ;;  %12518 = vmatprep.subr.bf16.mxu1 %v13381_v40 }
0x35c1   :  { %12497 = vmatpush3.bf16.msra.mxu0 %v13382_v62  ;;  %12519 = vmatpush3.bf16.msra.mxu1 %v13383_v52 }
0x35c2   :  { %12498 = vmatprep.subr.bf16.mxu0 %v13384_v54  ;;  %12520 = vmatprep.subr.bf16.mxu1 %v13385_v4 }
0x35c5   :  { %12499 = vmatpush3.bf16.msra.mxu0 %v13386_v46  ;;  %12521 = vmatpush3.bf16.msra.mxu1 %v13387_v7 }
0x35c6   :  { %12500 = vmatprep.subr.bf16.mxu0 %v13388_v38  ;;  %12522 = vmatprep.subr.bf16.mxu1 %v13389_v2 }
0x35c9   :  { %12501 = vmatpush3.bf16.msra.mxu0 %v13390_v15  ;;  %12523 = vmatpush3.bf16.msra.mxu1 %v13391_v36 }
0x35ca   :  { %12502 = vmatprep.subr.bf16.mxu0 %v13392_v60  ;;  %12524 = vmatprep.subr.bf16.mxu1 %v13393_v51 }
0x35cd   :  { %12503 = vmatpush3.bf16.msra.mxu0 %v13394_v17  ;;  %12525 = vmatpush3.bf16.msra.mxu1 %v13395_v48  ;;  %v11913_v48 = vld [vmem:[%s16089_s16 + $0x130] sm:$0xff] }
0x35ce   :  { %12504 = vmatprep.subr.bf16.mxu0 %v13396_v19  ;;  %12526 = vmatprep.subr.bf16.mxu1 %v13397_v45  ;;  %v11915_v19 = vld [vmem:[%s16089_s16 + $0x170] sm:$0xff] }
0x35d1   :  { %12505 = vmatpush3.bf16.msra.mxu0 %v13398_v23  ;;  %12527 = vmatpush3.bf16.msra.mxu1 %v13399_v20 }
0x35d2   :  { %10628 = vmatprep.subr.bf16.mxu0 %v11927_v25  ;;  %10671 = vmatprep.subr.bf16.mxu1 %v11929_v12  ;;  %v11914_v12 = vld [vmem:[%s16089_s16 + $0x138] sm:$0xff] }
0x366c   :  { %v12462_v61 = vpop.f32.mrf.mxu0  ;;  %v12484_v14 = vpop.f32.mrf.mxu1 }
0x366e   :  { %v12463_v11 = vpop.f32.mrf.mxu0  ;;  %v12485_v24 = vpop.f32.mrf.mxu1 }
0x366f   :  { %v12464_v16 = vadd.f32 %v12463_v11, %v12462_v61  ;;  %v12486_v55 = vadd.f32 %v12485_v24, %v12484_v14  ;;  %v11916_v61 = vld [vmem:[%s16089_s16 + $0x178] sm:$0xff] }
0x3670   :  { %v12465_v32 = vpop.f32.mrf.mxu0  ;;  %v12487_v35 = vpop.f32.mrf.mxu1 }
0x3671   :  { %v10030_v8 = vadd.f32 %v12486_v55, %v12464_v16 }
0x3672   :  { %v12466_v1 = vpop.f32.mrf.mxu0  ;;  %v12488_v30 = vpop.f32.mrf.mxu1 }
0x3673   :  { %v15898_v44 = vadd.f32 %v10030_v8, %v9528_v63  ;;  %v12467_v39 = vadd.f32 %v12466_v1, %v12465_v32  ;;  %v12489_v56 = vadd.f32 %v12488_v30, %v12487_v35  ;;  %v11923_v32 = vcombine.high %v11913_v48, %v11915_v19  ;;  %v13400_v1 = vld [vmem:[%s16090_s18 + $0x778] sm:$0xff]  }
0x3674   :  { %v10142_v13 = vpop.f32.mrf.mxu0  ;;  %v10185_v9 = vpop.f32.mrf.mxu1  ;;  %v11925_v35 = vcombine.high %v11914_v12, %v11916_v61  ;;  %v11922_v63 = vcombine.low %v11913_v48, %v11915_v19  ;;  %v11924_v8 = vcombine.low %v11914_v12, %v11916_v61  ;;  %v13401_v30 = vld [vmem:[%s16090_s18 + $0x7f8] sm:$0xff]  }
0x3675   :  { %v10033_v59 = vadd.f32 %v12489_v56, %v12467_v39  ;;  %v10143_v53 = vadd.f32 %v10142_v13, %v10051_v31  ;;  %v10186_v38 = vadd.f32 %v10185_v9, %v10059_v37  ;;  %v13410_v39 = vld [vmem:[%s16090_s18 + $0x728] sm:$0xff]   ;;  %v13413_v13 = vld [vmem:[%s16090_s18 + $0x7e0] sm:$0xff]  }
0x3676   :  { %v10144_v42 = vpop.f32.mrf.mxu0  ;;  %v10187_v41 = vpop.f32.mrf.mxu1  ;;  %v13411_v56 = vld [vmem:[%s16090_s18 + $0x7a8] sm:$0xff]   ;;  %v13414_v9 = vld [vmem:[%s16090_s18 + $0x720] sm:$0xff]  }
0x3677   :  { %v15908_v40 = vadd.f32 %v10033_v59, %v9529_v5  ;;  %v10145_v54 = vadd.f32 %v10144_v42, %v10055_v33  ;;  %v10188_v4 = vadd.f32 %v10187_v41, %v10063_v43  ;;  %v10194_v14 = vmax.f32 %v10143_v53, 0.0  ;;  %v13415_v5 = vld [vmem:[%s16090_s18 + $0x7a0] sm:$0xff]   ;;  %v13416_v59 = vld [vmem:[%s16090_s18 + $0x758] sm:$0xff]   ;;  %v13421_v42 = vld [vmem:[%s16090_s18 + $0x7d0] sm:$0xff]  }
0x3678   :  { %v10146_v62 = vpop.f32.mrf.mxu0  ;;  %v10189_v52 = vpop.f32.mrf.mxu1  ;;  %v10196_v57 = vmax.f32 %v10186_v38, 0.0  ;;  %v13422_v41 = vld [vmem:[%s16090_s18 + $0x710] sm:$0xff]   ;;  %v13429_v53 = vld [vmem:[%s16090_s18 + $0x7c0] sm:$0xff]  }
0x3679   :  { %v10147_v46 = vadd.f32 %v10146_v62, %v10051_v31  ;;  %v10190_v7 = vadd.f32 %v10189_v52, %v10059_v37  ;;  %v10195_v45 = vmax.f32 %v10145_v54, 0.0  ;;  %v10197_v23 = vmax.f32 %v10188_v4, 0.0  ;;  %v13419_v31 = vld [vmem:[%s16090_s18 + $0x798] sm:$0xff]   ;;  %v13420_v37 = vld [vmem:[%s16090_s18 + $0x750] sm:$0xff]   ;;  %v13424_v52 = vld [vmem:[%s16090_s18 + $0x748] sm:$0xff]  }
0x367a   :  { %v10148_v2 = vpop.f32.mrf.mxu0  ;;  %v10191_v15 = vpop.f32.mrf.mxu1  ;;  %v13423_v62 = vld [vmem:[%s16090_s18 + $0x790] sm:$0xff]   ;;  %v13425_v54 = vld [vmem:[%s16090_s18 + $0x7c8] sm:$0xff]   ;;  %v13430_v38 = vld [vmem:[%s16090_s18 + $0x700] sm:$0xff]  }
0x367b   :  { %v10149_v36 = vadd.f32 %v10148_v2, %v10055_v33  ;;  %v10192_v60 = vadd.f32 %v10191_v15, %v10063_v43  ;;  %v10198_v51 = vmax.f32 %v10147_v46, 0.0  ;;  %v10200_v17 = vmax.f32 %v10190_v7, 0.0  ;;  %v13417_v33 = vld [vmem:[%s16090_s18 + $0x7d8] sm:$0xff]   ;;  %v13426_v4 = vld [vmem:[%s16090_s18 + $0x708] sm:$0xff]   ;;  %v13428_v7 = vld [vmem:[%s16090_s18 + $0x740] sm:$0xff]  }
0x367c   :  { %v13418_v43 = vld [vmem:[%s16090_s18 + $0x718] sm:$0xff]   ;;  %v13427_v46 = vld [vmem:[%s16090_s18 + $0x788] sm:$0xff]   ;;  %v13431_v2 = vld [vmem:[%s16090_s18 + $0x780] sm:$0xff]  }
0x367d   :  { %v10199_v20 = vmax.f32 %v10149_v36, 0.0  ;;  %v10201_v25 = vmax.f32 %v10192_v60, 0.0  ;;  %v10202_v16 = vpack.c.bf16 %v10198_v51, %v10194_v14  ;;  %v10204_v55 = vpack.c.bf16 %v10200_v17, %v10196_v57  ;;  %v11921_v57 = vld [vmem:[%s16091_s17 + $0x1c] sm:$0xf] }
0x367f   :  { %v10203_v11 = vpack.c.bf16 %v10199_v20, %v10195_v45  ;;  %v10205_v24 = vpack.c.bf16 %v10201_v25, %v10197_v23 }
0x3681   :  { %10494 = vmatprep.mubr.bf16.mxu0 %v10203_v11  ;;  %10535 = vmatprep.mubr.bf16.mxu1 %v10205_v24 }
0x3682   :  { %10495 = vmatmul.mubr.bf16.vlgmr.msra.gmra.mxu0 %v10202_v16  ;;  %10536 = vmatmul.mubr.bf16.vlgmr.msra.gmra.mxu1 %v10204_v55  ;;  %v10563_v55 = vrot.slane %v11921_v57, %v14339_v18 }
0x3683   :  { %10629 = vmatpush1.bf16.msra.mxu0 %v11926_v28  ;;  %10672 = vmatpush1.bf16.msra.mxu1 %v11928_v49  ;;  %v13407_v28 = vld [vmem:[%s16090_s18 + $0x7b0] sm:$0xff]   ;;  %v13408_v49 = vld [vmem:[%s16090_s18 + $0x768] sm:$0xff]  }
0x3684   :  { %10630 = vmatprep.subr.bf16.mxu0 %v11923_v32  ;;  %10673 = vmatprep.subr.bf16.mxu1 %v11925_v35  ;;  %v10571_v32 = vrot.slane %v11921_v57, %v14465_v27  ;;  %v10559_v35 = vrot.slane %v11921_v57, %v13870_v3 }
0x3685   :  { %10648 = vmatprep.mubr.bf16.mxu0 %v13593_v0  ;;  %10691 = vmatprep.mubr.bf16.mxu1 %v13593_v0  ;;  %v13405_v0 = vld [vmem:[%s16090_s18 + $0x7f0] sm:$0xff]  }
0x3687   :  { %10631 = vmatpush1.bf16.msra.mxu0 %v11922_v63  ;;  %10674 = vmatpush1.bf16.msra.mxu1 %v11924_v8  ;;  %v10567_v63 = vrot.slane %v11921_v57, %v14468_v21 }
0x3688   :  { %12534 = vmatprep.subr.bf16.mxu0 %v13400_v1  ;;  %12556 = vmatprep.subr.bf16.mxu1 %v13401_v30 }
0x368a   :  { %11930 = vmatmul.mubr.msk.bf16.vlgmr.msra.gmra.mxu0 %vm211_vm3, %v15490_v29  ;;  %11931 = vmatmul.mubr.msk.bf16.vlgmr.msra.gmra.mxu1 %vm211_vm3, %v15490_v29  ;;  %v13409_v29 = vld [vmem:[%s16090_s18 + $0x7e8] sm:$0xff]  }
0x368b   :  { %12535 = vmatpush3.bf16.msra.mxu0 %v13402_v10  ;;  %12557 = vmatpush3.bf16.msra.mxu1 %v13403_v47 }
0x368c   :  { %12536 = vmatprep.subr.bf16.mxu0 %v13404_v22  ;;  %12558 = vmatprep.subr.bf16.mxu1 %v13405_v0 }
0x368f   :  { %12537 = vmatpush3.bf16.msra.mxu0 %v13406_v26  ;;  %12559 = vmatpush3.bf16.msra.mxu1 %v13407_v28 }
0x3690   :  { %12538 = vmatprep.subr.bf16.mxu0 %v13408_v49  ;;  %12560 = vmatprep.subr.bf16.mxu1 %v13409_v29 }
0x3693   :  { %12539 = vmatpush3.bf16.msra.mxu0 %v13410_v39  ;;  %12561 = vmatpush3.bf16.msra.mxu1 %v13411_v56 }
0x3694   :  { %12540 = vmatprep.subr.bf16.mxu0 %v13412_v34  ;;  %12562 = vmatprep.subr.bf16.mxu1 %v13413_v13 }
0x3697   :  { %12541 = vmatpush3.bf16.msra.mxu0 %v13414_v9  ;;  %12563 = vmatpush3.bf16.msra.mxu1 %v13415_v5 }
0x3698   :  { %12542 = vmatprep.subr.bf16.mxu0 %v13416_v59  ;;  %12564 = vmatprep.subr.bf16.mxu1 %v13417_v33 }
0x369b   :  { %12543 = vmatpush3.bf16.msra.mxu0 %v13418_v43  ;;  %12565 = vmatpush3.bf16.msra.mxu1 %v13419_v31 }
0x369c   :  { %12544 = vmatprep.subr.bf16.mxu0 %v13420_v37  ;;  %12566 = vmatprep.subr.bf16.mxu1 %v13421_v42 }
0x369f   :  { %12545 = vmatpush3.bf16.msra.mxu0 %v13422_v41  ;;  %12567 = vmatpush3.bf16.msra.mxu1 %v13423_v62 }
0x36a0   :  { %12546 = vmatprep.subr.bf16.mxu0 %v13424_v52  ;;  %12568 = vmatprep.subr.bf16.mxu1 %v13425_v54 }
0x36a3   :  { %12547 = vmatpush3.bf16.msra.mxu0 %v13426_v4  ;;  %12569 = vmatpush3.bf16.msra.mxu1 %v13427_v46 }
0x36a4   :  { %12548 = vmatprep.subr.bf16.mxu0 %v13428_v7  ;;  %12570 = vmatprep.subr.bf16.mxu1 %v13429_v53 }
0x36a7   :  { %12549 = vmatpush3.bf16.msra.mxu0 %v13430_v38  ;;  %12571 = vmatpush3.bf16.msra.mxu1 %v13431_v2 }
0x36a8   :  { %13064 = vmatprep.subr.bf16.mxu0 %v13594_v6 }
0x3742   :  { %v12506_v15 = vpop.f32.mrf.mxu0  ;;  %v12528_v36 = vpop.f32.mrf.mxu1 }
0x3744   :  { %v12507_v60 = vpop.f32.mrf.mxu0  ;;  %v12529_v51 = vpop.f32.mrf.mxu1 }
0x3745   :  { %v12508_v17 = vadd.f32 %v12507_v60, %v12506_v15  ;;  %v12530_v48 = vadd.f32 %v12529_v51, %v12528_v36 }
0x3746   :  { %v12509_v19 = vpop.f32.mrf.mxu0  ;;  %v12531_v45 = vpop.f32.mrf.mxu1 }
0x3747   :  { %v10538_v23 = vadd.f32 %v12530_v48, %v12508_v17 }
0x3748   :  { %v12510_v20 = vpop.f32.mrf.mxu0  ;;  %v12532_v25 = vpop.f32.mrf.mxu1 }
0x3749   :  { %v10544_v12 = vadd.f32 %v10538_v23, %v15898_v44  ;;  %v12511_v61 = vadd.f32 %v12510_v20, %v12509_v19  ;;  %v12533_v14 = vadd.f32 %v12532_v25, %v12531_v45 }
0x374a   :  { %v10650_v11 = vpop.f32.mrf.mxu0  ;;  %v10693_v24 = vpop.f32.mrf.mxu1 }
0x374b   :  { %v10541_v16 = vadd.f32 %v12533_v14, %v12511_v61  ;;  %v10651_v28 = vadd.f32 %v10650_v11, %v10559_v35  ;;  %v10694_v49 = vadd.f32 %v10693_v24, %v10567_v63  ;;  %v13433_v14 = vld [vmem:[%s16093_s20] sm:$0xff]  }
0x374c   :  { %v10652_v8 = vpop.f32.mrf.mxu0  ;;  %v10695_v1 = vpop.f32.mrf.mxu1 }
0x374d   :  { %v10545_v44 = vadd.f32 %v10541_v16, %v15908_v40  ;;  %v10653_v47 = vadd.f32 %v10652_v8, %v10563_v55  ;;  %v10696_v22 = vadd.f32 %v10695_v1, %v10571_v32  ;;  %v10702_v59 = vmax.f32 %v10651_v28, 0.0 }
0x374e   :  { %v10654_v30 = vpop.f32.mrf.mxu0  ;;  %v10697_v10 = vpop.f32.mrf.mxu1  ;;  %v10704_v40 = vmax.f32 %v10694_v49, 0.0 }
0x374f   :  { %v10655_v0 = vadd.f32 %v10654_v30, %v10559_v35  ;;  %v10698_v26 = vadd.f32 %v10697_v10, %v10567_v63  ;;  %v10703_v34 = vmax.f32 %v10653_v47, 0.0  ;;  %v10705_v13 = vmax.f32 %v10696_v22, 0.0 }
0x3750   :  { %v10656_v29 = vpop.f32.mrf.mxu0  ;;  %v10699_v18 = vpop.f32.mrf.mxu1 }
0x3751   :  { %v10657_v39 = vadd.f32 %v10656_v29, %v10563_v55  ;;  %v10700_v27 = vadd.f32 %v10699_v18, %v10571_v32  ;;  %v10706_v56 = vmax.f32 %v10655_v0, 0.0  ;;  %v10708_v3 = vmax.f32 %v10698_v26, 0.0  ;;  %v13592_v29 = vld [vmem:[%s16085_s15 + $0x4] sm:$0x7]  ;;  %s16135_s15 = sld [smem:[#allocation9_spill]] }
0x3752   :  { %v11095_v18 = vrot.slane %v13592_v29, %v14468_v21 }
0x3753   :  { %v10707_v9 = vmax.f32 %v10657_v39, 0.0  ;;  %v10709_v5 = vmax.f32 %v10700_v27, 0.0  ;;  %v10710_v31 = vpack.c.bf16 %v10706_v56, %v10702_v59  ;;  %v10712_v37 = vpack.c.bf16 %v10708_v3, %v10704_v40 }
0x3755   :  { %v10711_v33 = vpack.c.bf16 %v10707_v9, %v10703_v34  ;;  %v10713_v43 = vpack.c.bf16 %v10709_v5, %v10705_v13  ;;  %v12028_v9 = vld [vmem:[%s16094_s21] ss:$0 sm:$0xff] }
0x3757   :  { %11002 = vmatprep.mubr.bf16.mxu0 %v10711_v33  ;;  %11043 = vmatprep.mubr.bf16.mxu1 %v10713_v43 }
0x3758   :  { %11003 = vmatmul.mubr.bf16.vlgmr.msra.gmra.mxu0 %v10710_v31  ;;  %11044 = vmatmul.mubr.bf16.vlgmr.msra.gmra.mxu1 %v10712_v37 }
0x3759   :  { %13068 = vmatprep.mubr.msk.bf16.mxu0 %vm13596_vm2, %v13594_v6 }
0x3818   :  { %v12550_v42 = vpop.f32.mrf.mxu0  ;;  %v12572_v41 = vpop.f32.mrf.mxu1 }
0x381a   :  { %v12551_v62 = vpop.f32.mrf.mxu0  ;;  %v12573_v52 = vpop.f32.mrf.mxu1 }
0x381b   :  { %v12552_v54 = vadd.f32 %v12551_v62, %v12550_v42  ;;  %v12574_v4 = vadd.f32 %v12573_v52, %v12572_v41 }
0x381c   :  { %v12553_v46 = vpop.f32.mrf.mxu0  ;;  %v12575_v7 = vpop.f32.mrf.mxu1 }
0x381d   :  { %v11046_v53 = vadd.f32 %v12574_v4, %v12552_v54 }
0x381e   :  { %v12554_v38 = vpop.f32.mrf.mxu0  ;;  %v12576_v2 = vpop.f32.mrf.mxu1 }
0x381f   :  { %v11052_v15 = vadd.f32 %v11046_v53, %v10544_v12  ;;  %v12555_v36 = vadd.f32 %v12554_v38, %v12553_v46  ;;  %v12577_v60 = vadd.f32 %v12576_v2, %v12575_v7 }
0x3821   :  { %v11049_v51 = vadd.f32 %v12577_v60, %v12555_v36  ;;  %v11054_v17 = vadd.f32 %v11052_v15, %v15480_v58  ;;  %v13432_v58 = vld [vmem:[%s16093_s20 + $0x8] sm:$0xff]  }
0x3822   :  { %13065 = vmatpush3.bf16.msra.mxu0 %v13432_v58 }
0x3823   :  { %v11053_v48 = vadd.f32 %v11049_v51, %v10545_v44  ;;  %v11056_v19 = vsel %vm211_vm3, %v11054_v17, 0.0  ;;  %v11064_v45 = vmul.f32 %v11054_v17, %v11054_v17  ;;  %13066 = vmatprep.subr.bf16.mxu0 %v13594_v6  ;;  %v13591_v6 = vld [vmem:[%s16084_s14 + $0x4] sm:$0x7] }
0x3824   :  { %11057 = vadd.xlane.f32.xlu0 %v11056_v19  ;;  %v11089_v0 = vrot.slane %v13591_v6, %v14468_v21 }
0x3825   :  { %v11055_v23 = vadd.f32 %v11053_v48, %v15478_v50  ;;  %v11066_v25 = vsel %vm211_vm3, %v11064_v45, 0.0 }
0x3826   :  { %13067 = vmatpush3.bf16.msra.mxu0 %v13433_v14 }
0x3827   :  { %v11059_v20 = vsel %vm211_vm3, %v11055_v23, 0.0  ;;  %v11065_v61 = vmul.f32 %v11055_v23, %v11055_v23 }
0x3828   :  { %11060 = vadd.xlane.f32.xlu1 %v11059_v20  ;;  %11067 = vadd.xlane.f32.xlu0 %v11066_v25 }
0x3829   :  { %v11069_v12 = vsel %vm211_vm3, %v11065_v61, 0.0 }
0x382c   :  { %11070 = vadd.xlane.f32.xlu1 %v11069_v12 }
0x38ad   :  { %v11058_v50 = vpop.xlane.xlu0 %11057 }
0x38ae   :  { %v11062_v57 = vmul.f32 0.03125, %v11058_v50 }
0x38b0   :  { %v11074_v16 = vmul.f32 %v11062_v57, %v11062_v57  ;;  %v11078_v47 = vsub.f32 %v11054_v17, %v11062_v57 }
0x38b1   :  { %v11061_v11 = vpop.xlane.xlu1 %11060  ;;  %v11068_v24 = vpop.xlane.xlu0 %11067 }
0x38b2   :  { %v11063_v55 = vmul.f32 0.03125, %v11061_v11  ;;  %v11072_v32 = vmul.f32 0.03125, %v11068_v24 }
0x38b4   :  { %v11076_v35 = vsub.f32 %v11072_v32, %v11074_v16  ;;  %v11075_v8 = vmul.f32 %v11063_v55, %v11063_v55  ;;  %v11079_v28 = vsub.f32 %v11055_v23, %v11063_v55 }
0x38b5   :  { %v11071_v63 = vpop.xlane.xlu1 %11070 }
0x38b6   :  { %v11080_v1 = vadd.f32 1e-05, %v11076_v35  ;;  %v11073_v44 = vmul.f32 0.03125, %v11071_v63 }
0x38b8   :  { %13582 = vrsqrt.f32 %v11080_v1  ;;  %v11077_v30 = vsub.f32 %v11073_v44, %v11075_v8 }
0x38ba   :  { %v11081_v10 = vadd.f32 1e-05, %v11077_v30 }
0x38bc   :  { %13584 = vrsqrt.f32 %v11081_v10 }
0x38c5   :  { %v13583_v22 = vpop.eup %13582 }
0x38c6   :  { %v11084_v26 = vmul.f32 %v13583_v22, %v11078_v47 }
0x38c8   :  { %v11090_v39 = vmul.f32 %v11089_v0, %v11084_v26 }
0x38c9   :  { %v13585_v49 = vpop.eup %13584 }
0x38ca   :  { %v11085_v27 = vmul.f32 %v13585_v49, %v11079_v28  ;;  %v11096_v3 = vadd.f32 %v11095_v18, %v11090_v39 }
0x38cc   :  { %v11091_v56 = vmul.f32 %v11089_v0, %v11085_v27 }
0x38ce   :  { %v11097_v34 = vadd.f32 %v11095_v18, %v11091_v56 }
0x38d0   :  { %v11098_v13 = vpack.c.bf16 %v11097_v34, %v11096_v3 }
0x38d2   :  { %13069 = vmatmul.mubr.msk.bf16.vlgmr.msra.gmra.mxu0 %vm211_vm3, %v11098_v13 }
0x3992   :  { %v11159_v5 = vpop.f32.mrf.mxu0 }
0x3993   :  { %v11160_v59 = vadd.f32 %v12028_v9, %v11159_v5 }
0x3994   :  { %v13070_v40 = vpop.f32.mrf.mxu0 }
0x3995   :  { %11166 = vst [vmem:[%s16135_s15] sm:$0xff] %v11160_v59 }
0x3996   :  { %v11162_v21 = vpop.f32.mrf.mxu0 }
0x3997   :  { %v11163_v33 = vadd.f32 %v12028_v9, %v11162_v21 }
0x3998   :  { %v13071_v43 = vpop.f32.mrf.mxu0 }
0x3999   :  { %11167 = vst [vmem:[%s16135_s15 + $0x8] sm:$0xff] %v11163_v33 }

</bundles_post_ra>
